<compile_context>
chip_gen: v7x
topology: tpu7x:2x2x1
jax: 0.10.0
libtpu: 0.0.40
codegen_flags: <defaults>
</compile_context>

<pallas_src>
import functools
import math

import jax
import jax.numpy as jnp
import numpy as np
from jax.experimental import pallas as pl
from jax.experimental.pallas import tpu as pltpu

# ---------------- model hyper-parameters (small test sizes) ------------------
NUM_LAYERS = 2
INPUT_DIM = 16          # input_dim
NUM_HEADS = 2           # num_heads
HEAD_DIM = 8            # head_dim
PROJ_FACTOR = 2         # projection_factor
KER_SIZE = 4            # kernel_size of the causal conv

HID_DIM = NUM_HEADS * HEAD_DIM            # 16
PROJ_DIM = PROJ_FACTOR * INPUT_DIM        # 32
CFLAT = NUM_HEADS * HEAD_DIM * HEAD_DIM   # 128  (lane-dense flat C per batch row)

SEQ = 8
BATCH = 2
EPS = 1e-5

# original (unfused) parameter names -- used by init and the pure-jnp reference
WEIGHT_NAMES = [
    "ln_w", "ln_b",
    "up_l_w", "up_l_b",
    "up_r_w", "up_r_b",
    "conv_mat", "conv_b",
    "skip_w",
    "wq_w", "wq_b",
    "wk_w", "wk_b",
    "wv_w", "wv_b",
    "wi_w", "wi_b",
    "wf_w", "wf_b",
    "wo_w", "wo_b",
    "gn_w", "gn_b",
    "down_w", "down_b",
]

# fused parameter names consumed by the kernel
FUSED_NAMES = [
    "ln_w", "ln_b",
    "w_up", "b_up",          # [up_l | up_r]
    "conv_mat", "conv_b",
    "w_xc", "b_xc",          # [q | k/sqrt(Dh) | skip | i | f]   (consume x_c)
    "w_xt", "b_xt",          # [v | o]                           (consume x_t)
    "gn_w", "gn_b",
    "down_w", "down_b",
]
NUM_FUSED = len(FUSED_NAMES)

# constant selector matrices passed as kernel inputs (loaded at point of use)
CONST_NAMES = ["e_hd", "e_col", "e_row", "e_cfhd"]
NUM_CONSTS = len(CONST_NAMES)


def _silu(x):
    return x * jax.nn.sigmoid(x)


def _dot(a, b):
    return jnp.dot(a, b, preferred_element_type=jnp.float32)


def _dot_t(a, b):
    """a @ b.T -- contract the last dim of both (rhs kept in stored layout)."""
    return jax.lax.dot_general(a, b, (((1,), (1,)), ((), ())),
                               preferred_element_type=jnp.float32)


# ----------------------- constant selector matrices --------------------------
def build_selectors():
    """0/1 selector matrices for head-batched expand / tile / reduce.

    Flat C index: f = h*Dh*Dh + i*Dh + j  (head h, row i pairs with v, col j
    pairs with k/q).  HD index: p = h*Dh + (i or j).
      e_hd   (H, HD):    expand per-head scalars to the Dh lanes of that head
                         (used transposed for per-head reductions via NT dot)
      e_col  (HD, CF):   place k/q[h*Dh+j] on flat lane f = h*Dh*Dh+i*Dh+j
      e_row  (HD, CF):   place v[p] on every flat lane with f//Dh == p
                         (used transposed for the C.q contraction via NT dot)
      e_cfhd (H, CF+HD): [per-head -> flat-C expansion | per-head -> HD expansion]
    """
    dh, dh2 = HEAD_DIM, HEAD_DIM * HEAD_DIM
    h_idx = np.arange(NUM_HEADS)
    hd_idx = np.arange(HID_DIM)
    cf_idx = np.arange(CFLAT)

    e_hd = (hd_idx[None, :] // dh == h_idx[:, None]).astype(np.float32)
    e_cf = (cf_idx[None, :] // dh2 == h_idx[:, None]).astype(np.float32)
    e_row = (cf_idx[None, :] // dh == hd_idx[:, None]).astype(np.float32)
    e_col = ((cf_idx[None, :] // dh2) * dh + cf_idx[None, :] % dh
             == hd_idx[:, None]).astype(np.float32)
    e_cfhd = np.concatenate([e_cf, e_hd], axis=1)

    return {"e_hd": jnp.asarray(e_hd), "e_col": jnp.asarray(e_col),
            "e_row": jnp.asarray(e_row), "e_cfhd": jnp.asarray(e_cfhd)}


# ---------------- input-side projections of one mLSTM block ------------------
def _layer_input_proj(x_rows, wref, l, cref):
    """Everything that depends only on the block input (no recurrent state).

    x_rows: (M, D)  -> dict of (M, .) arrays.  For layer 0 this is called once
    with M = T*B (hoisted across time); for deeper layers per-step with M = B.
    """
    ln_w = wref["ln_w"][l]
    ln_b = wref["ln_b"][l]

    # LayerNorm over the feature dim
    mu = jnp.mean(x_rows, axis=-1, keepdims=True)
    var = jnp.mean((x_rows - mu) ** 2, axis=-1, keepdims=True)
    x_n = (x_rows - mu) * jax.lax.rsqrt(var + EPS) * ln_w + ln_b

    # fused up-projection:  [x_t | r_t]
    y_up = _dot(x_n, wref["w_up"][l]) + wref["b_up"][l]          # (M, PD+HD)
    x_t = y_up[:, :PROJ_DIM]
    r_t = y_up[:, PROJ_DIM:]

    # causal K-tap conv folded into a banded (PD, PD) matmul, then SiLU
    x_c = _silu(_dot(x_t, wref["conv_mat"][l]) + wref["conv_b"][l])

    # fused gate projections
    y_c = _dot(x_c, wref["w_xc"][l]) + wref["b_xc"][l]           # (M, 3HD+2H)
    q_all = y_c[:, :HID_DIM]
    k_all = y_c[:, HID_DIM:2 * HID_DIM]                          # 1/sqrt(Dh) pre-folded
    skip = y_c[:, 2 * HID_DIM:3 * HID_DIM]
    i_pre = y_c[:, 3 * HID_DIM:3 * HID_DIM + NUM_HEADS]
    f_pre = y_c[:, 3 * HID_DIM + NUM_HEADS:3 * HID_DIM + 2 * NUM_HEADS]

    y_t = _dot(x_t, wref["w_xt"][l]) + wref["b_xt"][l]           # (M, 2HD)
    v_all = y_t[:, :HID_DIM]
    o_sig = jax.nn.sigmoid(y_t[:, HID_DIM:])

    # per-head expansion into the lane-dense flat-C layout
    e_col = cref["e_col"][...]
    q_col = _dot(q_all, e_col)                                   # (M, CF)
    k_col = _dot(k_all, e_col)                                   # (M, CF)
    vk = _dot(v_all, cref["e_row"][...]) * k_col                 # v_i * k_j  (M, CF)

    return {"q_all": q_all, "k_all": k_all, "skip": skip,
            "i_pre": i_pre, "f_pre": f_pre, "o_sig": o_sig,
            "q_col": q_col, "vk": vk, "silu_r": _silu(r_t)}


# ------------- recurrent tail of one mLSTM block (one timestep) --------------
def _recurrent_tail(pre_t, x_res, c_prev, n_prev, m_prev, wref, l, cref):
    """pre_t: dict of (B, .) precomputed projections for this timestep."""
    e_hd = cref["e_hd"][...]          # (H, HD)
    e_cfhd = cref["e_cfhd"][...]      # (H, CF+HD)
    e_row = cref["e_row"][...]        # (HD, CF)

    i_pre, f_pre = pre_t["i_pre"], pre_t["f_pre"]

    # stabilized exponential gates (B, H)
    m_t = jnp.maximum(f_pre + m_prev, i_pre)
    i_g = jnp.exp(i_pre - m_t)
    f_g = jnp.exp(f_pre - m_t + m_prev)

    # expand gates per head: one merged RHS -> [flat-C lanes | HD lanes]
    f_x = _dot(f_g, e_cfhd)                                      # (B, CF+HD)
    i_x = _dot(i_g, e_cfhd)
    f_cf, f_hd = f_x[:, :CFLAT], f_x[:, CFLAT:]
    i_cf, i_hd = i_x[:, :CFLAT], i_x[:, CFLAT:]

    # head-batched matrix-memory update in the lane-dense flat layout
    c_new = f_cf * c_prev + i_cf * pre_t["vk"]                   # (B, CF)
    n_new = f_hd * n_prev + i_hd * pre_t["k_all"]                # (B, HD)

    # C_t q_t (per head-row) and n_t . q_t (per head) via NT dots
    num = _dot_t(c_new * pre_t["q_col"], e_row)                  # (B, HD)
    den = jnp.maximum(jnp.abs(_dot_t(n_new * pre_t["q_all"], e_hd)), 1.0)  # (B, H)
    # NOTE: pl.reciprocal(den, approx=True) would move this onto the EUP slot;
    # kept exact here to preserve tight parity with the f32 reference.
    inv_hd = _dot(pl.reciprocal(den), e_hd)                      # (B, HD)
    h_t = pre_t["o_sig"] * num * inv_hd

    # GroupNorm(num_groups=H) == per-head normalization + affine
    mean_h = _dot_t(h_t, e_hd) * (1.0 / HEAD_DIM)                # (B, H)
    cent = h_t - _dot(mean_h, e_hd)
    var_h = _dot_t(cent * cent, e_hd) * (1.0 / HEAD_DIM)         # (B, H)
    h_gn = (cent * jax.lax.rsqrt(_dot(var_h, e_hd) + EPS)
            * wref["gn_w"][l] + wref["gn_b"][l])

    out = (h_gn + pre_t["skip"]) * pre_t["silu_r"]
    out = _dot(out, wref["down_w"][l]) + wref["down_b"][l]       # (B, D)
    return out + x_res, c_new, n_new, m_t


# -------------------------------- Pallas kernel ------------------------------
def xlstm_kernel(*refs, seq_len, batch):
    # inputs: x_flat, c0, n0, m0, <4 selector consts>, <14 fused weights>
    # outputs: out_flat, c, n, m
    x_ref, c0_ref, n0_ref, m0_ref = refs[0:4]
    cref = dict(zip(CONST_NAMES, refs[4:4 + NUM_CONSTS]))
    wref = dict(zip(FUSED_NAMES, refs[4 + NUM_CONSTS:4 + NUM_CONSTS + NUM_FUSED]))
    out_ref, c_ref, n_ref, m_ref = refs[4 + NUM_CONSTS + NUM_FUSED:]

    x_all = x_ref[...]                                  # (T*B, D), lane-dense

    # layer 0's input-side work hoisted across ALL timesteps (T*B rows at once)
    pre0 = _layer_input_proj(x_all, wref, 0, cref)

    # initial recurrent state, lane-dense: C (B,128), n (B,16), m (B,H)
    state = [(c0_ref[l], n0_ref[l], m0_ref[l]) for l in range(NUM_LAYERS)]

    out_rows = []
    for t in range(seq_len):                            # fully unrolled (static)
        r0, r1 = t * batch, (t + 1) * batch
        x_rows = x_all[r0:r1]
        pre_t = {k: v[r0:r1] for k, v in pre0.items()}

        c_l, n_l, m_l = state[0]
        inp, c_l, n_l, m_l = _recurrent_tail(pre_t, x_rows, c_l, n_l, m_l,
                                             wref, 0, cref)
        state[0] = (c_l, n_l, m_l)

        for l in range(1, NUM_LAYERS):                  # deeper layers: fully serial
            pre_l = _layer_input_proj(inp, wref, l, cref)
            c_l, n_l, m_l = state[l]
            inp, c_l, n_l, m_l = _recurrent_tail(pre_l, inp, c_l, n_l, m_l,
                                                 wref, l, cref)
            state[l] = (c_l, n_l, m_l)

        out_rows.append(inp)

    # single lane/sublane-dense store of the whole output slab
    out_ref[...] = jnp.concatenate(out_rows, axis=0)    # (T*B, D)

    for l in range(NUM_LAYERS):
        c_l, n_l, m_l = state[l]
        c_ref[l] = c_l
        n_ref[l] = n_l
        m_ref[l] = m_l


# --------------------------- weight packing (wrapper) ------------------------
def pack_params(p):
    """Fuse the per-layer projection weights into 3 wide matmuls."""
    inv = 1.0 / math.sqrt(HEAD_DIM)
    zeros_skip_b = jnp.zeros((NUM_LAYERS, 1, HID_DIM), jnp.float32)
    return {
        "ln_w": p["ln_w"], "ln_b": p["ln_b"],
        "w_up": jnp.concatenate([p["up_l_w"], p["up_r_w"]], axis=-1),
        "b_up": jnp.concatenate([p["up_l_b"], p["up_r_b"]], axis=-1),
        "conv_mat": p["conv_mat"], "conv_b": p["conv_b"],
        "w_xc": jnp.concatenate([p["wq_w"], p["wk_w"] * inv, p["skip_w"],
                                 p["wi_w"], p["wf_w"]], axis=-1),
        "b_xc": jnp.concatenate([p["wq_b"], p["wk_b"] * inv, zeros_skip_b,
                                 p["wi_b"], p["wf_b"]], axis=-1),
        "w_xt": jnp.concatenate([p["wv_w"], p["wo_w"]], axis=-1),
        "b_xt": jnp.concatenate([p["wv_b"], p["wo_b"]], axis=-1),
        "gn_w": p["gn_w"], "gn_b": p["gn_b"],
        "down_w": p["down_w"], "down_b": p["down_b"],
    }


def xlstm_forward(x, params, hid=None):
    T, B, D = x.shape
    if hid is None:
        c0_i = jnp.zeros((NUM_LAYERS, B, CFLAT), jnp.float32)
        n0_i = jnp.ones((NUM_LAYERS, B, HID_DIM), jnp.float32)
        m0_i = jnp.zeros((NUM_LAYERS, B, NUM_HEADS), jnp.float32)
    else:
        c0, n0, m0 = hid
        c0_i = c0.reshape(NUM_LAYERS, B, CFLAT).astype(jnp.float32)
        n0_i = n0.reshape(NUM_LAYERS, B, HID_DIM).astype(jnp.float32)
        m0_i = m0.astype(jnp.float32)

    x_flat = x.reshape(T * B, D).astype(jnp.float32)    # lane/sublane-dense slab
    consts = build_selectors()
    fused = pack_params(params)

    in_arrays = ([x_flat, c0_i, n0_i, m0_i]
                 + [consts[n] for n in CONST_NAMES]
                 + [fused[n] for n in FUSED_NAMES])

    def full_spec(shape):
        nd = len(shape)
        return pl.BlockSpec(tuple(shape), lambda i, _nd=nd: (0,) * _nd)

    in_specs = [full_spec(a.shape) for a in in_arrays]
    out_shape = (jax.ShapeDtypeStruct((T * B, D), jnp.float32),
                 jax.ShapeDtypeStruct(c0_i.shape, jnp.float32),
                 jax.ShapeDtypeStruct(n0_i.shape, jnp.float32),
                 jax.ShapeDtypeStruct(m0_i.shape, jnp.float32))
    out_specs = (full_spec((T * B, D)), full_spec(c0_i.shape),
                 full_spec(n0_i.shape), full_spec(m0_i.shape))

    fn = pl.pallas_call(
        functools.partial(xlstm_kernel, seq_len=T, batch=B),
        grid=(1,),                                   # T loop is in-kernel, unrolled
        in_specs=in_specs,
        out_specs=out_specs,
        out_shape=out_shape,
        compiler_params=pltpu.CompilerParams(
            dimension_semantics=("arbitrary",)),
    )
    out_flat, c_i, n_i, m = fn(*in_arrays)
    out = out_flat.reshape(T, B, D)
    c = c_i.reshape(NUM_LAYERS, B, NUM_HEADS, HEAD_DIM, HEAD_DIM)
    n = n_i.reshape(NUM_LAYERS, B, NUM_HEADS, HEAD_DIM)
    return out, (c, n, m)


# --------------------------- pure-jnp reference ------------------------------
def _mlstm_layer_step_ref(inp, c_prev_heads, n_prev_heads, m_prev, w):
    """Independent (per-head, unfused) reference implementation."""
    inv_sqrt_dh = 1.0 / math.sqrt(HEAD_DIM)
    dot = functools.partial(jnp.dot, preferred_element_type=jnp.float32)

    mu = jnp.mean(inp, axis=-1, keepdims=True)
    var = jnp.mean((inp - mu) ** 2, axis=-1, keepdims=True)
    x_n = (inp - mu) * jax.lax.rsqrt(var + EPS) * w["ln_w"] + w["ln_b"]

    x_t = dot(x_n, w["up_l_w"]) + w["up_l_b"]
    r_t = dot(x_n, w["up_r_w"]) + w["up_r_b"]
    x_c = _silu(dot(x_t, w["conv_mat"]) + w["conv_b"])

    q_all = dot(x_c, w["wq_w"]) + w["wq_b"]
    k_all = (dot(x_c, w["wk_w"]) + w["wk_b"]) * inv_sqrt_dh
    v_all = dot(x_t, w["wv_w"]) + w["wv_b"]
    i_pre = dot(x_c, w["wi_w"]) + w["wi_b"]
    f_pre = dot(x_c, w["wf_w"]) + w["wf_b"]
    o_all = jax.nn.sigmoid(dot(x_t, w["wo_w"]) + w["wo_b"])

    m_t = jnp.maximum(f_pre + m_prev, i_pre)
    i_g = jnp.exp(i_pre - m_t)
    f_g = jnp.exp(f_pre - m_t + m_prev)

    h_heads, c_heads, n_heads = [], [], []
    for h in range(NUM_HEADS):
        sl = slice(h * HEAD_DIM, (h + 1) * HEAD_DIM)
        qh, kh, vh = q_all[:, sl], k_all[:, sl], v_all[:, sl]
        fgh, igh = f_g[:, h:h + 1], i_g[:, h:h + 1]
        c_h = (fgh[:, :, None] * c_prev_heads[h]
               + igh[:, :, None] * (vh[:, :, None] * kh[:, None, :]))
        n_h = fgh * n_prev_heads[h] + igh * kh
        num = jnp.sum(c_h * qh[:, None, :], axis=-1)
        den = jnp.maximum(jnp.abs(jnp.sum(n_h * qh, axis=-1, keepdims=True)), 1.0)
        h_h = o_all[:, sl] * (num / den)
        g_mu = jnp.mean(h_h, axis=-1, keepdims=True)
        g_var = jnp.mean((h_h - g_mu) ** 2, axis=-1, keepdims=True)
        h_heads.append((h_h - g_mu) * jax.lax.rsqrt(g_var + EPS))
        c_heads.append(c_h)
        n_heads.append(n_h)

    h_gn = jnp.concatenate(h_heads, axis=-1) * w["gn_w"] + w["gn_b"]
    skip = dot(x_c, w["skip_w"])
    out = (h_gn + skip) * _silu(r_t)
    out = dot(out, w["down_w"]) + w["down_b"]
    return out + inp, c_heads, n_heads, m_t


def reference_forward(x, params, c0, n0, m0):
    T = x.shape[0]
    c, n, m = c0, n0, m0
    outs = []
    for t in range(T):
        inp = x[t]
        c_new, n_new, m_new = [], [], []
        for l in range(NUM_LAYERS):
            w_l = {name: params[name][l] for name in WEIGHT_NAMES}
            c_prev_heads = [c[l, :, h] for h in range(NUM_HEADS)]
            n_prev_heads = [n[l, :, h] for h in range(NUM_HEADS)]
            inp, c_heads, n_heads, m_t = _mlstm_layer_step_ref(
                inp, c_prev_heads, n_prev_heads, m[l], w_l)
            c_new.append(jnp.stack(c_heads, axis=1))
            n_new.append(jnp.stack(n_heads, axis=1))
            m_new.append(m_t)
        c, n, m = jnp.stack(c_new), jnp.stack(n_new), jnp.stack(m_new)
        outs.append(inp)
    return jnp.stack(outs), c, n, m


# ----------------------------- parameter setup -------------------------------
def build_conv_mat(conv_w):
    """Fold CausalConv1d(1, 1, K) weights (L, K) into banded matrices (L, PD, PD):
    y[:, j] = sum_k w[k] * x[:, j - (K-1) + k]   (zero-padded on the left)."""
    i = jnp.arange(PROJ_DIM)[:, None]
    j = jnp.arange(PROJ_DIM)[None, :]
    kk = i - j + (KER_SIZE - 1)
    valid = (kk >= 0) & (kk < KER_SIZE)
    kk_c = jnp.clip(kk, 0, KER_SIZE - 1)
    return conv_w[:, kk_c] * valid[None].astype(conv_w.dtype)   # (L, PD, PD)


def init_params(key):
    L, D, H, Dh = NUM_LAYERS, INPUT_DIM, NUM_HEADS, HEAD_DIM
    PD, HD, K = PROJ_DIM, HID_DIM, KER_SIZE
    kit = iter(jax.random.split(key, 32))

    def unif(shape, fan_in):
        bound = 1.0 / math.sqrt(fan_in)
        return jax.random.uniform(next(kit), shape, jnp.float32, -bound, bound)

    p = {}
    p["ln_w"] = jnp.ones((L, 1, D), jnp.float32)
    p["ln_b"] = jnp.zeros((L, 1, D), jnp.float32)
    p["up_l_w"] = unif((L, D, PD), D); p["up_l_b"] = unif((L, 1, PD), D)
    p["up_r_w"] = unif((L, D, HD), D); p["up_r_b"] = unif((L, 1, HD), D)
    conv_w = unif((L, K), K)
    p["conv_mat"] = build_conv_mat(conv_w)
    p["conv_b"] = unif((L, 1, 1), K)
    p["skip_w"] = unif((L, PD, HD), PD)                      # Conv1d(PD,HD,1), no bias
    p["wq_w"] = unif((L, PD, HD), PD); p["wq_b"] = unif((L, 1, HD), PD)
    p["wk_w"] = unif((L, PD, HD), PD); p["wk_b"] = unif((L, 1, HD), PD)
    p["wv_w"] = unif((L, PD, HD), PD); p["wv_b"] = unif((L, 1, HD), PD)
    p["wi_w"] = unif((L, PD, H), PD);  p["wi_b"] = unif((L, 1, H), PD)
    p["wf_w"] = unif((L, PD, H), PD);  p["wf_b"] = unif((L, 1, H), PD)
    p["wo_w"] = unif((L, PD, HD), PD); p["wo_b"] = unif((L, 1, HD), PD)
    p["gn_w"] = jnp.ones((L, 1, HD), jnp.float32)
    p["gn_b"] = jnp.zeros((L, 1, HD), jnp.float32)
    p["down_w"] = unif((L, HD, D), HD); p["down_b"] = unif((L, 1, D), HD)
    return p


# ------------------------------------ main -----------------------------------
if __name__ == "__main__":
    key = jax.random.PRNGKey(0)
    kx, kp = jax.random.split(key)
    x = jax.random.normal(kx, (SEQ, BATCH, INPUT_DIM), jnp.float32)
    params = init_params(kp)

    fwd = jax.jit(xlstm_forward)
    out, (c, n, m) = fwd(x, params)
    jax.block_until_ready((out, c, n, m))

    # independent pure-JAX reference (unfused, per-head) for a tight check
    c0 = jnp.zeros((NUM_LAYERS, BATCH, NUM_HEADS, HEAD_DIM, HEAD_DIM), jnp.float32)
    n0 = jnp.ones((NUM_LAYERS, BATCH, NUM_HEADS, HEAD_DIM), jnp.float32)
    m0 = jnp.zeros((NUM_LAYERS, BATCH, NUM_HEADS), jnp.float32)
    ref_out, ref_c, ref_n, ref_m = reference_forward(x, params, c0, n0, m0)

    for got, ref in ((out, ref_out), (c, ref_c), (n, ref_n), (m, ref_m)):
        np.testing.assert_allclose(np.asarray(got), np.asarray(ref),
                                   rtol=1e-4, atol=2e-5)
    print("KERNEL_OK")
</pallas_src>

<mosaic_0001>
module attributes {stable_mosaic.version = 11 : i64} {
  func.func @xlstm_kernel(%arg0: i32, %arg1: memref<16x16xf32, #tpu.memory_space<vmem>>, %arg2: memref<2x2x128xf32, #tpu.memory_space<vmem>>, %arg3: memref<2x2x16xf32, #tpu.memory_space<vmem>>, %arg4: memref<2x2x2xf32, #tpu.memory_space<vmem>>, %arg5: memref<2x16xf32, #tpu.memory_space<vmem>>, %arg6: memref<16x128xf32, #tpu.memory_space<vmem>>, %arg7: memref<16x128xf32, #tpu.memory_space<vmem>>, %arg8: memref<2x144xf32, #tpu.memory_space<vmem>>, %arg9: memref<2x1x16xf32, #tpu.memory_space<vmem>>, %arg10: memref<2x1x16xf32, #tpu.memory_space<vmem>>, %arg11: memref<2x16x48xf32, #tpu.memory_space<vmem>>, %arg12: memref<2x1x48xf32, #tpu.memory_space<vmem>>, %arg13: memref<2x32x32xf32, #tpu.memory_space<vmem>>, %arg14: memref<2x1x1xf32, #tpu.memory_space<vmem>>, %arg15: memref<2x32x52xf32, #tpu.memory_space<vmem>>, %arg16: memref<2x1x52xf32, #tpu.memory_space<vmem>>, %arg17: memref<2x32x32xf32, #tpu.memory_space<vmem>>, %arg18: memref<2x1x32xf32, #tpu.memory_space<vmem>>, %arg19: memref<2x1x16xf32, #tpu.memory_space<vmem>>, %arg20: memref<2x1x16xf32, #tpu.memory_space<vmem>>, %arg21: memref<2x16x16xf32, #tpu.memory_space<vmem>>, %arg22: memref<2x1x16xf32, #tpu.memory_space<vmem>>, %arg23: memref<16x16xf32, #tpu.memory_space<vmem>>, %arg24: memref<2x2x128xf32, #tpu.memory_space<vmem>>, %arg25: memref<2x2x16xf32, #tpu.memory_space<vmem>>, %arg26: memref<2x2x2xf32, #tpu.memory_space<vmem>>) attributes {dimension_semantics = [#tpu.dimension_semantics<arbitrary>], iteration_bounds = array<i64: 1>, scalar_prefetch = 0 : i64, scratch_operands = 0 : i64, tpu.core_type = #tpu.core_type<tc>, window_params = [{pipeline_mode = #tpu.pipeline_mode<synchronous>, transform_indices = @transform_0, window_bounds = array<i64: 16, 16>}, {pipeline_mode = #tpu.pipeline_mode<synchronous>, transform_indices = @transform_1, window_bounds = array<i64: 2, 2, 128>}, {pipeline_mode = #tpu.pipeline_mode<synchronous>, transform_indices = @transform_2, window_bounds = array<i64: 2, 2, 16>}, {pipeline_mode = #tpu.pipeline_mode<synchronous>, transform_indices = @transform_3, window_bounds = array<i64: 2, 2, 2>}, {pipeline_mode = #tpu.pipeline_mode<synchronous>, transform_indices = @transform_4, window_bounds = array<i64: 2, 16>}, {pipeline_mode = #tpu.pipeline_mode<synchronous>, transform_indices = @transform_5, window_bounds = array<i64: 16, 128>}, {pipeline_mode = #tpu.pipeline_mode<synchronous>, transform_indices = @transform_6, window_bounds = array<i64: 16, 128>}, {pipeline_mode = #tpu.pipeline_mode<synchronous>, transform_indices = @transform_7, window_bounds = array<i64: 2, 144>}, {pipeline_mode = #tpu.pipeline_mode<synchronous>, transform_indices = @transform_8, window_bounds = array<i64: 2, 1, 16>}, {pipeline_mode = #tpu.pipeline_mode<synchronous>, transform_indices = @transform_9, window_bounds = array<i64: 2, 1, 16>}, {pipeline_mode = #tpu.pipeline_mode<synchronous>, transform_indices = @transform_10, window_bounds = array<i64: 2, 16, 48>}, {pipeline_mode = #tpu.pipeline_mode<synchronous>, transform_indices = @transform_11, window_bounds = array<i64: 2, 1, 48>}, {pipeline_mode = #tpu.pipeline_mode<synchronous>, transform_indices = @transform_12, window_bounds = array<i64: 2, 32, 32>}, {pipeline_mode = #tpu.pipeline_mode<synchronous>, transform_indices = @transform_13, window_bounds = array<i64: 2, 1, 1>}, {pipeline_mode = #tpu.pipeline_mode<synchronous>, transform_indices = @transform_14, window_bounds = array<i64: 2, 32, 52>}, {pipeline_mode = #tpu.pipeline_mode<synchronous>, transform_indices = @transform_15, window_bounds = array<i64: 2, 1, 52>}, {pipeline_mode = #tpu.pipeline_mode<synchronous>, transform_indices = @transform_16, window_bounds = array<i64: 2, 32, 32>}, {pipeline_mode = #tpu.pipeline_mode<synchronous>, transform_indices = @transform_17, window_bounds = array<i64: 2, 1, 32>}, {pipeline_mode = #tpu.pipeline_mode<synchronous>, transform_indices = @transform_18, window_bounds = array<i64: 2, 1, 16>}, {pipeline_mode = #tpu.pipeline_mode<synchronous>, transform_indices = @transform_19, window_bounds = array<i64: 2, 1, 16>}, {pipeline_mode = #tpu.pipeline_mode<synchronous>, transform_indices = @transform_20, window_bounds = array<i64: 2, 16, 16>}, {pipeline_mode = #tpu.pipeline_mode<synchronous>, transform_indices = @transform_21, window_bounds = array<i64: 2, 1, 16>}, {pipeline_mode = #tpu.pipeline_mode<synchronous>, transform_indices = @transform_22, window_bounds = array<i64: 16, 16>}, {pipeline_mode = #tpu.pipeline_mode<synchronous>, transform_indices = @transform_23, window_bounds = array<i64: 2, 2, 128>}, {pipeline_mode = #tpu.pipeline_mode<synchronous>, transform_indices = @transform_24, window_bounds = array<i64: 2, 2, 16>}, {pipeline_mode = #tpu.pipeline_mode<synchronous>, transform_indices = @transform_25, window_bounds = array<i64: 2, 2, 2>}]} {
    %c0 = arith.constant 0 : index
    %c0_0 = arith.constant 0 : index
    %0 = vector.load %arg1[%c0, %c0_0] : memref<16x16xf32, #tpu.memory_space<vmem>>, vector<16x16xf32>
    %c0_1 = arith.constant 0 : index
    %c0_2 = arith.constant 0 : index
    %c0_3 = arith.constant 0 : index
    %1 = vector.load %arg9[%c0_1, %c0_2, %c0_3] : memref<2x1x16xf32, #tpu.memory_space<vmem>>, vector<1x1x16xf32>
    %2 = vector.shape_cast %1 : vector<1x1x16xf32> to vector<1x16xf32>
    %c0_4 = arith.constant 0 : index
    %c0_5 = arith.constant 0 : index
    %c0_6 = arith.constant 0 : index
    %3 = vector.load %arg10[%c0_4, %c0_5, %c0_6] : memref<2x1x16xf32, #tpu.memory_space<vmem>>, vector<1x1x16xf32>
    %4 = vector.shape_cast %3 : vector<1x1x16xf32> to vector<1x16xf32>
    %cst = arith.constant dense<0.000000e+00> : vector<16xf32>
    %5 = vector.multi_reduction <add>, %0, %cst [1] : vector<16x16xf32> to vector<16xf32>
    %6 = vector.shape_cast %5 : vector<16xf32> to vector<16x1xf32>
    %cst_7 = arith.constant 1.600000e+01 : f32
    %7 = vector.broadcast %cst_7 : f32 to vector<16x1xf32>
    %8 = arith.divf %6, %7 : vector<16x1xf32>
    %9 = vector.broadcast %8 : vector<16x1xf32> to vector<16x16xf32>
    %10 = arith.subf %0, %9 : vector<16x16xf32>
    %11 = arith.mulf %10, %10 : vector<16x16xf32>
    %cst_8 = arith.constant dense<0.000000e+00> : vector<16xf32>
    %12 = vector.multi_reduction <add>, %11, %cst_8 [1] : vector<16x16xf32> to vector<16xf32>
    %13 = vector.shape_cast %12 : vector<16xf32> to vector<16x1xf32>
    %cst_9 = arith.constant 1.600000e+01 : f32
    %14 = vector.broadcast %cst_9 : f32 to vector<16x1xf32>
    %15 = arith.divf %13, %14 : vector<16x1xf32>
    %16 = vector.broadcast %8 : vector<16x1xf32> to vector<16x16xf32>
    %17 = arith.subf %0, %16 : vector<16x16xf32>
    %cst_10 = arith.constant 9.99999974E-6 : f32
    %18 = vector.broadcast %cst_10 : f32 to vector<16x1xf32>
    %19 = arith.addf %15, %18 : vector<16x1xf32>
    %20 = math.rsqrt %19 : vector<16x1xf32>
    %21 = vector.broadcast %20 : vector<16x1xf32> to vector<16x16xf32>
    %22 = arith.mulf %17, %21 : vector<16x16xf32>
    %23 = vector.broadcast %2 : vector<1x16xf32> to vector<16x16xf32>
    %24 = arith.mulf %22, %23 : vector<16x16xf32>
    %25 = vector.broadcast %4 : vector<1x16xf32> to vector<16x16xf32>
    %26 = arith.addf %24, %25 : vector<16x16xf32>
    %c0_11 = arith.constant 0 : index
    %c0_12 = arith.constant 0 : index
    %c0_13 = arith.constant 0 : index
    %27 = vector.load %arg11[%c0_11, %c0_12, %c0_13] : memref<2x16x48xf32, #tpu.memory_space<vmem>>, vector<1x16x48xf32>
    %28 = vector.shape_cast %27 : vector<1x16x48xf32> to vector<16x48xf32>
    %cst_14 = arith.constant dense<0.000000e+00> : vector<16x48xf32>
    %29 = tpu.matmul %26, %28, %cst_14 {dimension_numbers = #tpu.dot_dimension_numbers<[1], [0], [0], [1], [0, 0, 1, 1], [], []>} : vector<16x16xf32>, vector<16x48xf32>, vector<16x48xf32> -> vector<16x48xf32>
    %c0_15 = arith.constant 0 : index
    %c0_16 = arith.constant 0 : index
    %c0_17 = arith.constant 0 : index
    %30 = vector.load %arg12[%c0_15, %c0_16, %c0_17] : memref<2x1x48xf32, #tpu.memory_space<vmem>>, vector<1x1x48xf32>
    %31 = vector.shape_cast %30 : vector<1x1x48xf32> to vector<1x48xf32>
    %32 = vector.broadcast %31 : vector<1x48xf32> to vector<16x48xf32>
    %33 = arith.addf %29, %32 : vector<16x48xf32>
    %34 = vector.extract_strided_slice %33 {offsets = [0, 0], sizes = [16, 32], strides = [1, 1]} : vector<16x48xf32> to vector<16x32xf32>
    %35 = vector.extract_strided_slice %33 {offsets = [0, 32], sizes = [16, 16], strides = [1, 1]} : vector<16x48xf32> to vector<16x16xf32>
    %c0_18 = arith.constant 0 : index
    %c0_19 = arith.constant 0 : index
    %c0_20 = arith.constant 0 : index
    %36 = vector.load %arg13[%c0_18, %c0_19, %c0_20] : memref<2x32x32xf32, #tpu.memory_space<vmem>>, vector<1x32x32xf32>
    %37 = vector.shape_cast %36 : vector<1x32x32xf32> to vector<32x32xf32>
    %cst_21 = arith.constant dense<0.000000e+00> : vector<16x32xf32>
    %38 = tpu.matmul %34, %37, %cst_21 {dimension_numbers = #tpu.dot_dimension_numbers<[1], [0], [0], [1], [0, 0, 1, 1], [], []>} : vector<16x32xf32>, vector<32x32xf32>, vector<16x32xf32> -> vector<16x32xf32>
    %c0_22 = arith.constant 0 : index
    %c0_23 = arith.constant 0 : index
    %c0_24 = arith.constant 0 : index
    %39 = vector.load %arg14[%c0_22, %c0_23, %c0_24] : memref<2x1x1xf32, #tpu.memory_space<vmem>>, vector<1x1x1xf32>
    %40 = vector.shape_cast %39 : vector<1x1x1xf32> to vector<1x1xf32>
    %41 = vector.broadcast %40 : vector<1x1xf32> to vector<16x32xf32>
    %42 = arith.addf %38, %41 : vector<16x32xf32>
    %43 = arith.negf %42 : vector<16x32xf32>
    %44 = math.exp %43 : vector<16x32xf32>
    %cst_25 = arith.constant 1.000000e+00 : f32
    %45 = vector.broadcast %cst_25 : f32 to vector<16x32xf32>
    %46 = arith.addf %45, %44 : vector<16x32xf32>
    %47 = arith.divf %45, %46 : vector<16x32xf32>
    %48 = arith.mulf %42, %47 : vector<16x32xf32>
    %c0_26 = arith.constant 0 : index
    %c0_27 = arith.constant 0 : index
    %c0_28 = arith.constant 0 : index
    %49 = vector.load %arg15[%c0_26, %c0_27, %c0_28] : memref<2x32x52xf32, #tpu.memory_space<vmem>>, vector<1x32x52xf32>
    %50 = vector.shape_cast %49 : vector<1x32x52xf32> to vector<32x52xf32>
    %cst_29 = arith.constant dense<0.000000e+00> : vector<16x52xf32>
    %51 = tpu.matmul %48, %50, %cst_29 {dimension_numbers = #tpu.dot_dimension_numbers<[1], [0], [0], [1], [0, 0, 1, 1], [], []>} : vector<16x32xf32>, vector<32x52xf32>, vector<16x52xf32> -> vector<16x52xf32>
    %c0_30 = arith.constant 0 : index
    %c0_31 = arith.constant 0 : index
    %c0_32 = arith.constant 0 : index
    %52 = vector.load %arg16[%c0_30, %c0_31, %c0_32] : memref<2x1x52xf32, #tpu.memory_space<vmem>>, vector<1x1x52xf32>
    %53 = vector.shape_cast %52 : vector<1x1x52xf32> to vector<1x52xf32>
    %54 = vector.broadcast %53 : vector<1x52xf32> to vector<16x52xf32>
    %55 = arith.addf %51, %54 : vector<16x52xf32>
    %56 = vector.extract_strided_slice %55 {offsets = [0, 0], sizes = [16, 16], strides = [1, 1]} : vector<16x52xf32> to vector<16x16xf32>
    %57 = vector.extract_strided_slice %55 {offsets = [0, 16], sizes = [16, 16], strides = [1, 1]} : vector<16x52xf32> to vector<16x16xf32>
    %58 = vector.extract_strided_slice %55 {offsets = [0, 32], sizes = [16, 16], strides = [1, 1]} : vector<16x52xf32> to vector<16x16xf32>
    %59 = vector.extract_strided_slice %55 {offsets = [0, 48], sizes = [16, 2], strides = [1, 1]} : vector<16x52xf32> to vector<16x2xf32>
    %60 = vector.extract_strided_slice %55 {offsets = [0, 50], sizes = [16, 2], strides = [1, 1]} : vector<16x52xf32> to vector<16x2xf32>
    %c0_33 = arith.constant 0 : index
    %c0_34 = arith.constant 0 : index
    %c0_35 = arith.constant 0 : index
    %61 = vector.load %arg17[%c0_33, %c0_34, %c0_35] : memref<2x32x32xf32, #tpu.memory_space<vmem>>, vector<1x32x32xf32>
    %62 = vector.shape_cast %61 : vector<1x32x32xf32> to vector<32x32xf32>
    %cst_36 = arith.constant dense<0.000000e+00> : vector<16x32xf32>
    %63 = tpu.matmul %34, %62, %cst_36 {dimension_numbers = #tpu.dot_dimension_numbers<[1], [0], [0], [1], [0, 0, 1, 1], [], []>} : vector<16x32xf32>, vector<32x32xf32>, vector<16x32xf32> -> vector<16x32xf32>
    %c0_37 = arith.constant 0 : index
    %c0_38 = arith.constant 0 : index
    %c0_39 = arith.constant 0 : index
    %64 = vector.load %arg18[%c0_37, %c0_38, %c0_39] : memref<2x1x32xf32, #tpu.memory_space<vmem>>, vector<1x1x32xf32>
    %65 = vector.shape_cast %64 : vector<1x1x32xf32> to vector<1x32xf32>
    %66 = vector.broadcast %65 : vector<1x32xf32> to vector<16x32xf32>
    %67 = arith.addf %63, %66 : vector<16x32xf32>
    %68 = vector.extract_strided_slice %67 {offsets = [0, 0], sizes = [16, 16], strides = [1, 1]} : vector<16x32xf32> to vector<16x16xf32>
    %69 = vector.extract_strided_slice %67 {offsets = [0, 16], sizes = [16, 16], strides = [1, 1]} : vector<16x32xf32> to vector<16x16xf32>
    %70 = arith.negf %69 : vector<16x16xf32>
    %71 = math.exp %70 : vector<16x16xf32>
    %cst_40 = arith.constant 1.000000e+00 : f32
    %72 = vector.broadcast %cst_40 : f32 to vector<16x16xf32>
    %73 = arith.addf %72, %71 : vector<16x16xf32>
    %74 = arith.divf %72, %73 : vector<16x16xf32>
    %c0_41 = arith.constant 0 : index
    %c0_42 = arith.constant 0 : index
    %75 = vector.load %arg6[%c0_41, %c0_42] : memref<16x128xf32, #tpu.memory_space<vmem>>, vector<16x128xf32>
    %cst_43 = arith.constant dense<0.000000e+00> : vector<16x128xf32>
    %76 = tpu.matmul %56, %75, %cst_43 {dimension_numbers = #tpu.dot_dimension_numbers<[1], [0], [0], [1], [0, 0, 1, 1], [], []>} : vector<16x16xf32>, vector<16x128xf32>, vector<16x128xf32> -> vector<16x128xf32>
    %cst_44 = arith.constant dense<0.000000e+00> : vector<16x128xf32>
    %77 = tpu.matmul %57, %75, %cst_44 {dimension_numbers = #tpu.dot_dimension_numbers<[1], [0], [0], [1], [0, 0, 1, 1], [], []>} : vector<16x16xf32>, vector<16x128xf32>, vector<16x128xf32> -> vector<16x128xf32>
    %c0_45 = arith.constant 0 : index
    %c0_46 = arith.constant 0 : index
    %78 = vector.load %arg7[%c0_45, %c0_46] : memref<16x128xf32, #tpu.memory_space<vmem>>, vector<16x128xf32>
    %cst_47 = arith.constant dense<0.000000e+00> : vector<16x128xf32>
    %79 = tpu.matmul %68, %78, %cst_47 {dimension_numbers = #tpu.dot_dimension_numbers<[1], [0], [0], [1], [0, 0, 1, 1], [], []>} : vector<16x16xf32>, vector<16x128xf32>, vector<16x128xf32> -> vector<16x128xf32>
    %80 = arith.mulf %79, %77 : vector<16x128xf32>
    %81 = arith.negf %35 : vector<16x16xf32>
    %82 = math.exp %81 : vector<16x16xf32>
    %cst_48 = arith.constant 1.000000e+00 : f32
    %83 = vector.broadcast %cst_48 : f32 to vector<16x16xf32>
    %84 = arith.addf %83, %82 : vector<16x16xf32>
    %85 = arith.divf %83, %84 : vector<16x16xf32>
    %86 = arith.mulf %35, %85 : vector<16x16xf32>
    %c0_49 = arith.constant 0 : index
    %c0_50 = arith.constant 0 : index
    %c0_51 = arith.constant 0 : index
    %87 = vector.load %arg2[%c0_49, %c0_50, %c0_51] : memref<2x2x128xf32, #tpu.memory_space<vmem>>, vector<1x2x128xf32>
    %88 = vector.shape_cast %87 : vector<1x2x128xf32> to vector<2x128xf32>
    %c0_52 = arith.constant 0 : index
    %c0_53 = arith.constant 0 : index
    %c0_54 = arith.constant 0 : index
    %89 = vector.load %arg3[%c0_52, %c0_53, %c0_54] : memref<2x2x16xf32, #tpu.memory_space<vmem>>, vector<1x2x16xf32>
    %90 = vector.shape_cast %89 : vector<1x2x16xf32> to vector<2x16xf32>
    %c0_55 = arith.constant 0 : index
    %c0_56 = arith.constant 0 : index
    %c0_57 = arith.constant 0 : index
    %91 = vector.load %arg4[%c0_55, %c0_56, %c0_57] : memref<2x2x2xf32, #tpu.memory_space<vmem>>, vector<1x2x2xf32>
    %92 = vector.shape_cast %91 : vector<1x2x2xf32> to vector<2x2xf32>
    %c1 = arith.constant 1 : index
    %c0_58 = arith.constant 0 : index
    %c0_59 = arith.constant 0 : index
    %93 = vector.load %arg2[%c1, %c0_58, %c0_59] : memref<2x2x128xf32, #tpu.memory_space<vmem>>, vector<1x2x128xf32>
    %94 = vector.shape_cast %93 : vector<1x2x128xf32> to vector<2x128xf32>
    %c1_60 = arith.constant 1 : index
    %c0_61 = arith.constant 0 : index
    %c0_62 = arith.constant 0 : index
    %95 = vector.load %arg3[%c1_60, %c0_61, %c0_62] : memref<2x2x16xf32, #tpu.memory_space<vmem>>, vector<1x2x16xf32>
    %96 = vector.shape_cast %95 : vector<1x2x16xf32> to vector<2x16xf32>
    %c1_63 = arith.constant 1 : index
    %c0_64 = arith.constant 0 : index
    %c0_65 = arith.constant 0 : index
    %97 = vector.load %arg4[%c1_63, %c0_64, %c0_65] : memref<2x2x2xf32, #tpu.memory_space<vmem>>, vector<1x2x2xf32>
    %98 = vector.shape_cast %97 : vector<1x2x2xf32> to vector<2x2xf32>
    %99 = vector.extract_strided_slice %0 {offsets = [0, 0], sizes = [2, 16], strides = [1, 1]} : vector<16x16xf32> to vector<2x16xf32>
    %100 = vector.extract_strided_slice %56 {offsets = [0, 0], sizes = [2, 16], strides = [1, 1]} : vector<16x16xf32> to vector<2x16xf32>
    %101 = vector.extract_strided_slice %57 {offsets = [0, 0], sizes = [2, 16], strides = [1, 1]} : vector<16x16xf32> to vector<2x16xf32>
    %102 = vector.extract_strided_slice %58 {offsets = [0, 0], sizes = [2, 16], strides = [1, 1]} : vector<16x16xf32> to vector<2x16xf32>
    %103 = vector.extract_strided_slice %59 {offsets = [0, 0], sizes = [2, 2], strides = [1, 1]} : vector<16x2xf32> to vector<2x2xf32>
    %104 = vector.extract_strided_slice %60 {offsets = [0, 0], sizes = [2, 2], strides = [1, 1]} : vector<16x2xf32> to vector<2x2xf32>
    %105 = vector.extract_strided_slice %74 {offsets = [0, 0], sizes = [2, 16], strides = [1, 1]} : vector<16x16xf32> to vector<2x16xf32>
    %106 = vector.extract_strided_slice %76 {offsets = [0, 0], sizes = [2, 128], strides = [1, 1]} : vector<16x128xf32> to vector<2x128xf32>
    %107 = vector.extract_strided_slice %80 {offsets = [0, 0], sizes = [2, 128], strides = [1, 1]} : vector<16x128xf32> to vector<2x128xf32>
    %108 = vector.extract_strided_slice %86 {offsets = [0, 0], sizes = [2, 16], strides = [1, 1]} : vector<16x16xf32> to vector<2x16xf32>
    %c0_66 = arith.constant 0 : index
    %c0_67 = arith.constant 0 : index
    %109 = vector.load %arg5[%c0_66, %c0_67] : memref<2x16xf32, #tpu.memory_space<vmem>>, vector<2x16xf32>
    %c0_68 = arith.constant 0 : index
    %c0_69 = arith.constant 0 : index
    %110 = vector.load %arg8[%c0_68, %c0_69] : memref<2x144xf32, #tpu.memory_space<vmem>>, vector<2x144xf32>
    %c0_70 = arith.constant 0 : index
    %c0_71 = arith.constant 0 : index
    %111 = vector.load %arg7[%c0_70, %c0_71] : memref<16x128xf32, #tpu.memory_space<vmem>>, vector<16x128xf32>
    %112 = arith.addf %104, %92 : vector<2x2xf32>
    %113 = arith.maximumf %112, %103 : vector<2x2xf32>
    %114 = arith.subf %103, %113 : vector<2x2xf32>
    %115 = math.exp %114 : vector<2x2xf32>
    %116 = arith.subf %104, %113 : vector<2x2xf32>
    %117 = arith.addf %116, %92 : vector<2x2xf32>
    %118 = math.exp %117 : vector<2x2xf32>
    %cst_72 = arith.constant dense<0.000000e+00> : vector<2x144xf32>
    %119 = tpu.matmul %118, %110, %cst_72 {dimension_numbers = #tpu.dot_dimension_numbers<[1], [0], [0], [1], [0, 0, 1, 1], [], []>} : vector<2x2xf32>, vector<2x144xf32>, vector<2x144xf32> -> vector<2x144xf32>
    %cst_73 = arith.constant dense<0.000000e+00> : vector<2x144xf32>
    %120 = tpu.matmul %115, %110, %cst_73 {dimension_numbers = #tpu.dot_dimension_numbers<[1], [0], [0], [1], [0, 0, 1, 1], [], []>} : vector<2x2xf32>, vector<2x144xf32>, vector<2x144xf32> -> vector<2x144xf32>
    %121 = vector.extract_strided_slice %119 {offsets = [0, 0], sizes = [2, 128], strides = [1, 1]} : vector<2x144xf32> to vector<2x128xf32>
    %122 = vector.extract_strided_slice %119 {offsets = [0, 128], sizes = [2, 16], strides = [1, 1]} : vector<2x144xf32> to vector<2x16xf32>
    %123 = vector.extract_strided_slice %120 {offsets = [0, 0], sizes = [2, 128], strides = [1, 1]} : vector<2x144xf32> to vector<2x128xf32>
    %124 = vector.extract_strided_slice %120 {offsets = [0, 128], sizes = [2, 16], strides = [1, 1]} : vector<2x144xf32> to vector<2x16xf32>
    %125 = arith.mulf %121, %88 : vector<2x128xf32>
    %126 = arith.mulf %123, %107 : vector<2x128xf32>
    %127 = arith.addf %125, %126 : vector<2x128xf32>
    %128 = arith.mulf %122, %90 : vector<2x16xf32>
    %129 = arith.mulf %124, %101 : vector<2x16xf32>
    %130 = arith.addf %128, %129 : vector<2x16xf32>
    %131 = arith.mulf %127, %106 : vector<2x128xf32>
    %cst_74 = arith.constant dense<0.000000e+00> : vector<2x16xf32>
    %132 = tpu.matmul %131, %111, %cst_74 {dimension_numbers = #tpu.dot_dimension_numbers<[1], [1], [0], [0], [0, 0, 1, 0], [], []>} : vector<2x128xf32>, vector<16x128xf32>, vector<2x16xf32> -> vector<2x16xf32>
    %133 = arith.mulf %130, %100 : vector<2x16xf32>
    %cst_75 = arith.constant dense<0.000000e+00> : vector<2x2xf32>
    %134 = tpu.matmul %133, %109, %cst_75 {dimension_numbers = #tpu.dot_dimension_numbers<[1], [1], [0], [0], [0, 0, 1, 0], [], []>} : vector<2x16xf32>, vector<2x16xf32>, vector<2x2xf32> -> vector<2x2xf32>
    %135 = math.absf %134 : vector<2x2xf32>
    %cst_76 = arith.constant 1.000000e+00 : f32
    %136 = vector.broadcast %cst_76 : f32 to vector<2x2xf32>
    %137 = arith.maximumf %135, %136 : vector<2x2xf32>
    %138 = tpu.reciprocal %137 : vector<2x2xf32> -> vector<2x2xf32>
    %cst_77 = arith.constant dense<0.000000e+00> : vector<2x16xf32>
    %139 = tpu.matmul %138, %109, %cst_77 {dimension_numbers = #tpu.dot_dimension_numbers<[1], [0], [0], [1], [0, 0, 1, 1], [], []>} : vector<2x2xf32>, vector<2x16xf32>, vector<2x16xf32> -> vector<2x16xf32>
    %140 = arith.mulf %105, %132 : vector<2x16xf32>
    %141 = arith.mulf %140, %139 : vector<2x16xf32>
    %cst_78 = arith.constant dense<0.000000e+00> : vector<2x2xf32>
    %142 = tpu.matmul %141, %109, %cst_78 {dimension_numbers = #tpu.dot_dimension_numbers<[1], [1], [0], [0], [0, 0, 1, 0], [], []>} : vector<2x16xf32>, vector<2x16xf32>, vector<2x2xf32> -> vector<2x2xf32>
    %cst_79 = arith.constant 1.250000e-01 : f32
    %143 = vector.broadcast %cst_79 : f32 to vector<2x2xf32>
    %144 = arith.mulf %142, %143 : vector<2x2xf32>
    %cst_80 = arith.constant dense<0.000000e+00> : vector<2x16xf32>
    %145 = tpu.matmul %144, %109, %cst_80 {dimension_numbers = #tpu.dot_dimension_numbers<[1], [0], [0], [1], [0, 0, 1, 1], [], []>} : vector<2x2xf32>, vector<2x16xf32>, vector<2x16xf32> -> vector<2x16xf32>
    %146 = arith.subf %141, %145 : vector<2x16xf32>
    %147 = arith.mulf %146, %146 : vector<2x16xf32>
    %cst_81 = arith.constant dense<0.000000e+00> : vector<2x2xf32>
    %148 = tpu.matmul %147, %109, %cst_81 {dimension_numbers = #tpu.dot_dimension_numbers<[1], [1], [0], [0], [0, 0, 1, 0], [], []>} : vector<2x16xf32>, vector<2x16xf32>, vector<2x2xf32> -> vector<2x2xf32>
    %cst_82 = arith.constant 1.250000e-01 : f32
    %149 = vector.broadcast %cst_82 : f32 to vector<2x2xf32>
    %150 = arith.mulf %148, %149 : vector<2x2xf32>
    %cst_83 = arith.constant dense<0.000000e+00> : vector<2x16xf32>
    %151 = tpu.matmul %150, %109, %cst_83 {dimension_numbers = #tpu.dot_dimension_numbers<[1], [0], [0], [1], [0, 0, 1, 1], [], []>} : vector<2x2xf32>, vector<2x16xf32>, vector<2x16xf32> -> vector<2x16xf32>
    %cst_84 = arith.constant 9.99999974E-6 : f32
    %152 = vector.broadcast %cst_84 : f32 to vector<2x16xf32>
    %153 = arith.addf %151, %152 : vector<2x16xf32>
    %154 = math.rsqrt %153 : vector<2x16xf32>
    %155 = arith.mulf %146, %154 : vector<2x16xf32>
    %c0_85 = arith.constant 0 : index
    %c0_86 = arith.constant 0 : index
    %c0_87 = arith.constant 0 : index
    %156 = vector.load %arg19[%c0_85, %c0_86, %c0_87] : memref<2x1x16xf32, #tpu.memory_space<vmem>>, vector<1x1x16xf32>
    %157 = vector.shape_cast %156 : vector<1x1x16xf32> to vector<1x16xf32>
    %158 = vector.broadcast %157 : vector<1x16xf32> to vector<2x16xf32>
    %159 = arith.mulf %155, %158 : vector<2x16xf32>
    %c0_88 = arith.constant 0 : index
    %c0_89 = arith.constant 0 : index
    %c0_90 = arith.constant 0 : index
    %160 = vector.load %arg20[%c0_88, %c0_89, %c0_90] : memref<2x1x16xf32, #tpu.memory_space<vmem>>, vector<1x1x16xf32>
    %161 = vector.shape_cast %160 : vector<1x1x16xf32> to vector<1x16xf32>
    %162 = vector.broadcast %161 : vector<1x16xf32> to vector<2x16xf32>
    %163 = arith.addf %159, %162 : vector<2x16xf32>
    %164 = arith.addf %163, %102 : vector<2x16xf32>
    %165 = arith.mulf %164, %108 : vector<2x16xf32>
    %c0_91 = arith.constant 0 : index
    %c0_92 = arith.constant 0 : index
    %c0_93 = arith.constant 0 : index
    %166 = vector.load %arg21[%c0_91, %c0_92, %c0_93] : memref<2x16x16xf32, #tpu.memory_space<vmem>>, vector<1x16x16xf32>
    %167 = vector.shape_cast %166 : vector<1x16x16xf32> to vector<16x16xf32>
    %cst_94 = arith.constant dense<0.000000e+00> : vector<2x16xf32>
    %168 = tpu.matmul %165, %167, %cst_94 {dimension_numbers = #tpu.dot_dimension_numbers<[1], [0], [0], [1], [0, 0, 1, 1], [], []>} : vector<2x16xf32>, vector<16x16xf32>, vector<2x16xf32> -> vector<2x16xf32>
    %c0_95 = arith.constant 0 : index
    %c0_96 = arith.constant 0 : index
    %c0_97 = arith.constant 0 : index
    %169 = vector.load %arg22[%c0_95, %c0_96, %c0_97] : memref<2x1x16xf32, #tpu.memory_space<vmem>>, vector<1x1x16xf32>
    %170 = vector.shape_cast %169 : vector<1x1x16xf32> to vector<1x16xf32>
    %171 = vector.broadcast %170 : vector<1x16xf32> to vector<2x16xf32>
    %172 = arith.addf %168, %171 : vector<2x16xf32>
    %173 = arith.addf %172, %99 : vector<2x16xf32>
    %c1_98 = arith.constant 1 : index
    %c0_99 = arith.constant 0 : index
    %c0_100 = arith.constant 0 : index
    %174 = vector.load %arg9[%c1_98, %c0_99, %c0_100] : memref<2x1x16xf32, #tpu.memory_space<vmem>>, vector<1x1x16xf32>
    %175 = vector.shape_cast %174 : vector<1x1x16xf32> to vector<1x16xf32>
    %c1_101 = arith.constant 1 : index
    %c0_102 = arith.constant 0 : index
    %c0_103 = arith.constant 0 : index
    %176 = vector.load %arg10[%c1_101, %c0_102, %c0_103] : memref<2x1x16xf32, #tpu.memory_space<vmem>>, vector<1x1x16xf32>
    %177 = vector.shape_cast %176 : vector<1x1x16xf32> to vector<1x16xf32>
    %cst_104 = arith.constant dense<0.000000e+00> : vector<2xf32>
    %178 = vector.multi_reduction <add>, %173, %cst_104 [1] : vector<2x16xf32> to vector<2xf32>
    %179 = vector.shape_cast %178 : vector<2xf32> to vector<2x1xf32>
    %cst_105 = arith.constant 1.600000e+01 : f32
    %180 = vector.broadcast %cst_105 : f32 to vector<2x1xf32>
    %181 = arith.divf %179, %180 : vector<2x1xf32>
    %182 = vector.broadcast %181 : vector<2x1xf32> to vector<2x16xf32>
    %183 = arith.subf %173, %182 : vector<2x16xf32>
    %184 = arith.mulf %183, %183 : vector<2x16xf32>
    %cst_106 = arith.constant dense<0.000000e+00> : vector<2xf32>
    %185 = vector.multi_reduction <add>, %184, %cst_106 [1] : vector<2x16xf32> to vector<2xf32>
    %186 = vector.shape_cast %185 : vector<2xf32> to vector<2x1xf32>
    %cst_107 = arith.constant 1.600000e+01 : f32
    %187 = vector.broadcast %cst_107 : f32 to vector<2x1xf32>
    %188 = arith.divf %186, %187 : vector<2x1xf32>
    %189 = vector.broadcast %181 : vector<2x1xf32> to vector<2x16xf32>
    %190 = arith.subf %173, %189 : vector<2x16xf32>
    %cst_108 = arith.constant 9.99999974E-6 : f32
    %191 = vector.broadcast %cst_108 : f32 to vector<2x1xf32>
    %192 = arith.addf %188, %191 : vector<2x1xf32>
    %193 = math.rsqrt %192 : vector<2x1xf32>
    %194 = vector.broadcast %193 : vector<2x1xf32> to vector<2x16xf32>
    %195 = arith.mulf %190, %194 : vector<2x16xf32>
    %196 = vector.broadcast %175 : vector<1x16xf32> to vector<2x16xf32>
    %197 = arith.mulf %195, %196 : vector<2x16xf32>
    %198 = vector.broadcast %177 : vector<1x16xf32> to vector<2x16xf32>
    %199 = arith.addf %197, %198 : vector<2x16xf32>
    %c1_109 = arith.constant 1 : index
    %c0_110 = arith.constant 0 : index
    %c0_111 = arith.constant 0 : index
    %200 = vector.load %arg11[%c1_109, %c0_110, %c0_111] : memref<2x16x48xf32, #tpu.memory_space<vmem>>, vector<1x16x48xf32>
    %201 = vector.shape_cast %200 : vector<1x16x48xf32> to vector<16x48xf32>
    %cst_112 = arith.constant dense<0.000000e+00> : vector<2x48xf32>
    %202 = tpu.matmul %199, %201, %cst_112 {dimension_numbers = #tpu.dot_dimension_numbers<[1], [0], [0], [1], [0, 0, 1, 1], [], []>} : vector<2x16xf32>, vector<16x48xf32>, vector<2x48xf32> -> vector<2x48xf32>
    %c1_113 = arith.constant 1 : index
    %c0_114 = arith.constant 0 : index
    %c0_115 = arith.constant 0 : index
    %203 = vector.load %arg12[%c1_113, %c0_114, %c0_115] : memref<2x1x48xf32, #tpu.memory_space<vmem>>, vector<1x1x48xf32>
    %204 = vector.shape_cast %203 : vector<1x1x48xf32> to vector<1x48xf32>
    %205 = vector.broadcast %204 : vector<1x48xf32> to vector<2x48xf32>
    %206 = arith.addf %202, %205 : vector<2x48xf32>
    %207 = vector.extract_strided_slice %206 {offsets = [0, 0], sizes = [2, 32], strides = [1, 1]} : vector<2x48xf32> to vector<2x32xf32>
    %208 = vector.extract_strided_slice %206 {offsets = [0, 32], sizes = [2, 16], strides = [1, 1]} : vector<2x48xf32> to vector<2x16xf32>
    %c1_116 = arith.constant 1 : index
    %c0_117 = arith.constant 0 : index
    %c0_118 = arith.constant 0 : index
    %209 = vector.load %arg13[%c1_116, %c0_117, %c0_118] : memref<2x32x32xf32, #tpu.memory_space<vmem>>, vector<1x32x32xf32>
    %210 = vector.shape_cast %209 : vector<1x32x32xf32> to vector<32x32xf32>
    %cst_119 = arith.constant dense<0.000000e+00> : vector<2x32xf32>
    %211 = tpu.matmul %207, %210, %cst_119 {dimension_numbers = #tpu.dot_dimension_numbers<[1], [0], [0], [1], [0, 0, 1, 1], [], []>} : vector<2x32xf32>, vector<32x32xf32>, vector<2x32xf32> -> vector<2x32xf32>
    %c1_120 = arith.constant 1 : index
    %c0_121 = arith.constant 0 : index
    %c0_122 = arith.constant 0 : index
    %212 = vector.load %arg14[%c1_120, %c0_121, %c0_122] : memref<2x1x1xf32, #tpu.memory_space<vmem>>, vector<1x1x1xf32>
    %213 = vector.shape_cast %212 : vector<1x1x1xf32> to vector<1x1xf32>
    %214 = vector.broadcast %213 : vector<1x1xf32> to vector<2x32xf32>
    %215 = arith.addf %211, %214 : vector<2x32xf32>
    %216 = arith.negf %215 : vector<2x32xf32>
    %217 = math.exp %216 : vector<2x32xf32>
    %cst_123 = arith.constant 1.000000e+00 : f32
    %218 = vector.broadcast %cst_123 : f32 to vector<2x32xf32>
    %219 = arith.addf %218, %217 : vector<2x32xf32>
    %220 = arith.divf %218, %219 : vector<2x32xf32>
    %221 = arith.mulf %215, %220 : vector<2x32xf32>
    %c1_124 = arith.constant 1 : index
    %c0_125 = arith.constant 0 : index
    %c0_126 = arith.constant 0 : index
    %222 = vector.load %arg15[%c1_124, %c0_125, %c0_126] : memref<2x32x52xf32, #tpu.memory_space<vmem>>, vector<1x32x52xf32>
    %223 = vector.shape_cast %222 : vector<1x32x52xf32> to vector<32x52xf32>
    %cst_127 = arith.constant dense<0.000000e+00> : vector<2x52xf32>
    %224 = tpu.matmul %221, %223, %cst_127 {dimension_numbers = #tpu.dot_dimension_numbers<[1], [0], [0], [1], [0, 0, 1, 1], [], []>} : vector<2x32xf32>, vector<32x52xf32>, vector<2x52xf32> -> vector<2x52xf32>
    %c1_128 = arith.constant 1 : index
    %c0_129 = arith.constant 0 : index
    %c0_130 = arith.constant 0 : index
    %225 = vector.load %arg16[%c1_128, %c0_129, %c0_130] : memref<2x1x52xf32, #tpu.memory_space<vmem>>, vector<1x1x52xf32>
    %226 = vector.shape_cast %225 : vector<1x1x52xf32> to vector<1x52xf32>
    %227 = vector.broadcast %226 : vector<1x52xf32> to vector<2x52xf32>
    %228 = arith.addf %224, %227 : vector<2x52xf32>
    %229 = vector.extract_strided_slice %228 {offsets = [0, 0], sizes = [2, 16], strides = [1, 1]} : vector<2x52xf32> to vector<2x16xf32>
    %230 = vector.extract_strided_slice %228 {offsets = [0, 16], sizes = [2, 16], strides = [1, 1]} : vector<2x52xf32> to vector<2x16xf32>
    %231 = vector.extract_strided_slice %228 {offsets = [0, 32], sizes = [2, 16], strides = [1, 1]} : vector<2x52xf32> to vector<2x16xf32>
    %232 = vector.extract_strided_slice %228 {offsets = [0, 48], sizes = [2, 2], strides = [1, 1]} : vector<2x52xf32> to vector<2x2xf32>
    %233 = vector.extract_strided_slice %228 {offsets = [0, 50], sizes = [2, 2], strides = [1, 1]} : vector<2x52xf32> to vector<2x2xf32>
    %c1_131 = arith.constant 1 : index
    %c0_132 = arith.constant 0 : index
    %c0_133 = arith.constant 0 : index
    %234 = vector.load %arg17[%c1_131, %c0_132, %c0_133] : memref<2x32x32xf32, #tpu.memory_space<vmem>>, vector<1x32x32xf32>
    %235 = vector.shape_cast %234 : vector<1x32x32xf32> to vector<32x32xf32>
    %cst_134 = arith.constant dense<0.000000e+00> : vector<2x32xf32>
    %236 = tpu.matmul %207, %235, %cst_134 {dimension_numbers = #tpu.dot_dimension_numbers<[1], [0], [0], [1], [0, 0, 1, 1], [], []>} : vector<2x32xf32>, vector<32x32xf32>, vector<2x32xf32> -> vector<2x32xf32>
    %c1_135 = arith.constant 1 : index
    %c0_136 = arith.constant 0 : index
    %c0_137 = arith.constant 0 : index
    %237 = vector.load %arg18[%c1_135, %c0_136, %c0_137] : memref<2x1x32xf32, #tpu.memory_space<vmem>>, vector<1x1x32xf32>
    %238 = vector.shape_cast %237 : vector<1x1x32xf32> to vector<1x32xf32>
    %239 = vector.broadcast %238 : vector<1x32xf32> to vector<2x32xf32>
    %240 = arith.addf %236, %239 : vector<2x32xf32>
    %241 = vector.extract_strided_slice %240 {offsets = [0, 0], sizes = [2, 16], strides = [1, 1]} : vector<2x32xf32> to vector<2x16xf32>
    %242 = vector.extract_strided_slice %240 {offsets = [0, 16], sizes = [2, 16], strides = [1, 1]} : vector<2x32xf32> to vector<2x16xf32>
    %243 = arith.negf %242 : vector<2x16xf32>
    %244 = math.exp %243 : vector<2x16xf32>
    %cst_138 = arith.constant 1.000000e+00 : f32
    %245 = vector.broadcast %cst_138 : f32 to vector<2x16xf32>
    %246 = arith.addf %245, %244 : vector<2x16xf32>
    %247 = arith.divf %245, %246 : vector<2x16xf32>
    %c0_139 = arith.constant 0 : index
    %c0_140 = arith.constant 0 : index
    %248 = vector.load %arg6[%c0_139, %c0_140] : memref<16x128xf32, #tpu.memory_space<vmem>>, vector<16x128xf32>
    %cst_141 = arith.constant dense<0.000000e+00> : vector<2x128xf32>
    %249 = tpu.matmul %229, %248, %cst_141 {dimension_numbers = #tpu.dot_dimension_numbers<[1], [0], [0], [1], [0, 0, 1, 1], [], []>} : vector<2x16xf32>, vector<16x128xf32>, vector<2x128xf32> -> vector<2x128xf32>
    %cst_142 = arith.constant dense<0.000000e+00> : vector<2x128xf32>
    %250 = tpu.matmul %230, %248, %cst_142 {dimension_numbers = #tpu.dot_dimension_numbers<[1], [0], [0], [1], [0, 0, 1, 1], [], []>} : vector<2x16xf32>, vector<16x128xf32>, vector<2x128xf32> -> vector<2x128xf32>
    %c0_143 = arith.constant 0 : index
    %c0_144 = arith.constant 0 : index
    %251 = vector.load %arg7[%c0_143, %c0_144] : memref<16x128xf32, #tpu.memory_space<vmem>>, vector<16x128xf32>
    %cst_145 = arith.constant dense<0.000000e+00> : vector<2x128xf32>
    %252 = tpu.matmul %241, %251, %cst_145 {dimension_numbers = #tpu.dot_dimension_numbers<[1], [0], [0], [1], [0, 0, 1, 1], [], []>} : vector<2x16xf32>, vector<16x128xf32>, vector<2x128xf32> -> vector<2x128xf32>
    %253 = arith.mulf %252, %250 : vector<2x128xf32>
    %254 = arith.negf %208 : vector<2x16xf32>
    %255 = math.exp %254 : vector<2x16xf32>
    %cst_146 = arith.constant 1.000000e+00 : f32
    %256 = vector.broadcast %cst_146 : f32 to vector<2x16xf32>
    %257 = arith.addf %256, %255 : vector<2x16xf32>
    %258 = arith.divf %256, %257 : vector<2x16xf32>
    %259 = arith.mulf %208, %258 : vector<2x16xf32>
    %c0_147 = arith.constant 0 : index
    %c0_148 = arith.constant 0 : index
    %260 = vector.load %arg5[%c0_147, %c0_148] : memref<2x16xf32, #tpu.memory_space<vmem>>, vector<2x16xf32>
    %c0_149 = arith.constant 0 : index
    %c0_150 = arith.constant 0 : index
    %261 = vector.load %arg8[%c0_149, %c0_150] : memref<2x144xf32, #tpu.memory_space<vmem>>, vector<2x144xf32>
    %c0_151 = arith.constant 0 : index
    %c0_152 = arith.constant 0 : index
    %262 = vector.load %arg7[%c0_151, %c0_152] : memref<16x128xf32, #tpu.memory_space<vmem>>, vector<16x128xf32>
    %263 = arith.addf %233, %98 : vector<2x2xf32>
    %264 = arith.maximumf %263, %232 : vector<2x2xf32>
    %265 = arith.subf %232, %264 : vector<2x2xf32>
    %266 = math.exp %265 : vector<2x2xf32>
    %267 = arith.subf %233, %264 : vector<2x2xf32>
    %268 = arith.addf %267, %98 : vector<2x2xf32>
    %269 = math.exp %268 : vector<2x2xf32>
    %cst_153 = arith.constant dense<0.000000e+00> : vector<2x144xf32>
    %270 = tpu.matmul %269, %261, %cst_153 {dimension_numbers = #tpu.dot_dimension_numbers<[1], [0], [0], [1], [0, 0, 1, 1], [], []>} : vector<2x2xf32>, vector<2x144xf32>, vector<2x144xf32> -> vector<2x144xf32>
    %cst_154 = arith.constant dense<0.000000e+00> : vector<2x144xf32>
    %271 = tpu.matmul %266, %261, %cst_154 {dimension_numbers = #tpu.dot_dimension_numbers<[1], [0], [0], [1], [0, 0, 1, 1], [], []>} : vector<2x2xf32>, vector<2x144xf32>, vector<2x144xf32> -> vector<2x144xf32>
    %272 = vector.extract_strided_slice %270 {offsets = [0, 0], sizes = [2, 128], strides = [1, 1]} : vector<2x144xf32> to vector<2x128xf32>
    %273 = vector.extract_strided_slice %270 {offsets = [0, 128], sizes = [2, 16], strides = [1, 1]} : vector<2x144xf32> to vector<2x16xf32>
    %274 = vector.extract_strided_slice %271 {offsets = [0, 0], sizes = [2, 128], strides = [1, 1]} : vector<2x144xf32> to vector<2x128xf32>
    %275 = vector.extract_strided_slice %271 {offsets = [0, 128], sizes = [2, 16], strides = [1, 1]} : vector<2x144xf32> to vector<2x16xf32>
    %276 = arith.mulf %272, %94 : vector<2x128xf32>
    %277 = arith.mulf %274, %253 : vector<2x128xf32>
    %278 = arith.addf %276, %277 : vector<2x128xf32>
    %279 = arith.mulf %273, %96 : vector<2x16xf32>
    %280 = arith.mulf %275, %230 : vector<2x16xf32>
    %281 = arith.addf %279, %280 : vector<2x16xf32>
    %282 = arith.mulf %278, %249 : vector<2x128xf32>
    %cst_155 = arith.constant dense<0.000000e+00> : vector<2x16xf32>
    %283 = tpu.matmul %282, %262, %cst_155 {dimension_numbers = #tpu.dot_dimension_numbers<[1], [1], [0], [0], [0, 0, 1, 0], [], []>} : vector<2x128xf32>, vector<16x128xf32>, vector<2x16xf32> -> vector<2x16xf32>
    %284 = arith.mulf %281, %229 : vector<2x16xf32>
    %cst_156 = arith.constant dense<0.000000e+00> : vector<2x2xf32>
    %285 = tpu.matmul %284, %260, %cst_156 {dimension_numbers = #tpu.dot_dimension_numbers<[1], [1], [0], [0], [0, 0, 1, 0], [], []>} : vector<2x16xf32>, vector<2x16xf32>, vector<2x2xf32> -> vector<2x2xf32>
    %286 = math.absf %285 : vector<2x2xf32>
    %cst_157 = arith.constant 1.000000e+00 : f32
    %287 = vector.broadcast %cst_157 : f32 to vector<2x2xf32>
    %288 = arith.maximumf %286, %287 : vector<2x2xf32>
    %289 = tpu.reciprocal %288 : vector<2x2xf32> -> vector<2x2xf32>
    %cst_158 = arith.constant dense<0.000000e+00> : vector<2x16xf32>
    %290 = tpu.matmul %289, %260, %cst_158 {dimension_numbers = #tpu.dot_dimension_numbers<[1], [0], [0], [1], [0, 0, 1, 1], [], []>} : vector<2x2xf32>, vector<2x16xf32>, vector<2x16xf32> -> vector<2x16xf32>
    %291 = arith.mulf %247, %283 : vector<2x16xf32>
    %292 = arith.mulf %291, %290 : vector<2x16xf32>
    %cst_159 = arith.constant dense<0.000000e+00> : vector<2x2xf32>
    %293 = tpu.matmul %292, %260, %cst_159 {dimension_numbers = #tpu.dot_dimension_numbers<[1], [1], [0], [0], [0, 0, 1, 0], [], []>} : vector<2x16xf32>, vector<2x16xf32>, vector<2x2xf32> -> vector<2x2xf32>
    %cst_160 = arith.constant 1.250000e-01 : f32
    %294 = vector.broadcast %cst_160 : f32 to vector<2x2xf32>
    %295 = arith.mulf %293, %294 : vector<2x2xf32>
    %cst_161 = arith.constant dense<0.000000e+00> : vector<2x16xf32>
    %296 = tpu.matmul %295, %260, %cst_161 {dimension_numbers = #tpu.dot_dimension_numbers<[1], [0], [0], [1], [0, 0, 1, 1], [], []>} : vector<2x2xf32>, vector<2x16xf32>, vector<2x16xf32> -> vector<2x16xf32>
    %297 = arith.subf %292, %296 : vector<2x16xf32>
    %298 = arith.mulf %297, %297 : vector<2x16xf32>
    %cst_162 = arith.constant dense<0.000000e+00> : vector<2x2xf32>
    %299 = tpu.matmul %298, %260, %cst_162 {dimension_numbers = #tpu.dot_dimension_numbers<[1], [1], [0], [0], [0, 0, 1, 0], [], []>} : vector<2x16xf32>, vector<2x16xf32>, vector<2x2xf32> -> vector<2x2xf32>
    %cst_163 = arith.constant 1.250000e-01 : f32
    %300 = vector.broadcast %cst_163 : f32 to vector<2x2xf32>
    %301 = arith.mulf %299, %300 : vector<2x2xf32>
    %cst_164 = arith.constant dense<0.000000e+00> : vector<2x16xf32>
    %302 = tpu.matmul %301, %260, %cst_164 {dimension_numbers = #tpu.dot_dimension_numbers<[1], [0], [0], [1], [0, 0, 1, 1], [], []>} : vector<2x2xf32>, vector<2x16xf32>, vector<2x16xf32> -> vector<2x16xf32>
    %cst_165 = arith.constant 9.99999974E-6 : f32
    %303 = vector.broadcast %cst_165 : f32 to vector<2x16xf32>
    %304 = arith.addf %302, %303 : vector<2x16xf32>
    %305 = math.rsqrt %304 : vector<2x16xf32>
    %306 = arith.mulf %297, %305 : vector<2x16xf32>
    %c1_166 = arith.constant 1 : index
    %c0_167 = arith.constant 0 : index
    %c0_168 = arith.constant 0 : index
    %307 = vector.load %arg19[%c1_166, %c0_167, %c0_168] : memref<2x1x16xf32, #tpu.memory_space<vmem>>, vector<1x1x16xf32>
    %308 = vector.shape_cast %307 : vector<1x1x16xf32> to vector<1x16xf32>
    %309 = vector.broadcast %308 : vector<1x16xf32> to vector<2x16xf32>
    %310 = arith.mulf %306, %309 : vector<2x16xf32>
    %c1_169 = arith.constant 1 : index
    %c0_170 = arith.constant 0 : index
    %c0_171 = arith.constant 0 : index
    %311 = vector.load %arg20[%c1_169, %c0_170, %c0_171] : memref<2x1x16xf32, #tpu.memory_space<vmem>>, vector<1x1x16xf32>
    %312 = vector.shape_cast %311 : vector<1x1x16xf32> to vector<1x16xf32>
    %313 = vector.broadcast %312 : vector<1x16xf32> to vector<2x16xf32>
    %314 = arith.addf %310, %313 : vector<2x16xf32>
    %315 = arith.addf %314, %231 : vector<2x16xf32>
    %316 = arith.mulf %315, %259 : vector<2x16xf32>
    %c1_172 = arith.constant 1 : index
    %c0_173 = arith.constant 0 : index
    %c0_174 = arith.constant 0 : index
    %317 = vector.load %arg21[%c1_172, %c0_173, %c0_174] : memref<2x16x16xf32, #tpu.memory_space<vmem>>, vector<1x16x16xf32>
    %318 = vector.shape_cast %317 : vector<1x16x16xf32> to vector<16x16xf32>
    %cst_175 = arith.constant dense<0.000000e+00> : vector<2x16xf32>
    %319 = tpu.matmul %316, %318, %cst_175 {dimension_numbers = #tpu.dot_dimension_numbers<[1], [0], [0], [1], [0, 0, 1, 1], [], []>} : vector<2x16xf32>, vector<16x16xf32>, vector<2x16xf32> -> vector<2x16xf32>
    %c1_176 = arith.constant 1 : index
    %c0_177 = arith.constant 0 : index
    %c0_178 = arith.constant 0 : index
    %320 = vector.load %arg22[%c1_176, %c0_177, %c0_178] : memref<2x1x16xf32, #tpu.memory_space<vmem>>, vector<1x1x16xf32>
    %321 = vector.shape_cast %320 : vector<1x1x16xf32> to vector<1x16xf32>
    %322 = vector.broadcast %321 : vector<1x16xf32> to vector<2x16xf32>
    %323 = arith.addf %319, %322 : vector<2x16xf32>
    %324 = arith.addf %323, %173 : vector<2x16xf32>
    %325 = vector.extract_strided_slice %0 {offsets = [2, 0], sizes = [2, 16], strides = [1, 1]} : vector<16x16xf32> to vector<2x16xf32>
    %326 = vector.extract_strided_slice %56 {offsets = [2, 0], sizes = [2, 16], strides = [1, 1]} : vector<16x16xf32> to vector<2x16xf32>
    %327 = vector.extract_strided_slice %57 {offsets = [2, 0], sizes = [2, 16], strides = [1, 1]} : vector<16x16xf32> to vector<2x16xf32>
    %328 = vector.extract_strided_slice %58 {offsets = [2, 0], sizes = [2, 16], strides = [1, 1]} : vector<16x16xf32> to vector<2x16xf32>
    %329 = vector.extract_strided_slice %59 {offsets = [2, 0], sizes = [2, 2], strides = [1, 1]} : vector<16x2xf32> to vector<2x2xf32>
    %330 = vector.extract_strided_slice %60 {offsets = [2, 0], sizes = [2, 2], strides = [1, 1]} : vector<16x2xf32> to vector<2x2xf32>
    %331 = vector.extract_strided_slice %74 {offsets = [2, 0], sizes = [2, 16], strides = [1, 1]} : vector<16x16xf32> to vector<2x16xf32>
    %332 = vector.extract_strided_slice %76 {offsets = [2, 0], sizes = [2, 128], strides = [1, 1]} : vector<16x128xf32> to vector<2x128xf32>
    %333 = vector.extract_strided_slice %80 {offsets = [2, 0], sizes = [2, 128], strides = [1, 1]} : vector<16x128xf32> to vector<2x128xf32>
    %334 = vector.extract_strided_slice %86 {offsets = [2, 0], sizes = [2, 16], strides = [1, 1]} : vector<16x16xf32> to vector<2x16xf32>
    %c0_179 = arith.constant 0 : index
    %c0_180 = arith.constant 0 : index
    %335 = vector.load %arg5[%c0_179, %c0_180] : memref<2x16xf32, #tpu.memory_space<vmem>>, vector<2x16xf32>
    %c0_181 = arith.constant 0 : index
    %c0_182 = arith.constant 0 : index
    %336 = vector.load %arg8[%c0_181, %c0_182] : memref<2x144xf32, #tpu.memory_space<vmem>>, vector<2x144xf32>
    %c0_183 = arith.constant 0 : index
    %c0_184 = arith.constant 0 : index
    %337 = vector.load %arg7[%c0_183, %c0_184] : memref<16x128xf32, #tpu.memory_space<vmem>>, vector<16x128xf32>
    %338 = arith.addf %330, %113 : vector<2x2xf32>
    %339 = arith.maximumf %338, %329 : vector<2x2xf32>
    %340 = arith.subf %329, %339 : vector<2x2xf32>
    %341 = math.exp %340 : vector<2x2xf32>
    %342 = arith.subf %330, %339 : vector<2x2xf32>
    %343 = arith.addf %342, %113 : vector<2x2xf32>
    %344 = math.exp %343 : vector<2x2xf32>
    %cst_185 = arith.constant dense<0.000000e+00> : vector<2x144xf32>
    %345 = tpu.matmul %344, %336, %cst_185 {dimension_numbers = #tpu.dot_dimension_numbers<[1], [0], [0], [1], [0, 0, 1, 1], [], []>} : vector<2x2xf32>, vector<2x144xf32>, vector<2x144xf32> -> vector<2x144xf32>
    %cst_186 = arith.constant dense<0.000000e+00> : vector<2x144xf32>
    %346 = tpu.matmul %341, %336, %cst_186 {dimension_numbers = #tpu.dot_dimension_numbers<[1], [0], [0], [1], [0, 0, 1, 1], [], []>} : vector<2x2xf32>, vector<2x144xf32>, vector<2x144xf32> -> vector<2x144xf32>
    %347 = vector.extract_strided_slice %345 {offsets = [0, 0], sizes = [2, 128], strides = [1, 1]} : vector<2x144xf32> to vector<2x128xf32>
    %348 = vector.extract_strided_slice %345 {offsets = [0, 128], sizes = [2, 16], strides = [1, 1]} : vector<2x144xf32> to vector<2x16xf32>
    %349 = vector.extract_strided_slice %346 {offsets = [0, 0], sizes = [2, 128], strides = [1, 1]} : vector<2x144xf32> to vector<2x128xf32>
    %350 = vector.extract_strided_slice %346 {offsets = [0, 128], sizes = [2, 16], strides = [1, 1]} : vector<2x144xf32> to vector<2x16xf32>
    %351 = arith.mulf %347, %127 : vector<2x128xf32>
    %352 = arith.mulf %349, %333 : vector<2x128xf32>
    %353 = arith.addf %351, %352 : vector<2x128xf32>
    %354 = arith.mulf %348, %130 : vector<2x16xf32>
    %355 = arith.mulf %350, %327 : vector<2x16xf32>
    %356 = arith.addf %354, %355 : vector<2x16xf32>
    %357 = arith.mulf %353, %332 : vector<2x128xf32>
    %cst_187 = arith.constant dense<0.000000e+00> : vector<2x16xf32>
    %358 = tpu.matmul %357, %337, %cst_187 {dimension_numbers = #tpu.dot_dimension_numbers<[1], [1], [0], [0], [0, 0, 1, 0], [], []>} : vector<2x128xf32>, vector<16x128xf32>, vector<2x16xf32> -> vector<2x16xf32>
    %359 = arith.mulf %356, %326 : vector<2x16xf32>
    %cst_188 = arith.constant dense<0.000000e+00> : vector<2x2xf32>
    %360 = tpu.matmul %359, %335, %cst_188 {dimension_numbers = #tpu.dot_dimension_numbers<[1], [1], [0], [0], [0, 0, 1, 0], [], []>} : vector<2x16xf32>, vector<2x16xf32>, vector<2x2xf32> -> vector<2x2xf32>
    %361 = math.absf %360 : vector<2x2xf32>
    %cst_189 = arith.constant 1.000000e+00 : f32
    %362 = vector.broadcast %cst_189 : f32 to vector<2x2xf32>
    %363 = arith.maximumf %361, %362 : vector<2x2xf32>
    %364 = tpu.reciprocal %363 : vector<2x2xf32> -> vector<2x2xf32>
    %cst_190 = arith.constant dense<0.000000e+00> : vector<2x16xf32>
    %365 = tpu.matmul %364, %335, %cst_190 {dimension_numbers = #tpu.dot_dimension_numbers<[1], [0], [0], [1], [0, 0, 1, 1], [], []>} : vector<2x2xf32>, vector<2x16xf32>, vector<2x16xf32> -> vector<2x16xf32>
    %366 = arith.mulf %331, %358 : vector<2x16xf32>
    %367 = arith.mulf %366, %365 : vector<2x16xf32>
    %cst_191 = arith.constant dense<0.000000e+00> : vector<2x2xf32>
    %368 = tpu.matmul %367, %335, %cst_191 {dimension_numbers = #tpu.dot_dimension_numbers<[1], [1], [0], [0], [0, 0, 1, 0], [], []>} : vector<2x16xf32>, vector<2x16xf32>, vector<2x2xf32> -> vector<2x2xf32>
    %cst_192 = arith.constant 1.250000e-01 : f32
    %369 = vector.broadcast %cst_192 : f32 to vector<2x2xf32>
    %370 = arith.mulf %368, %369 : vector<2x2xf32>
    %cst_193 = arith.constant dense<0.000000e+00> : vector<2x16xf32>
    %371 = tpu.matmul %370, %335, %cst_193 {dimension_numbers = #tpu.dot_dimension_numbers<[1], [0], [0], [1], [0, 0, 1, 1], [], []>} : vector<2x2xf32>, vector<2x16xf32>, vector<2x16xf32> -> vector<2x16xf32>
    %372 = arith.subf %367, %371 : vector<2x16xf32>
    %373 = arith.mulf %372, %372 : vector<2x16xf32>
    %cst_194 = arith.constant dense<0.000000e+00> : vector<2x2xf32>
    %374 = tpu.matmul %373, %335, %cst_194 {dimension_numbers = #tpu.dot_dimension_numbers<[1], [1], [0], [0], [0, 0, 1, 0], [], []>} : vector<2x16xf32>, vector<2x16xf32>, vector<2x2xf32> -> vector<2x2xf32>
    %cst_195 = arith.constant 1.250000e-01 : f32
    %375 = vector.broadcast %cst_195 : f32 to vector<2x2xf32>
    %376 = arith.mulf %374, %375 : vector<2x2xf32>
    %cst_196 = arith.constant dense<0.000000e+00> : vector<2x16xf32>
    %377 = tpu.matmul %376, %335, %cst_196 {dimension_numbers = #tpu.dot_dimension_numbers<[1], [0], [0], [1], [0, 0, 1, 1], [], []>} : vector<2x2xf32>, vector<2x16xf32>, vector<2x16xf32> -> vector<2x16xf32>
    %cst_197 = arith.constant 9.99999974E-6 : f32
    %378 = vector.broadcast %cst_197 : f32 to vector<2x16xf32>
    %379 = arith.addf %377, %378 : vector<2x16xf32>
    %380 = math.rsqrt %379 : vector<2x16xf32>
    %381 = arith.mulf %372, %380 : vector<2x16xf32>
    %c0_198 = arith.constant 0 : index
    %c0_199 = arith.constant 0 : index
    %c0_200 = arith.constant 0 : index
    %382 = vector.load %arg19[%c0_198, %c0_199, %c0_200] : memref<2x1x16xf32, #tpu.memory_space<vmem>>, vector<1x1x16xf32>
    %383 = vector.shape_cast %382 : vector<1x1x16xf32> to vector<1x16xf32>
    %384 = vector.broadcast %383 : vector<1x16xf32> to vector<2x16xf32>
    %385 = arith.mulf %381, %384 : vector<2x16xf32>
    %c0_201 = arith.constant 0 : index
    %c0_202 = arith.constant 0 : index
    %c0_203 = arith.constant 0 : index
    %386 = vector.load %arg20[%c0_201, %c0_202, %c0_203] : memref<2x1x16xf32, #tpu.memory_space<vmem>>, vector<1x1x16xf32>
    %387 = vector.shape_cast %386 : vector<1x1x16xf32> to vector<1x16xf32>
    %388 = vector.broadcast %387 : vector<1x16xf32> to vector<2x16xf32>
    %389 = arith.addf %385, %388 : vector<2x16xf32>
    %390 = arith.addf %389, %328 : vector<2x16xf32>
    %391 = arith.mulf %390, %334 : vector<2x16xf32>
    %c0_204 = arith.constant 0 : index
    %c0_205 = arith.constant 0 : index
    %c0_206 = arith.constant 0 : index
    %392 = vector.load %arg21[%c0_204, %c0_205, %c0_206] : memref<2x16x16xf32, #tpu.memory_space<vmem>>, vector<1x16x16xf32>
    %393 = vector.shape_cast %392 : vector<1x16x16xf32> to vector<16x16xf32>
    %cst_207 = arith.constant dense<0.000000e+00> : vector<2x16xf32>
    %394 = tpu.matmul %391, %393, %cst_207 {dimension_numbers = #tpu.dot_dimension_numbers<[1], [0], [0], [1], [0, 0, 1, 1], [], []>} : vector<2x16xf32>, vector<16x16xf32>, vector<2x16xf32> -> vector<2x16xf32>
    %c0_208 = arith.constant 0 : index
    %c0_209 = arith.constant 0 : index
    %c0_210 = arith.constant 0 : index
    %395 = vector.load %arg22[%c0_208, %c0_209, %c0_210] : memref<2x1x16xf32, #tpu.memory_space<vmem>>, vector<1x1x16xf32>
    %396 = vector.shape_cast %395 : vector<1x1x16xf32> to vector<1x16xf32>
    %397 = vector.broadcast %396 : vector<1x16xf32> to vector<2x16xf32>
    %398 = arith.addf %394, %397 : vector<2x16xf32>
    %399 = arith.addf %398, %325 : vector<2x16xf32>
    %c1_211 = arith.constant 1 : index
    %c0_212 = arith.constant 0 : index
    %c0_213 = arith.constant 0 : index
    %400 = vector.load %arg9[%c1_211, %c0_212, %c0_213] : memref<2x1x16xf32, #tpu.memory_space<vmem>>, vector<1x1x16xf32>
    %401 = vector.shape_cast %400 : vector<1x1x16xf32> to vector<1x16xf32>
    %c1_214 = arith.constant 1 : index
    %c0_215 = arith.constant 0 : index
    %c0_216 = arith.constant 0 : index
    %402 = vector.load %arg10[%c1_214, %c0_215, %c0_216] : memref<2x1x16xf32, #tpu.memory_space<vmem>>, vector<1x1x16xf32>
    %403 = vector.shape_cast %402 : vector<1x1x16xf32> to vector<1x16xf32>
    %cst_217 = arith.constant dense<0.000000e+00> : vector<2xf32>
    %404 = vector.multi_reduction <add>, %399, %cst_217 [1] : vector<2x16xf32> to vector<2xf32>
    %405 = vector.shape_cast %404 : vector<2xf32> to vector<2x1xf32>
    %cst_218 = arith.constant 1.600000e+01 : f32
    %406 = vector.broadcast %cst_218 : f32 to vector<2x1xf32>
    %407 = arith.divf %405, %406 : vector<2x1xf32>
    %408 = vector.broadcast %407 : vector<2x1xf32> to vector<2x16xf32>
    %409 = arith.subf %399, %408 : vector<2x16xf32>
    %410 = arith.mulf %409, %409 : vector<2x16xf32>
    %cst_219 = arith.constant dense<0.000000e+00> : vector<2xf32>
    %411 = vector.multi_reduction <add>, %410, %cst_219 [1] : vector<2x16xf32> to vector<2xf32>
    %412 = vector.shape_cast %411 : vector<2xf32> to vector<2x1xf32>
    %cst_220 = arith.constant 1.600000e+01 : f32
    %413 = vector.broadcast %cst_220 : f32 to vector<2x1xf32>
    %414 = arith.divf %412, %413 : vector<2x1xf32>
    %415 = vector.broadcast %407 : vector<2x1xf32> to vector<2x16xf32>
    %416 = arith.subf %399, %415 : vector<2x16xf32>
    %cst_221 = arith.constant 9.99999974E-6 : f32
    %417 = vector.broadcast %cst_221 : f32 to vector<2x1xf32>
    %418 = arith.addf %414, %417 : vector<2x1xf32>
    %419 = math.rsqrt %418 : vector<2x1xf32>
    %420 = vector.broadcast %419 : vector<2x1xf32> to vector<2x16xf32>
    %421 = arith.mulf %416, %420 : vector<2x16xf32>
    %422 = vector.broadcast %401 : vector<1x16xf32> to vector<2x16xf32>
    %423 = arith.mulf %421, %422 : vector<2x16xf32>
    %424 = vector.broadcast %403 : vector<1x16xf32> to vector<2x16xf32>
    %425 = arith.addf %423, %424 : vector<2x16xf32>
    %c1_222 = arith.constant 1 : index
    %c0_223 = arith.constant 0 : index
    %c0_224 = arith.constant 0 : index
    %426 = vector.load %arg11[%c1_222, %c0_223, %c0_224] : memref<2x16x48xf32, #tpu.memory_space<vmem>>, vector<1x16x48xf32>
    %427 = vector.shape_cast %426 : vector<1x16x48xf32> to vector<16x48xf32>
    %cst_225 = arith.constant dense<0.000000e+00> : vector<2x48xf32>
    %428 = tpu.matmul %425, %427, %cst_225 {dimension_numbers = #tpu.dot_dimension_numbers<[1], [0], [0], [1], [0, 0, 1, 1], [], []>} : vector<2x16xf32>, vector<16x48xf32>, vector<2x48xf32> -> vector<2x48xf32>
    %c1_226 = arith.constant 1 : index
    %c0_227 = arith.constant 0 : index
    %c0_228 = arith.constant 0 : index
    %429 = vector.load %arg12[%c1_226, %c0_227, %c0_228] : memref<2x1x48xf32, #tpu.memory_space<vmem>>, vector<1x1x48xf32>
    %430 = vector.shape_cast %429 : vector<1x1x48xf32> to vector<1x48xf32>
    %431 = vector.broadcast %430 : vector<1x48xf32> to vector<2x48xf32>
    %432 = arith.addf %428, %431 : vector<2x48xf32>
    %433 = vector.extract_strided_slice %432 {offsets = [0, 0], sizes = [2, 32], strides = [1, 1]} : vector<2x48xf32> to vector<2x32xf32>
    %434 = vector.extract_strided_slice %432 {offsets = [0, 32], sizes = [2, 16], strides = [1, 1]} : vector<2x48xf32> to vector<2x16xf32>
    %c1_229 = arith.constant 1 : index
    %c0_230 = arith.constant 0 : index
    %c0_231 = arith.constant 0 : index
    %435 = vector.load %arg13[%c1_229, %c0_230, %c0_231] : memref<2x32x32xf32, #tpu.memory_space<vmem>>, vector<1x32x32xf32>
    %436 = vector.shape_cast %435 : vector<1x32x32xf32> to vector<32x32xf32>
    %cst_232 = arith.constant dense<0.000000e+00> : vector<2x32xf32>
    %437 = tpu.matmul %433, %436, %cst_232 {dimension_numbers = #tpu.dot_dimension_numbers<[1], [0], [0], [1], [0, 0, 1, 1], [], []>} : vector<2x32xf32>, vector<32x32xf32>, vector<2x32xf32> -> vector<2x32xf32>
    %c1_233 = arith.constant 1 : index
    %c0_234 = arith.constant 0 : index
    %c0_235 = arith.constant 0 : index
    %438 = vector.load %arg14[%c1_233, %c0_234, %c0_235] : memref<2x1x1xf32, #tpu.memory_space<vmem>>, vector<1x1x1xf32>
    %439 = vector.shape_cast %438 : vector<1x1x1xf32> to vector<1x1xf32>
    %440 = vector.broadcast %439 : vector<1x1xf32> to vector<2x32xf32>
    %441 = arith.addf %437, %440 : vector<2x32xf32>
    %442 = arith.negf %441 : vector<2x32xf32>
    %443 = math.exp %442 : vector<2x32xf32>
    %cst_236 = arith.constant 1.000000e+00 : f32
    %444 = vector.broadcast %cst_236 : f32 to vector<2x32xf32>
    %445 = arith.addf %444, %443 : vector<2x32xf32>
    %446 = arith.divf %444, %445 : vector<2x32xf32>
    %447 = arith.mulf %441, %446 : vector<2x32xf32>
    %c1_237 = arith.constant 1 : index
    %c0_238 = arith.constant 0 : index
    %c0_239 = arith.constant 0 : index
    %448 = vector.load %arg15[%c1_237, %c0_238, %c0_239] : memref<2x32x52xf32, #tpu.memory_space<vmem>>, vector<1x32x52xf32>
    %449 = vector.shape_cast %448 : vector<1x32x52xf32> to vector<32x52xf32>
    %cst_240 = arith.constant dense<0.000000e+00> : vector<2x52xf32>
    %450 = tpu.matmul %447, %449, %cst_240 {dimension_numbers = #tpu.dot_dimension_numbers<[1], [0], [0], [1], [0, 0, 1, 1], [], []>} : vector<2x32xf32>, vector<32x52xf32>, vector<2x52xf32> -> vector<2x52xf32>
    %c1_241 = arith.constant 1 : index
    %c0_242 = arith.constant 0 : index
    %c0_243 = arith.constant 0 : index
    %451 = vector.load %arg16[%c1_241, %c0_242, %c0_243] : memref<2x1x52xf32, #tpu.memory_space<vmem>>, vector<1x1x52xf32>
    %452 = vector.shape_cast %451 : vector<1x1x52xf32> to vector<1x52xf32>
    %453 = vector.broadcast %452 : vector<1x52xf32> to vector<2x52xf32>
    %454 = arith.addf %450, %453 : vector<2x52xf32>
    %455 = vector.extract_strided_slice %454 {offsets = [0, 0], sizes = [2, 16], strides = [1, 1]} : vector<2x52xf32> to vector<2x16xf32>
    %456 = vector.extract_strided_slice %454 {offsets = [0, 16], sizes = [2, 16], strides = [1, 1]} : vector<2x52xf32> to vector<2x16xf32>
    %457 = vector.extract_strided_slice %454 {offsets = [0, 32], sizes = [2, 16], strides = [1, 1]} : vector<2x52xf32> to vector<2x16xf32>
    %458 = vector.extract_strided_slice %454 {offsets = [0, 48], sizes = [2, 2], strides = [1, 1]} : vector<2x52xf32> to vector<2x2xf32>
    %459 = vector.extract_strided_slice %454 {offsets = [0, 50], sizes = [2, 2], strides = [1, 1]} : vector<2x52xf32> to vector<2x2xf32>
    %c1_244 = arith.constant 1 : index
    %c0_245 = arith.constant 0 : index
    %c0_246 = arith.constant 0 : index
    %460 = vector.load %arg17[%c1_244, %c0_245, %c0_246] : memref<2x32x32xf32, #tpu.memory_space<vmem>>, vector<1x32x32xf32>
    %461 = vector.shape_cast %460 : vector<1x32x32xf32> to vector<32x32xf32>
    %cst_247 = arith.constant dense<0.000000e+00> : vector<2x32xf32>
    %462 = tpu.matmul %433, %461, %cst_247 {dimension_numbers = #tpu.dot_dimension_numbers<[1], [0], [0], [1], [0, 0, 1, 1], [], []>} : vector<2x32xf32>, vector<32x32xf32>, vector<2x32xf32> -> vector<2x32xf32>
    %c1_248 = arith.constant 1 : index
    %c0_249 = arith.constant 0 : index
    %c0_250 = arith.constant 0 : index
    %463 = vector.load %arg18[%c1_248, %c0_249, %c0_250] : memref<2x1x32xf32, #tpu.memory_space<vmem>>, vector<1x1x32xf32>
    %464 = vector.shape_cast %463 : vector<1x1x32xf32> to vector<1x32xf32>
    %465 = vector.broadcast %464 : vector<1x32xf32> to vector<2x32xf32>
    %466 = arith.addf %462, %465 : vector<2x32xf32>
    %467 = vector.extract_strided_slice %466 {offsets = [0, 0], sizes = [2, 16], strides = [1, 1]} : vector<2x32xf32> to vector<2x16xf32>
    %468 = vector.extract_strided_slice %466 {offsets = [0, 16], sizes = [2, 16], strides = [1, 1]} : vector<2x32xf32> to vector<2x16xf32>
    %469 = arith.negf %468 : vector<2x16xf32>
    %470 = math.exp %469 : vector<2x16xf32>
    %cst_251 = arith.constant 1.000000e+00 : f32
    %471 = vector.broadcast %cst_251 : f32 to vector<2x16xf32>
    %472 = arith.addf %471, %470 : vector<2x16xf32>
    %473 = arith.divf %471, %472 : vector<2x16xf32>
    %c0_252 = arith.constant 0 : index
    %c0_253 = arith.constant 0 : index
    %474 = vector.load %arg6[%c0_252, %c0_253] : memref<16x128xf32, #tpu.memory_space<vmem>>, vector<16x128xf32>
    %cst_254 = arith.constant dense<0.000000e+00> : vector<2x128xf32>
    %475 = tpu.matmul %455, %474, %cst_254 {dimension_numbers = #tpu.dot_dimension_numbers<[1], [0], [0], [1], [0, 0, 1, 1], [], []>} : vector<2x16xf32>, vector<16x128xf32>, vector<2x128xf32> -> vector<2x128xf32>
    %cst_255 = arith.constant dense<0.000000e+00> : vector<2x128xf32>
    %476 = tpu.matmul %456, %474, %cst_255 {dimension_numbers = #tpu.dot_dimension_numbers<[1], [0], [0], [1], [0, 0, 1, 1], [], []>} : vector<2x16xf32>, vector<16x128xf32>, vector<2x128xf32> -> vector<2x128xf32>
    %c0_256 = arith.constant 0 : index
    %c0_257 = arith.constant 0 : index
    %477 = vector.load %arg7[%c0_256, %c0_257] : memref<16x128xf32, #tpu.memory_space<vmem>>, vector<16x128xf32>
    %cst_258 = arith.constant dense<0.000000e+00> : vector<2x128xf32>
    %478 = tpu.matmul %467, %477, %cst_258 {dimension_numbers = #tpu.dot_dimension_numbers<[1], [0], [0], [1], [0, 0, 1, 1], [], []>} : vector<2x16xf32>, vector<16x128xf32>, vector<2x128xf32> -> vector<2x128xf32>
    %479 = arith.mulf %478, %476 : vector<2x128xf32>
    %480 = arith.negf %434 : vector<2x16xf32>
    %481 = math.exp %480 : vector<2x16xf32>
    %cst_259 = arith.constant 1.000000e+00 : f32
    %482 = vector.broadcast %cst_259 : f32 to vector<2x16xf32>
    %483 = arith.addf %482, %481 : vector<2x16xf32>
    %484 = arith.divf %482, %483 : vector<2x16xf32>
    %485 = arith.mulf %434, %484 : vector<2x16xf32>
    %c0_260 = arith.constant 0 : index
    %c0_261 = arith.constant 0 : index
    %486 = vector.load %arg5[%c0_260, %c0_261] : memref<2x16xf32, #tpu.memory_space<vmem>>, vector<2x16xf32>
    %c0_262 = arith.constant 0 : index
    %c0_263 = arith.constant 0 : index
    %487 = vector.load %arg8[%c0_262, %c0_263] : memref<2x144xf32, #tpu.memory_space<vmem>>, vector<2x144xf32>
    %c0_264 = arith.constant 0 : index
    %c0_265 = arith.constant 0 : index
    %488 = vector.load %arg7[%c0_264, %c0_265] : memref<16x128xf32, #tpu.memory_space<vmem>>, vector<16x128xf32>
    %489 = arith.addf %459, %264 : vector<2x2xf32>
    %490 = arith.maximumf %489, %458 : vector<2x2xf32>
    %491 = arith.subf %458, %490 : vector<2x2xf32>
    %492 = math.exp %491 : vector<2x2xf32>
    %493 = arith.subf %459, %490 : vector<2x2xf32>
    %494 = arith.addf %493, %264 : vector<2x2xf32>
    %495 = math.exp %494 : vector<2x2xf32>
    %cst_266 = arith.constant dense<0.000000e+00> : vector<2x144xf32>
    %496 = tpu.matmul %495, %487, %cst_266 {dimension_numbers = #tpu.dot_dimension_numbers<[1], [0], [0], [1], [0, 0, 1, 1], [], []>} : vector<2x2xf32>, vector<2x144xf32>, vector<2x144xf32> -> vector<2x144xf32>
    %cst_267 = arith.constant dense<0.000000e+00> : vector<2x144xf32>
    %497 = tpu.matmul %492, %487, %cst_267 {dimension_numbers = #tpu.dot_dimension_numbers<[1], [0], [0], [1], [0, 0, 1, 1], [], []>} : vector<2x2xf32>, vector<2x144xf32>, vector<2x144xf32> -> vector<2x144xf32>
    %498 = vector.extract_strided_slice %496 {offsets = [0, 0], sizes = [2, 128], strides = [1, 1]} : vector<2x144xf32> to vector<2x128xf32>
    %499 = vector.extract_strided_slice %496 {offsets = [0, 128], sizes = [2, 16], strides = [1, 1]} : vector<2x144xf32> to vector<2x16xf32>
    %500 = vector.extract_strided_slice %497 {offsets = [0, 0], sizes = [2, 128], strides = [1, 1]} : vector<2x144xf32> to vector<2x128xf32>
    %501 = vector.extract_strided_slice %497 {offsets = [0, 128], sizes = [2, 16], strides = [1, 1]} : vector<2x144xf32> to vector<2x16xf32>
    %502 = arith.mulf %498, %278 : vector<2x128xf32>
    %503 = arith.mulf %500, %479 : vector<2x128xf32>
    %504 = arith.addf %502, %503 : vector<2x128xf32>
    %505 = arith.mulf %499, %281 : vector<2x16xf32>
    %506 = arith.mulf %501, %456 : vector<2x16xf32>
    %507 = arith.addf %505, %506 : vector<2x16xf32>
    %508 = arith.mulf %504, %475 : vector<2x128xf32>
    %cst_268 = arith.constant dense<0.000000e+00> : vector<2x16xf32>
    %509 = tpu.matmul %508, %488, %cst_268 {dimension_numbers = #tpu.dot_dimension_numbers<[1], [1], [0], [0], [0, 0, 1, 0], [], []>} : vector<2x128xf32>, vector<16x128xf32>, vector<2x16xf32> -> vector<2x16xf32>
    %510 = arith.mulf %507, %455 : vector<2x16xf32>
    %cst_269 = arith.constant dense<0.000000e+00> : vector<2x2xf32>
    %511 = tpu.matmul %510, %486, %cst_269 {dimension_numbers = #tpu.dot_dimension_numbers<[1], [1], [0], [0], [0, 0, 1, 0], [], []>} : vector<2x16xf32>, vector<2x16xf32>, vector<2x2xf32> -> vector<2x2xf32>
    %512 = math.absf %511 : vector<2x2xf32>
    %cst_270 = arith.constant 1.000000e+00 : f32
    %513 = vector.broadcast %cst_270 : f32 to vector<2x2xf32>
    %514 = arith.maximumf %512, %513 : vector<2x2xf32>
    %515 = tpu.reciprocal %514 : vector<2x2xf32> -> vector<2x2xf32>
    %cst_271 = arith.constant dense<0.000000e+00> : vector<2x16xf32>
    %516 = tpu.matmul %515, %486, %cst_271 {dimension_numbers = #tpu.dot_dimension_numbers<[1], [0], [0], [1], [0, 0, 1, 1], [], []>} : vector<2x2xf32>, vector<2x16xf32>, vector<2x16xf32> -> vector<2x16xf32>
    %517 = arith.mulf %473, %509 : vector<2x16xf32>
    %518 = arith.mulf %517, %516 : vector<2x16xf32>
    %cst_272 = arith.constant dense<0.000000e+00> : vector<2x2xf32>
    %519 = tpu.matmul %518, %486, %cst_272 {dimension_numbers = #tpu.dot_dimension_numbers<[1], [1], [0], [0], [0, 0, 1, 0], [], []>} : vector<2x16xf32>, vector<2x16xf32>, vector<2x2xf32> -> vector<2x2xf32>
    %cst_273 = arith.constant 1.250000e-01 : f32
    %520 = vector.broadcast %cst_273 : f32 to vector<2x2xf32>
    %521 = arith.mulf %519, %520 : vector<2x2xf32>
    %cst_274 = arith.constant dense<0.000000e+00> : vector<2x16xf32>
    %522 = tpu.matmul %521, %486, %cst_274 {dimension_numbers = #tpu.dot_dimension_numbers<[1], [0], [0], [1], [0, 0, 1, 1], [], []>} : vector<2x2xf32>, vector<2x16xf32>, vector<2x16xf32> -> vector<2x16xf32>
    %523 = arith.subf %518, %522 : vector<2x16xf32>
    %524 = arith.mulf %523, %523 : vector<2x16xf32>
    %cst_275 = arith.constant dense<0.000000e+00> : vector<2x2xf32>
    %525 = tpu.matmul %524, %486, %cst_275 {dimension_numbers = #tpu.dot_dimension_numbers<[1], [1], [0], [0], [0, 0, 1, 0], [], []>} : vector<2x16xf32>, vector<2x16xf32>, vector<2x2xf32> -> vector<2x2xf32>
    %cst_276 = arith.constant 1.250000e-01 : f32
    %526 = vector.broadcast %cst_276 : f32 to vector<2x2xf32>
    %527 = arith.mulf %525, %526 : vector<2x2xf32>
    %cst_277 = arith.constant dense<0.000000e+00> : vector<2x16xf32>
    %528 = tpu.matmul %527, %486, %cst_277 {dimension_numbers = #tpu.dot_dimension_numbers<[1], [0], [0], [1], [0, 0, 1, 1], [], []>} : vector<2x2xf32>, vector<2x16xf32>, vector<2x16xf32> -> vector<2x16xf32>
    %cst_278 = arith.constant 9.99999974E-6 : f32
    %529 = vector.broadcast %cst_278 : f32 to vector<2x16xf32>
    %530 = arith.addf %528, %529 : vector<2x16xf32>
    %531 = math.rsqrt %530 : vector<2x16xf32>
    %532 = arith.mulf %523, %531 : vector<2x16xf32>
    %c1_279 = arith.constant 1 : index
    %c0_280 = arith.constant 0 : index
    %c0_281 = arith.constant 0 : index
    %533 = vector.load %arg19[%c1_279, %c0_280, %c0_281] : memref<2x1x16xf32, #tpu.memory_space<vmem>>, vector<1x1x16xf32>
    %534 = vector.shape_cast %533 : vector<1x1x16xf32> to vector<1x16xf32>
    %535 = vector.broadcast %534 : vector<1x16xf32> to vector<2x16xf32>
    %536 = arith.mulf %532, %535 : vector<2x16xf32>
    %c1_282 = arith.constant 1 : index
    %c0_283 = arith.constant 0 : index
    %c0_284 = arith.constant 0 : index
    %537 = vector.load %arg20[%c1_282, %c0_283, %c0_284] : memref<2x1x16xf32, #tpu.memory_space<vmem>>, vector<1x1x16xf32>
    %538 = vector.shape_cast %537 : vector<1x1x16xf32> to vector<1x16xf32>
    %539 = vector.broadcast %538 : vector<1x16xf32> to vector<2x16xf32>
    %540 = arith.addf %536, %539 : vector<2x16xf32>
    %541 = arith.addf %540, %457 : vector<2x16xf32>
    %542 = arith.mulf %541, %485 : vector<2x16xf32>
    %c1_285 = arith.constant 1 : index
    %c0_286 = arith.constant 0 : index
    %c0_287 = arith.constant 0 : index
    %543 = vector.load %arg21[%c1_285, %c0_286, %c0_287] : memref<2x16x16xf32, #tpu.memory_space<vmem>>, vector<1x16x16xf32>
    %544 = vector.shape_cast %543 : vector<1x16x16xf32> to vector<16x16xf32>
    %cst_288 = arith.constant dense<0.000000e+00> : vector<2x16xf32>
    %545 = tpu.matmul %542, %544, %cst_288 {dimension_numbers = #tpu.dot_dimension_numbers<[1], [0], [0], [1], [0, 0, 1, 1], [], []>} : vector<2x16xf32>, vector<16x16xf32>, vector<2x16xf32> -> vector<2x16xf32>
    %c1_289 = arith.constant 1 : index
    %c0_290 = arith.constant 0 : index
    %c0_291 = arith.constant 0 : index
    %546 = vector.load %arg22[%c1_289, %c0_290, %c0_291] : memref<2x1x16xf32, #tpu.memory_space<vmem>>, vector<1x1x16xf32>
    %547 = vector.shape_cast %546 : vector<1x1x16xf32> to vector<1x16xf32>
    %548 = vector.broadcast %547 : vector<1x16xf32> to vector<2x16xf32>
    %549 = arith.addf %545, %548 : vector<2x16xf32>
    %550 = arith.addf %549, %399 : vector<2x16xf32>
    %551 = vector.extract_strided_slice %0 {offsets = [4, 0], sizes = [2, 16], strides = [1, 1]} : vector<16x16xf32> to vector<2x16xf32>
    %552 = vector.extract_strided_slice %56 {offsets = [4, 0], sizes = [2, 16], strides = [1, 1]} : vector<16x16xf32> to vector<2x16xf32>
    %553 = vector.extract_strided_slice %57 {offsets = [4, 0], sizes = [2, 16], strides = [1, 1]} : vector<16x16xf32> to vector<2x16xf32>
    %554 = vector.extract_strided_slice %58 {offsets = [4, 0], sizes = [2, 16], strides = [1, 1]} : vector<16x16xf32> to vector<2x16xf32>
    %555 = vector.extract_strided_slice %59 {offsets = [4, 0], sizes = [2, 2], strides = [1, 1]} : vector<16x2xf32> to vector<2x2xf32>
    %556 = vector.extract_strided_slice %60 {offsets = [4, 0], sizes = [2, 2], strides = [1, 1]} : vector<16x2xf32> to vector<2x2xf32>
    %557 = vector.extract_strided_slice %74 {offsets = [4, 0], sizes = [2, 16], strides = [1, 1]} : vector<16x16xf32> to vector<2x16xf32>
    %558 = vector.extract_strided_slice %76 {offsets = [4, 0], sizes = [2, 128], strides = [1, 1]} : vector<16x128xf32> to vector<2x128xf32>
    %559 = vector.extract_strided_slice %80 {offsets = [4, 0], sizes = [2, 128], strides = [1, 1]} : vector<16x128xf32> to vector<2x128xf32>
    %560 = vector.extract_strided_slice %86 {offsets = [4, 0], sizes = [2, 16], strides = [1, 1]} : vector<16x16xf32> to vector<2x16xf32>
    %c0_292 = arith.constant 0 : index
    %c0_293 = arith.constant 0 : index
    %561 = vector.load %arg5[%c0_292, %c0_293] : memref<2x16xf32, #tpu.memory_space<vmem>>, vector<2x16xf32>
    %c0_294 = arith.constant 0 : index
    %c0_295 = arith.constant 0 : index
    %562 = vector.load %arg8[%c0_294, %c0_295] : memref<2x144xf32, #tpu.memory_space<vmem>>, vector<2x144xf32>
    %c0_296 = arith.constant 0 : index
    %c0_297 = arith.constant 0 : index
    %563 = vector.load %arg7[%c0_296, %c0_297] : memref<16x128xf32, #tpu.memory_space<vmem>>, vector<16x128xf32>
    %564 = arith.addf %556, %339 : vector<2x2xf32>
    %565 = arith.maximumf %564, %555 : vector<2x2xf32>
    %566 = arith.subf %555, %565 : vector<2x2xf32>
    %567 = math.exp %566 : vector<2x2xf32>
    %568 = arith.subf %556, %565 : vector<2x2xf32>
    %569 = arith.addf %568, %339 : vector<2x2xf32>
    %570 = math.exp %569 : vector<2x2xf32>
    %cst_298 = arith.constant dense<0.000000e+00> : vector<2x144xf32>
    %571 = tpu.matmul %570, %562, %cst_298 {dimension_numbers = #tpu.dot_dimension_numbers<[1], [0], [0], [1], [0, 0, 1, 1], [], []>} : vector<2x2xf32>, vector<2x144xf32>, vector<2x144xf32> -> vector<2x144xf32>
    %cst_299 = arith.constant dense<0.000000e+00> : vector<2x144xf32>
    %572 = tpu.matmul %567, %562, %cst_299 {dimension_numbers = #tpu.dot_dimension_numbers<[1], [0], [0], [1], [0, 0, 1, 1], [], []>} : vector<2x2xf32>, vector<2x144xf32>, vector<2x144xf32> -> vector<2x144xf32>
    %573 = vector.extract_strided_slice %571 {offsets = [0, 0], sizes = [2, 128], strides = [1, 1]} : vector<2x144xf32> to vector<2x128xf32>
    %574 = vector.extract_strided_slice %571 {offsets = [0, 128], sizes = [2, 16], strides = [1, 1]} : vector<2x144xf32> to vector<2x16xf32>
    %575 = vector.extract_strided_slice %572 {offsets = [0, 0], sizes = [2, 128], strides = [1, 1]} : vector<2x144xf32> to vector<2x128xf32>
    %576 = vector.extract_strided_slice %572 {offsets = [0, 128], sizes = [2, 16], strides = [1, 1]} : vector<2x144xf32> to vector<2x16xf32>
    %577 = arith.mulf %573, %353 : vector<2x128xf32>
    %578 = arith.mulf %575, %559 : vector<2x128xf32>
    %579 = arith.addf %577, %578 : vector<2x128xf32>
    %580 = arith.mulf %574, %356 : vector<2x16xf32>
    %581 = arith.mulf %576, %553 : vector<2x16xf32>
    %582 = arith.addf %580, %581 : vector<2x16xf32>
    %583 = arith.mulf %579, %558 : vector<2x128xf32>
    %cst_300 = arith.constant dense<0.000000e+00> : vector<2x16xf32>
    %584 = tpu.matmul %583, %563, %cst_300 {dimension_numbers = #tpu.dot_dimension_numbers<[1], [1], [0], [0], [0, 0, 1, 0], [], []>} : vector<2x128xf32>, vector<16x128xf32>, vector<2x16xf32> -> vector<2x16xf32>
    %585 = arith.mulf %582, %552 : vector<2x16xf32>
    %cst_301 = arith.constant dense<0.000000e+00> : vector<2x2xf32>
    %586 = tpu.matmul %585, %561, %cst_301 {dimension_numbers = #tpu.dot_dimension_numbers<[1], [1], [0], [0], [0, 0, 1, 0], [], []>} : vector<2x16xf32>, vector<2x16xf32>, vector<2x2xf32> -> vector<2x2xf32>
    %587 = math.absf %586 : vector<2x2xf32>
    %cst_302 = arith.constant 1.000000e+00 : f32
    %588 = vector.broadcast %cst_302 : f32 to vector<2x2xf32>
    %589 = arith.maximumf %587, %588 : vector<2x2xf32>
    %590 = tpu.reciprocal %589 : vector<2x2xf32> -> vector<2x2xf32>
    %cst_303 = arith.constant dense<0.000000e+00> : vector<2x16xf32>
    %591 = tpu.matmul %590, %561, %cst_303 {dimension_numbers = #tpu.dot_dimension_numbers<[1], [0], [0], [1], [0, 0, 1, 1], [], []>} : vector<2x2xf32>, vector<2x16xf32>, vector<2x16xf32> -> vector<2x16xf32>
    %592 = arith.mulf %557, %584 : vector<2x16xf32>
    %593 = arith.mulf %592, %591 : vector<2x16xf32>
    %cst_304 = arith.constant dense<0.000000e+00> : vector<2x2xf32>
    %594 = tpu.matmul %593, %561, %cst_304 {dimension_numbers = #tpu.dot_dimension_numbers<[1], [1], [0], [0], [0, 0, 1, 0], [], []>} : vector<2x16xf32>, vector<2x16xf32>, vector<2x2xf32> -> vector<2x2xf32>
    %cst_305 = arith.constant 1.250000e-01 : f32
    %595 = vector.broadcast %cst_305 : f32 to vector<2x2xf32>
    %596 = arith.mulf %594, %595 : vector<2x2xf32>
    %cst_306 = arith.constant dense<0.000000e+00> : vector<2x16xf32>
    %597 = tpu.matmul %596, %561, %cst_306 {dimension_numbers = #tpu.dot_dimension_numbers<[1], [0], [0], [1], [0, 0, 1, 1], [], []>} : vector<2x2xf32>, vector<2x16xf32>, vector<2x16xf32> -> vector<2x16xf32>
    %598 = arith.subf %593, %597 : vector<2x16xf32>
    %599 = arith.mulf %598, %598 : vector<2x16xf32>
    %cst_307 = arith.constant dense<0.000000e+00> : vector<2x2xf32>
    %600 = tpu.matmul %599, %561, %cst_307 {dimension_numbers = #tpu.dot_dimension_numbers<[1], [1], [0], [0], [0, 0, 1, 0], [], []>} : vector<2x16xf32>, vector<2x16xf32>, vector<2x2xf32> -> vector<2x2xf32>
    %cst_308 = arith.constant 1.250000e-01 : f32
    %601 = vector.broadcast %cst_308 : f32 to vector<2x2xf32>
    %602 = arith.mulf %600, %601 : vector<2x2xf32>
    %cst_309 = arith.constant dense<0.000000e+00> : vector<2x16xf32>
    %603 = tpu.matmul %602, %561, %cst_309 {dimension_numbers = #tpu.dot_dimension_numbers<[1], [0], [0], [1], [0, 0, 1, 1], [], []>} : vector<2x2xf32>, vector<2x16xf32>, vector<2x16xf32> -> vector<2x16xf32>
    %cst_310 = arith.constant 9.99999974E-6 : f32
    %604 = vector.broadcast %cst_310 : f32 to vector<2x16xf32>
    %605 = arith.addf %603, %604 : vector<2x16xf32>
    %606 = math.rsqrt %605 : vector<2x16xf32>
    %607 = arith.mulf %598, %606 : vector<2x16xf32>
    %c0_311 = arith.constant 0 : index
    %c0_312 = arith.constant 0 : index
    %c0_313 = arith.constant 0 : index
    %608 = vector.load %arg19[%c0_311, %c0_312, %c0_313] : memref<2x1x16xf32, #tpu.memory_space<vmem>>, vector<1x1x16xf32>
    %609 = vector.shape_cast %608 : vector<1x1x16xf32> to vector<1x16xf32>
    %610 = vector.broadcast %609 : vector<1x16xf32> to vector<2x16xf32>
    %611 = arith.mulf %607, %610 : vector<2x16xf32>
    %c0_314 = arith.constant 0 : index
    %c0_315 = arith.constant 0 : index
    %c0_316 = arith.constant 0 : index
    %612 = vector.load %arg20[%c0_314, %c0_315, %c0_316] : memref<2x1x16xf32, #tpu.memory_space<vmem>>, vector<1x1x16xf32>
    %613 = vector.shape_cast %612 : vector<1x1x16xf32> to vector<1x16xf32>
    %614 = vector.broadcast %613 : vector<1x16xf32> to vector<2x16xf32>
    %615 = arith.addf %611, %614 : vector<2x16xf32>
    %616 = arith.addf %615, %554 : vector<2x16xf32>
    %617 = arith.mulf %616, %560 : vector<2x16xf32>
    %c0_317 = arith.constant 0 : index
    %c0_318 = arith.constant 0 : index
    %c0_319 = arith.constant 0 : index
    %618 = vector.load %arg21[%c0_317, %c0_318, %c0_319] : memref<2x16x16xf32, #tpu.memory_space<vmem>>, vector<1x16x16xf32>
    %619 = vector.shape_cast %618 : vector<1x16x16xf32> to vector<16x16xf32>
    %cst_320 = arith.constant dense<0.000000e+00> : vector<2x16xf32>
    %620 = tpu.matmul %617, %619, %cst_320 {dimension_numbers = #tpu.dot_dimension_numbers<[1], [0], [0], [1], [0, 0, 1, 1], [], []>} : vector<2x16xf32>, vector<16x16xf32>, vector<2x16xf32> -> vector<2x16xf32>
    %c0_321 = arith.constant 0 : index
    %c0_322 = arith.constant 0 : index
    %c0_323 = arith.constant 0 : index
    %621 = vector.load %arg22[%c0_321, %c0_322, %c0_323] : memref<2x1x16xf32, #tpu.memory_space<vmem>>, vector<1x1x16xf32>
    %622 = vector.shape_cast %621 : vector<1x1x16xf32> to vector<1x16xf32>
    %623 = vector.broadcast %622 : vector<1x16xf32> to vector<2x16xf32>
    %624 = arith.addf %620, %623 : vector<2x16xf32>
    %625 = arith.addf %624, %551 : vector<2x16xf32>
    %c1_324 = arith.constant 1 : index
    %c0_325 = arith.constant 0 : index
    %c0_326 = arith.constant 0 : index
    %626 = vector.load %arg9[%c1_324, %c0_325, %c0_326] : memref<2x1x16xf32, #tpu.memory_space<vmem>>, vector<1x1x16xf32>
    %627 = vector.shape_cast %626 : vector<1x1x16xf32> to vector<1x16xf32>
    %c1_327 = arith.constant 1 : index
    %c0_328 = arith.constant 0 : index
    %c0_329 = arith.constant 0 : index
    %628 = vector.load %arg10[%c1_327, %c0_328, %c0_329] : memref<2x1x16xf32, #tpu.memory_space<vmem>>, vector<1x1x16xf32>
    %629 = vector.shape_cast %628 : vector<1x1x16xf32> to vector<1x16xf32>
    %cst_330 = arith.constant dense<0.000000e+00> : vector<2xf32>
    %630 = vector.multi_reduction <add>, %625, %cst_330 [1] : vector<2x16xf32> to vector<2xf32>
    %631 = vector.shape_cast %630 : vector<2xf32> to vector<2x1xf32>
    %cst_331 = arith.constant 1.600000e+01 : f32
    %632 = vector.broadcast %cst_331 : f32 to vector<2x1xf32>
    %633 = arith.divf %631, %632 : vector<2x1xf32>
    %634 = vector.broadcast %633 : vector<2x1xf32> to vector<2x16xf32>
    %635 = arith.subf %625, %634 : vector<2x16xf32>
    %636 = arith.mulf %635, %635 : vector<2x16xf32>
    %cst_332 = arith.constant dense<0.000000e+00> : vector<2xf32>
    %637 = vector.multi_reduction <add>, %636, %cst_332 [1] : vector<2x16xf32> to vector<2xf32>
    %638 = vector.shape_cast %637 : vector<2xf32> to vector<2x1xf32>
    %cst_333 = arith.constant 1.600000e+01 : f32
    %639 = vector.broadcast %cst_333 : f32 to vector<2x1xf32>
    %640 = arith.divf %638, %639 : vector<2x1xf32>
    %641 = vector.broadcast %633 : vector<2x1xf32> to vector<2x16xf32>
    %642 = arith.subf %625, %641 : vector<2x16xf32>
    %cst_334 = arith.constant 9.99999974E-6 : f32
    %643 = vector.broadcast %cst_334 : f32 to vector<2x1xf32>
    %644 = arith.addf %640, %643 : vector<2x1xf32>
    %645 = math.rsqrt %644 : vector<2x1xf32>
    %646 = vector.broadcast %645 : vector<2x1xf32> to vector<2x16xf32>
    %647 = arith.mulf %642, %646 : vector<2x16xf32>
    %648 = vector.broadcast %627 : vector<1x16xf32> to vector<2x16xf32>
    %649 = arith.mulf %647, %648 : vector<2x16xf32>
    %650 = vector.broadcast %629 : vector<1x16xf32> to vector<2x16xf32>
    %651 = arith.addf %649, %650 : vector<2x16xf32>
    %c1_335 = arith.constant 1 : index
    %c0_336 = arith.constant 0 : index
    %c0_337 = arith.constant 0 : index
    %652 = vector.load %arg11[%c1_335, %c0_336, %c0_337] : memref<2x16x48xf32, #tpu.memory_space<vmem>>, vector<1x16x48xf32>
    %653 = vector.shape_cast %652 : vector<1x16x48xf32> to vector<16x48xf32>
    %cst_338 = arith.constant dense<0.000000e+00> : vector<2x48xf32>
    %654 = tpu.matmul %651, %653, %cst_338 {dimension_numbers = #tpu.dot_dimension_numbers<[1], [0], [0], [1], [0, 0, 1, 1], [], []>} : vector<2x16xf32>, vector<16x48xf32>, vector<2x48xf32> -> vector<2x48xf32>
    %c1_339 = arith.constant 1 : index
    %c0_340 = arith.constant 0 : index
    %c0_341 = arith.constant 0 : index
    %655 = vector.load %arg12[%c1_339, %c0_340, %c0_341] : memref<2x1x48xf32, #tpu.memory_space<vmem>>, vector<1x1x48xf32>
    %656 = vector.shape_cast %655 : vector<1x1x48xf32> to vector<1x48xf32>
    %657 = vector.broadcast %656 : vector<1x48xf32> to vector<2x48xf32>
    %658 = arith.addf %654, %657 : vector<2x48xf32>
    %659 = vector.extract_strided_slice %658 {offsets = [0, 0], sizes = [2, 32], strides = [1, 1]} : vector<2x48xf32> to vector<2x32xf32>
    %660 = vector.extract_strided_slice %658 {offsets = [0, 32], sizes = [2, 16], strides = [1, 1]} : vector<2x48xf32> to vector<2x16xf32>
    %c1_342 = arith.constant 1 : index
    %c0_343 = arith.constant 0 : index
    %c0_344 = arith.constant 0 : index
    %661 = vector.load %arg13[%c1_342, %c0_343, %c0_344] : memref<2x32x32xf32, #tpu.memory_space<vmem>>, vector<1x32x32xf32>
    %662 = vector.shape_cast %661 : vector<1x32x32xf32> to vector<32x32xf32>
    %cst_345 = arith.constant dense<0.000000e+00> : vector<2x32xf32>
    %663 = tpu.matmul %659, %662, %cst_345 {dimension_numbers = #tpu.dot_dimension_numbers<[1], [0], [0], [1], [0, 0, 1, 1], [], []>} : vector<2x32xf32>, vector<32x32xf32>, vector<2x32xf32> -> vector<2x32xf32>
    %c1_346 = arith.constant 1 : index
    %c0_347 = arith.constant 0 : index
    %c0_348 = arith.constant 0 : index
    %664 = vector.load %arg14[%c1_346, %c0_347, %c0_348] : memref<2x1x1xf32, #tpu.memory_space<vmem>>, vector<1x1x1xf32>
    %665 = vector.shape_cast %664 : vector<1x1x1xf32> to vector<1x1xf32>
    %666 = vector.broadcast %665 : vector<1x1xf32> to vector<2x32xf32>
    %667 = arith.addf %663, %666 : vector<2x32xf32>
    %668 = arith.negf %667 : vector<2x32xf32>
    %669 = math.exp %668 : vector<2x32xf32>
    %cst_349 = arith.constant 1.000000e+00 : f32
    %670 = vector.broadcast %cst_349 : f32 to vector<2x32xf32>
    %671 = arith.addf %670, %669 : vector<2x32xf32>
    %672 = arith.divf %670, %671 : vector<2x32xf32>
    %673 = arith.mulf %667, %672 : vector<2x32xf32>
    %c1_350 = arith.constant 1 : index
    %c0_351 = arith.constant 0 : index
    %c0_352 = arith.constant 0 : index
    %674 = vector.load %arg15[%c1_350, %c0_351, %c0_352] : memref<2x32x52xf32, #tpu.memory_space<vmem>>, vector<1x32x52xf32>
    %675 = vector.shape_cast %674 : vector<1x32x52xf32> to vector<32x52xf32>
    %cst_353 = arith.constant dense<0.000000e+00> : vector<2x52xf32>
    %676 = tpu.matmul %673, %675, %cst_353 {dimension_numbers = #tpu.dot_dimension_numbers<[1], [0], [0], [1], [0, 0, 1, 1], [], []>} : vector<2x32xf32>, vector<32x52xf32>, vector<2x52xf32> -> vector<2x52xf32>
    %c1_354 = arith.constant 1 : index
    %c0_355 = arith.constant 0 : index
    %c0_356 = arith.constant 0 : index
    %677 = vector.load %arg16[%c1_354, %c0_355, %c0_356] : memref<2x1x52xf32, #tpu.memory_space<vmem>>, vector<1x1x52xf32>
    %678 = vector.shape_cast %677 : vector<1x1x52xf32> to vector<1x52xf32>
    %679 = vector.broadcast %678 : vector<1x52xf32> to vector<2x52xf32>
    %680 = arith.addf %676, %679 : vector<2x52xf32>
    %681 = vector.extract_strided_slice %680 {offsets = [0, 0], sizes = [2, 16], strides = [1, 1]} : vector<2x52xf32> to vector<2x16xf32>
    %682 = vector.extract_strided_slice %680 {offsets = [0, 16], sizes = [2, 16], strides = [1, 1]} : vector<2x52xf32> to vector<2x16xf32>
    %683 = vector.extract_strided_slice %680 {offsets = [0, 32], sizes = [2, 16], strides = [1, 1]} : vector<2x52xf32> to vector<2x16xf32>
    %684 = vector.extract_strided_slice %680 {offsets = [0, 48], sizes = [2, 2], strides = [1, 1]} : vector<2x52xf32> to vector<2x2xf32>
    %685 = vector.extract_strided_slice %680 {offsets = [0, 50], sizes = [2, 2], strides = [1, 1]} : vector<2x52xf32> to vector<2x2xf32>
    %c1_357 = arith.constant 1 : index
    %c0_358 = arith.constant 0 : index
    %c0_359 = arith.constant 0 : index
    %686 = vector.load %arg17[%c1_357, %c0_358, %c0_359] : memref<2x32x32xf32, #tpu.memory_space<vmem>>, vector<1x32x32xf32>
    %687 = vector.shape_cast %686 : vector<1x32x32xf32> to vector<32x32xf32>
    %cst_360 = arith.constant dense<0.000000e+00> : vector<2x32xf32>
    %688 = tpu.matmul %659, %687, %cst_360 {dimension_numbers = #tpu.dot_dimension_numbers<[1], [0], [0], [1], [0, 0, 1, 1], [], []>} : vector<2x32xf32>, vector<32x32xf32>, vector<2x32xf32> -> vector<2x32xf32>
    %c1_361 = arith.constant 1 : index
    %c0_362 = arith.constant 0 : index
    %c0_363 = arith.constant 0 : index
    %689 = vector.load %arg18[%c1_361, %c0_362, %c0_363] : memref<2x1x32xf32, #tpu.memory_space<vmem>>, vector<1x1x32xf32>
    %690 = vector.shape_cast %689 : vector<1x1x32xf32> to vector<1x32xf32>
    %691 = vector.broadcast %690 : vector<1x32xf32> to vector<2x32xf32>
    %692 = arith.addf %688, %691 : vector<2x32xf32>
    %693 = vector.extract_strided_slice %692 {offsets = [0, 0], sizes = [2, 16], strides = [1, 1]} : vector<2x32xf32> to vector<2x16xf32>
    %694 = vector.extract_strided_slice %692 {offsets = [0, 16], sizes = [2, 16], strides = [1, 1]} : vector<2x32xf32> to vector<2x16xf32>
    %695 = arith.negf %694 : vector<2x16xf32>
    %696 = math.exp %695 : vector<2x16xf32>
    %cst_364 = arith.constant 1.000000e+00 : f32
    %697 = vector.broadcast %cst_364 : f32 to vector<2x16xf32>
    %698 = arith.addf %697, %696 : vector<2x16xf32>
    %699 = arith.divf %697, %698 : vector<2x16xf32>
    %c0_365 = arith.constant 0 : index
    %c0_366 = arith.constant 0 : index
    %700 = vector.load %arg6[%c0_365, %c0_366] : memref<16x128xf32, #tpu.memory_space<vmem>>, vector<16x128xf32>
    %cst_367 = arith.constant dense<0.000000e+00> : vector<2x128xf32>
    %701 = tpu.matmul %681, %700, %cst_367 {dimension_numbers = #tpu.dot_dimension_numbers<[1], [0], [0], [1], [0, 0, 1, 1], [], []>} : vector<2x16xf32>, vector<16x128xf32>, vector<2x128xf32> -> vector<2x128xf32>
    %cst_368 = arith.constant dense<0.000000e+00> : vector<2x128xf32>
    %702 = tpu.matmul %682, %700, %cst_368 {dimension_numbers = #tpu.dot_dimension_numbers<[1], [0], [0], [1], [0, 0, 1, 1], [], []>} : vector<2x16xf32>, vector<16x128xf32>, vector<2x128xf32> -> vector<2x128xf32>
    %c0_369 = arith.constant 0 : index
    %c0_370 = arith.constant 0 : index
    %703 = vector.load %arg7[%c0_369, %c0_370] : memref<16x128xf32, #tpu.memory_space<vmem>>, vector<16x128xf32>
    %cst_371 = arith.constant dense<0.000000e+00> : vector<2x128xf32>
    %704 = tpu.matmul %693, %703, %cst_371 {dimension_numbers = #tpu.dot_dimension_numbers<[1], [0], [0], [1], [0, 0, 1, 1], [], []>} : vector<2x16xf32>, vector<16x128xf32>, vector<2x128xf32> -> vector<2x128xf32>
    %705 = arith.mulf %704, %702 : vector<2x128xf32>
    %706 = arith.negf %660 : vector<2x16xf32>
    %707 = math.exp %706 : vector<2x16xf32>
    %cst_372 = arith.constant 1.000000e+00 : f32
    %708 = vector.broadcast %cst_372 : f32 to vector<2x16xf32>
    %709 = arith.addf %708, %707 : vector<2x16xf32>
    %710 = arith.divf %708, %709 : vector<2x16xf32>
    %711 = arith.mulf %660, %710 : vector<2x16xf32>
    %c0_373 = arith.constant 0 : index
    %c0_374 = arith.constant 0 : index
    %712 = vector.load %arg5[%c0_373, %c0_374] : memref<2x16xf32, #tpu.memory_space<vmem>>, vector<2x16xf32>
    %c0_375 = arith.constant 0 : index
    %c0_376 = arith.constant 0 : index
    %713 = vector.load %arg8[%c0_375, %c0_376] : memref<2x144xf32, #tpu.memory_space<vmem>>, vector<2x144xf32>
    %c0_377 = arith.constant 0 : index
    %c0_378 = arith.constant 0 : index
    %714 = vector.load %arg7[%c0_377, %c0_378] : memref<16x128xf32, #tpu.memory_space<vmem>>, vector<16x128xf32>
    %715 = arith.addf %685, %490 : vector<2x2xf32>
    %716 = arith.maximumf %715, %684 : vector<2x2xf32>
    %717 = arith.subf %684, %716 : vector<2x2xf32>
    %718 = math.exp %717 : vector<2x2xf32>
    %719 = arith.subf %685, %716 : vector<2x2xf32>
    %720 = arith.addf %719, %490 : vector<2x2xf32>
    %721 = math.exp %720 : vector<2x2xf32>
    %cst_379 = arith.constant dense<0.000000e+00> : vector<2x144xf32>
    %722 = tpu.matmul %721, %713, %cst_379 {dimension_numbers = #tpu.dot_dimension_numbers<[1], [0], [0], [1], [0, 0, 1, 1], [], []>} : vector<2x2xf32>, vector<2x144xf32>, vector<2x144xf32> -> vector<2x144xf32>
    %cst_380 = arith.constant dense<0.000000e+00> : vector<2x144xf32>
    %723 = tpu.matmul %718, %713, %cst_380 {dimension_numbers = #tpu.dot_dimension_numbers<[1], [0], [0], [1], [0, 0, 1, 1], [], []>} : vector<2x2xf32>, vector<2x144xf32>, vector<2x144xf32> -> vector<2x144xf32>
    %724 = vector.extract_strided_slice %722 {offsets = [0, 0], sizes = [2, 128], strides = [1, 1]} : vector<2x144xf32> to vector<2x128xf32>
    %725 = vector.extract_strided_slice %722 {offsets = [0, 128], sizes = [2, 16], strides = [1, 1]} : vector<2x144xf32> to vector<2x16xf32>
    %726 = vector.extract_strided_slice %723 {offsets = [0, 0], sizes = [2, 128], strides = [1, 1]} : vector<2x144xf32> to vector<2x128xf32>
    %727 = vector.extract_strided_slice %723 {offsets = [0, 128], sizes = [2, 16], strides = [1, 1]} : vector<2x144xf32> to vector<2x16xf32>
    %728 = arith.mulf %724, %504 : vector<2x128xf32>
    %729 = arith.mulf %726, %705 : vector<2x128xf32>
    %730 = arith.addf %728, %729 : vector<2x128xf32>
    %731 = arith.mulf %725, %507 : vector<2x16xf32>
    %732 = arith.mulf %727, %682 : vector<2x16xf32>
    %733 = arith.addf %731, %732 : vector<2x16xf32>
    %734 = arith.mulf %730, %701 : vector<2x128xf32>
    %cst_381 = arith.constant dense<0.000000e+00> : vector<2x16xf32>
    %735 = tpu.matmul %734, %714, %cst_381 {dimension_numbers = #tpu.dot_dimension_numbers<[1], [1], [0], [0], [0, 0, 1, 0], [], []>} : vector<2x128xf32>, vector<16x128xf32>, vector<2x16xf32> -> vector<2x16xf32>
    %736 = arith.mulf %733, %681 : vector<2x16xf32>
    %cst_382 = arith.constant dense<0.000000e+00> : vector<2x2xf32>
    %737 = tpu.matmul %736, %712, %cst_382 {dimension_numbers = #tpu.dot_dimension_numbers<[1], [1], [0], [0], [0, 0, 1, 0], [], []>} : vector<2x16xf32>, vector<2x16xf32>, vector<2x2xf32> -> vector<2x2xf32>
    %738 = math.absf %737 : vector<2x2xf32>
    %cst_383 = arith.constant 1.000000e+00 : f32
    %739 = vector.broadcast %cst_383 : f32 to vector<2x2xf32>
    %740 = arith.maximumf %738, %739 : vector<2x2xf32>
    %741 = tpu.reciprocal %740 : vector<2x2xf32> -> vector<2x2xf32>
    %cst_384 = arith.constant dense<0.000000e+00> : vector<2x16xf32>
    %742 = tpu.matmul %741, %712, %cst_384 {dimension_numbers = #tpu.dot_dimension_numbers<[1], [0], [0], [1], [0, 0, 1, 1], [], []>} : vector<2x2xf32>, vector<2x16xf32>, vector<2x16xf32> -> vector<2x16xf32>
    %743 = arith.mulf %699, %735 : vector<2x16xf32>
    %744 = arith.mulf %743, %742 : vector<2x16xf32>
    %cst_385 = arith.constant dense<0.000000e+00> : vector<2x2xf32>
    %745 = tpu.matmul %744, %712, %cst_385 {dimension_numbers = #tpu.dot_dimension_numbers<[1], [1], [0], [0], [0, 0, 1, 0], [], []>} : vector<2x16xf32>, vector<2x16xf32>, vector<2x2xf32> -> vector<2x2xf32>
    %cst_386 = arith.constant 1.250000e-01 : f32
    %746 = vector.broadcast %cst_386 : f32 to vector<2x2xf32>
    %747 = arith.mulf %745, %746 : vector<2x2xf32>
    %cst_387 = arith.constant dense<0.000000e+00> : vector<2x16xf32>
    %748 = tpu.matmul %747, %712, %cst_387 {dimension_numbers = #tpu.dot_dimension_numbers<[1], [0], [0], [1], [0, 0, 1, 1], [], []>} : vector<2x2xf32>, vector<2x16xf32>, vector<2x16xf32> -> vector<2x16xf32>
    %749 = arith.subf %744, %748 : vector<2x16xf32>
    %750 = arith.mulf %749, %749 : vector<2x16xf32>
    %cst_388 = arith.constant dense<0.000000e+00> : vector<2x2xf32>
    %751 = tpu.matmul %750, %712, %cst_388 {dimension_numbers = #tpu.dot_dimension_numbers<[1], [1], [0], [0], [0, 0, 1, 0], [], []>} : vector<2x16xf32>, vector<2x16xf32>, vector<2x2xf32> -> vector<2x2xf32>
    %cst_389 = arith.constant 1.250000e-01 : f32
    %752 = vector.broadcast %cst_389 : f32 to vector<2x2xf32>
    %753 = arith.mulf %751, %752 : vector<2x2xf32>
    %cst_390 = arith.constant dense<0.000000e+00> : vector<2x16xf32>
    %754 = tpu.matmul %753, %712, %cst_390 {dimension_numbers = #tpu.dot_dimension_numbers<[1], [0], [0], [1], [0, 0, 1, 1], [], []>} : vector<2x2xf32>, vector<2x16xf32>, vector<2x16xf32> -> vector<2x16xf32>
    %cst_391 = arith.constant 9.99999974E-6 : f32
    %755 = vector.broadcast %cst_391 : f32 to vector<2x16xf32>
    %756 = arith.addf %754, %755 : vector<2x16xf32>
    %757 = math.rsqrt %756 : vector<2x16xf32>
    %758 = arith.mulf %749, %757 : vector<2x16xf32>
    %c1_392 = arith.constant 1 : index
    %c0_393 = arith.constant 0 : index
    %c0_394 = arith.constant 0 : index
    %759 = vector.load %arg19[%c1_392, %c0_393, %c0_394] : memref<2x1x16xf32, #tpu.memory_space<vmem>>, vector<1x1x16xf32>
    %760 = vector.shape_cast %759 : vector<1x1x16xf32> to vector<1x16xf32>
    %761 = vector.broadcast %760 : vector<1x16xf32> to vector<2x16xf32>
    %762 = arith.mulf %758, %761 : vector<2x16xf32>
    %c1_395 = arith.constant 1 : index
    %c0_396 = arith.constant 0 : index
    %c0_397 = arith.constant 0 : index
    %763 = vector.load %arg20[%c1_395, %c0_396, %c0_397] : memref<2x1x16xf32, #tpu.memory_space<vmem>>, vector<1x1x16xf32>
    %764 = vector.shape_cast %763 : vector<1x1x16xf32> to vector<1x16xf32>
    %765 = vector.broadcast %764 : vector<1x16xf32> to vector<2x16xf32>
    %766 = arith.addf %762, %765 : vector<2x16xf32>
    %767 = arith.addf %766, %683 : vector<2x16xf32>
    %768 = arith.mulf %767, %711 : vector<2x16xf32>
    %c1_398 = arith.constant 1 : index
    %c0_399 = arith.constant 0 : index
    %c0_400 = arith.constant 0 : index
    %769 = vector.load %arg21[%c1_398, %c0_399, %c0_400] : memref<2x16x16xf32, #tpu.memory_space<vmem>>, vector<1x16x16xf32>
    %770 = vector.shape_cast %769 : vector<1x16x16xf32> to vector<16x16xf32>
    %cst_401 = arith.constant dense<0.000000e+00> : vector<2x16xf32>
    %771 = tpu.matmul %768, %770, %cst_401 {dimension_numbers = #tpu.dot_dimension_numbers<[1], [0], [0], [1], [0, 0, 1, 1], [], []>} : vector<2x16xf32>, vector<16x16xf32>, vector<2x16xf32> -> vector<2x16xf32>
    %c1_402 = arith.constant 1 : index
    %c0_403 = arith.constant 0 : index
    %c0_404 = arith.constant 0 : index
    %772 = vector.load %arg22[%c1_402, %c0_403, %c0_404] : memref<2x1x16xf32, #tpu.memory_space<vmem>>, vector<1x1x16xf32>
    %773 = vector.shape_cast %772 : vector<1x1x16xf32> to vector<1x16xf32>
    %774 = vector.broadcast %773 : vector<1x16xf32> to vector<2x16xf32>
    %775 = arith.addf %771, %774 : vector<2x16xf32>
    %776 = arith.addf %775, %625 : vector<2x16xf32>
    %777 = vector.extract_strided_slice %0 {offsets = [6, 0], sizes = [2, 16], strides = [1, 1]} : vector<16x16xf32> to vector<2x16xf32>
    %778 = vector.extract_strided_slice %56 {offsets = [6, 0], sizes = [2, 16], strides = [1, 1]} : vector<16x16xf32> to vector<2x16xf32>
    %779 = vector.extract_strided_slice %57 {offsets = [6, 0], sizes = [2, 16], strides = [1, 1]} : vector<16x16xf32> to vector<2x16xf32>
    %780 = vector.extract_strided_slice %58 {offsets = [6, 0], sizes = [2, 16], strides = [1, 1]} : vector<16x16xf32> to vector<2x16xf32>
    %781 = vector.extract_strided_slice %59 {offsets = [6, 0], sizes = [2, 2], strides = [1, 1]} : vector<16x2xf32> to vector<2x2xf32>
    %782 = vector.extract_strided_slice %60 {offsets = [6, 0], sizes = [2, 2], strides = [1, 1]} : vector<16x2xf32> to vector<2x2xf32>
    %783 = vector.extract_strided_slice %74 {offsets = [6, 0], sizes = [2, 16], strides = [1, 1]} : vector<16x16xf32> to vector<2x16xf32>
    %784 = vector.extract_strided_slice %76 {offsets = [6, 0], sizes = [2, 128], strides = [1, 1]} : vector<16x128xf32> to vector<2x128xf32>
    %785 = vector.extract_strided_slice %80 {offsets = [6, 0], sizes = [2, 128], strides = [1, 1]} : vector<16x128xf32> to vector<2x128xf32>
    %786 = vector.extract_strided_slice %86 {offsets = [6, 0], sizes = [2, 16], strides = [1, 1]} : vector<16x16xf32> to vector<2x16xf32>
    %c0_405 = arith.constant 0 : index
    %c0_406 = arith.constant 0 : index
    %787 = vector.load %arg5[%c0_405, %c0_406] : memref<2x16xf32, #tpu.memory_space<vmem>>, vector<2x16xf32>
    %c0_407 = arith.constant 0 : index
    %c0_408 = arith.constant 0 : index
    %788 = vector.load %arg8[%c0_407, %c0_408] : memref<2x144xf32, #tpu.memory_space<vmem>>, vector<2x144xf32>
    %c0_409 = arith.constant 0 : index
    %c0_410 = arith.constant 0 : index
    %789 = vector.load %arg7[%c0_409, %c0_410] : memref<16x128xf32, #tpu.memory_space<vmem>>, vector<16x128xf32>
    %790 = arith.addf %782, %565 : vector<2x2xf32>
    %791 = arith.maximumf %790, %781 : vector<2x2xf32>
    %792 = arith.subf %781, %791 : vector<2x2xf32>
    %793 = math.exp %792 : vector<2x2xf32>
    %794 = arith.subf %782, %791 : vector<2x2xf32>
    %795 = arith.addf %794, %565 : vector<2x2xf32>
    %796 = math.exp %795 : vector<2x2xf32>
    %cst_411 = arith.constant dense<0.000000e+00> : vector<2x144xf32>
    %797 = tpu.matmul %796, %788, %cst_411 {dimension_numbers = #tpu.dot_dimension_numbers<[1], [0], [0], [1], [0, 0, 1, 1], [], []>} : vector<2x2xf32>, vector<2x144xf32>, vector<2x144xf32> -> vector<2x144xf32>
    %cst_412 = arith.constant dense<0.000000e+00> : vector<2x144xf32>
    %798 = tpu.matmul %793, %788, %cst_412 {dimension_numbers = #tpu.dot_dimension_numbers<[1], [0], [0], [1], [0, 0, 1, 1], [], []>} : vector<2x2xf32>, vector<2x144xf32>, vector<2x144xf32> -> vector<2x144xf32>
    %799 = vector.extract_strided_slice %797 {offsets = [0, 0], sizes = [2, 128], strides = [1, 1]} : vector<2x144xf32> to vector<2x128xf32>
    %800 = vector.extract_strided_slice %797 {offsets = [0, 128], sizes = [2, 16], strides = [1, 1]} : vector<2x144xf32> to vector<2x16xf32>
    %801 = vector.extract_strided_slice %798 {offsets = [0, 0], sizes = [2, 128], strides = [1, 1]} : vector<2x144xf32> to vector<2x128xf32>
    %802 = vector.extract_strided_slice %798 {offsets = [0, 128], sizes = [2, 16], strides = [1, 1]} : vector<2x144xf32> to vector<2x16xf32>
    %803 = arith.mulf %799, %579 : vector<2x128xf32>
    %804 = arith.mulf %801, %785 : vector<2x128xf32>
    %805 = arith.addf %803, %804 : vector<2x128xf32>
    %806 = arith.mulf %800, %582 : vector<2x16xf32>
    %807 = arith.mulf %802, %779 : vector<2x16xf32>
    %808 = arith.addf %806, %807 : vector<2x16xf32>
    %809 = arith.mulf %805, %784 : vector<2x128xf32>
    %cst_413 = arith.constant dense<0.000000e+00> : vector<2x16xf32>
    %810 = tpu.matmul %809, %789, %cst_413 {dimension_numbers = #tpu.dot_dimension_numbers<[1], [1], [0], [0], [0, 0, 1, 0], [], []>} : vector<2x128xf32>, vector<16x128xf32>, vector<2x16xf32> -> vector<2x16xf32>
    %811 = arith.mulf %808, %778 : vector<2x16xf32>
    %cst_414 = arith.constant dense<0.000000e+00> : vector<2x2xf32>
    %812 = tpu.matmul %811, %787, %cst_414 {dimension_numbers = #tpu.dot_dimension_numbers<[1], [1], [0], [0], [0, 0, 1, 0], [], []>} : vector<2x16xf32>, vector<2x16xf32>, vector<2x2xf32> -> vector<2x2xf32>
    %813 = math.absf %812 : vector<2x2xf32>
    %cst_415 = arith.constant 1.000000e+00 : f32
    %814 = vector.broadcast %cst_415 : f32 to vector<2x2xf32>
    %815 = arith.maximumf %813, %814 : vector<2x2xf32>
    %816 = tpu.reciprocal %815 : vector<2x2xf32> -> vector<2x2xf32>
    %cst_416 = arith.constant dense<0.000000e+00> : vector<2x16xf32>
    %817 = tpu.matmul %816, %787, %cst_416 {dimension_numbers = #tpu.dot_dimension_numbers<[1], [0], [0], [1], [0, 0, 1, 1], [], []>} : vector<2x2xf32>, vector<2x16xf32>, vector<2x16xf32> -> vector<2x16xf32>
    %818 = arith.mulf %783, %810 : vector<2x16xf32>
    %819 = arith.mulf %818, %817 : vector<2x16xf32>
    %cst_417 = arith.constant dense<0.000000e+00> : vector<2x2xf32>
    %820 = tpu.matmul %819, %787, %cst_417 {dimension_numbers = #tpu.dot_dimension_numbers<[1], [1], [0], [0], [0, 0, 1, 0], [], []>} : vector<2x16xf32>, vector<2x16xf32>, vector<2x2xf32> -> vector<2x2xf32>
    %cst_418 = arith.constant 1.250000e-01 : f32
    %821 = vector.broadcast %cst_418 : f32 to vector<2x2xf32>
    %822 = arith.mulf %820, %821 : vector<2x2xf32>
    %cst_419 = arith.constant dense<0.000000e+00> : vector<2x16xf32>
    %823 = tpu.matmul %822, %787, %cst_419 {dimension_numbers = #tpu.dot_dimension_numbers<[1], [0], [0], [1], [0, 0, 1, 1], [], []>} : vector<2x2xf32>, vector<2x16xf32>, vector<2x16xf32> -> vector<2x16xf32>
    %824 = arith.subf %819, %823 : vector<2x16xf32>
    %825 = arith.mulf %824, %824 : vector<2x16xf32>
    %cst_420 = arith.constant dense<0.000000e+00> : vector<2x2xf32>
    %826 = tpu.matmul %825, %787, %cst_420 {dimension_numbers = #tpu.dot_dimension_numbers<[1], [1], [0], [0], [0, 0, 1, 0], [], []>} : vector<2x16xf32>, vector<2x16xf32>, vector<2x2xf32> -> vector<2x2xf32>
    %cst_421 = arith.constant 1.250000e-01 : f32
    %827 = vector.broadcast %cst_421 : f32 to vector<2x2xf32>
    %828 = arith.mulf %826, %827 : vector<2x2xf32>
    %cst_422 = arith.constant dense<0.000000e+00> : vector<2x16xf32>
    %829 = tpu.matmul %828, %787, %cst_422 {dimension_numbers = #tpu.dot_dimension_numbers<[1], [0], [0], [1], [0, 0, 1, 1], [], []>} : vector<2x2xf32>, vector<2x16xf32>, vector<2x16xf32> -> vector<2x16xf32>
    %cst_423 = arith.constant 9.99999974E-6 : f32
    %830 = vector.broadcast %cst_423 : f32 to vector<2x16xf32>
    %831 = arith.addf %829, %830 : vector<2x16xf32>
    %832 = math.rsqrt %831 : vector<2x16xf32>
    %833 = arith.mulf %824, %832 : vector<2x16xf32>
    %c0_424 = arith.constant 0 : index
    %c0_425 = arith.constant 0 : index
    %c0_426 = arith.constant 0 : index
    %834 = vector.load %arg19[%c0_424, %c0_425, %c0_426] : memref<2x1x16xf32, #tpu.memory_space<vmem>>, vector<1x1x16xf32>
    %835 = vector.shape_cast %834 : vector<1x1x16xf32> to vector<1x16xf32>
    %836 = vector.broadcast %835 : vector<1x16xf32> to vector<2x16xf32>
    %837 = arith.mulf %833, %836 : vector<2x16xf32>
    %c0_427 = arith.constant 0 : index
    %c0_428 = arith.constant 0 : index
    %c0_429 = arith.constant 0 : index
    %838 = vector.load %arg20[%c0_427, %c0_428, %c0_429] : memref<2x1x16xf32, #tpu.memory_space<vmem>>, vector<1x1x16xf32>
    %839 = vector.shape_cast %838 : vector<1x1x16xf32> to vector<1x16xf32>
    %840 = vector.broadcast %839 : vector<1x16xf32> to vector<2x16xf32>
    %841 = arith.addf %837, %840 : vector<2x16xf32>
    %842 = arith.addf %841, %780 : vector<2x16xf32>
    %843 = arith.mulf %842, %786 : vector<2x16xf32>
    %c0_430 = arith.constant 0 : index
    %c0_431 = arith.constant 0 : index
    %c0_432 = arith.constant 0 : index
    %844 = vector.load %arg21[%c0_430, %c0_431, %c0_432] : memref<2x16x16xf32, #tpu.memory_space<vmem>>, vector<1x16x16xf32>
    %845 = vector.shape_cast %844 : vector<1x16x16xf32> to vector<16x16xf32>
    %cst_433 = arith.constant dense<0.000000e+00> : vector<2x16xf32>
    %846 = tpu.matmul %843, %845, %cst_433 {dimension_numbers = #tpu.dot_dimension_numbers<[1], [0], [0], [1], [0, 0, 1, 1], [], []>} : vector<2x16xf32>, vector<16x16xf32>, vector<2x16xf32> -> vector<2x16xf32>
    %c0_434 = arith.constant 0 : index
    %c0_435 = arith.constant 0 : index
    %c0_436 = arith.constant 0 : index
    %847 = vector.load %arg22[%c0_434, %c0_435, %c0_436] : memref<2x1x16xf32, #tpu.memory_space<vmem>>, vector<1x1x16xf32>
    %848 = vector.shape_cast %847 : vector<1x1x16xf32> to vector<1x16xf32>
    %849 = vector.broadcast %848 : vector<1x16xf32> to vector<2x16xf32>
    %850 = arith.addf %846, %849 : vector<2x16xf32>
    %851 = arith.addf %850, %777 : vector<2x16xf32>
    %c1_437 = arith.constant 1 : index
    %c0_438 = arith.constant 0 : index
    %c0_439 = arith.constant 0 : index
    %852 = vector.load %arg9[%c1_437, %c0_438, %c0_439] : memref<2x1x16xf32, #tpu.memory_space<vmem>>, vector<1x1x16xf32>
    %853 = vector.shape_cast %852 : vector<1x1x16xf32> to vector<1x16xf32>
    %c1_440 = arith.constant 1 : index
    %c0_441 = arith.constant 0 : index
    %c0_442 = arith.constant 0 : index
    %854 = vector.load %arg10[%c1_440, %c0_441, %c0_442] : memref<2x1x16xf32, #tpu.memory_space<vmem>>, vector<1x1x16xf32>
    %855 = vector.shape_cast %854 : vector<1x1x16xf32> to vector<1x16xf32>
    %cst_443 = arith.constant dense<0.000000e+00> : vector<2xf32>
    %856 = vector.multi_reduction <add>, %851, %cst_443 [1] : vector<2x16xf32> to vector<2xf32>
    %857 = vector.shape_cast %856 : vector<2xf32> to vector<2x1xf32>
    %cst_444 = arith.constant 1.600000e+01 : f32
    %858 = vector.broadcast %cst_444 : f32 to vector<2x1xf32>
    %859 = arith.divf %857, %858 : vector<2x1xf32>
    %860 = vector.broadcast %859 : vector<2x1xf32> to vector<2x16xf32>
    %861 = arith.subf %851, %860 : vector<2x16xf32>
    %862 = arith.mulf %861, %861 : vector<2x16xf32>
    %cst_445 = arith.constant dense<0.000000e+00> : vector<2xf32>
    %863 = vector.multi_reduction <add>, %862, %cst_445 [1] : vector<2x16xf32> to vector<2xf32>
    %864 = vector.shape_cast %863 : vector<2xf32> to vector<2x1xf32>
    %cst_446 = arith.constant 1.600000e+01 : f32
    %865 = vector.broadcast %cst_446 : f32 to vector<2x1xf32>
    %866 = arith.divf %864, %865 : vector<2x1xf32>
    %867 = vector.broadcast %859 : vector<2x1xf32> to vector<2x16xf32>
    %868 = arith.subf %851, %867 : vector<2x16xf32>
    %cst_447 = arith.constant 9.99999974E-6 : f32
    %869 = vector.broadcast %cst_447 : f32 to vector<2x1xf32>
    %870 = arith.addf %866, %869 : vector<2x1xf32>
    %871 = math.rsqrt %870 : vector<2x1xf32>
    %872 = vector.broadcast %871 : vector<2x1xf32> to vector<2x16xf32>
    %873 = arith.mulf %868, %872 : vector<2x16xf32>
    %874 = vector.broadcast %853 : vector<1x16xf32> to vector<2x16xf32>
    %875 = arith.mulf %873, %874 : vector<2x16xf32>
    %876 = vector.broadcast %855 : vector<1x16xf32> to vector<2x16xf32>
    %877 = arith.addf %875, %876 : vector<2x16xf32>
    %c1_448 = arith.constant 1 : index
    %c0_449 = arith.constant 0 : index
    %c0_450 = arith.constant 0 : index
    %878 = vector.load %arg11[%c1_448, %c0_449, %c0_450] : memref<2x16x48xf32, #tpu.memory_space<vmem>>, vector<1x16x48xf32>
    %879 = vector.shape_cast %878 : vector<1x16x48xf32> to vector<16x48xf32>
    %cst_451 = arith.constant dense<0.000000e+00> : vector<2x48xf32>
    %880 = tpu.matmul %877, %879, %cst_451 {dimension_numbers = #tpu.dot_dimension_numbers<[1], [0], [0], [1], [0, 0, 1, 1], [], []>} : vector<2x16xf32>, vector<16x48xf32>, vector<2x48xf32> -> vector<2x48xf32>
    %c1_452 = arith.constant 1 : index
    %c0_453 = arith.constant 0 : index
    %c0_454 = arith.constant 0 : index
    %881 = vector.load %arg12[%c1_452, %c0_453, %c0_454] : memref<2x1x48xf32, #tpu.memory_space<vmem>>, vector<1x1x48xf32>
    %882 = vector.shape_cast %881 : vector<1x1x48xf32> to vector<1x48xf32>
    %883 = vector.broadcast %882 : vector<1x48xf32> to vector<2x48xf32>
    %884 = arith.addf %880, %883 : vector<2x48xf32>
    %885 = vector.extract_strided_slice %884 {offsets = [0, 0], sizes = [2, 32], strides = [1, 1]} : vector<2x48xf32> to vector<2x32xf32>
    %886 = vector.extract_strided_slice %884 {offsets = [0, 32], sizes = [2, 16], strides = [1, 1]} : vector<2x48xf32> to vector<2x16xf32>
    %c1_455 = arith.constant 1 : index
    %c0_456 = arith.constant 0 : index
    %c0_457 = arith.constant 0 : index
    %887 = vector.load %arg13[%c1_455, %c0_456, %c0_457] : memref<2x32x32xf32, #tpu.memory_space<vmem>>, vector<1x32x32xf32>
    %888 = vector.shape_cast %887 : vector<1x32x32xf32> to vector<32x32xf32>
    %cst_458 = arith.constant dense<0.000000e+00> : vector<2x32xf32>
    %889 = tpu.matmul %885, %888, %cst_458 {dimension_numbers = #tpu.dot_dimension_numbers<[1], [0], [0], [1], [0, 0, 1, 1], [], []>} : vector<2x32xf32>, vector<32x32xf32>, vector<2x32xf32> -> vector<2x32xf32>
    %c1_459 = arith.constant 1 : index
    %c0_460 = arith.constant 0 : index
    %c0_461 = arith.constant 0 : index
    %890 = vector.load %arg14[%c1_459, %c0_460, %c0_461] : memref<2x1x1xf32, #tpu.memory_space<vmem>>, vector<1x1x1xf32>
    %891 = vector.shape_cast %890 : vector<1x1x1xf32> to vector<1x1xf32>
    %892 = vector.broadcast %891 : vector<1x1xf32> to vector<2x32xf32>
    %893 = arith.addf %889, %892 : vector<2x32xf32>
    %894 = arith.negf %893 : vector<2x32xf32>
    %895 = math.exp %894 : vector<2x32xf32>
    %cst_462 = arith.constant 1.000000e+00 : f32
    %896 = vector.broadcast %cst_462 : f32 to vector<2x32xf32>
    %897 = arith.addf %896, %895 : vector<2x32xf32>
    %898 = arith.divf %896, %897 : vector<2x32xf32>
    %899 = arith.mulf %893, %898 : vector<2x32xf32>
    %c1_463 = arith.constant 1 : index
    %c0_464 = arith.constant 0 : index
    %c0_465 = arith.constant 0 : index
    %900 = vector.load %arg15[%c1_463, %c0_464, %c0_465] : memref<2x32x52xf32, #tpu.memory_space<vmem>>, vector<1x32x52xf32>
    %901 = vector.shape_cast %900 : vector<1x32x52xf32> to vector<32x52xf32>
    %cst_466 = arith.constant dense<0.000000e+00> : vector<2x52xf32>
    %902 = tpu.matmul %899, %901, %cst_466 {dimension_numbers = #tpu.dot_dimension_numbers<[1], [0], [0], [1], [0, 0, 1, 1], [], []>} : vector<2x32xf32>, vector<32x52xf32>, vector<2x52xf32> -> vector<2x52xf32>
    %c1_467 = arith.constant 1 : index
    %c0_468 = arith.constant 0 : index
    %c0_469 = arith.constant 0 : index
    %903 = vector.load %arg16[%c1_467, %c0_468, %c0_469] : memref<2x1x52xf32, #tpu.memory_space<vmem>>, vector<1x1x52xf32>
    %904 = vector.shape_cast %903 : vector<1x1x52xf32> to vector<1x52xf32>
    %905 = vector.broadcast %904 : vector<1x52xf32> to vector<2x52xf32>
    %906 = arith.addf %902, %905 : vector<2x52xf32>
    %907 = vector.extract_strided_slice %906 {offsets = [0, 0], sizes = [2, 16], strides = [1, 1]} : vector<2x52xf32> to vector<2x16xf32>
    %908 = vector.extract_strided_slice %906 {offsets = [0, 16], sizes = [2, 16], strides = [1, 1]} : vector<2x52xf32> to vector<2x16xf32>
    %909 = vector.extract_strided_slice %906 {offsets = [0, 32], sizes = [2, 16], strides = [1, 1]} : vector<2x52xf32> to vector<2x16xf32>
    %910 = vector.extract_strided_slice %906 {offsets = [0, 48], sizes = [2, 2], strides = [1, 1]} : vector<2x52xf32> to vector<2x2xf32>
    %911 = vector.extract_strided_slice %906 {offsets = [0, 50], sizes = [2, 2], strides = [1, 1]} : vector<2x52xf32> to vector<2x2xf32>
    %c1_470 = arith.constant 1 : index
    %c0_471 = arith.constant 0 : index
    %c0_472 = arith.constant 0 : index
    %912 = vector.load %arg17[%c1_470, %c0_471, %c0_472] : memref<2x32x32xf32, #tpu.memory_space<vmem>>, vector<1x32x32xf32>
    %913 = vector.shape_cast %912 : vector<1x32x32xf32> to vector<32x32xf32>
    %cst_473 = arith.constant dense<0.000000e+00> : vector<2x32xf32>
    %914 = tpu.matmul %885, %913, %cst_473 {dimension_numbers = #tpu.dot_dimension_numbers<[1], [0], [0], [1], [0, 0, 1, 1], [], []>} : vector<2x32xf32>, vector<32x32xf32>, vector<2x32xf32> -> vector<2x32xf32>
    %c1_474 = arith.constant 1 : index
    %c0_475 = arith.constant 0 : index
    %c0_476 = arith.constant 0 : index
    %915 = vector.load %arg18[%c1_474, %c0_475, %c0_476] : memref<2x1x32xf32, #tpu.memory_space<vmem>>, vector<1x1x32xf32>
    %916 = vector.shape_cast %915 : vector<1x1x32xf32> to vector<1x32xf32>
    %917 = vector.broadcast %916 : vector<1x32xf32> to vector<2x32xf32>
    %918 = arith.addf %914, %917 : vector<2x32xf32>
    %919 = vector.extract_strided_slice %918 {offsets = [0, 0], sizes = [2, 16], strides = [1, 1]} : vector<2x32xf32> to vector<2x16xf32>
    %920 = vector.extract_strided_slice %918 {offsets = [0, 16], sizes = [2, 16], strides = [1, 1]} : vector<2x32xf32> to vector<2x16xf32>
    %921 = arith.negf %920 : vector<2x16xf32>
    %922 = math.exp %921 : vector<2x16xf32>
    %cst_477 = arith.constant 1.000000e+00 : f32
    %923 = vector.broadcast %cst_477 : f32 to vector<2x16xf32>
    %924 = arith.addf %923, %922 : vector<2x16xf32>
    %925 = arith.divf %923, %924 : vector<2x16xf32>
    %c0_478 = arith.constant 0 : index
    %c0_479 = arith.constant 0 : index
    %926 = vector.load %arg6[%c0_478, %c0_479] : memref<16x128xf32, #tpu.memory_space<vmem>>, vector<16x128xf32>
    %cst_480 = arith.constant dense<0.000000e+00> : vector<2x128xf32>
    %927 = tpu.matmul %907, %926, %cst_480 {dimension_numbers = #tpu.dot_dimension_numbers<[1], [0], [0], [1], [0, 0, 1, 1], [], []>} : vector<2x16xf32>, vector<16x128xf32>, vector<2x128xf32> -> vector<2x128xf32>
    %cst_481 = arith.constant dense<0.000000e+00> : vector<2x128xf32>
    %928 = tpu.matmul %908, %926, %cst_481 {dimension_numbers = #tpu.dot_dimension_numbers<[1], [0], [0], [1], [0, 0, 1, 1], [], []>} : vector<2x16xf32>, vector<16x128xf32>, vector<2x128xf32> -> vector<2x128xf32>
    %c0_482 = arith.constant 0 : index
    %c0_483 = arith.constant 0 : index
    %929 = vector.load %arg7[%c0_482, %c0_483] : memref<16x128xf32, #tpu.memory_space<vmem>>, vector<16x128xf32>
    %cst_484 = arith.constant dense<0.000000e+00> : vector<2x128xf32>
    %930 = tpu.matmul %919, %929, %cst_484 {dimension_numbers = #tpu.dot_dimension_numbers<[1], [0], [0], [1], [0, 0, 1, 1], [], []>} : vector<2x16xf32>, vector<16x128xf32>, vector<2x128xf32> -> vector<2x128xf32>
    %931 = arith.mulf %930, %928 : vector<2x128xf32>
    %932 = arith.negf %886 : vector<2x16xf32>
    %933 = math.exp %932 : vector<2x16xf32>
    %cst_485 = arith.constant 1.000000e+00 : f32
    %934 = vector.broadcast %cst_485 : f32 to vector<2x16xf32>
    %935 = arith.addf %934, %933 : vector<2x16xf32>
    %936 = arith.divf %934, %935 : vector<2x16xf32>
    %937 = arith.mulf %886, %936 : vector<2x16xf32>
    %c0_486 = arith.constant 0 : index
    %c0_487 = arith.constant 0 : index
    %938 = vector.load %arg5[%c0_486, %c0_487] : memref<2x16xf32, #tpu.memory_space<vmem>>, vector<2x16xf32>
    %c0_488 = arith.constant 0 : index
    %c0_489 = arith.constant 0 : index
    %939 = vector.load %arg8[%c0_488, %c0_489] : memref<2x144xf32, #tpu.memory_space<vmem>>, vector<2x144xf32>
    %c0_490 = arith.constant 0 : index
    %c0_491 = arith.constant 0 : index
    %940 = vector.load %arg7[%c0_490, %c0_491] : memref<16x128xf32, #tpu.memory_space<vmem>>, vector<16x128xf32>
    %941 = arith.addf %911, %716 : vector<2x2xf32>
    %942 = arith.maximumf %941, %910 : vector<2x2xf32>
    %943 = arith.subf %910, %942 : vector<2x2xf32>
    %944 = math.exp %943 : vector<2x2xf32>
    %945 = arith.subf %911, %942 : vector<2x2xf32>
    %946 = arith.addf %945, %716 : vector<2x2xf32>
    %947 = math.exp %946 : vector<2x2xf32>
    %cst_492 = arith.constant dense<0.000000e+00> : vector<2x144xf32>
    %948 = tpu.matmul %947, %939, %cst_492 {dimension_numbers = #tpu.dot_dimension_numbers<[1], [0], [0], [1], [0, 0, 1, 1], [], []>} : vector<2x2xf32>, vector<2x144xf32>, vector<2x144xf32> -> vector<2x144xf32>
    %cst_493 = arith.constant dense<0.000000e+00> : vector<2x144xf32>
    %949 = tpu.matmul %944, %939, %cst_493 {dimension_numbers = #tpu.dot_dimension_numbers<[1], [0], [0], [1], [0, 0, 1, 1], [], []>} : vector<2x2xf32>, vector<2x144xf32>, vector<2x144xf32> -> vector<2x144xf32>
    %950 = vector.extract_strided_slice %948 {offsets = [0, 0], sizes = [2, 128], strides = [1, 1]} : vector<2x144xf32> to vector<2x128xf32>
    %951 = vector.extract_strided_slice %948 {offsets = [0, 128], sizes = [2, 16], strides = [1, 1]} : vector<2x144xf32> to vector<2x16xf32>
    %952 = vector.extract_strided_slice %949 {offsets = [0, 0], sizes = [2, 128], strides = [1, 1]} : vector<2x144xf32> to vector<2x128xf32>
    %953 = vector.extract_strided_slice %949 {offsets = [0, 128], sizes = [2, 16], strides = [1, 1]} : vector<2x144xf32> to vector<2x16xf32>
    %954 = arith.mulf %950, %730 : vector<2x128xf32>
    %955 = arith.mulf %952, %931 : vector<2x128xf32>
    %956 = arith.addf %954, %955 : vector<2x128xf32>
    %957 = arith.mulf %951, %733 : vector<2x16xf32>
    %958 = arith.mulf %953, %908 : vector<2x16xf32>
    %959 = arith.addf %957, %958 : vector<2x16xf32>
    %960 = arith.mulf %956, %927 : vector<2x128xf32>
    %cst_494 = arith.constant dense<0.000000e+00> : vector<2x16xf32>
    %961 = tpu.matmul %960, %940, %cst_494 {dimension_numbers = #tpu.dot_dimension_numbers<[1], [1], [0], [0], [0, 0, 1, 0], [], []>} : vector<2x128xf32>, vector<16x128xf32>, vector<2x16xf32> -> vector<2x16xf32>
    %962 = arith.mulf %959, %907 : vector<2x16xf32>
    %cst_495 = arith.constant dense<0.000000e+00> : vector<2x2xf32>
    %963 = tpu.matmul %962, %938, %cst_495 {dimension_numbers = #tpu.dot_dimension_numbers<[1], [1], [0], [0], [0, 0, 1, 0], [], []>} : vector<2x16xf32>, vector<2x16xf32>, vector<2x2xf32> -> vector<2x2xf32>
    %964 = math.absf %963 : vector<2x2xf32>
    %cst_496 = arith.constant 1.000000e+00 : f32
    %965 = vector.broadcast %cst_496 : f32 to vector<2x2xf32>
    %966 = arith.maximumf %964, %965 : vector<2x2xf32>
    %967 = tpu.reciprocal %966 : vector<2x2xf32> -> vector<2x2xf32>
    %cst_497 = arith.constant dense<0.000000e+00> : vector<2x16xf32>
    %968 = tpu.matmul %967, %938, %cst_497 {dimension_numbers = #tpu.dot_dimension_numbers<[1], [0], [0], [1], [0, 0, 1, 1], [], []>} : vector<2x2xf32>, vector<2x16xf32>, vector<2x16xf32> -> vector<2x16xf32>
    %969 = arith.mulf %925, %961 : vector<2x16xf32>
    %970 = arith.mulf %969, %968 : vector<2x16xf32>
    %cst_498 = arith.constant dense<0.000000e+00> : vector<2x2xf32>
    %971 = tpu.matmul %970, %938, %cst_498 {dimension_numbers = #tpu.dot_dimension_numbers<[1], [1], [0], [0], [0, 0, 1, 0], [], []>} : vector<2x16xf32>, vector<2x16xf32>, vector<2x2xf32> -> vector<2x2xf32>
    %cst_499 = arith.constant 1.250000e-01 : f32
    %972 = vector.broadcast %cst_499 : f32 to vector<2x2xf32>
    %973 = arith.mulf %971, %972 : vector<2x2xf32>
    %cst_500 = arith.constant dense<0.000000e+00> : vector<2x16xf32>
    %974 = tpu.matmul %973, %938, %cst_500 {dimension_numbers = #tpu.dot_dimension_numbers<[1], [0], [0], [1], [0, 0, 1, 1], [], []>} : vector<2x2xf32>, vector<2x16xf32>, vector<2x16xf32> -> vector<2x16xf32>
    %975 = arith.subf %970, %974 : vector<2x16xf32>
    %976 = arith.mulf %975, %975 : vector<2x16xf32>
    %cst_501 = arith.constant dense<0.000000e+00> : vector<2x2xf32>
    %977 = tpu.matmul %976, %938, %cst_501 {dimension_numbers = #tpu.dot_dimension_numbers<[1], [1], [0], [0], [0, 0, 1, 0], [], []>} : vector<2x16xf32>, vector<2x16xf32>, vector<2x2xf32> -> vector<2x2xf32>
    %cst_502 = arith.constant 1.250000e-01 : f32
    %978 = vector.broadcast %cst_502 : f32 to vector<2x2xf32>
    %979 = arith.mulf %977, %978 : vector<2x2xf32>
    %cst_503 = arith.constant dense<0.000000e+00> : vector<2x16xf32>
    %980 = tpu.matmul %979, %938, %cst_503 {dimension_numbers = #tpu.dot_dimension_numbers<[1], [0], [0], [1], [0, 0, 1, 1], [], []>} : vector<2x2xf32>, vector<2x16xf32>, vector<2x16xf32> -> vector<2x16xf32>
    %cst_504 = arith.constant 9.99999974E-6 : f32
    %981 = vector.broadcast %cst_504 : f32 to vector<2x16xf32>
    %982 = arith.addf %980, %981 : vector<2x16xf32>
    %983 = math.rsqrt %982 : vector<2x16xf32>
    %984 = arith.mulf %975, %983 : vector<2x16xf32>
    %c1_505 = arith.constant 1 : index
    %c0_506 = arith.constant 0 : index
    %c0_507 = arith.constant 0 : index
    %985 = vector.load %arg19[%c1_505, %c0_506, %c0_507] : memref<2x1x16xf32, #tpu.memory_space<vmem>>, vector<1x1x16xf32>
    %986 = vector.shape_cast %985 : vector<1x1x16xf32> to vector<1x16xf32>
    %987 = vector.broadcast %986 : vector<1x16xf32> to vector<2x16xf32>
    %988 = arith.mulf %984, %987 : vector<2x16xf32>
    %c1_508 = arith.constant 1 : index
    %c0_509 = arith.constant 0 : index
    %c0_510 = arith.constant 0 : index
    %989 = vector.load %arg20[%c1_508, %c0_509, %c0_510] : memref<2x1x16xf32, #tpu.memory_space<vmem>>, vector<1x1x16xf32>
    %990 = vector.shape_cast %989 : vector<1x1x16xf32> to vector<1x16xf32>
    %991 = vector.broadcast %990 : vector<1x16xf32> to vector<2x16xf32>
    %992 = arith.addf %988, %991 : vector<2x16xf32>
    %993 = arith.addf %992, %909 : vector<2x16xf32>
    %994 = arith.mulf %993, %937 : vector<2x16xf32>
    %c1_511 = arith.constant 1 : index
    %c0_512 = arith.constant 0 : index
    %c0_513 = arith.constant 0 : index
    %995 = vector.load %arg21[%c1_511, %c0_512, %c0_513] : memref<2x16x16xf32, #tpu.memory_space<vmem>>, vector<1x16x16xf32>
    %996 = vector.shape_cast %995 : vector<1x16x16xf32> to vector<16x16xf32>
    %cst_514 = arith.constant dense<0.000000e+00> : vector<2x16xf32>
    %997 = tpu.matmul %994, %996, %cst_514 {dimension_numbers = #tpu.dot_dimension_numbers<[1], [0], [0], [1], [0, 0, 1, 1], [], []>} : vector<2x16xf32>, vector<16x16xf32>, vector<2x16xf32> -> vector<2x16xf32>
    %c1_515 = arith.constant 1 : index
    %c0_516 = arith.constant 0 : index
    %c0_517 = arith.constant 0 : index
    %998 = vector.load %arg22[%c1_515, %c0_516, %c0_517] : memref<2x1x16xf32, #tpu.memory_space<vmem>>, vector<1x1x16xf32>
    %999 = vector.shape_cast %998 : vector<1x1x16xf32> to vector<1x16xf32>
    %1000 = vector.broadcast %999 : vector<1x16xf32> to vector<2x16xf32>
    %1001 = arith.addf %997, %1000 : vector<2x16xf32>
    %1002 = arith.addf %1001, %851 : vector<2x16xf32>
    %1003 = vector.extract_strided_slice %0 {offsets = [8, 0], sizes = [2, 16], strides = [1, 1]} : vector<16x16xf32> to vector<2x16xf32>
    %1004 = vector.extract_strided_slice %56 {offsets = [8, 0], sizes = [2, 16], strides = [1, 1]} : vector<16x16xf32> to vector<2x16xf32>
    %1005 = vector.extract_strided_slice %57 {offsets = [8, 0], sizes = [2, 16], strides = [1, 1]} : vector<16x16xf32> to vector<2x16xf32>
    %1006 = vector.extract_strided_slice %58 {offsets = [8, 0], sizes = [2, 16], strides = [1, 1]} : vector<16x16xf32> to vector<2x16xf32>
    %1007 = vector.extract_strided_slice %59 {offsets = [8, 0], sizes = [2, 2], strides = [1, 1]} : vector<16x2xf32> to vector<2x2xf32>
    %1008 = vector.extract_strided_slice %60 {offsets = [8, 0], sizes = [2, 2], strides = [1, 1]} : vector<16x2xf32> to vector<2x2xf32>
    %1009 = vector.extract_strided_slice %74 {offsets = [8, 0], sizes = [2, 16], strides = [1, 1]} : vector<16x16xf32> to vector<2x16xf32>
    %1010 = vector.extract_strided_slice %76 {offsets = [8, 0], sizes = [2, 128], strides = [1, 1]} : vector<16x128xf32> to vector<2x128xf32>
    %1011 = vector.extract_strided_slice %80 {offsets = [8, 0], sizes = [2, 128], strides = [1, 1]} : vector<16x128xf32> to vector<2x128xf32>
    %1012 = vector.extract_strided_slice %86 {offsets = [8, 0], sizes = [2, 16], strides = [1, 1]} : vector<16x16xf32> to vector<2x16xf32>
    %c0_518 = arith.constant 0 : index
    %c0_519 = arith.constant 0 : index
    %1013 = vector.load %arg5[%c0_518, %c0_519] : memref<2x16xf32, #tpu.memory_space<vmem>>, vector<2x16xf32>
    %c0_520 = arith.constant 0 : index
    %c0_521 = arith.constant 0 : index
    %1014 = vector.load %arg8[%c0_520, %c0_521] : memref<2x144xf32, #tpu.memory_space<vmem>>, vector<2x144xf32>
    %c0_522 = arith.constant 0 : index
    %c0_523 = arith.constant 0 : index
    %1015 = vector.load %arg7[%c0_522, %c0_523] : memref<16x128xf32, #tpu.memory_space<vmem>>, vector<16x128xf32>
    %1016 = arith.addf %1008, %791 : vector<2x2xf32>
    %1017 = arith.maximumf %1016, %1007 : vector<2x2xf32>
    %1018 = arith.subf %1007, %1017 : vector<2x2xf32>
    %1019 = math.exp %1018 : vector<2x2xf32>
    %1020 = arith.subf %1008, %1017 : vector<2x2xf32>
    %1021 = arith.addf %1020, %791 : vector<2x2xf32>
    %1022 = math.exp %1021 : vector<2x2xf32>
    %cst_524 = arith.constant dense<0.000000e+00> : vector<2x144xf32>
    %1023 = tpu.matmul %1022, %1014, %cst_524 {dimension_numbers = #tpu.dot_dimension_numbers<[1], [0], [0], [1], [0, 0, 1, 1], [], []>} : vector<2x2xf32>, vector<2x144xf32>, vector<2x144xf32> -> vector<2x144xf32>
    %cst_525 = arith.constant dense<0.000000e+00> : vector<2x144xf32>
    %1024 = tpu.matmul %1019, %1014, %cst_525 {dimension_numbers = #tpu.dot_dimension_numbers<[1], [0], [0], [1], [0, 0, 1, 1], [], []>} : vector<2x2xf32>, vector<2x144xf32>, vector<2x144xf32> -> vector<2x144xf32>
    %1025 = vector.extract_strided_slice %1023 {offsets = [0, 0], sizes = [2, 128], strides = [1, 1]} : vector<2x144xf32> to vector<2x128xf32>
    %1026 = vector.extract_strided_slice %1023 {offsets = [0, 128], sizes = [2, 16], strides = [1, 1]} : vector<2x144xf32> to vector<2x16xf32>
    %1027 = vector.extract_strided_slice %1024 {offsets = [0, 0], sizes = [2, 128], strides = [1, 1]} : vector<2x144xf32> to vector<2x128xf32>
    %1028 = vector.extract_strided_slice %1024 {offsets = [0, 128], sizes = [2, 16], strides = [1, 1]} : vector<2x144xf32> to vector<2x16xf32>
    %1029 = arith.mulf %1025, %805 : vector<2x128xf32>
    %1030 = arith.mulf %1027, %1011 : vector<2x128xf32>
    %1031 = arith.addf %1029, %1030 : vector<2x128xf32>
    %1032 = arith.mulf %1026, %808 : vector<2x16xf32>
    %1033 = arith.mulf %1028, %1005 : vector<2x16xf32>
    %1034 = arith.addf %1032, %1033 : vector<2x16xf32>
    %1035 = arith.mulf %1031, %1010 : vector<2x128xf32>
    %cst_526 = arith.constant dense<0.000000e+00> : vector<2x16xf32>
    %1036 = tpu.matmul %1035, %1015, %cst_526 {dimension_numbers = #tpu.dot_dimension_numbers<[1], [1], [0], [0], [0, 0, 1, 0], [], []>} : vector<2x128xf32>, vector<16x128xf32>, vector<2x16xf32> -> vector<2x16xf32>
    %1037 = arith.mulf %1034, %1004 : vector<2x16xf32>
    %cst_527 = arith.constant dense<0.000000e+00> : vector<2x2xf32>
    %1038 = tpu.matmul %1037, %1013, %cst_527 {dimension_numbers = #tpu.dot_dimension_numbers<[1], [1], [0], [0], [0, 0, 1, 0], [], []>} : vector<2x16xf32>, vector<2x16xf32>, vector<2x2xf32> -> vector<2x2xf32>
    %1039 = math.absf %1038 : vector<2x2xf32>
    %cst_528 = arith.constant 1.000000e+00 : f32
    %1040 = vector.broadcast %cst_528 : f32 to vector<2x2xf32>
    %1041 = arith.maximumf %1039, %1040 : vector<2x2xf32>
    %1042 = tpu.reciprocal %1041 : vector<2x2xf32> -> vector<2x2xf32>
    %cst_529 = arith.constant dense<0.000000e+00> : vector<2x16xf32>
    %1043 = tpu.matmul %1042, %1013, %cst_529 {dimension_numbers = #tpu.dot_dimension_numbers<[1], [0], [0], [1], [0, 0, 1, 1], [], []>} : vector<2x2xf32>, vector<2x16xf32>, vector<2x16xf32> -> vector<2x16xf32>
    %1044 = arith.mulf %1009, %1036 : vector<2x16xf32>
    %1045 = arith.mulf %1044, %1043 : vector<2x16xf32>
    %cst_530 = arith.constant dense<0.000000e+00> : vector<2x2xf32>
    %1046 = tpu.matmul %1045, %1013, %cst_530 {dimension_numbers = #tpu.dot_dimension_numbers<[1], [1], [0], [0], [0, 0, 1, 0], [], []>} : vector<2x16xf32>, vector<2x16xf32>, vector<2x2xf32> -> vector<2x2xf32>
    %cst_531 = arith.constant 1.250000e-01 : f32
    %1047 = vector.broadcast %cst_531 : f32 to vector<2x2xf32>
    %1048 = arith.mulf %1046, %1047 : vector<2x2xf32>
    %cst_532 = arith.constant dense<0.000000e+00> : vector<2x16xf32>
    %1049 = tpu.matmul %1048, %1013, %cst_532 {dimension_numbers = #tpu.dot_dimension_numbers<[1], [0], [0], [1], [0, 0, 1, 1], [], []>} : vector<2x2xf32>, vector<2x16xf32>, vector<2x16xf32> -> vector<2x16xf32>
    %1050 = arith.subf %1045, %1049 : vector<2x16xf32>
    %1051 = arith.mulf %1050, %1050 : vector<2x16xf32>
    %cst_533 = arith.constant dense<0.000000e+00> : vector<2x2xf32>
    %1052 = tpu.matmul %1051, %1013, %cst_533 {dimension_numbers = #tpu.dot_dimension_numbers<[1], [1], [0], [0], [0, 0, 1, 0], [], []>} : vector<2x16xf32>, vector<2x16xf32>, vector<2x2xf32> -> vector<2x2xf32>
    %cst_534 = arith.constant 1.250000e-01 : f32
    %1053 = vector.broadcast %cst_534 : f32 to vector<2x2xf32>
    %1054 = arith.mulf %1052, %1053 : vector<2x2xf32>
    %cst_535 = arith.constant dense<0.000000e+00> : vector<2x16xf32>
    %1055 = tpu.matmul %1054, %1013, %cst_535 {dimension_numbers = #tpu.dot_dimension_numbers<[1], [0], [0], [1], [0, 0, 1, 1], [], []>} : vector<2x2xf32>, vector<2x16xf32>, vector<2x16xf32> -> vector<2x16xf32>
    %cst_536 = arith.constant 9.99999974E-6 : f32
    %1056 = vector.broadcast %cst_536 : f32 to vector<2x16xf32>
    %1057 = arith.addf %1055, %1056 : vector<2x16xf32>
    %1058 = math.rsqrt %1057 : vector<2x16xf32>
    %1059 = arith.mulf %1050, %1058 : vector<2x16xf32>
    %c0_537 = arith.constant 0 : index
    %c0_538 = arith.constant 0 : index
    %c0_539 = arith.constant 0 : index
    %1060 = vector.load %arg19[%c0_537, %c0_538, %c0_539] : memref<2x1x16xf32, #tpu.memory_space<vmem>>, vector<1x1x16xf32>
    %1061 = vector.shape_cast %1060 : vector<1x1x16xf32> to vector<1x16xf32>
    %1062 = vector.broadcast %1061 : vector<1x16xf32> to vector<2x16xf32>
    %1063 = arith.mulf %1059, %1062 : vector<2x16xf32>
    %c0_540 = arith.constant 0 : index
    %c0_541 = arith.constant 0 : index
    %c0_542 = arith.constant 0 : index
    %1064 = vector.load %arg20[%c0_540, %c0_541, %c0_542] : memref<2x1x16xf32, #tpu.memory_space<vmem>>, vector<1x1x16xf32>
    %1065 = vector.shape_cast %1064 : vector<1x1x16xf32> to vector<1x16xf32>
    %1066 = vector.broadcast %1065 : vector<1x16xf32> to vector<2x16xf32>
    %1067 = arith.addf %1063, %1066 : vector<2x16xf32>
    %1068 = arith.addf %1067, %1006 : vector<2x16xf32>
    %1069 = arith.mulf %1068, %1012 : vector<2x16xf32>
    %c0_543 = arith.constant 0 : index
    %c0_544 = arith.constant 0 : index
    %c0_545 = arith.constant 0 : index
    %1070 = vector.load %arg21[%c0_543, %c0_544, %c0_545] : memref<2x16x16xf32, #tpu.memory_space<vmem>>, vector<1x16x16xf32>
    %1071 = vector.shape_cast %1070 : vector<1x16x16xf32> to vector<16x16xf32>
    %cst_546 = arith.constant dense<0.000000e+00> : vector<2x16xf32>
    %1072 = tpu.matmul %1069, %1071, %cst_546 {dimension_numbers = #tpu.dot_dimension_numbers<[1], [0], [0], [1], [0, 0, 1, 1], [], []>} : vector<2x16xf32>, vector<16x16xf32>, vector<2x16xf32> -> vector<2x16xf32>
    %c0_547 = arith.constant 0 : index
    %c0_548 = arith.constant 0 : index
    %c0_549 = arith.constant 0 : index
    %1073 = vector.load %arg22[%c0_547, %c0_548, %c0_549] : memref<2x1x16xf32, #tpu.memory_space<vmem>>, vector<1x1x16xf32>
    %1074 = vector.shape_cast %1073 : vector<1x1x16xf32> to vector<1x16xf32>
    %1075 = vector.broadcast %1074 : vector<1x16xf32> to vector<2x16xf32>
    %1076 = arith.addf %1072, %1075 : vector<2x16xf32>
    %1077 = arith.addf %1076, %1003 : vector<2x16xf32>
    %c1_550 = arith.constant 1 : index
    %c0_551 = arith.constant 0 : index
    %c0_552 = arith.constant 0 : index
    %1078 = vector.load %arg9[%c1_550, %c0_551, %c0_552] : memref<2x1x16xf32, #tpu.memory_space<vmem>>, vector<1x1x16xf32>
    %1079 = vector.shape_cast %1078 : vector<1x1x16xf32> to vector<1x16xf32>
    %c1_553 = arith.constant 1 : index
    %c0_554 = arith.constant 0 : index
    %c0_555 = arith.constant 0 : index
    %1080 = vector.load %arg10[%c1_553, %c0_554, %c0_555] : memref<2x1x16xf32, #tpu.memory_space<vmem>>, vector<1x1x16xf32>
    %1081 = vector.shape_cast %1080 : vector<1x1x16xf32> to vector<1x16xf32>
    %cst_556 = arith.constant dense<0.000000e+00> : vector<2xf32>
    %1082 = vector.multi_reduction <add>, %1077, %cst_556 [1] : vector<2x16xf32> to vector<2xf32>
    %1083 = vector.shape_cast %1082 : vector<2xf32> to vector<2x1xf32>
    %cst_557 = arith.constant 1.600000e+01 : f32
    %1084 = vector.broadcast %cst_557 : f32 to vector<2x1xf32>
    %1085 = arith.divf %1083, %1084 : vector<2x1xf32>
    %1086 = vector.broadcast %1085 : vector<2x1xf32> to vector<2x16xf32>
    %1087 = arith.subf %1077, %1086 : vector<2x16xf32>
    %1088 = arith.mulf %1087, %1087 : vector<2x16xf32>
    %cst_558 = arith.constant dense<0.000000e+00> : vector<2xf32>
    %1089 = vector.multi_reduction <add>, %1088, %cst_558 [1] : vector<2x16xf32> to vector<2xf32>
    %1090 = vector.shape_cast %1089 : vector<2xf32> to vector<2x1xf32>
    %cst_559 = arith.constant 1.600000e+01 : f32
    %1091 = vector.broadcast %cst_559 : f32 to vector<2x1xf32>
    %1092 = arith.divf %1090, %1091 : vector<2x1xf32>
    %1093 = vector.broadcast %1085 : vector<2x1xf32> to vector<2x16xf32>
    %1094 = arith.subf %1077, %1093 : vector<2x16xf32>
    %cst_560 = arith.constant 9.99999974E-6 : f32
    %1095 = vector.broadcast %cst_560 : f32 to vector<2x1xf32>
    %1096 = arith.addf %1092, %1095 : vector<2x1xf32>
    %1097 = math.rsqrt %1096 : vector<2x1xf32>
    %1098 = vector.broadcast %1097 : vector<2x1xf32> to vector<2x16xf32>
    %1099 = arith.mulf %1094, %1098 : vector<2x16xf32>
    %1100 = vector.broadcast %1079 : vector<1x16xf32> to vector<2x16xf32>
    %1101 = arith.mulf %1099, %1100 : vector<2x16xf32>
    %1102 = vector.broadcast %1081 : vector<1x16xf32> to vector<2x16xf32>
    %1103 = arith.addf %1101, %1102 : vector<2x16xf32>
    %c1_561 = arith.constant 1 : index
    %c0_562 = arith.constant 0 : index
    %c0_563 = arith.constant 0 : index
    %1104 = vector.load %arg11[%c1_561, %c0_562, %c0_563] : memref<2x16x48xf32, #tpu.memory_space<vmem>>, vector<1x16x48xf32>
    %1105 = vector.shape_cast %1104 : vector<1x16x48xf32> to vector<16x48xf32>
    %cst_564 = arith.constant dense<0.000000e+00> : vector<2x48xf32>
    %1106 = tpu.matmul %1103, %1105, %cst_564 {dimension_numbers = #tpu.dot_dimension_numbers<[1], [0], [0], [1], [0, 0, 1, 1], [], []>} : vector<2x16xf32>, vector<16x48xf32>, vector<2x48xf32> -> vector<2x48xf32>
    %c1_565 = arith.constant 1 : index
    %c0_566 = arith.constant 0 : index
    %c0_567 = arith.constant 0 : index
    %1107 = vector.load %arg12[%c1_565, %c0_566, %c0_567] : memref<2x1x48xf32, #tpu.memory_space<vmem>>, vector<1x1x48xf32>
    %1108 = vector.shape_cast %1107 : vector<1x1x48xf32> to vector<1x48xf32>
    %1109 = vector.broadcast %1108 : vector<1x48xf32> to vector<2x48xf32>
    %1110 = arith.addf %1106, %1109 : vector<2x48xf32>
    %1111 = vector.extract_strided_slice %1110 {offsets = [0, 0], sizes = [2, 32], strides = [1, 1]} : vector<2x48xf32> to vector<2x32xf32>
    %1112 = vector.extract_strided_slice %1110 {offsets = [0, 32], sizes = [2, 16], strides = [1, 1]} : vector<2x48xf32> to vector<2x16xf32>
    %c1_568 = arith.constant 1 : index
    %c0_569 = arith.constant 0 : index
    %c0_570 = arith.constant 0 : index
    %1113 = vector.load %arg13[%c1_568, %c0_569, %c0_570] : memref<2x32x32xf32, #tpu.memory_space<vmem>>, vector<1x32x32xf32>
    %1114 = vector.shape_cast %1113 : vector<1x32x32xf32> to vector<32x32xf32>
    %cst_571 = arith.constant dense<0.000000e+00> : vector<2x32xf32>
    %1115 = tpu.matmul %1111, %1114, %cst_571 {dimension_numbers = #tpu.dot_dimension_numbers<[1], [0], [0], [1], [0, 0, 1, 1], [], []>} : vector<2x32xf32>, vector<32x32xf32>, vector<2x32xf32> -> vector<2x32xf32>
    %c1_572 = arith.constant 1 : index
    %c0_573 = arith.constant 0 : index
    %c0_574 = arith.constant 0 : index
    %1116 = vector.load %arg14[%c1_572, %c0_573, %c0_574] : memref<2x1x1xf32, #tpu.memory_space<vmem>>, vector<1x1x1xf32>
    %1117 = vector.shape_cast %1116 : vector<1x1x1xf32> to vector<1x1xf32>
    %1118 = vector.broadcast %1117 : vector<1x1xf32> to vector<2x32xf32>
    %1119 = arith.addf %1115, %1118 : vector<2x32xf32>
    %1120 = arith.negf %1119 : vector<2x32xf32>
    %1121 = math.exp %1120 : vector<2x32xf32>
    %cst_575 = arith.constant 1.000000e+00 : f32
    %1122 = vector.broadcast %cst_575 : f32 to vector<2x32xf32>
    %1123 = arith.addf %1122, %1121 : vector<2x32xf32>
    %1124 = arith.divf %1122, %1123 : vector<2x32xf32>
    %1125 = arith.mulf %1119, %1124 : vector<2x32xf32>
    %c1_576 = arith.constant 1 : index
    %c0_577 = arith.constant 0 : index
    %c0_578 = arith.constant 0 : index
    %1126 = vector.load %arg15[%c1_576, %c0_577, %c0_578] : memref<2x32x52xf32, #tpu.memory_space<vmem>>, vector<1x32x52xf32>
    %1127 = vector.shape_cast %1126 : vector<1x32x52xf32> to vector<32x52xf32>
    %cst_579 = arith.constant dense<0.000000e+00> : vector<2x52xf32>
    %1128 = tpu.matmul %1125, %1127, %cst_579 {dimension_numbers = #tpu.dot_dimension_numbers<[1], [0], [0], [1], [0, 0, 1, 1], [], []>} : vector<2x32xf32>, vector<32x52xf32>, vector<2x52xf32> -> vector<2x52xf32>
    %c1_580 = arith.constant 1 : index
    %c0_581 = arith.constant 0 : index
    %c0_582 = arith.constant 0 : index
    %1129 = vector.load %arg16[%c1_580, %c0_581, %c0_582] : memref<2x1x52xf32, #tpu.memory_space<vmem>>, vector<1x1x52xf32>
    %1130 = vector.shape_cast %1129 : vector<1x1x52xf32> to vector<1x52xf32>
    %1131 = vector.broadcast %1130 : vector<1x52xf32> to vector<2x52xf32>
    %1132 = arith.addf %1128, %1131 : vector<2x52xf32>
    %1133 = vector.extract_strided_slice %1132 {offsets = [0, 0], sizes = [2, 16], strides = [1, 1]} : vector<2x52xf32> to vector<2x16xf32>
    %1134 = vector.extract_strided_slice %1132 {offsets = [0, 16], sizes = [2, 16], strides = [1, 1]} : vector<2x52xf32> to vector<2x16xf32>
    %1135 = vector.extract_strided_slice %1132 {offsets = [0, 32], sizes = [2, 16], strides = [1, 1]} : vector<2x52xf32> to vector<2x16xf32>
    %1136 = vector.extract_strided_slice %1132 {offsets = [0, 48], sizes = [2, 2], strides = [1, 1]} : vector<2x52xf32> to vector<2x2xf32>
    %1137 = vector.extract_strided_slice %1132 {offsets = [0, 50], sizes = [2, 2], strides = [1, 1]} : vector<2x52xf32> to vector<2x2xf32>
    %c1_583 = arith.constant 1 : index
    %c0_584 = arith.constant 0 : index
    %c0_585 = arith.constant 0 : index
    %1138 = vector.load %arg17[%c1_583, %c0_584, %c0_585] : memref<2x32x32xf32, #tpu.memory_space<vmem>>, vector<1x32x32xf32>
    %1139 = vector.shape_cast %1138 : vector<1x32x32xf32> to vector<32x32xf32>
    %cst_586 = arith.constant dense<0.000000e+00> : vector<2x32xf32>
    %1140 = tpu.matmul %1111, %1139, %cst_586 {dimension_numbers = #tpu.dot_dimension_numbers<[1], [0], [0], [1], [0, 0, 1, 1], [], []>} : vector<2x32xf32>, vector<32x32xf32>, vector<2x32xf32> -> vector<2x32xf32>
    %c1_587 = arith.constant 1 : index
    %c0_588 = arith.constant 0 : index
    %c0_589 = arith.constant 0 : index
    %1141 = vector.load %arg18[%c1_587, %c0_588, %c0_589] : memref<2x1x32xf32, #tpu.memory_space<vmem>>, vector<1x1x32xf32>
    %1142 = vector.shape_cast %1141 : vector<1x1x32xf32> to vector<1x32xf32>
    %1143 = vector.broadcast %1142 : vector<1x32xf32> to vector<2x32xf32>
    %1144 = arith.addf %1140, %1143 : vector<2x32xf32>
    %1145 = vector.extract_strided_slice %1144 {offsets = [0, 0], sizes = [2, 16], strides = [1, 1]} : vector<2x32xf32> to vector<2x16xf32>
    %1146 = vector.extract_strided_slice %1144 {offsets = [0, 16], sizes = [2, 16], strides = [1, 1]} : vector<2x32xf32> to vector<2x16xf32>
    %1147 = arith.negf %1146 : vector<2x16xf32>
    %1148 = math.exp %1147 : vector<2x16xf32>
    %cst_590 = arith.constant 1.000000e+00 : f32
    %1149 = vector.broadcast %cst_590 : f32 to vector<2x16xf32>
    %1150 = arith.addf %1149, %1148 : vector<2x16xf32>
    %1151 = arith.divf %1149, %1150 : vector<2x16xf32>
    %c0_591 = arith.constant 0 : index
    %c0_592 = arith.constant 0 : index
    %1152 = vector.load %arg6[%c0_591, %c0_592] : memref<16x128xf32, #tpu.memory_space<vmem>>, vector<16x128xf32>
    %cst_593 = arith.constant dense<0.000000e+00> : vector<2x128xf32>
    %1153 = tpu.matmul %1133, %1152, %cst_593 {dimension_numbers = #tpu.dot_dimension_numbers<[1], [0], [0], [1], [0, 0, 1, 1], [], []>} : vector<2x16xf32>, vector<16x128xf32>, vector<2x128xf32> -> vector<2x128xf32>
    %cst_594 = arith.constant dense<0.000000e+00> : vector<2x128xf32>
    %1154 = tpu.matmul %1134, %1152, %cst_594 {dimension_numbers = #tpu.dot_dimension_numbers<[1], [0], [0], [1], [0, 0, 1, 1], [], []>} : vector<2x16xf32>, vector<16x128xf32>, vector<2x128xf32> -> vector<2x128xf32>
    %c0_595 = arith.constant 0 : index
    %c0_596 = arith.constant 0 : index
    %1155 = vector.load %arg7[%c0_595, %c0_596] : memref<16x128xf32, #tpu.memory_space<vmem>>, vector<16x128xf32>
    %cst_597 = arith.constant dense<0.000000e+00> : vector<2x128xf32>
    %1156 = tpu.matmul %1145, %1155, %cst_597 {dimension_numbers = #tpu.dot_dimension_numbers<[1], [0], [0], [1], [0, 0, 1, 1], [], []>} : vector<2x16xf32>, vector<16x128xf32>, vector<2x128xf32> -> vector<2x128xf32>
    %1157 = arith.mulf %1156, %1154 : vector<2x128xf32>
    %1158 = arith.negf %1112 : vector<2x16xf32>
    %1159 = math.exp %1158 : vector<2x16xf32>
    %cst_598 = arith.constant 1.000000e+00 : f32
    %1160 = vector.broadcast %cst_598 : f32 to vector<2x16xf32>
    %1161 = arith.addf %1160, %1159 : vector<2x16xf32>
    %1162 = arith.divf %1160, %1161 : vector<2x16xf32>
    %1163 = arith.mulf %1112, %1162 : vector<2x16xf32>
    %c0_599 = arith.constant 0 : index
    %c0_600 = arith.constant 0 : index
    %1164 = vector.load %arg5[%c0_599, %c0_600] : memref<2x16xf32, #tpu.memory_space<vmem>>, vector<2x16xf32>
    %c0_601 = arith.constant 0 : index
    %c0_602 = arith.constant 0 : index
    %1165 = vector.load %arg8[%c0_601, %c0_602] : memref<2x144xf32, #tpu.memory_space<vmem>>, vector<2x144xf32>
    %c0_603 = arith.constant 0 : index
    %c0_604 = arith.constant 0 : index
    %1166 = vector.load %arg7[%c0_603, %c0_604] : memref<16x128xf32, #tpu.memory_space<vmem>>, vector<16x128xf32>
    %1167 = arith.addf %1137, %942 : vector<2x2xf32>
    %1168 = arith.maximumf %1167, %1136 : vector<2x2xf32>
    %1169 = arith.subf %1136, %1168 : vector<2x2xf32>
    %1170 = math.exp %1169 : vector<2x2xf32>
    %1171 = arith.subf %1137, %1168 : vector<2x2xf32>
    %1172 = arith.addf %1171, %942 : vector<2x2xf32>
    %1173 = math.exp %1172 : vector<2x2xf32>
    %cst_605 = arith.constant dense<0.000000e+00> : vector<2x144xf32>
    %1174 = tpu.matmul %1173, %1165, %cst_605 {dimension_numbers = #tpu.dot_dimension_numbers<[1], [0], [0], [1], [0, 0, 1, 1], [], []>} : vector<2x2xf32>, vector<2x144xf32>, vector<2x144xf32> -> vector<2x144xf32>
    %cst_606 = arith.constant dense<0.000000e+00> : vector<2x144xf32>
    %1175 = tpu.matmul %1170, %1165, %cst_606 {dimension_numbers = #tpu.dot_dimension_numbers<[1], [0], [0], [1], [0, 0, 1, 1], [], []>} : vector<2x2xf32>, vector<2x144xf32>, vector<2x144xf32> -> vector<2x144xf32>
    %1176 = vector.extract_strided_slice %1174 {offsets = [0, 0], sizes = [2, 128], strides = [1, 1]} : vector<2x144xf32> to vector<2x128xf32>
    %1177 = vector.extract_strided_slice %1174 {offsets = [0, 128], sizes = [2, 16], strides = [1, 1]} : vector<2x144xf32> to vector<2x16xf32>
    %1178 = vector.extract_strided_slice %1175 {offsets = [0, 0], sizes = [2, 128], strides = [1, 1]} : vector<2x144xf32> to vector<2x128xf32>
    %1179 = vector.extract_strided_slice %1175 {offsets = [0, 128], sizes = [2, 16], strides = [1, 1]} : vector<2x144xf32> to vector<2x16xf32>
    %1180 = arith.mulf %1176, %956 : vector<2x128xf32>
    %1181 = arith.mulf %1178, %1157 : vector<2x128xf32>
    %1182 = arith.addf %1180, %1181 : vector<2x128xf32>
    %1183 = arith.mulf %1177, %959 : vector<2x16xf32>
    %1184 = arith.mulf %1179, %1134 : vector<2x16xf32>
    %1185 = arith.addf %1183, %1184 : vector<2x16xf32>
    %1186 = arith.mulf %1182, %1153 : vector<2x128xf32>
    %cst_607 = arith.constant dense<0.000000e+00> : vector<2x16xf32>
    %1187 = tpu.matmul %1186, %1166, %cst_607 {dimension_numbers = #tpu.dot_dimension_numbers<[1], [1], [0], [0], [0, 0, 1, 0], [], []>} : vector<2x128xf32>, vector<16x128xf32>, vector<2x16xf32> -> vector<2x16xf32>
    %1188 = arith.mulf %1185, %1133 : vector<2x16xf32>
    %cst_608 = arith.constant dense<0.000000e+00> : vector<2x2xf32>
    %1189 = tpu.matmul %1188, %1164, %cst_608 {dimension_numbers = #tpu.dot_dimension_numbers<[1], [1], [0], [0], [0, 0, 1, 0], [], []>} : vector<2x16xf32>, vector<2x16xf32>, vector<2x2xf32> -> vector<2x2xf32>
    %1190 = math.absf %1189 : vector<2x2xf32>
    %cst_609 = arith.constant 1.000000e+00 : f32
    %1191 = vector.broadcast %cst_609 : f32 to vector<2x2xf32>
    %1192 = arith.maximumf %1190, %1191 : vector<2x2xf32>
    %1193 = tpu.reciprocal %1192 : vector<2x2xf32> -> vector<2x2xf32>
    %cst_610 = arith.constant dense<0.000000e+00> : vector<2x16xf32>
    %1194 = tpu.matmul %1193, %1164, %cst_610 {dimension_numbers = #tpu.dot_dimension_numbers<[1], [0], [0], [1], [0, 0, 1, 1], [], []>} : vector<2x2xf32>, vector<2x16xf32>, vector<2x16xf32> -> vector<2x16xf32>
    %1195 = arith.mulf %1151, %1187 : vector<2x16xf32>
    %1196 = arith.mulf %1195, %1194 : vector<2x16xf32>
    %cst_611 = arith.constant dense<0.000000e+00> : vector<2x2xf32>
    %1197 = tpu.matmul %1196, %1164, %cst_611 {dimension_numbers = #tpu.dot_dimension_numbers<[1], [1], [0], [0], [0, 0, 1, 0], [], []>} : vector<2x16xf32>, vector<2x16xf32>, vector<2x2xf32> -> vector<2x2xf32>
    %cst_612 = arith.constant 1.250000e-01 : f32
    %1198 = vector.broadcast %cst_612 : f32 to vector<2x2xf32>
    %1199 = arith.mulf %1197, %1198 : vector<2x2xf32>
    %cst_613 = arith.constant dense<0.000000e+00> : vector<2x16xf32>
    %1200 = tpu.matmul %1199, %1164, %cst_613 {dimension_numbers = #tpu.dot_dimension_numbers<[1], [0], [0], [1], [0, 0, 1, 1], [], []>} : vector<2x2xf32>, vector<2x16xf32>, vector<2x16xf32> -> vector<2x16xf32>
    %1201 = arith.subf %1196, %1200 : vector<2x16xf32>
    %1202 = arith.mulf %1201, %1201 : vector<2x16xf32>
    %cst_614 = arith.constant dense<0.000000e+00> : vector<2x2xf32>
    %1203 = tpu.matmul %1202, %1164, %cst_614 {dimension_numbers = #tpu.dot_dimension_numbers<[1], [1], [0], [0], [0, 0, 1, 0], [], []>} : vector<2x16xf32>, vector<2x16xf32>, vector<2x2xf32> -> vector<2x2xf32>
    %cst_615 = arith.constant 1.250000e-01 : f32
    %1204 = vector.broadcast %cst_615 : f32 to vector<2x2xf32>
    %1205 = arith.mulf %1203, %1204 : vector<2x2xf32>
    %cst_616 = arith.constant dense<0.000000e+00> : vector<2x16xf32>
    %1206 = tpu.matmul %1205, %1164, %cst_616 {dimension_numbers = #tpu.dot_dimension_numbers<[1], [0], [0], [1], [0, 0, 1, 1], [], []>} : vector<2x2xf32>, vector<2x16xf32>, vector<2x16xf32> -> vector<2x16xf32>
    %cst_617 = arith.constant 9.99999974E-6 : f32
    %1207 = vector.broadcast %cst_617 : f32 to vector<2x16xf32>
    %1208 = arith.addf %1206, %1207 : vector<2x16xf32>
    %1209 = math.rsqrt %1208 : vector<2x16xf32>
    %1210 = arith.mulf %1201, %1209 : vector<2x16xf32>
    %c1_618 = arith.constant 1 : index
    %c0_619 = arith.constant 0 : index
    %c0_620 = arith.constant 0 : index
    %1211 = vector.load %arg19[%c1_618, %c0_619, %c0_620] : memref<2x1x16xf32, #tpu.memory_space<vmem>>, vector<1x1x16xf32>
    %1212 = vector.shape_cast %1211 : vector<1x1x16xf32> to vector<1x16xf32>
    %1213 = vector.broadcast %1212 : vector<1x16xf32> to vector<2x16xf32>
    %1214 = arith.mulf %1210, %1213 : vector<2x16xf32>
    %c1_621 = arith.constant 1 : index
    %c0_622 = arith.constant 0 : index
    %c0_623 = arith.constant 0 : index
    %1215 = vector.load %arg20[%c1_621, %c0_622, %c0_623] : memref<2x1x16xf32, #tpu.memory_space<vmem>>, vector<1x1x16xf32>
    %1216 = vector.shape_cast %1215 : vector<1x1x16xf32> to vector<1x16xf32>
    %1217 = vector.broadcast %1216 : vector<1x16xf32> to vector<2x16xf32>
    %1218 = arith.addf %1214, %1217 : vector<2x16xf32>
    %1219 = arith.addf %1218, %1135 : vector<2x16xf32>
    %1220 = arith.mulf %1219, %1163 : vector<2x16xf32>
    %c1_624 = arith.constant 1 : index
    %c0_625 = arith.constant 0 : index
    %c0_626 = arith.constant 0 : index
    %1221 = vector.load %arg21[%c1_624, %c0_625, %c0_626] : memref<2x16x16xf32, #tpu.memory_space<vmem>>, vector<1x16x16xf32>
    %1222 = vector.shape_cast %1221 : vector<1x16x16xf32> to vector<16x16xf32>
    %cst_627 = arith.constant dense<0.000000e+00> : vector<2x16xf32>
    %1223 = tpu.matmul %1220, %1222, %cst_627 {dimension_numbers = #tpu.dot_dimension_numbers<[1], [0], [0], [1], [0, 0, 1, 1], [], []>} : vector<2x16xf32>, vector<16x16xf32>, vector<2x16xf32> -> vector<2x16xf32>
    %c1_628 = arith.constant 1 : index
    %c0_629 = arith.constant 0 : index
    %c0_630 = arith.constant 0 : index
    %1224 = vector.load %arg22[%c1_628, %c0_629, %c0_630] : memref<2x1x16xf32, #tpu.memory_space<vmem>>, vector<1x1x16xf32>
    %1225 = vector.shape_cast %1224 : vector<1x1x16xf32> to vector<1x16xf32>
    %1226 = vector.broadcast %1225 : vector<1x16xf32> to vector<2x16xf32>
    %1227 = arith.addf %1223, %1226 : vector<2x16xf32>
    %1228 = arith.addf %1227, %1077 : vector<2x16xf32>
    %1229 = vector.extract_strided_slice %0 {offsets = [10, 0], sizes = [2, 16], strides = [1, 1]} : vector<16x16xf32> to vector<2x16xf32>
    %1230 = vector.extract_strided_slice %56 {offsets = [10, 0], sizes = [2, 16], strides = [1, 1]} : vector<16x16xf32> to vector<2x16xf32>
    %1231 = vector.extract_strided_slice %57 {offsets = [10, 0], sizes = [2, 16], strides = [1, 1]} : vector<16x16xf32> to vector<2x16xf32>
    %1232 = vector.extract_strided_slice %58 {offsets = [10, 0], sizes = [2, 16], strides = [1, 1]} : vector<16x16xf32> to vector<2x16xf32>
    %1233 = vector.extract_strided_slice %59 {offsets = [10, 0], sizes = [2, 2], strides = [1, 1]} : vector<16x2xf32> to vector<2x2xf32>
    %1234 = vector.extract_strided_slice %60 {offsets = [10, 0], sizes = [2, 2], strides = [1, 1]} : vector<16x2xf32> to vector<2x2xf32>
    %1235 = vector.extract_strided_slice %74 {offsets = [10, 0], sizes = [2, 16], strides = [1, 1]} : vector<16x16xf32> to vector<2x16xf32>
    %1236 = vector.extract_strided_slice %76 {offsets = [10, 0], sizes = [2, 128], strides = [1, 1]} : vector<16x128xf32> to vector<2x128xf32>
    %1237 = vector.extract_strided_slice %80 {offsets = [10, 0], sizes = [2, 128], strides = [1, 1]} : vector<16x128xf32> to vector<2x128xf32>
    %1238 = vector.extract_strided_slice %86 {offsets = [10, 0], sizes = [2, 16], strides = [1, 1]} : vector<16x16xf32> to vector<2x16xf32>
    %c0_631 = arith.constant 0 : index
    %c0_632 = arith.constant 0 : index
    %1239 = vector.load %arg5[%c0_631, %c0_632] : memref<2x16xf32, #tpu.memory_space<vmem>>, vector<2x16xf32>
    %c0_633 = arith.constant 0 : index
    %c0_634 = arith.constant 0 : index
    %1240 = vector.load %arg8[%c0_633, %c0_634] : memref<2x144xf32, #tpu.memory_space<vmem>>, vector<2x144xf32>
    %c0_635 = arith.constant 0 : index
    %c0_636 = arith.constant 0 : index
    %1241 = vector.load %arg7[%c0_635, %c0_636] : memref<16x128xf32, #tpu.memory_space<vmem>>, vector<16x128xf32>
    %1242 = arith.addf %1234, %1017 : vector<2x2xf32>
    %1243 = arith.maximumf %1242, %1233 : vector<2x2xf32>
    %1244 = arith.subf %1233, %1243 : vector<2x2xf32>
    %1245 = math.exp %1244 : vector<2x2xf32>
    %1246 = arith.subf %1234, %1243 : vector<2x2xf32>
    %1247 = arith.addf %1246, %1017 : vector<2x2xf32>
    %1248 = math.exp %1247 : vector<2x2xf32>
    %cst_637 = arith.constant dense<0.000000e+00> : vector<2x144xf32>
    %1249 = tpu.matmul %1248, %1240, %cst_637 {dimension_numbers = #tpu.dot_dimension_numbers<[1], [0], [0], [1], [0, 0, 1, 1], [], []>} : vector<2x2xf32>, vector<2x144xf32>, vector<2x144xf32> -> vector<2x144xf32>
    %cst_638 = arith.constant dense<0.000000e+00> : vector<2x144xf32>
    %1250 = tpu.matmul %1245, %1240, %cst_638 {dimension_numbers = #tpu.dot_dimension_numbers<[1], [0], [0], [1], [0, 0, 1, 1], [], []>} : vector<2x2xf32>, vector<2x144xf32>, vector<2x144xf32> -> vector<2x144xf32>
    %1251 = vector.extract_strided_slice %1249 {offsets = [0, 0], sizes = [2, 128], strides = [1, 1]} : vector<2x144xf32> to vector<2x128xf32>
    %1252 = vector.extract_strided_slice %1249 {offsets = [0, 128], sizes = [2, 16], strides = [1, 1]} : vector<2x144xf32> to vector<2x16xf32>
    %1253 = vector.extract_strided_slice %1250 {offsets = [0, 0], sizes = [2, 128], strides = [1, 1]} : vector<2x144xf32> to vector<2x128xf32>
    %1254 = vector.extract_strided_slice %1250 {offsets = [0, 128], sizes = [2, 16], strides = [1, 1]} : vector<2x144xf32> to vector<2x16xf32>
    %1255 = arith.mulf %1251, %1031 : vector<2x128xf32>
    %1256 = arith.mulf %1253, %1237 : vector<2x128xf32>
    %1257 = arith.addf %1255, %1256 : vector<2x128xf32>
    %1258 = arith.mulf %1252, %1034 : vector<2x16xf32>
    %1259 = arith.mulf %1254, %1231 : vector<2x16xf32>
    %1260 = arith.addf %1258, %1259 : vector<2x16xf32>
    %1261 = arith.mulf %1257, %1236 : vector<2x128xf32>
    %cst_639 = arith.constant dense<0.000000e+00> : vector<2x16xf32>
    %1262 = tpu.matmul %1261, %1241, %cst_639 {dimension_numbers = #tpu.dot_dimension_numbers<[1], [1], [0], [0], [0, 0, 1, 0], [], []>} : vector<2x128xf32>, vector<16x128xf32>, vector<2x16xf32> -> vector<2x16xf32>
    %1263 = arith.mulf %1260, %1230 : vector<2x16xf32>
    %cst_640 = arith.constant dense<0.000000e+00> : vector<2x2xf32>
    %1264 = tpu.matmul %1263, %1239, %cst_640 {dimension_numbers = #tpu.dot_dimension_numbers<[1], [1], [0], [0], [0, 0, 1, 0], [], []>} : vector<2x16xf32>, vector<2x16xf32>, vector<2x2xf32> -> vector<2x2xf32>
    %1265 = math.absf %1264 : vector<2x2xf32>
    %cst_641 = arith.constant 1.000000e+00 : f32
    %1266 = vector.broadcast %cst_641 : f32 to vector<2x2xf32>
    %1267 = arith.maximumf %1265, %1266 : vector<2x2xf32>
    %1268 = tpu.reciprocal %1267 : vector<2x2xf32> -> vector<2x2xf32>
    %cst_642 = arith.constant dense<0.000000e+00> : vector<2x16xf32>
    %1269 = tpu.matmul %1268, %1239, %cst_642 {dimension_numbers = #tpu.dot_dimension_numbers<[1], [0], [0], [1], [0, 0, 1, 1], [], []>} : vector<2x2xf32>, vector<2x16xf32>, vector<2x16xf32> -> vector<2x16xf32>
    %1270 = arith.mulf %1235, %1262 : vector<2x16xf32>
    %1271 = arith.mulf %1270, %1269 : vector<2x16xf32>
    %cst_643 = arith.constant dense<0.000000e+00> : vector<2x2xf32>
    %1272 = tpu.matmul %1271, %1239, %cst_643 {dimension_numbers = #tpu.dot_dimension_numbers<[1], [1], [0], [0], [0, 0, 1, 0], [], []>} : vector<2x16xf32>, vector<2x16xf32>, vector<2x2xf32> -> vector<2x2xf32>
    %cst_644 = arith.constant 1.250000e-01 : f32
    %1273 = vector.broadcast %cst_644 : f32 to vector<2x2xf32>
    %1274 = arith.mulf %1272, %1273 : vector<2x2xf32>
    %cst_645 = arith.constant dense<0.000000e+00> : vector<2x16xf32>
    %1275 = tpu.matmul %1274, %1239, %cst_645 {dimension_numbers = #tpu.dot_dimension_numbers<[1], [0], [0], [1], [0, 0, 1, 1], [], []>} : vector<2x2xf32>, vector<2x16xf32>, vector<2x16xf32> -> vector<2x16xf32>
    %1276 = arith.subf %1271, %1275 : vector<2x16xf32>
    %1277 = arith.mulf %1276, %1276 : vector<2x16xf32>
    %cst_646 = arith.constant dense<0.000000e+00> : vector<2x2xf32>
    %1278 = tpu.matmul %1277, %1239, %cst_646 {dimension_numbers = #tpu.dot_dimension_numbers<[1], [1], [0], [0], [0, 0, 1, 0], [], []>} : vector<2x16xf32>, vector<2x16xf32>, vector<2x2xf32> -> vector<2x2xf32>
    %cst_647 = arith.constant 1.250000e-01 : f32
    %1279 = vector.broadcast %cst_647 : f32 to vector<2x2xf32>
    %1280 = arith.mulf %1278, %1279 : vector<2x2xf32>
    %cst_648 = arith.constant dense<0.000000e+00> : vector<2x16xf32>
    %1281 = tpu.matmul %1280, %1239, %cst_648 {dimension_numbers = #tpu.dot_dimension_numbers<[1], [0], [0], [1], [0, 0, 1, 1], [], []>} : vector<2x2xf32>, vector<2x16xf32>, vector<2x16xf32> -> vector<2x16xf32>
    %cst_649 = arith.constant 9.99999974E-6 : f32
    %1282 = vector.broadcast %cst_649 : f32 to vector<2x16xf32>
    %1283 = arith.addf %1281, %1282 : vector<2x16xf32>
    %1284 = math.rsqrt %1283 : vector<2x16xf32>
    %1285 = arith.mulf %1276, %1284 : vector<2x16xf32>
    %c0_650 = arith.constant 0 : index
    %c0_651 = arith.constant 0 : index
    %c0_652 = arith.constant 0 : index
    %1286 = vector.load %arg19[%c0_650, %c0_651, %c0_652] : memref<2x1x16xf32, #tpu.memory_space<vmem>>, vector<1x1x16xf32>
    %1287 = vector.shape_cast %1286 : vector<1x1x16xf32> to vector<1x16xf32>
    %1288 = vector.broadcast %1287 : vector<1x16xf32> to vector<2x16xf32>
    %1289 = arith.mulf %1285, %1288 : vector<2x16xf32>
    %c0_653 = arith.constant 0 : index
    %c0_654 = arith.constant 0 : index
    %c0_655 = arith.constant 0 : index
    %1290 = vector.load %arg20[%c0_653, %c0_654, %c0_655] : memref<2x1x16xf32, #tpu.memory_space<vmem>>, vector<1x1x16xf32>
    %1291 = vector.shape_cast %1290 : vector<1x1x16xf32> to vector<1x16xf32>
    %1292 = vector.broadcast %1291 : vector<1x16xf32> to vector<2x16xf32>
    %1293 = arith.addf %1289, %1292 : vector<2x16xf32>
    %1294 = arith.addf %1293, %1232 : vector<2x16xf32>
    %1295 = arith.mulf %1294, %1238 : vector<2x16xf32>
    %c0_656 = arith.constant 0 : index
    %c0_657 = arith.constant 0 : index
    %c0_658 = arith.constant 0 : index
    %1296 = vector.load %arg21[%c0_656, %c0_657, %c0_658] : memref<2x16x16xf32, #tpu.memory_space<vmem>>, vector<1x16x16xf32>
    %1297 = vector.shape_cast %1296 : vector<1x16x16xf32> to vector<16x16xf32>
    %cst_659 = arith.constant dense<0.000000e+00> : vector<2x16xf32>
    %1298 = tpu.matmul %1295, %1297, %cst_659 {dimension_numbers = #tpu.dot_dimension_numbers<[1], [0], [0], [1], [0, 0, 1, 1], [], []>} : vector<2x16xf32>, vector<16x16xf32>, vector<2x16xf32> -> vector<2x16xf32>
    %c0_660 = arith.constant 0 : index
    %c0_661 = arith.constant 0 : index
    %c0_662 = arith.constant 0 : index
    %1299 = vector.load %arg22[%c0_660, %c0_661, %c0_662] : memref<2x1x16xf32, #tpu.memory_space<vmem>>, vector<1x1x16xf32>
    %1300 = vector.shape_cast %1299 : vector<1x1x16xf32> to vector<1x16xf32>
    %1301 = vector.broadcast %1300 : vector<1x16xf32> to vector<2x16xf32>
    %1302 = arith.addf %1298, %1301 : vector<2x16xf32>
    %1303 = arith.addf %1302, %1229 : vector<2x16xf32>
    %c1_663 = arith.constant 1 : index
    %c0_664 = arith.constant 0 : index
    %c0_665 = arith.constant 0 : index
    %1304 = vector.load %arg9[%c1_663, %c0_664, %c0_665] : memref<2x1x16xf32, #tpu.memory_space<vmem>>, vector<1x1x16xf32>
    %1305 = vector.shape_cast %1304 : vector<1x1x16xf32> to vector<1x16xf32>
    %c1_666 = arith.constant 1 : index
    %c0_667 = arith.constant 0 : index
    %c0_668 = arith.constant 0 : index
    %1306 = vector.load %arg10[%c1_666, %c0_667, %c0_668] : memref<2x1x16xf32, #tpu.memory_space<vmem>>, vector<1x1x16xf32>
    %1307 = vector.shape_cast %1306 : vector<1x1x16xf32> to vector<1x16xf32>
    %cst_669 = arith.constant dense<0.000000e+00> : vector<2xf32>
    %1308 = vector.multi_reduction <add>, %1303, %cst_669 [1] : vector<2x16xf32> to vector<2xf32>
    %1309 = vector.shape_cast %1308 : vector<2xf32> to vector<2x1xf32>
    %cst_670 = arith.constant 1.600000e+01 : f32
    %1310 = vector.broadcast %cst_670 : f32 to vector<2x1xf32>
    %1311 = arith.divf %1309, %1310 : vector<2x1xf32>
    %1312 = vector.broadcast %1311 : vector<2x1xf32> to vector<2x16xf32>
    %1313 = arith.subf %1303, %1312 : vector<2x16xf32>
    %1314 = arith.mulf %1313, %1313 : vector<2x16xf32>
    %cst_671 = arith.constant dense<0.000000e+00> : vector<2xf32>
    %1315 = vector.multi_reduction <add>, %1314, %cst_671 [1] : vector<2x16xf32> to vector<2xf32>
    %1316 = vector.shape_cast %1315 : vector<2xf32> to vector<2x1xf32>
    %cst_672 = arith.constant 1.600000e+01 : f32
    %1317 = vector.broadcast %cst_672 : f32 to vector<2x1xf32>
    %1318 = arith.divf %1316, %1317 : vector<2x1xf32>
    %1319 = vector.broadcast %1311 : vector<2x1xf32> to vector<2x16xf32>
    %1320 = arith.subf %1303, %1319 : vector<2x16xf32>
    %cst_673 = arith.constant 9.99999974E-6 : f32
    %1321 = vector.broadcast %cst_673 : f32 to vector<2x1xf32>
    %1322 = arith.addf %1318, %1321 : vector<2x1xf32>
    %1323 = math.rsqrt %1322 : vector<2x1xf32>
    %1324 = vector.broadcast %1323 : vector<2x1xf32> to vector<2x16xf32>
    %1325 = arith.mulf %1320, %1324 : vector<2x16xf32>
    %1326 = vector.broadcast %1305 : vector<1x16xf32> to vector<2x16xf32>
    %1327 = arith.mulf %1325, %1326 : vector<2x16xf32>
    %1328 = vector.broadcast %1307 : vector<1x16xf32> to vector<2x16xf32>
    %1329 = arith.addf %1327, %1328 : vector<2x16xf32>
    %c1_674 = arith.constant 1 : index
    %c0_675 = arith.constant 0 : index
    %c0_676 = arith.constant 0 : index
    %1330 = vector.load %arg11[%c1_674, %c0_675, %c0_676] : memref<2x16x48xf32, #tpu.memory_space<vmem>>, vector<1x16x48xf32>
    %1331 = vector.shape_cast %1330 : vector<1x16x48xf32> to vector<16x48xf32>
    %cst_677 = arith.constant dense<0.000000e+00> : vector<2x48xf32>
    %1332 = tpu.matmul %1329, %1331, %cst_677 {dimension_numbers = #tpu.dot_dimension_numbers<[1], [0], [0], [1], [0, 0, 1, 1], [], []>} : vector<2x16xf32>, vector<16x48xf32>, vector<2x48xf32> -> vector<2x48xf32>
    %c1_678 = arith.constant 1 : index
    %c0_679 = arith.constant 0 : index
    %c0_680 = arith.constant 0 : index
    %1333 = vector.load %arg12[%c1_678, %c0_679, %c0_680] : memref<2x1x48xf32, #tpu.memory_space<vmem>>, vector<1x1x48xf32>
    %1334 = vector.shape_cast %1333 : vector<1x1x48xf32> to vector<1x48xf32>
    %1335 = vector.broadcast %1334 : vector<1x48xf32> to vector<2x48xf32>
    %1336 = arith.addf %1332, %1335 : vector<2x48xf32>
    %1337 = vector.extract_strided_slice %1336 {offsets = [0, 0], sizes = [2, 32], strides = [1, 1]} : vector<2x48xf32> to vector<2x32xf32>
    %1338 = vector.extract_strided_slice %1336 {offsets = [0, 32], sizes = [2, 16], strides = [1, 1]} : vector<2x48xf32> to vector<2x16xf32>
    %c1_681 = arith.constant 1 : index
    %c0_682 = arith.constant 0 : index
    %c0_683 = arith.constant 0 : index
    %1339 = vector.load %arg13[%c1_681, %c0_682, %c0_683] : memref<2x32x32xf32, #tpu.memory_space<vmem>>, vector<1x32x32xf32>
    %1340 = vector.shape_cast %1339 : vector<1x32x32xf32> to vector<32x32xf32>
    %cst_684 = arith.constant dense<0.000000e+00> : vector<2x32xf32>
    %1341 = tpu.matmul %1337, %1340, %cst_684 {dimension_numbers = #tpu.dot_dimension_numbers<[1], [0], [0], [1], [0, 0, 1, 1], [], []>} : vector<2x32xf32>, vector<32x32xf32>, vector<2x32xf32> -> vector<2x32xf32>
    %c1_685 = arith.constant 1 : index
    %c0_686 = arith.constant 0 : index
    %c0_687 = arith.constant 0 : index
    %1342 = vector.load %arg14[%c1_685, %c0_686, %c0_687] : memref<2x1x1xf32, #tpu.memory_space<vmem>>, vector<1x1x1xf32>
    %1343 = vector.shape_cast %1342 : vector<1x1x1xf32> to vector<1x1xf32>
    %1344 = vector.broadcast %1343 : vector<1x1xf32> to vector<2x32xf32>
    %1345 = arith.addf %1341, %1344 : vector<2x32xf32>
    %1346 = arith.negf %1345 : vector<2x32xf32>
    %1347 = math.exp %1346 : vector<2x32xf32>
    %cst_688 = arith.constant 1.000000e+00 : f32
    %1348 = vector.broadcast %cst_688 : f32 to vector<2x32xf32>
    %1349 = arith.addf %1348, %1347 : vector<2x32xf32>
    %1350 = arith.divf %1348, %1349 : vector<2x32xf32>
    %1351 = arith.mulf %1345, %1350 : vector<2x32xf32>
    %c1_689 = arith.constant 1 : index
    %c0_690 = arith.constant 0 : index
    %c0_691 = arith.constant 0 : index
    %1352 = vector.load %arg15[%c1_689, %c0_690, %c0_691] : memref<2x32x52xf32, #tpu.memory_space<vmem>>, vector<1x32x52xf32>
    %1353 = vector.shape_cast %1352 : vector<1x32x52xf32> to vector<32x52xf32>
    %cst_692 = arith.constant dense<0.000000e+00> : vector<2x52xf32>
    %1354 = tpu.matmul %1351, %1353, %cst_692 {dimension_numbers = #tpu.dot_dimension_numbers<[1], [0], [0], [1], [0, 0, 1, 1], [], []>} : vector<2x32xf32>, vector<32x52xf32>, vector<2x52xf32> -> vector<2x52xf32>
    %c1_693 = arith.constant 1 : index
    %c0_694 = arith.constant 0 : index
    %c0_695 = arith.constant 0 : index
    %1355 = vector.load %arg16[%c1_693, %c0_694, %c0_695] : memref<2x1x52xf32, #tpu.memory_space<vmem>>, vector<1x1x52xf32>
    %1356 = vector.shape_cast %1355 : vector<1x1x52xf32> to vector<1x52xf32>
    %1357 = vector.broadcast %1356 : vector<1x52xf32> to vector<2x52xf32>
    %1358 = arith.addf %1354, %1357 : vector<2x52xf32>
    %1359 = vector.extract_strided_slice %1358 {offsets = [0, 0], sizes = [2, 16], strides = [1, 1]} : vector<2x52xf32> to vector<2x16xf32>
    %1360 = vector.extract_strided_slice %1358 {offsets = [0, 16], sizes = [2, 16], strides = [1, 1]} : vector<2x52xf32> to vector<2x16xf32>
    %1361 = vector.extract_strided_slice %1358 {offsets = [0, 32], sizes = [2, 16], strides = [1, 1]} : vector<2x52xf32> to vector<2x16xf32>
    %1362 = vector.extract_strided_slice %1358 {offsets = [0, 48], sizes = [2, 2], strides = [1, 1]} : vector<2x52xf32> to vector<2x2xf32>
    %1363 = vector.extract_strided_slice %1358 {offsets = [0, 50], sizes = [2, 2], strides = [1, 1]} : vector<2x52xf32> to vector<2x2xf32>
    %c1_696 = arith.constant 1 : index
    %c0_697 = arith.constant 0 : index
    %c0_698 = arith.constant 0 : index
    %1364 = vector.load %arg17[%c1_696, %c0_697, %c0_698] : memref<2x32x32xf32, #tpu.memory_space<vmem>>, vector<1x32x32xf32>
    %1365 = vector.shape_cast %1364 : vector<1x32x32xf32> to vector<32x32xf32>
    %cst_699 = arith.constant dense<0.000000e+00> : vector<2x32xf32>
    %1366 = tpu.matmul %1337, %1365, %cst_699 {dimension_numbers = #tpu.dot_dimension_numbers<[1], [0], [0], [1], [0, 0, 1, 1], [], []>} : vector<2x32xf32>, vector<32x32xf32>, vector<2x32xf32> -> vector<2x32xf32>
    %c1_700 = arith.constant 1 : index
    %c0_701 = arith.constant 0 : index
    %c0_702 = arith.constant 0 : index
    %1367 = vector.load %arg18[%c1_700, %c0_701, %c0_702] : memref<2x1x32xf32, #tpu.memory_space<vmem>>, vector<1x1x32xf32>
    %1368 = vector.shape_cast %1367 : vector<1x1x32xf32> to vector<1x32xf32>
    %1369 = vector.broadcast %1368 : vector<1x32xf32> to vector<2x32xf32>
    %1370 = arith.addf %1366, %1369 : vector<2x32xf32>
    %1371 = vector.extract_strided_slice %1370 {offsets = [0, 0], sizes = [2, 16], strides = [1, 1]} : vector<2x32xf32> to vector<2x16xf32>
    %1372 = vector.extract_strided_slice %1370 {offsets = [0, 16], sizes = [2, 16], strides = [1, 1]} : vector<2x32xf32> to vector<2x16xf32>
    %1373 = arith.negf %1372 : vector<2x16xf32>
    %1374 = math.exp %1373 : vector<2x16xf32>
    %cst_703 = arith.constant 1.000000e+00 : f32
    %1375 = vector.broadcast %cst_703 : f32 to vector<2x16xf32>
    %1376 = arith.addf %1375, %1374 : vector<2x16xf32>
    %1377 = arith.divf %1375, %1376 : vector<2x16xf32>
    %c0_704 = arith.constant 0 : index
    %c0_705 = arith.constant 0 : index
    %1378 = vector.load %arg6[%c0_704, %c0_705] : memref<16x128xf32, #tpu.memory_space<vmem>>, vector<16x128xf32>
    %cst_706 = arith.constant dense<0.000000e+00> : vector<2x128xf32>
    %1379 = tpu.matmul %1359, %1378, %cst_706 {dimension_numbers = #tpu.dot_dimension_numbers<[1], [0], [0], [1], [0, 0, 1, 1], [], []>} : vector<2x16xf32>, vector<16x128xf32>, vector<2x128xf32> -> vector<2x128xf32>
    %cst_707 = arith.constant dense<0.000000e+00> : vector<2x128xf32>
    %1380 = tpu.matmul %1360, %1378, %cst_707 {dimension_numbers = #tpu.dot_dimension_numbers<[1], [0], [0], [1], [0, 0, 1, 1], [], []>} : vector<2x16xf32>, vector<16x128xf32>, vector<2x128xf32> -> vector<2x128xf32>
    %c0_708 = arith.constant 0 : index
    %c0_709 = arith.constant 0 : index
    %1381 = vector.load %arg7[%c0_708, %c0_709] : memref<16x128xf32, #tpu.memory_space<vmem>>, vector<16x128xf32>
    %cst_710 = arith.constant dense<0.000000e+00> : vector<2x128xf32>
    %1382 = tpu.matmul %1371, %1381, %cst_710 {dimension_numbers = #tpu.dot_dimension_numbers<[1], [0], [0], [1], [0, 0, 1, 1], [], []>} : vector<2x16xf32>, vector<16x128xf32>, vector<2x128xf32> -> vector<2x128xf32>
    %1383 = arith.mulf %1382, %1380 : vector<2x128xf32>
    %1384 = arith.negf %1338 : vector<2x16xf32>
    %1385 = math.exp %1384 : vector<2x16xf32>
    %cst_711 = arith.constant 1.000000e+00 : f32
    %1386 = vector.broadcast %cst_711 : f32 to vector<2x16xf32>
    %1387 = arith.addf %1386, %1385 : vector<2x16xf32>
    %1388 = arith.divf %1386, %1387 : vector<2x16xf32>
    %1389 = arith.mulf %1338, %1388 : vector<2x16xf32>
    %c0_712 = arith.constant 0 : index
    %c0_713 = arith.constant 0 : index
    %1390 = vector.load %arg5[%c0_712, %c0_713] : memref<2x16xf32, #tpu.memory_space<vmem>>, vector<2x16xf32>
    %c0_714 = arith.constant 0 : index
    %c0_715 = arith.constant 0 : index
    %1391 = vector.load %arg8[%c0_714, %c0_715] : memref<2x144xf32, #tpu.memory_space<vmem>>, vector<2x144xf32>
    %c0_716 = arith.constant 0 : index
    %c0_717 = arith.constant 0 : index
    %1392 = vector.load %arg7[%c0_716, %c0_717] : memref<16x128xf32, #tpu.memory_space<vmem>>, vector<16x128xf32>
    %1393 = arith.addf %1363, %1168 : vector<2x2xf32>
    %1394 = arith.maximumf %1393, %1362 : vector<2x2xf32>
    %1395 = arith.subf %1362, %1394 : vector<2x2xf32>
    %1396 = math.exp %1395 : vector<2x2xf32>
    %1397 = arith.subf %1363, %1394 : vector<2x2xf32>
    %1398 = arith.addf %1397, %1168 : vector<2x2xf32>
    %1399 = math.exp %1398 : vector<2x2xf32>
    %cst_718 = arith.constant dense<0.000000e+00> : vector<2x144xf32>
    %1400 = tpu.matmul %1399, %1391, %cst_718 {dimension_numbers = #tpu.dot_dimension_numbers<[1], [0], [0], [1], [0, 0, 1, 1], [], []>} : vector<2x2xf32>, vector<2x144xf32>, vector<2x144xf32> -> vector<2x144xf32>
    %cst_719 = arith.constant dense<0.000000e+00> : vector<2x144xf32>
    %1401 = tpu.matmul %1396, %1391, %cst_719 {dimension_numbers = #tpu.dot_dimension_numbers<[1], [0], [0], [1], [0, 0, 1, 1], [], []>} : vector<2x2xf32>, vector<2x144xf32>, vector<2x144xf32> -> vector<2x144xf32>
    %1402 = vector.extract_strided_slice %1400 {offsets = [0, 0], sizes = [2, 128], strides = [1, 1]} : vector<2x144xf32> to vector<2x128xf32>
    %1403 = vector.extract_strided_slice %1400 {offsets = [0, 128], sizes = [2, 16], strides = [1, 1]} : vector<2x144xf32> to vector<2x16xf32>
    %1404 = vector.extract_strided_slice %1401 {offsets = [0, 0], sizes = [2, 128], strides = [1, 1]} : vector<2x144xf32> to vector<2x128xf32>
    %1405 = vector.extract_strided_slice %1401 {offsets = [0, 128], sizes = [2, 16], strides = [1, 1]} : vector<2x144xf32> to vector<2x16xf32>
    %1406 = arith.mulf %1402, %1182 : vector<2x128xf32>
    %1407 = arith.mulf %1404, %1383 : vector<2x128xf32>
    %1408 = arith.addf %1406, %1407 : vector<2x128xf32>
    %1409 = arith.mulf %1403, %1185 : vector<2x16xf32>
    %1410 = arith.mulf %1405, %1360 : vector<2x16xf32>
    %1411 = arith.addf %1409, %1410 : vector<2x16xf32>
    %1412 = arith.mulf %1408, %1379 : vector<2x128xf32>
    %cst_720 = arith.constant dense<0.000000e+00> : vector<2x16xf32>
    %1413 = tpu.matmul %1412, %1392, %cst_720 {dimension_numbers = #tpu.dot_dimension_numbers<[1], [1], [0], [0], [0, 0, 1, 0], [], []>} : vector<2x128xf32>, vector<16x128xf32>, vector<2x16xf32> -> vector<2x16xf32>
    %1414 = arith.mulf %1411, %1359 : vector<2x16xf32>
    %cst_721 = arith.constant dense<0.000000e+00> : vector<2x2xf32>
    %1415 = tpu.matmul %1414, %1390, %cst_721 {dimension_numbers = #tpu.dot_dimension_numbers<[1], [1], [0], [0], [0, 0, 1, 0], [], []>} : vector<2x16xf32>, vector<2x16xf32>, vector<2x2xf32> -> vector<2x2xf32>
    %1416 = math.absf %1415 : vector<2x2xf32>
    %cst_722 = arith.constant 1.000000e+00 : f32
    %1417 = vector.broadcast %cst_722 : f32 to vector<2x2xf32>
    %1418 = arith.maximumf %1416, %1417 : vector<2x2xf32>
    %1419 = tpu.reciprocal %1418 : vector<2x2xf32> -> vector<2x2xf32>
    %cst_723 = arith.constant dense<0.000000e+00> : vector<2x16xf32>
    %1420 = tpu.matmul %1419, %1390, %cst_723 {dimension_numbers = #tpu.dot_dimension_numbers<[1], [0], [0], [1], [0, 0, 1, 1], [], []>} : vector<2x2xf32>, vector<2x16xf32>, vector<2x16xf32> -> vector<2x16xf32>
    %1421 = arith.mulf %1377, %1413 : vector<2x16xf32>
    %1422 = arith.mulf %1421, %1420 : vector<2x16xf32>
    %cst_724 = arith.constant dense<0.000000e+00> : vector<2x2xf32>
    %1423 = tpu.matmul %1422, %1390, %cst_724 {dimension_numbers = #tpu.dot_dimension_numbers<[1], [1], [0], [0], [0, 0, 1, 0], [], []>} : vector<2x16xf32>, vector<2x16xf32>, vector<2x2xf32> -> vector<2x2xf32>
    %cst_725 = arith.constant 1.250000e-01 : f32
    %1424 = vector.broadcast %cst_725 : f32 to vector<2x2xf32>
    %1425 = arith.mulf %1423, %1424 : vector<2x2xf32>
    %cst_726 = arith.constant dense<0.000000e+00> : vector<2x16xf32>
    %1426 = tpu.matmul %1425, %1390, %cst_726 {dimension_numbers = #tpu.dot_dimension_numbers<[1], [0], [0], [1], [0, 0, 1, 1], [], []>} : vector<2x2xf32>, vector<2x16xf32>, vector<2x16xf32> -> vector<2x16xf32>
    %1427 = arith.subf %1422, %1426 : vector<2x16xf32>
    %1428 = arith.mulf %1427, %1427 : vector<2x16xf32>
    %cst_727 = arith.constant dense<0.000000e+00> : vector<2x2xf32>
    %1429 = tpu.matmul %1428, %1390, %cst_727 {dimension_numbers = #tpu.dot_dimension_numbers<[1], [1], [0], [0], [0, 0, 1, 0], [], []>} : vector<2x16xf32>, vector<2x16xf32>, vector<2x2xf32> -> vector<2x2xf32>
    %cst_728 = arith.constant 1.250000e-01 : f32
    %1430 = vector.broadcast %cst_728 : f32 to vector<2x2xf32>
    %1431 = arith.mulf %1429, %1430 : vector<2x2xf32>
    %cst_729 = arith.constant dense<0.000000e+00> : vector<2x16xf32>
    %1432 = tpu.matmul %1431, %1390, %cst_729 {dimension_numbers = #tpu.dot_dimension_numbers<[1], [0], [0], [1], [0, 0, 1, 1], [], []>} : vector<2x2xf32>, vector<2x16xf32>, vector<2x16xf32> -> vector<2x16xf32>
    %cst_730 = arith.constant 9.99999974E-6 : f32
    %1433 = vector.broadcast %cst_730 : f32 to vector<2x16xf32>
    %1434 = arith.addf %1432, %1433 : vector<2x16xf32>
    %1435 = math.rsqrt %1434 : vector<2x16xf32>
    %1436 = arith.mulf %1427, %1435 : vector<2x16xf32>
    %c1_731 = arith.constant 1 : index
    %c0_732 = arith.constant 0 : index
    %c0_733 = arith.constant 0 : index
    %1437 = vector.load %arg19[%c1_731, %c0_732, %c0_733] : memref<2x1x16xf32, #tpu.memory_space<vmem>>, vector<1x1x16xf32>
    %1438 = vector.shape_cast %1437 : vector<1x1x16xf32> to vector<1x16xf32>
    %1439 = vector.broadcast %1438 : vector<1x16xf32> to vector<2x16xf32>
    %1440 = arith.mulf %1436, %1439 : vector<2x16xf32>
    %c1_734 = arith.constant 1 : index
    %c0_735 = arith.constant 0 : index
    %c0_736 = arith.constant 0 : index
    %1441 = vector.load %arg20[%c1_734, %c0_735, %c0_736] : memref<2x1x16xf32, #tpu.memory_space<vmem>>, vector<1x1x16xf32>
    %1442 = vector.shape_cast %1441 : vector<1x1x16xf32> to vector<1x16xf32>
    %1443 = vector.broadcast %1442 : vector<1x16xf32> to vector<2x16xf32>
    %1444 = arith.addf %1440, %1443 : vector<2x16xf32>
    %1445 = arith.addf %1444, %1361 : vector<2x16xf32>
    %1446 = arith.mulf %1445, %1389 : vector<2x16xf32>
    %c1_737 = arith.constant 1 : index
    %c0_738 = arith.constant 0 : index
    %c0_739 = arith.constant 0 : index
    %1447 = vector.load %arg21[%c1_737, %c0_738, %c0_739] : memref<2x16x16xf32, #tpu.memory_space<vmem>>, vector<1x16x16xf32>
    %1448 = vector.shape_cast %1447 : vector<1x16x16xf32> to vector<16x16xf32>
    %cst_740 = arith.constant dense<0.000000e+00> : vector<2x16xf32>
    %1449 = tpu.matmul %1446, %1448, %cst_740 {dimension_numbers = #tpu.dot_dimension_numbers<[1], [0], [0], [1], [0, 0, 1, 1], [], []>} : vector<2x16xf32>, vector<16x16xf32>, vector<2x16xf32> -> vector<2x16xf32>
    %c1_741 = arith.constant 1 : index
    %c0_742 = arith.constant 0 : index
    %c0_743 = arith.constant 0 : index
    %1450 = vector.load %arg22[%c1_741, %c0_742, %c0_743] : memref<2x1x16xf32, #tpu.memory_space<vmem>>, vector<1x1x16xf32>
    %1451 = vector.shape_cast %1450 : vector<1x1x16xf32> to vector<1x16xf32>
    %1452 = vector.broadcast %1451 : vector<1x16xf32> to vector<2x16xf32>
    %1453 = arith.addf %1449, %1452 : vector<2x16xf32>
    %1454 = arith.addf %1453, %1303 : vector<2x16xf32>
    %1455 = vector.extract_strided_slice %0 {offsets = [12, 0], sizes = [2, 16], strides = [1, 1]} : vector<16x16xf32> to vector<2x16xf32>
    %1456 = vector.extract_strided_slice %56 {offsets = [12, 0], sizes = [2, 16], strides = [1, 1]} : vector<16x16xf32> to vector<2x16xf32>
    %1457 = vector.extract_strided_slice %57 {offsets = [12, 0], sizes = [2, 16], strides = [1, 1]} : vector<16x16xf32> to vector<2x16xf32>
    %1458 = vector.extract_strided_slice %58 {offsets = [12, 0], sizes = [2, 16], strides = [1, 1]} : vector<16x16xf32> to vector<2x16xf32>
    %1459 = vector.extract_strided_slice %59 {offsets = [12, 0], sizes = [2, 2], strides = [1, 1]} : vector<16x2xf32> to vector<2x2xf32>
    %1460 = vector.extract_strided_slice %60 {offsets = [12, 0], sizes = [2, 2], strides = [1, 1]} : vector<16x2xf32> to vector<2x2xf32>
    %1461 = vector.extract_strided_slice %74 {offsets = [12, 0], sizes = [2, 16], strides = [1, 1]} : vector<16x16xf32> to vector<2x16xf32>
    %1462 = vector.extract_strided_slice %76 {offsets = [12, 0], sizes = [2, 128], strides = [1, 1]} : vector<16x128xf32> to vector<2x128xf32>
    %1463 = vector.extract_strided_slice %80 {offsets = [12, 0], sizes = [2, 128], strides = [1, 1]} : vector<16x128xf32> to vector<2x128xf32>
    %1464 = vector.extract_strided_slice %86 {offsets = [12, 0], sizes = [2, 16], strides = [1, 1]} : vector<16x16xf32> to vector<2x16xf32>
    %c0_744 = arith.constant 0 : index
    %c0_745 = arith.constant 0 : index
    %1465 = vector.load %arg5[%c0_744, %c0_745] : memref<2x16xf32, #tpu.memory_space<vmem>>, vector<2x16xf32>
    %c0_746 = arith.constant 0 : index
    %c0_747 = arith.constant 0 : index
    %1466 = vector.load %arg8[%c0_746, %c0_747] : memref<2x144xf32, #tpu.memory_space<vmem>>, vector<2x144xf32>
    %c0_748 = arith.constant 0 : index
    %c0_749 = arith.constant 0 : index
    %1467 = vector.load %arg7[%c0_748, %c0_749] : memref<16x128xf32, #tpu.memory_space<vmem>>, vector<16x128xf32>
    %1468 = arith.addf %1460, %1243 : vector<2x2xf32>
    %1469 = arith.maximumf %1468, %1459 : vector<2x2xf32>
    %1470 = arith.subf %1459, %1469 : vector<2x2xf32>
    %1471 = math.exp %1470 : vector<2x2xf32>
    %1472 = arith.subf %1460, %1469 : vector<2x2xf32>
    %1473 = arith.addf %1472, %1243 : vector<2x2xf32>
    %1474 = math.exp %1473 : vector<2x2xf32>
    %cst_750 = arith.constant dense<0.000000e+00> : vector<2x144xf32>
    %1475 = tpu.matmul %1474, %1466, %cst_750 {dimension_numbers = #tpu.dot_dimension_numbers<[1], [0], [0], [1], [0, 0, 1, 1], [], []>} : vector<2x2xf32>, vector<2x144xf32>, vector<2x144xf32> -> vector<2x144xf32>
    %cst_751 = arith.constant dense<0.000000e+00> : vector<2x144xf32>
    %1476 = tpu.matmul %1471, %1466, %cst_751 {dimension_numbers = #tpu.dot_dimension_numbers<[1], [0], [0], [1], [0, 0, 1, 1], [], []>} : vector<2x2xf32>, vector<2x144xf32>, vector<2x144xf32> -> vector<2x144xf32>
    %1477 = vector.extract_strided_slice %1475 {offsets = [0, 0], sizes = [2, 128], strides = [1, 1]} : vector<2x144xf32> to vector<2x128xf32>
    %1478 = vector.extract_strided_slice %1475 {offsets = [0, 128], sizes = [2, 16], strides = [1, 1]} : vector<2x144xf32> to vector<2x16xf32>
    %1479 = vector.extract_strided_slice %1476 {offsets = [0, 0], sizes = [2, 128], strides = [1, 1]} : vector<2x144xf32> to vector<2x128xf32>
    %1480 = vector.extract_strided_slice %1476 {offsets = [0, 128], sizes = [2, 16], strides = [1, 1]} : vector<2x144xf32> to vector<2x16xf32>
    %1481 = arith.mulf %1477, %1257 : vector<2x128xf32>
    %1482 = arith.mulf %1479, %1463 : vector<2x128xf32>
    %1483 = arith.addf %1481, %1482 : vector<2x128xf32>
    %1484 = arith.mulf %1478, %1260 : vector<2x16xf32>
    %1485 = arith.mulf %1480, %1457 : vector<2x16xf32>
    %1486 = arith.addf %1484, %1485 : vector<2x16xf32>
    %1487 = arith.mulf %1483, %1462 : vector<2x128xf32>
    %cst_752 = arith.constant dense<0.000000e+00> : vector<2x16xf32>
    %1488 = tpu.matmul %1487, %1467, %cst_752 {dimension_numbers = #tpu.dot_dimension_numbers<[1], [1], [0], [0], [0, 0, 1, 0], [], []>} : vector<2x128xf32>, vector<16x128xf32>, vector<2x16xf32> -> vector<2x16xf32>
    %1489 = arith.mulf %1486, %1456 : vector<2x16xf32>
    %cst_753 = arith.constant dense<0.000000e+00> : vector<2x2xf32>
    %1490 = tpu.matmul %1489, %1465, %cst_753 {dimension_numbers = #tpu.dot_dimension_numbers<[1], [1], [0], [0], [0, 0, 1, 0], [], []>} : vector<2x16xf32>, vector<2x16xf32>, vector<2x2xf32> -> vector<2x2xf32>
    %1491 = math.absf %1490 : vector<2x2xf32>
    %cst_754 = arith.constant 1.000000e+00 : f32
    %1492 = vector.broadcast %cst_754 : f32 to vector<2x2xf32>
    %1493 = arith.maximumf %1491, %1492 : vector<2x2xf32>
    %1494 = tpu.reciprocal %1493 : vector<2x2xf32> -> vector<2x2xf32>
    %cst_755 = arith.constant dense<0.000000e+00> : vector<2x16xf32>
    %1495 = tpu.matmul %1494, %1465, %cst_755 {dimension_numbers = #tpu.dot_dimension_numbers<[1], [0], [0], [1], [0, 0, 1, 1], [], []>} : vector<2x2xf32>, vector<2x16xf32>, vector<2x16xf32> -> vector<2x16xf32>
    %1496 = arith.mulf %1461, %1488 : vector<2x16xf32>
    %1497 = arith.mulf %1496, %1495 : vector<2x16xf32>
    %cst_756 = arith.constant dense<0.000000e+00> : vector<2x2xf32>
    %1498 = tpu.matmul %1497, %1465, %cst_756 {dimension_numbers = #tpu.dot_dimension_numbers<[1], [1], [0], [0], [0, 0, 1, 0], [], []>} : vector<2x16xf32>, vector<2x16xf32>, vector<2x2xf32> -> vector<2x2xf32>
    %cst_757 = arith.constant 1.250000e-01 : f32
    %1499 = vector.broadcast %cst_757 : f32 to vector<2x2xf32>
    %1500 = arith.mulf %1498, %1499 : vector<2x2xf32>
    %cst_758 = arith.constant dense<0.000000e+00> : vector<2x16xf32>
    %1501 = tpu.matmul %1500, %1465, %cst_758 {dimension_numbers = #tpu.dot_dimension_numbers<[1], [0], [0], [1], [0, 0, 1, 1], [], []>} : vector<2x2xf32>, vector<2x16xf32>, vector<2x16xf32> -> vector<2x16xf32>
    %1502 = arith.subf %1497, %1501 : vector<2x16xf32>
    %1503 = arith.mulf %1502, %1502 : vector<2x16xf32>
    %cst_759 = arith.constant dense<0.000000e+00> : vector<2x2xf32>
    %1504 = tpu.matmul %1503, %1465, %cst_759 {dimension_numbers = #tpu.dot_dimension_numbers<[1], [1], [0], [0], [0, 0, 1, 0], [], []>} : vector<2x16xf32>, vector<2x16xf32>, vector<2x2xf32> -> vector<2x2xf32>
    %cst_760 = arith.constant 1.250000e-01 : f32
    %1505 = vector.broadcast %cst_760 : f32 to vector<2x2xf32>
    %1506 = arith.mulf %1504, %1505 : vector<2x2xf32>
    %cst_761 = arith.constant dense<0.000000e+00> : vector<2x16xf32>
    %1507 = tpu.matmul %1506, %1465, %cst_761 {dimension_numbers = #tpu.dot_dimension_numbers<[1], [0], [0], [1], [0, 0, 1, 1], [], []>} : vector<2x2xf32>, vector<2x16xf32>, vector<2x16xf32> -> vector<2x16xf32>
    %cst_762 = arith.constant 9.99999974E-6 : f32
    %1508 = vector.broadcast %cst_762 : f32 to vector<2x16xf32>
    %1509 = arith.addf %1507, %1508 : vector<2x16xf32>
    %1510 = math.rsqrt %1509 : vector<2x16xf32>
    %1511 = arith.mulf %1502, %1510 : vector<2x16xf32>
    %c0_763 = arith.constant 0 : index
    %c0_764 = arith.constant 0 : index
    %c0_765 = arith.constant 0 : index
    %1512 = vector.load %arg19[%c0_763, %c0_764, %c0_765] : memref<2x1x16xf32, #tpu.memory_space<vmem>>, vector<1x1x16xf32>
    %1513 = vector.shape_cast %1512 : vector<1x1x16xf32> to vector<1x16xf32>
    %1514 = vector.broadcast %1513 : vector<1x16xf32> to vector<2x16xf32>
    %1515 = arith.mulf %1511, %1514 : vector<2x16xf32>
    %c0_766 = arith.constant 0 : index
    %c0_767 = arith.constant 0 : index
    %c0_768 = arith.constant 0 : index
    %1516 = vector.load %arg20[%c0_766, %c0_767, %c0_768] : memref<2x1x16xf32, #tpu.memory_space<vmem>>, vector<1x1x16xf32>
    %1517 = vector.shape_cast %1516 : vector<1x1x16xf32> to vector<1x16xf32>
    %1518 = vector.broadcast %1517 : vector<1x16xf32> to vector<2x16xf32>
    %1519 = arith.addf %1515, %1518 : vector<2x16xf32>
    %1520 = arith.addf %1519, %1458 : vector<2x16xf32>
    %1521 = arith.mulf %1520, %1464 : vector<2x16xf32>
    %c0_769 = arith.constant 0 : index
    %c0_770 = arith.constant 0 : index
    %c0_771 = arith.constant 0 : index
    %1522 = vector.load %arg21[%c0_769, %c0_770, %c0_771] : memref<2x16x16xf32, #tpu.memory_space<vmem>>, vector<1x16x16xf32>
    %1523 = vector.shape_cast %1522 : vector<1x16x16xf32> to vector<16x16xf32>
    %cst_772 = arith.constant dense<0.000000e+00> : vector<2x16xf32>
    %1524 = tpu.matmul %1521, %1523, %cst_772 {dimension_numbers = #tpu.dot_dimension_numbers<[1], [0], [0], [1], [0, 0, 1, 1], [], []>} : vector<2x16xf32>, vector<16x16xf32>, vector<2x16xf32> -> vector<2x16xf32>
    %c0_773 = arith.constant 0 : index
    %c0_774 = arith.constant 0 : index
    %c0_775 = arith.constant 0 : index
    %1525 = vector.load %arg22[%c0_773, %c0_774, %c0_775] : memref<2x1x16xf32, #tpu.memory_space<vmem>>, vector<1x1x16xf32>
    %1526 = vector.shape_cast %1525 : vector<1x1x16xf32> to vector<1x16xf32>
    %1527 = vector.broadcast %1526 : vector<1x16xf32> to vector<2x16xf32>
    %1528 = arith.addf %1524, %1527 : vector<2x16xf32>
    %1529 = arith.addf %1528, %1455 : vector<2x16xf32>
    %c1_776 = arith.constant 1 : index
    %c0_777 = arith.constant 0 : index
    %c0_778 = arith.constant 0 : index
    %1530 = vector.load %arg9[%c1_776, %c0_777, %c0_778] : memref<2x1x16xf32, #tpu.memory_space<vmem>>, vector<1x1x16xf32>
    %1531 = vector.shape_cast %1530 : vector<1x1x16xf32> to vector<1x16xf32>
    %c1_779 = arith.constant 1 : index
    %c0_780 = arith.constant 0 : index
    %c0_781 = arith.constant 0 : index
    %1532 = vector.load %arg10[%c1_779, %c0_780, %c0_781] : memref<2x1x16xf32, #tpu.memory_space<vmem>>, vector<1x1x16xf32>
    %1533 = vector.shape_cast %1532 : vector<1x1x16xf32> to vector<1x16xf32>
    %cst_782 = arith.constant dense<0.000000e+00> : vector<2xf32>
    %1534 = vector.multi_reduction <add>, %1529, %cst_782 [1] : vector<2x16xf32> to vector<2xf32>
    %1535 = vector.shape_cast %1534 : vector<2xf32> to vector<2x1xf32>
    %cst_783 = arith.constant 1.600000e+01 : f32
    %1536 = vector.broadcast %cst_783 : f32 to vector<2x1xf32>
    %1537 = arith.divf %1535, %1536 : vector<2x1xf32>
    %1538 = vector.broadcast %1537 : vector<2x1xf32> to vector<2x16xf32>
    %1539 = arith.subf %1529, %1538 : vector<2x16xf32>
    %1540 = arith.mulf %1539, %1539 : vector<2x16xf32>
    %cst_784 = arith.constant dense<0.000000e+00> : vector<2xf32>
    %1541 = vector.multi_reduction <add>, %1540, %cst_784 [1] : vector<2x16xf32> to vector<2xf32>
    %1542 = vector.shape_cast %1541 : vector<2xf32> to vector<2x1xf32>
    %cst_785 = arith.constant 1.600000e+01 : f32
    %1543 = vector.broadcast %cst_785 : f32 to vector<2x1xf32>
    %1544 = arith.divf %1542, %1543 : vector<2x1xf32>
    %1545 = vector.broadcast %1537 : vector<2x1xf32> to vector<2x16xf32>
    %1546 = arith.subf %1529, %1545 : vector<2x16xf32>
    %cst_786 = arith.constant 9.99999974E-6 : f32
    %1547 = vector.broadcast %cst_786 : f32 to vector<2x1xf32>
    %1548 = arith.addf %1544, %1547 : vector<2x1xf32>
    %1549 = math.rsqrt %1548 : vector<2x1xf32>
    %1550 = vector.broadcast %1549 : vector<2x1xf32> to vector<2x16xf32>
    %1551 = arith.mulf %1546, %1550 : vector<2x16xf32>
    %1552 = vector.broadcast %1531 : vector<1x16xf32> to vector<2x16xf32>
    %1553 = arith.mulf %1551, %1552 : vector<2x16xf32>
    %1554 = vector.broadcast %1533 : vector<1x16xf32> to vector<2x16xf32>
    %1555 = arith.addf %1553, %1554 : vector<2x16xf32>
    %c1_787 = arith.constant 1 : index
    %c0_788 = arith.constant 0 : index
    %c0_789 = arith.constant 0 : index
    %1556 = vector.load %arg11[%c1_787, %c0_788, %c0_789] : memref<2x16x48xf32, #tpu.memory_space<vmem>>, vector<1x16x48xf32>
    %1557 = vector.shape_cast %1556 : vector<1x16x48xf32> to vector<16x48xf32>
    %cst_790 = arith.constant dense<0.000000e+00> : vector<2x48xf32>
    %1558 = tpu.matmul %1555, %1557, %cst_790 {dimension_numbers = #tpu.dot_dimension_numbers<[1], [0], [0], [1], [0, 0, 1, 1], [], []>} : vector<2x16xf32>, vector<16x48xf32>, vector<2x48xf32> -> vector<2x48xf32>
    %c1_791 = arith.constant 1 : index
    %c0_792 = arith.constant 0 : index
    %c0_793 = arith.constant 0 : index
    %1559 = vector.load %arg12[%c1_791, %c0_792, %c0_793] : memref<2x1x48xf32, #tpu.memory_space<vmem>>, vector<1x1x48xf32>
    %1560 = vector.shape_cast %1559 : vector<1x1x48xf32> to vector<1x48xf32>
    %1561 = vector.broadcast %1560 : vector<1x48xf32> to vector<2x48xf32>
    %1562 = arith.addf %1558, %1561 : vector<2x48xf32>
    %1563 = vector.extract_strided_slice %1562 {offsets = [0, 0], sizes = [2, 32], strides = [1, 1]} : vector<2x48xf32> to vector<2x32xf32>
    %1564 = vector.extract_strided_slice %1562 {offsets = [0, 32], sizes = [2, 16], strides = [1, 1]} : vector<2x48xf32> to vector<2x16xf32>
    %c1_794 = arith.constant 1 : index
    %c0_795 = arith.constant 0 : index
    %c0_796 = arith.constant 0 : index
    %1565 = vector.load %arg13[%c1_794, %c0_795, %c0_796] : memref<2x32x32xf32, #tpu.memory_space<vmem>>, vector<1x32x32xf32>
    %1566 = vector.shape_cast %1565 : vector<1x32x32xf32> to vector<32x32xf32>
    %cst_797 = arith.constant dense<0.000000e+00> : vector<2x32xf32>
    %1567 = tpu.matmul %1563, %1566, %cst_797 {dimension_numbers = #tpu.dot_dimension_numbers<[1], [0], [0], [1], [0, 0, 1, 1], [], []>} : vector<2x32xf32>, vector<32x32xf32>, vector<2x32xf32> -> vector<2x32xf32>
    %c1_798 = arith.constant 1 : index
    %c0_799 = arith.constant 0 : index
    %c0_800 = arith.constant 0 : index
    %1568 = vector.load %arg14[%c1_798, %c0_799, %c0_800] : memref<2x1x1xf32, #tpu.memory_space<vmem>>, vector<1x1x1xf32>
    %1569 = vector.shape_cast %1568 : vector<1x1x1xf32> to vector<1x1xf32>
    %1570 = vector.broadcast %1569 : vector<1x1xf32> to vector<2x32xf32>
    %1571 = arith.addf %1567, %1570 : vector<2x32xf32>
    %1572 = arith.negf %1571 : vector<2x32xf32>
    %1573 = math.exp %1572 : vector<2x32xf32>
    %cst_801 = arith.constant 1.000000e+00 : f32
    %1574 = vector.broadcast %cst_801 : f32 to vector<2x32xf32>
    %1575 = arith.addf %1574, %1573 : vector<2x32xf32>
    %1576 = arith.divf %1574, %1575 : vector<2x32xf32>
    %1577 = arith.mulf %1571, %1576 : vector<2x32xf32>
    %c1_802 = arith.constant 1 : index
    %c0_803 = arith.constant 0 : index
    %c0_804 = arith.constant 0 : index
    %1578 = vector.load %arg15[%c1_802, %c0_803, %c0_804] : memref<2x32x52xf32, #tpu.memory_space<vmem>>, vector<1x32x52xf32>
    %1579 = vector.shape_cast %1578 : vector<1x32x52xf32> to vector<32x52xf32>
    %cst_805 = arith.constant dense<0.000000e+00> : vector<2x52xf32>
    %1580 = tpu.matmul %1577, %1579, %cst_805 {dimension_numbers = #tpu.dot_dimension_numbers<[1], [0], [0], [1], [0, 0, 1, 1], [], []>} : vector<2x32xf32>, vector<32x52xf32>, vector<2x52xf32> -> vector<2x52xf32>
    %c1_806 = arith.constant 1 : index
    %c0_807 = arith.constant 0 : index
    %c0_808 = arith.constant 0 : index
    %1581 = vector.load %arg16[%c1_806, %c0_807, %c0_808] : memref<2x1x52xf32, #tpu.memory_space<vmem>>, vector<1x1x52xf32>
    %1582 = vector.shape_cast %1581 : vector<1x1x52xf32> to vector<1x52xf32>
    %1583 = vector.broadcast %1582 : vector<1x52xf32> to vector<2x52xf32>
    %1584 = arith.addf %1580, %1583 : vector<2x52xf32>
    %1585 = vector.extract_strided_slice %1584 {offsets = [0, 0], sizes = [2, 16], strides = [1, 1]} : vector<2x52xf32> to vector<2x16xf32>
    %1586 = vector.extract_strided_slice %1584 {offsets = [0, 16], sizes = [2, 16], strides = [1, 1]} : vector<2x52xf32> to vector<2x16xf32>
    %1587 = vector.extract_strided_slice %1584 {offsets = [0, 32], sizes = [2, 16], strides = [1, 1]} : vector<2x52xf32> to vector<2x16xf32>
    %1588 = vector.extract_strided_slice %1584 {offsets = [0, 48], sizes = [2, 2], strides = [1, 1]} : vector<2x52xf32> to vector<2x2xf32>
    %1589 = vector.extract_strided_slice %1584 {offsets = [0, 50], sizes = [2, 2], strides = [1, 1]} : vector<2x52xf32> to vector<2x2xf32>
    %c1_809 = arith.constant 1 : index
    %c0_810 = arith.constant 0 : index
    %c0_811 = arith.constant 0 : index
    %1590 = vector.load %arg17[%c1_809, %c0_810, %c0_811] : memref<2x32x32xf32, #tpu.memory_space<vmem>>, vector<1x32x32xf32>
    %1591 = vector.shape_cast %1590 : vector<1x32x32xf32> to vector<32x32xf32>
    %cst_812 = arith.constant dense<0.000000e+00> : vector<2x32xf32>
    %1592 = tpu.matmul %1563, %1591, %cst_812 {dimension_numbers = #tpu.dot_dimension_numbers<[1], [0], [0], [1], [0, 0, 1, 1], [], []>} : vector<2x32xf32>, vector<32x32xf32>, vector<2x32xf32> -> vector<2x32xf32>
    %c1_813 = arith.constant 1 : index
    %c0_814 = arith.constant 0 : index
    %c0_815 = arith.constant 0 : index
    %1593 = vector.load %arg18[%c1_813, %c0_814, %c0_815] : memref<2x1x32xf32, #tpu.memory_space<vmem>>, vector<1x1x32xf32>
    %1594 = vector.shape_cast %1593 : vector<1x1x32xf32> to vector<1x32xf32>
    %1595 = vector.broadcast %1594 : vector<1x32xf32> to vector<2x32xf32>
    %1596 = arith.addf %1592, %1595 : vector<2x32xf32>
    %1597 = vector.extract_strided_slice %1596 {offsets = [0, 0], sizes = [2, 16], strides = [1, 1]} : vector<2x32xf32> to vector<2x16xf32>
    %1598 = vector.extract_strided_slice %1596 {offsets = [0, 16], sizes = [2, 16], strides = [1, 1]} : vector<2x32xf32> to vector<2x16xf32>
    %1599 = arith.negf %1598 : vector<2x16xf32>
    %1600 = math.exp %1599 : vector<2x16xf32>
    %cst_816 = arith.constant 1.000000e+00 : f32
    %1601 = vector.broadcast %cst_816 : f32 to vector<2x16xf32>
    %1602 = arith.addf %1601, %1600 : vector<2x16xf32>
    %1603 = arith.divf %1601, %1602 : vector<2x16xf32>
    %c0_817 = arith.constant 0 : index
    %c0_818 = arith.constant 0 : index
    %1604 = vector.load %arg6[%c0_817, %c0_818] : memref<16x128xf32, #tpu.memory_space<vmem>>, vector<16x128xf32>
    %cst_819 = arith.constant dense<0.000000e+00> : vector<2x128xf32>
    %1605 = tpu.matmul %1585, %1604, %cst_819 {dimension_numbers = #tpu.dot_dimension_numbers<[1], [0], [0], [1], [0, 0, 1, 1], [], []>} : vector<2x16xf32>, vector<16x128xf32>, vector<2x128xf32> -> vector<2x128xf32>
    %cst_820 = arith.constant dense<0.000000e+00> : vector<2x128xf32>
    %1606 = tpu.matmul %1586, %1604, %cst_820 {dimension_numbers = #tpu.dot_dimension_numbers<[1], [0], [0], [1], [0, 0, 1, 1], [], []>} : vector<2x16xf32>, vector<16x128xf32>, vector<2x128xf32> -> vector<2x128xf32>
    %c0_821 = arith.constant 0 : index
    %c0_822 = arith.constant 0 : index
    %1607 = vector.load %arg7[%c0_821, %c0_822] : memref<16x128xf32, #tpu.memory_space<vmem>>, vector<16x128xf32>
    %cst_823 = arith.constant dense<0.000000e+00> : vector<2x128xf32>
    %1608 = tpu.matmul %1597, %1607, %cst_823 {dimension_numbers = #tpu.dot_dimension_numbers<[1], [0], [0], [1], [0, 0, 1, 1], [], []>} : vector<2x16xf32>, vector<16x128xf32>, vector<2x128xf32> -> vector<2x128xf32>
    %1609 = arith.mulf %1608, %1606 : vector<2x128xf32>
    %1610 = arith.negf %1564 : vector<2x16xf32>
    %1611 = math.exp %1610 : vector<2x16xf32>
    %cst_824 = arith.constant 1.000000e+00 : f32
    %1612 = vector.broadcast %cst_824 : f32 to vector<2x16xf32>
    %1613 = arith.addf %1612, %1611 : vector<2x16xf32>
    %1614 = arith.divf %1612, %1613 : vector<2x16xf32>
    %1615 = arith.mulf %1564, %1614 : vector<2x16xf32>
    %c0_825 = arith.constant 0 : index
    %c0_826 = arith.constant 0 : index
    %1616 = vector.load %arg5[%c0_825, %c0_826] : memref<2x16xf32, #tpu.memory_space<vmem>>, vector<2x16xf32>
    %c0_827 = arith.constant 0 : index
    %c0_828 = arith.constant 0 : index
    %1617 = vector.load %arg8[%c0_827, %c0_828] : memref<2x144xf32, #tpu.memory_space<vmem>>, vector<2x144xf32>
    %c0_829 = arith.constant 0 : index
    %c0_830 = arith.constant 0 : index
    %1618 = vector.load %arg7[%c0_829, %c0_830] : memref<16x128xf32, #tpu.memory_space<vmem>>, vector<16x128xf32>
    %1619 = arith.addf %1589, %1394 : vector<2x2xf32>
    %1620 = arith.maximumf %1619, %1588 : vector<2x2xf32>
    %1621 = arith.subf %1588, %1620 : vector<2x2xf32>
    %1622 = math.exp %1621 : vector<2x2xf32>
    %1623 = arith.subf %1589, %1620 : vector<2x2xf32>
    %1624 = arith.addf %1623, %1394 : vector<2x2xf32>
    %1625 = math.exp %1624 : vector<2x2xf32>
    %cst_831 = arith.constant dense<0.000000e+00> : vector<2x144xf32>
    %1626 = tpu.matmul %1625, %1617, %cst_831 {dimension_numbers = #tpu.dot_dimension_numbers<[1], [0], [0], [1], [0, 0, 1, 1], [], []>} : vector<2x2xf32>, vector<2x144xf32>, vector<2x144xf32> -> vector<2x144xf32>
    %cst_832 = arith.constant dense<0.000000e+00> : vector<2x144xf32>
    %1627 = tpu.matmul %1622, %1617, %cst_832 {dimension_numbers = #tpu.dot_dimension_numbers<[1], [0], [0], [1], [0, 0, 1, 1], [], []>} : vector<2x2xf32>, vector<2x144xf32>, vector<2x144xf32> -> vector<2x144xf32>
    %1628 = vector.extract_strided_slice %1626 {offsets = [0, 0], sizes = [2, 128], strides = [1, 1]} : vector<2x144xf32> to vector<2x128xf32>
    %1629 = vector.extract_strided_slice %1626 {offsets = [0, 128], sizes = [2, 16], strides = [1, 1]} : vector<2x144xf32> to vector<2x16xf32>
    %1630 = vector.extract_strided_slice %1627 {offsets = [0, 0], sizes = [2, 128], strides = [1, 1]} : vector<2x144xf32> to vector<2x128xf32>
    %1631 = vector.extract_strided_slice %1627 {offsets = [0, 128], sizes = [2, 16], strides = [1, 1]} : vector<2x144xf32> to vector<2x16xf32>
    %1632 = arith.mulf %1628, %1408 : vector<2x128xf32>
    %1633 = arith.mulf %1630, %1609 : vector<2x128xf32>
    %1634 = arith.addf %1632, %1633 : vector<2x128xf32>
    %1635 = arith.mulf %1629, %1411 : vector<2x16xf32>
    %1636 = arith.mulf %1631, %1586 : vector<2x16xf32>
    %1637 = arith.addf %1635, %1636 : vector<2x16xf32>
    %1638 = arith.mulf %1634, %1605 : vector<2x128xf32>
    %cst_833 = arith.constant dense<0.000000e+00> : vector<2x16xf32>
    %1639 = tpu.matmul %1638, %1618, %cst_833 {dimension_numbers = #tpu.dot_dimension_numbers<[1], [1], [0], [0], [0, 0, 1, 0], [], []>} : vector<2x128xf32>, vector<16x128xf32>, vector<2x16xf32> -> vector<2x16xf32>
    %1640 = arith.mulf %1637, %1585 : vector<2x16xf32>
    %cst_834 = arith.constant dense<0.000000e+00> : vector<2x2xf32>
    %1641 = tpu.matmul %1640, %1616, %cst_834 {dimension_numbers = #tpu.dot_dimension_numbers<[1], [1], [0], [0], [0, 0, 1, 0], [], []>} : vector<2x16xf32>, vector<2x16xf32>, vector<2x2xf32> -> vector<2x2xf32>
    %1642 = math.absf %1641 : vector<2x2xf32>
    %cst_835 = arith.constant 1.000000e+00 : f32
    %1643 = vector.broadcast %cst_835 : f32 to vector<2x2xf32>
    %1644 = arith.maximumf %1642, %1643 : vector<2x2xf32>
    %1645 = tpu.reciprocal %1644 : vector<2x2xf32> -> vector<2x2xf32>
    %cst_836 = arith.constant dense<0.000000e+00> : vector<2x16xf32>
    %1646 = tpu.matmul %1645, %1616, %cst_836 {dimension_numbers = #tpu.dot_dimension_numbers<[1], [0], [0], [1], [0, 0, 1, 1], [], []>} : vector<2x2xf32>, vector<2x16xf32>, vector<2x16xf32> -> vector<2x16xf32>
    %1647 = arith.mulf %1603, %1639 : vector<2x16xf32>
    %1648 = arith.mulf %1647, %1646 : vector<2x16xf32>
    %cst_837 = arith.constant dense<0.000000e+00> : vector<2x2xf32>
    %1649 = tpu.matmul %1648, %1616, %cst_837 {dimension_numbers = #tpu.dot_dimension_numbers<[1], [1], [0], [0], [0, 0, 1, 0], [], []>} : vector<2x16xf32>, vector<2x16xf32>, vector<2x2xf32> -> vector<2x2xf32>
    %cst_838 = arith.constant 1.250000e-01 : f32
    %1650 = vector.broadcast %cst_838 : f32 to vector<2x2xf32>
    %1651 = arith.mulf %1649, %1650 : vector<2x2xf32>
    %cst_839 = arith.constant dense<0.000000e+00> : vector<2x16xf32>
    %1652 = tpu.matmul %1651, %1616, %cst_839 {dimension_numbers = #tpu.dot_dimension_numbers<[1], [0], [0], [1], [0, 0, 1, 1], [], []>} : vector<2x2xf32>, vector<2x16xf32>, vector<2x16xf32> -> vector<2x16xf32>
    %1653 = arith.subf %1648, %1652 : vector<2x16xf32>
    %1654 = arith.mulf %1653, %1653 : vector<2x16xf32>
    %cst_840 = arith.constant dense<0.000000e+00> : vector<2x2xf32>
    %1655 = tpu.matmul %1654, %1616, %cst_840 {dimension_numbers = #tpu.dot_dimension_numbers<[1], [1], [0], [0], [0, 0, 1, 0], [], []>} : vector<2x16xf32>, vector<2x16xf32>, vector<2x2xf32> -> vector<2x2xf32>
    %cst_841 = arith.constant 1.250000e-01 : f32
    %1656 = vector.broadcast %cst_841 : f32 to vector<2x2xf32>
    %1657 = arith.mulf %1655, %1656 : vector<2x2xf32>
    %cst_842 = arith.constant dense<0.000000e+00> : vector<2x16xf32>
    %1658 = tpu.matmul %1657, %1616, %cst_842 {dimension_numbers = #tpu.dot_dimension_numbers<[1], [0], [0], [1], [0, 0, 1, 1], [], []>} : vector<2x2xf32>, vector<2x16xf32>, vector<2x16xf32> -> vector<2x16xf32>
    %cst_843 = arith.constant 9.99999974E-6 : f32
    %1659 = vector.broadcast %cst_843 : f32 to vector<2x16xf32>
    %1660 = arith.addf %1658, %1659 : vector<2x16xf32>
    %1661 = math.rsqrt %1660 : vector<2x16xf32>
    %1662 = arith.mulf %1653, %1661 : vector<2x16xf32>
    %c1_844 = arith.constant 1 : index
    %c0_845 = arith.constant 0 : index
    %c0_846 = arith.constant 0 : index
    %1663 = vector.load %arg19[%c1_844, %c0_845, %c0_846] : memref<2x1x16xf32, #tpu.memory_space<vmem>>, vector<1x1x16xf32>
    %1664 = vector.shape_cast %1663 : vector<1x1x16xf32> to vector<1x16xf32>
    %1665 = vector.broadcast %1664 : vector<1x16xf32> to vector<2x16xf32>
    %1666 = arith.mulf %1662, %1665 : vector<2x16xf32>
    %c1_847 = arith.constant 1 : index
    %c0_848 = arith.constant 0 : index
    %c0_849 = arith.constant 0 : index
    %1667 = vector.load %arg20[%c1_847, %c0_848, %c0_849] : memref<2x1x16xf32, #tpu.memory_space<vmem>>, vector<1x1x16xf32>
    %1668 = vector.shape_cast %1667 : vector<1x1x16xf32> to vector<1x16xf32>
    %1669 = vector.broadcast %1668 : vector<1x16xf32> to vector<2x16xf32>
    %1670 = arith.addf %1666, %1669 : vector<2x16xf32>
    %1671 = arith.addf %1670, %1587 : vector<2x16xf32>
    %1672 = arith.mulf %1671, %1615 : vector<2x16xf32>
    %c1_850 = arith.constant 1 : index
    %c0_851 = arith.constant 0 : index
    %c0_852 = arith.constant 0 : index
    %1673 = vector.load %arg21[%c1_850, %c0_851, %c0_852] : memref<2x16x16xf32, #tpu.memory_space<vmem>>, vector<1x16x16xf32>
    %1674 = vector.shape_cast %1673 : vector<1x16x16xf32> to vector<16x16xf32>
    %cst_853 = arith.constant dense<0.000000e+00> : vector<2x16xf32>
    %1675 = tpu.matmul %1672, %1674, %cst_853 {dimension_numbers = #tpu.dot_dimension_numbers<[1], [0], [0], [1], [0, 0, 1, 1], [], []>} : vector<2x16xf32>, vector<16x16xf32>, vector<2x16xf32> -> vector<2x16xf32>
    %c1_854 = arith.constant 1 : index
    %c0_855 = arith.constant 0 : index
    %c0_856 = arith.constant 0 : index
    %1676 = vector.load %arg22[%c1_854, %c0_855, %c0_856] : memref<2x1x16xf32, #tpu.memory_space<vmem>>, vector<1x1x16xf32>
    %1677 = vector.shape_cast %1676 : vector<1x1x16xf32> to vector<1x16xf32>
    %1678 = vector.broadcast %1677 : vector<1x16xf32> to vector<2x16xf32>
    %1679 = arith.addf %1675, %1678 : vector<2x16xf32>
    %1680 = arith.addf %1679, %1529 : vector<2x16xf32>
    %1681 = vector.extract_strided_slice %0 {offsets = [14, 0], sizes = [2, 16], strides = [1, 1]} : vector<16x16xf32> to vector<2x16xf32>
    %1682 = vector.extract_strided_slice %56 {offsets = [14, 0], sizes = [2, 16], strides = [1, 1]} : vector<16x16xf32> to vector<2x16xf32>
    %1683 = vector.extract_strided_slice %57 {offsets = [14, 0], sizes = [2, 16], strides = [1, 1]} : vector<16x16xf32> to vector<2x16xf32>
    %1684 = vector.extract_strided_slice %58 {offsets = [14, 0], sizes = [2, 16], strides = [1, 1]} : vector<16x16xf32> to vector<2x16xf32>
    %1685 = vector.extract_strided_slice %59 {offsets = [14, 0], sizes = [2, 2], strides = [1, 1]} : vector<16x2xf32> to vector<2x2xf32>
    %1686 = vector.extract_strided_slice %60 {offsets = [14, 0], sizes = [2, 2], strides = [1, 1]} : vector<16x2xf32> to vector<2x2xf32>
    %1687 = vector.extract_strided_slice %74 {offsets = [14, 0], sizes = [2, 16], strides = [1, 1]} : vector<16x16xf32> to vector<2x16xf32>
    %1688 = vector.extract_strided_slice %76 {offsets = [14, 0], sizes = [2, 128], strides = [1, 1]} : vector<16x128xf32> to vector<2x128xf32>
    %1689 = vector.extract_strided_slice %80 {offsets = [14, 0], sizes = [2, 128], strides = [1, 1]} : vector<16x128xf32> to vector<2x128xf32>
    %1690 = vector.extract_strided_slice %86 {offsets = [14, 0], sizes = [2, 16], strides = [1, 1]} : vector<16x16xf32> to vector<2x16xf32>
    %c0_857 = arith.constant 0 : index
    %c0_858 = arith.constant 0 : index
    %1691 = vector.load %arg5[%c0_857, %c0_858] : memref<2x16xf32, #tpu.memory_space<vmem>>, vector<2x16xf32>
    %c0_859 = arith.constant 0 : index
    %c0_860 = arith.constant 0 : index
    %1692 = vector.load %arg8[%c0_859, %c0_860] : memref<2x144xf32, #tpu.memory_space<vmem>>, vector<2x144xf32>
    %c0_861 = arith.constant 0 : index
    %c0_862 = arith.constant 0 : index
    %1693 = vector.load %arg7[%c0_861, %c0_862] : memref<16x128xf32, #tpu.memory_space<vmem>>, vector<16x128xf32>
    %1694 = arith.addf %1686, %1469 : vector<2x2xf32>
    %1695 = arith.maximumf %1694, %1685 : vector<2x2xf32>
    %1696 = arith.subf %1685, %1695 : vector<2x2xf32>
    %1697 = math.exp %1696 : vector<2x2xf32>
    %1698 = arith.subf %1686, %1695 : vector<2x2xf32>
    %1699 = arith.addf %1698, %1469 : vector<2x2xf32>
    %1700 = math.exp %1699 : vector<2x2xf32>
    %cst_863 = arith.constant dense<0.000000e+00> : vector<2x144xf32>
    %1701 = tpu.matmul %1700, %1692, %cst_863 {dimension_numbers = #tpu.dot_dimension_numbers<[1], [0], [0], [1], [0, 0, 1, 1], [], []>} : vector<2x2xf32>, vector<2x144xf32>, vector<2x144xf32> -> vector<2x144xf32>
    %cst_864 = arith.constant dense<0.000000e+00> : vector<2x144xf32>
    %1702 = tpu.matmul %1697, %1692, %cst_864 {dimension_numbers = #tpu.dot_dimension_numbers<[1], [0], [0], [1], [0, 0, 1, 1], [], []>} : vector<2x2xf32>, vector<2x144xf32>, vector<2x144xf32> -> vector<2x144xf32>
    %1703 = vector.extract_strided_slice %1701 {offsets = [0, 0], sizes = [2, 128], strides = [1, 1]} : vector<2x144xf32> to vector<2x128xf32>
    %1704 = vector.extract_strided_slice %1701 {offsets = [0, 128], sizes = [2, 16], strides = [1, 1]} : vector<2x144xf32> to vector<2x16xf32>
    %1705 = vector.extract_strided_slice %1702 {offsets = [0, 0], sizes = [2, 128], strides = [1, 1]} : vector<2x144xf32> to vector<2x128xf32>
    %1706 = vector.extract_strided_slice %1702 {offsets = [0, 128], sizes = [2, 16], strides = [1, 1]} : vector<2x144xf32> to vector<2x16xf32>
    %1707 = arith.mulf %1703, %1483 : vector<2x128xf32>
    %1708 = arith.mulf %1705, %1689 : vector<2x128xf32>
    %1709 = arith.addf %1707, %1708 : vector<2x128xf32>
    %1710 = arith.mulf %1704, %1486 : vector<2x16xf32>
    %1711 = arith.mulf %1706, %1683 : vector<2x16xf32>
    %1712 = arith.addf %1710, %1711 : vector<2x16xf32>
    %1713 = arith.mulf %1709, %1688 : vector<2x128xf32>
    %cst_865 = arith.constant dense<0.000000e+00> : vector<2x16xf32>
    %1714 = tpu.matmul %1713, %1693, %cst_865 {dimension_numbers = #tpu.dot_dimension_numbers<[1], [1], [0], [0], [0, 0, 1, 0], [], []>} : vector<2x128xf32>, vector<16x128xf32>, vector<2x16xf32> -> vector<2x16xf32>
    %1715 = arith.mulf %1712, %1682 : vector<2x16xf32>
    %cst_866 = arith.constant dense<0.000000e+00> : vector<2x2xf32>
    %1716 = tpu.matmul %1715, %1691, %cst_866 {dimension_numbers = #tpu.dot_dimension_numbers<[1], [1], [0], [0], [0, 0, 1, 0], [], []>} : vector<2x16xf32>, vector<2x16xf32>, vector<2x2xf32> -> vector<2x2xf32>
    %1717 = math.absf %1716 : vector<2x2xf32>
    %cst_867 = arith.constant 1.000000e+00 : f32
    %1718 = vector.broadcast %cst_867 : f32 to vector<2x2xf32>
    %1719 = arith.maximumf %1717, %1718 : vector<2x2xf32>
    %1720 = tpu.reciprocal %1719 : vector<2x2xf32> -> vector<2x2xf32>
    %cst_868 = arith.constant dense<0.000000e+00> : vector<2x16xf32>
    %1721 = tpu.matmul %1720, %1691, %cst_868 {dimension_numbers = #tpu.dot_dimension_numbers<[1], [0], [0], [1], [0, 0, 1, 1], [], []>} : vector<2x2xf32>, vector<2x16xf32>, vector<2x16xf32> -> vector<2x16xf32>
    %1722 = arith.mulf %1687, %1714 : vector<2x16xf32>
    %1723 = arith.mulf %1722, %1721 : vector<2x16xf32>
    %cst_869 = arith.constant dense<0.000000e+00> : vector<2x2xf32>
    %1724 = tpu.matmul %1723, %1691, %cst_869 {dimension_numbers = #tpu.dot_dimension_numbers<[1], [1], [0], [0], [0, 0, 1, 0], [], []>} : vector<2x16xf32>, vector<2x16xf32>, vector<2x2xf32> -> vector<2x2xf32>
    %cst_870 = arith.constant 1.250000e-01 : f32
    %1725 = vector.broadcast %cst_870 : f32 to vector<2x2xf32>
    %1726 = arith.mulf %1724, %1725 : vector<2x2xf32>
    %cst_871 = arith.constant dense<0.000000e+00> : vector<2x16xf32>
    %1727 = tpu.matmul %1726, %1691, %cst_871 {dimension_numbers = #tpu.dot_dimension_numbers<[1], [0], [0], [1], [0, 0, 1, 1], [], []>} : vector<2x2xf32>, vector<2x16xf32>, vector<2x16xf32> -> vector<2x16xf32>
    %1728 = arith.subf %1723, %1727 : vector<2x16xf32>
    %1729 = arith.mulf %1728, %1728 : vector<2x16xf32>
    %cst_872 = arith.constant dense<0.000000e+00> : vector<2x2xf32>
    %1730 = tpu.matmul %1729, %1691, %cst_872 {dimension_numbers = #tpu.dot_dimension_numbers<[1], [1], [0], [0], [0, 0, 1, 0], [], []>} : vector<2x16xf32>, vector<2x16xf32>, vector<2x2xf32> -> vector<2x2xf32>
    %cst_873 = arith.constant 1.250000e-01 : f32
    %1731 = vector.broadcast %cst_873 : f32 to vector<2x2xf32>
    %1732 = arith.mulf %1730, %1731 : vector<2x2xf32>
    %cst_874 = arith.constant dense<0.000000e+00> : vector<2x16xf32>
    %1733 = tpu.matmul %1732, %1691, %cst_874 {dimension_numbers = #tpu.dot_dimension_numbers<[1], [0], [0], [1], [0, 0, 1, 1], [], []>} : vector<2x2xf32>, vector<2x16xf32>, vector<2x16xf32> -> vector<2x16xf32>
    %cst_875 = arith.constant 9.99999974E-6 : f32
    %1734 = vector.broadcast %cst_875 : f32 to vector<2x16xf32>
    %1735 = arith.addf %1733, %1734 : vector<2x16xf32>
    %1736 = math.rsqrt %1735 : vector<2x16xf32>
    %1737 = arith.mulf %1728, %1736 : vector<2x16xf32>
    %c0_876 = arith.constant 0 : index
    %c0_877 = arith.constant 0 : index
    %c0_878 = arith.constant 0 : index
    %1738 = vector.load %arg19[%c0_876, %c0_877, %c0_878] : memref<2x1x16xf32, #tpu.memory_space<vmem>>, vector<1x1x16xf32>
    %1739 = vector.shape_cast %1738 : vector<1x1x16xf32> to vector<1x16xf32>
    %1740 = vector.broadcast %1739 : vector<1x16xf32> to vector<2x16xf32>
    %1741 = arith.mulf %1737, %1740 : vector<2x16xf32>
    %c0_879 = arith.constant 0 : index
    %c0_880 = arith.constant 0 : index
    %c0_881 = arith.constant 0 : index
    %1742 = vector.load %arg20[%c0_879, %c0_880, %c0_881] : memref<2x1x16xf32, #tpu.memory_space<vmem>>, vector<1x1x16xf32>
    %1743 = vector.shape_cast %1742 : vector<1x1x16xf32> to vector<1x16xf32>
    %1744 = vector.broadcast %1743 : vector<1x16xf32> to vector<2x16xf32>
    %1745 = arith.addf %1741, %1744 : vector<2x16xf32>
    %1746 = arith.addf %1745, %1684 : vector<2x16xf32>
    %1747 = arith.mulf %1746, %1690 : vector<2x16xf32>
    %c0_882 = arith.constant 0 : index
    %c0_883 = arith.constant 0 : index
    %c0_884 = arith.constant 0 : index
    %1748 = vector.load %arg21[%c0_882, %c0_883, %c0_884] : memref<2x16x16xf32, #tpu.memory_space<vmem>>, vector<1x16x16xf32>
    %1749 = vector.shape_cast %1748 : vector<1x16x16xf32> to vector<16x16xf32>
    %cst_885 = arith.constant dense<0.000000e+00> : vector<2x16xf32>
    %1750 = tpu.matmul %1747, %1749, %cst_885 {dimension_numbers = #tpu.dot_dimension_numbers<[1], [0], [0], [1], [0, 0, 1, 1], [], []>} : vector<2x16xf32>, vector<16x16xf32>, vector<2x16xf32> -> vector<2x16xf32>
    %c0_886 = arith.constant 0 : index
    %c0_887 = arith.constant 0 : index
    %c0_888 = arith.constant 0 : index
    %1751 = vector.load %arg22[%c0_886, %c0_887, %c0_888] : memref<2x1x16xf32, #tpu.memory_space<vmem>>, vector<1x1x16xf32>
    %1752 = vector.shape_cast %1751 : vector<1x1x16xf32> to vector<1x16xf32>
    %1753 = vector.broadcast %1752 : vector<1x16xf32> to vector<2x16xf32>
    %1754 = arith.addf %1750, %1753 : vector<2x16xf32>
    %1755 = arith.addf %1754, %1681 : vector<2x16xf32>
    %c1_889 = arith.constant 1 : index
    %c0_890 = arith.constant 0 : index
    %c0_891 = arith.constant 0 : index
    %1756 = vector.load %arg9[%c1_889, %c0_890, %c0_891] : memref<2x1x16xf32, #tpu.memory_space<vmem>>, vector<1x1x16xf32>
    %1757 = vector.shape_cast %1756 : vector<1x1x16xf32> to vector<1x16xf32>
    %c1_892 = arith.constant 1 : index
    %c0_893 = arith.constant 0 : index
    %c0_894 = arith.constant 0 : index
    %1758 = vector.load %arg10[%c1_892, %c0_893, %c0_894] : memref<2x1x16xf32, #tpu.memory_space<vmem>>, vector<1x1x16xf32>
    %1759 = vector.shape_cast %1758 : vector<1x1x16xf32> to vector<1x16xf32>
    %cst_895 = arith.constant dense<0.000000e+00> : vector<2xf32>
    %1760 = vector.multi_reduction <add>, %1755, %cst_895 [1] : vector<2x16xf32> to vector<2xf32>
    %1761 = vector.shape_cast %1760 : vector<2xf32> to vector<2x1xf32>
    %cst_896 = arith.constant 1.600000e+01 : f32
    %1762 = vector.broadcast %cst_896 : f32 to vector<2x1xf32>
    %1763 = arith.divf %1761, %1762 : vector<2x1xf32>
    %1764 = vector.broadcast %1763 : vector<2x1xf32> to vector<2x16xf32>
    %1765 = arith.subf %1755, %1764 : vector<2x16xf32>
    %1766 = arith.mulf %1765, %1765 : vector<2x16xf32>
    %cst_897 = arith.constant dense<0.000000e+00> : vector<2xf32>
    %1767 = vector.multi_reduction <add>, %1766, %cst_897 [1] : vector<2x16xf32> to vector<2xf32>
    %1768 = vector.shape_cast %1767 : vector<2xf32> to vector<2x1xf32>
    %cst_898 = arith.constant 1.600000e+01 : f32
    %1769 = vector.broadcast %cst_898 : f32 to vector<2x1xf32>
    %1770 = arith.divf %1768, %1769 : vector<2x1xf32>
    %1771 = vector.broadcast %1763 : vector<2x1xf32> to vector<2x16xf32>
    %1772 = arith.subf %1755, %1771 : vector<2x16xf32>
    %cst_899 = arith.constant 9.99999974E-6 : f32
    %1773 = vector.broadcast %cst_899 : f32 to vector<2x1xf32>
    %1774 = arith.addf %1770, %1773 : vector<2x1xf32>
    %1775 = math.rsqrt %1774 : vector<2x1xf32>
    %1776 = vector.broadcast %1775 : vector<2x1xf32> to vector<2x16xf32>
    %1777 = arith.mulf %1772, %1776 : vector<2x16xf32>
    %1778 = vector.broadcast %1757 : vector<1x16xf32> to vector<2x16xf32>
    %1779 = arith.mulf %1777, %1778 : vector<2x16xf32>
    %1780 = vector.broadcast %1759 : vector<1x16xf32> to vector<2x16xf32>
    %1781 = arith.addf %1779, %1780 : vector<2x16xf32>
    %c1_900 = arith.constant 1 : index
    %c0_901 = arith.constant 0 : index
    %c0_902 = arith.constant 0 : index
    %1782 = vector.load %arg11[%c1_900, %c0_901, %c0_902] : memref<2x16x48xf32, #tpu.memory_space<vmem>>, vector<1x16x48xf32>
    %1783 = vector.shape_cast %1782 : vector<1x16x48xf32> to vector<16x48xf32>
    %cst_903 = arith.constant dense<0.000000e+00> : vector<2x48xf32>
    %1784 = tpu.matmul %1781, %1783, %cst_903 {dimension_numbers = #tpu.dot_dimension_numbers<[1], [0], [0], [1], [0, 0, 1, 1], [], []>} : vector<2x16xf32>, vector<16x48xf32>, vector<2x48xf32> -> vector<2x48xf32>
    %c1_904 = arith.constant 1 : index
    %c0_905 = arith.constant 0 : index
    %c0_906 = arith.constant 0 : index
    %1785 = vector.load %arg12[%c1_904, %c0_905, %c0_906] : memref<2x1x48xf32, #tpu.memory_space<vmem>>, vector<1x1x48xf32>
    %1786 = vector.shape_cast %1785 : vector<1x1x48xf32> to vector<1x48xf32>
    %1787 = vector.broadcast %1786 : vector<1x48xf32> to vector<2x48xf32>
    %1788 = arith.addf %1784, %1787 : vector<2x48xf32>
    %1789 = vector.extract_strided_slice %1788 {offsets = [0, 0], sizes = [2, 32], strides = [1, 1]} : vector<2x48xf32> to vector<2x32xf32>
    %1790 = vector.extract_strided_slice %1788 {offsets = [0, 32], sizes = [2, 16], strides = [1, 1]} : vector<2x48xf32> to vector<2x16xf32>
    %c1_907 = arith.constant 1 : index
    %c0_908 = arith.constant 0 : index
    %c0_909 = arith.constant 0 : index
    %1791 = vector.load %arg13[%c1_907, %c0_908, %c0_909] : memref<2x32x32xf32, #tpu.memory_space<vmem>>, vector<1x32x32xf32>
    %1792 = vector.shape_cast %1791 : vector<1x32x32xf32> to vector<32x32xf32>
    %cst_910 = arith.constant dense<0.000000e+00> : vector<2x32xf32>
    %1793 = tpu.matmul %1789, %1792, %cst_910 {dimension_numbers = #tpu.dot_dimension_numbers<[1], [0], [0], [1], [0, 0, 1, 1], [], []>} : vector<2x32xf32>, vector<32x32xf32>, vector<2x32xf32> -> vector<2x32xf32>
    %c1_911 = arith.constant 1 : index
    %c0_912 = arith.constant 0 : index
    %c0_913 = arith.constant 0 : index
    %1794 = vector.load %arg14[%c1_911, %c0_912, %c0_913] : memref<2x1x1xf32, #tpu.memory_space<vmem>>, vector<1x1x1xf32>
    %1795 = vector.shape_cast %1794 : vector<1x1x1xf32> to vector<1x1xf32>
    %1796 = vector.broadcast %1795 : vector<1x1xf32> to vector<2x32xf32>
    %1797 = arith.addf %1793, %1796 : vector<2x32xf32>
    %1798 = arith.negf %1797 : vector<2x32xf32>
    %1799 = math.exp %1798 : vector<2x32xf32>
    %cst_914 = arith.constant 1.000000e+00 : f32
    %1800 = vector.broadcast %cst_914 : f32 to vector<2x32xf32>
    %1801 = arith.addf %1800, %1799 : vector<2x32xf32>
    %1802 = arith.divf %1800, %1801 : vector<2x32xf32>
    %1803 = arith.mulf %1797, %1802 : vector<2x32xf32>
    %c1_915 = arith.constant 1 : index
    %c0_916 = arith.constant 0 : index
    %c0_917 = arith.constant 0 : index
    %1804 = vector.load %arg15[%c1_915, %c0_916, %c0_917] : memref<2x32x52xf32, #tpu.memory_space<vmem>>, vector<1x32x52xf32>
    %1805 = vector.shape_cast %1804 : vector<1x32x52xf32> to vector<32x52xf32>
    %cst_918 = arith.constant dense<0.000000e+00> : vector<2x52xf32>
    %1806 = tpu.matmul %1803, %1805, %cst_918 {dimension_numbers = #tpu.dot_dimension_numbers<[1], [0], [0], [1], [0, 0, 1, 1], [], []>} : vector<2x32xf32>, vector<32x52xf32>, vector<2x52xf32> -> vector<2x52xf32>
    %c1_919 = arith.constant 1 : index
    %c0_920 = arith.constant 0 : index
    %c0_921 = arith.constant 0 : index
    %1807 = vector.load %arg16[%c1_919, %c0_920, %c0_921] : memref<2x1x52xf32, #tpu.memory_space<vmem>>, vector<1x1x52xf32>
    %1808 = vector.shape_cast %1807 : vector<1x1x52xf32> to vector<1x52xf32>
    %1809 = vector.broadcast %1808 : vector<1x52xf32> to vector<2x52xf32>
    %1810 = arith.addf %1806, %1809 : vector<2x52xf32>
    %1811 = vector.extract_strided_slice %1810 {offsets = [0, 0], sizes = [2, 16], strides = [1, 1]} : vector<2x52xf32> to vector<2x16xf32>
    %1812 = vector.extract_strided_slice %1810 {offsets = [0, 16], sizes = [2, 16], strides = [1, 1]} : vector<2x52xf32> to vector<2x16xf32>
    %1813 = vector.extract_strided_slice %1810 {offsets = [0, 32], sizes = [2, 16], strides = [1, 1]} : vector<2x52xf32> to vector<2x16xf32>
    %1814 = vector.extract_strided_slice %1810 {offsets = [0, 48], sizes = [2, 2], strides = [1, 1]} : vector<2x52xf32> to vector<2x2xf32>
    %1815 = vector.extract_strided_slice %1810 {offsets = [0, 50], sizes = [2, 2], strides = [1, 1]} : vector<2x52xf32> to vector<2x2xf32>
    %c1_922 = arith.constant 1 : index
    %c0_923 = arith.constant 0 : index
    %c0_924 = arith.constant 0 : index
    %1816 = vector.load %arg17[%c1_922, %c0_923, %c0_924] : memref<2x32x32xf32, #tpu.memory_space<vmem>>, vector<1x32x32xf32>
    %1817 = vector.shape_cast %1816 : vector<1x32x32xf32> to vector<32x32xf32>
    %cst_925 = arith.constant dense<0.000000e+00> : vector<2x32xf32>
    %1818 = tpu.matmul %1789, %1817, %cst_925 {dimension_numbers = #tpu.dot_dimension_numbers<[1], [0], [0], [1], [0, 0, 1, 1], [], []>} : vector<2x32xf32>, vector<32x32xf32>, vector<2x32xf32> -> vector<2x32xf32>
    %c1_926 = arith.constant 1 : index
    %c0_927 = arith.constant 0 : index
    %c0_928 = arith.constant 0 : index
    %1819 = vector.load %arg18[%c1_926, %c0_927, %c0_928] : memref<2x1x32xf32, #tpu.memory_space<vmem>>, vector<1x1x32xf32>
    %1820 = vector.shape_cast %1819 : vector<1x1x32xf32> to vector<1x32xf32>
    %1821 = vector.broadcast %1820 : vector<1x32xf32> to vector<2x32xf32>
    %1822 = arith.addf %1818, %1821 : vector<2x32xf32>
    %1823 = vector.extract_strided_slice %1822 {offsets = [0, 0], sizes = [2, 16], strides = [1, 1]} : vector<2x32xf32> to vector<2x16xf32>
    %1824 = vector.extract_strided_slice %1822 {offsets = [0, 16], sizes = [2, 16], strides = [1, 1]} : vector<2x32xf32> to vector<2x16xf32>
    %1825 = arith.negf %1824 : vector<2x16xf32>
    %1826 = math.exp %1825 : vector<2x16xf32>
    %cst_929 = arith.constant 1.000000e+00 : f32
    %1827 = vector.broadcast %cst_929 : f32 to vector<2x16xf32>
    %1828 = arith.addf %1827, %1826 : vector<2x16xf32>
    %1829 = arith.divf %1827, %1828 : vector<2x16xf32>
    %c0_930 = arith.constant 0 : index
    %c0_931 = arith.constant 0 : index
    %1830 = vector.load %arg6[%c0_930, %c0_931] : memref<16x128xf32, #tpu.memory_space<vmem>>, vector<16x128xf32>
    %cst_932 = arith.constant dense<0.000000e+00> : vector<2x128xf32>
    %1831 = tpu.matmul %1811, %1830, %cst_932 {dimension_numbers = #tpu.dot_dimension_numbers<[1], [0], [0], [1], [0, 0, 1, 1], [], []>} : vector<2x16xf32>, vector<16x128xf32>, vector<2x128xf32> -> vector<2x128xf32>
    %cst_933 = arith.constant dense<0.000000e+00> : vector<2x128xf32>
    %1832 = tpu.matmul %1812, %1830, %cst_933 {dimension_numbers = #tpu.dot_dimension_numbers<[1], [0], [0], [1], [0, 0, 1, 1], [], []>} : vector<2x16xf32>, vector<16x128xf32>, vector<2x128xf32> -> vector<2x128xf32>
    %c0_934 = arith.constant 0 : index
    %c0_935 = arith.constant 0 : index
    %1833 = vector.load %arg7[%c0_934, %c0_935] : memref<16x128xf32, #tpu.memory_space<vmem>>, vector<16x128xf32>
    %cst_936 = arith.constant dense<0.000000e+00> : vector<2x128xf32>
    %1834 = tpu.matmul %1823, %1833, %cst_936 {dimension_numbers = #tpu.dot_dimension_numbers<[1], [0], [0], [1], [0, 0, 1, 1], [], []>} : vector<2x16xf32>, vector<16x128xf32>, vector<2x128xf32> -> vector<2x128xf32>
    %1835 = arith.mulf %1834, %1832 : vector<2x128xf32>
    %1836 = arith.negf %1790 : vector<2x16xf32>
    %1837 = math.exp %1836 : vector<2x16xf32>
    %cst_937 = arith.constant 1.000000e+00 : f32
    %1838 = vector.broadcast %cst_937 : f32 to vector<2x16xf32>
    %1839 = arith.addf %1838, %1837 : vector<2x16xf32>
    %1840 = arith.divf %1838, %1839 : vector<2x16xf32>
    %1841 = arith.mulf %1790, %1840 : vector<2x16xf32>
    %c0_938 = arith.constant 0 : index
    %c0_939 = arith.constant 0 : index
    %1842 = vector.load %arg5[%c0_938, %c0_939] : memref<2x16xf32, #tpu.memory_space<vmem>>, vector<2x16xf32>
    %c0_940 = arith.constant 0 : index
    %c0_941 = arith.constant 0 : index
    %1843 = vector.load %arg8[%c0_940, %c0_941] : memref<2x144xf32, #tpu.memory_space<vmem>>, vector<2x144xf32>
    %c0_942 = arith.constant 0 : index
    %c0_943 = arith.constant 0 : index
    %1844 = vector.load %arg7[%c0_942, %c0_943] : memref<16x128xf32, #tpu.memory_space<vmem>>, vector<16x128xf32>
    %1845 = arith.addf %1815, %1620 : vector<2x2xf32>
    %1846 = arith.maximumf %1845, %1814 : vector<2x2xf32>
    %1847 = arith.subf %1814, %1846 : vector<2x2xf32>
    %1848 = math.exp %1847 : vector<2x2xf32>
    %1849 = arith.subf %1815, %1846 : vector<2x2xf32>
    %1850 = arith.addf %1849, %1620 : vector<2x2xf32>
    %1851 = math.exp %1850 : vector<2x2xf32>
    %cst_944 = arith.constant dense<0.000000e+00> : vector<2x144xf32>
    %1852 = tpu.matmul %1851, %1843, %cst_944 {dimension_numbers = #tpu.dot_dimension_numbers<[1], [0], [0], [1], [0, 0, 1, 1], [], []>} : vector<2x2xf32>, vector<2x144xf32>, vector<2x144xf32> -> vector<2x144xf32>
    %cst_945 = arith.constant dense<0.000000e+00> : vector<2x144xf32>
    %1853 = tpu.matmul %1848, %1843, %cst_945 {dimension_numbers = #tpu.dot_dimension_numbers<[1], [0], [0], [1], [0, 0, 1, 1], [], []>} : vector<2x2xf32>, vector<2x144xf32>, vector<2x144xf32> -> vector<2x144xf32>
    %1854 = vector.extract_strided_slice %1852 {offsets = [0, 0], sizes = [2, 128], strides = [1, 1]} : vector<2x144xf32> to vector<2x128xf32>
    %1855 = vector.extract_strided_slice %1852 {offsets = [0, 128], sizes = [2, 16], strides = [1, 1]} : vector<2x144xf32> to vector<2x16xf32>
    %1856 = vector.extract_strided_slice %1853 {offsets = [0, 0], sizes = [2, 128], strides = [1, 1]} : vector<2x144xf32> to vector<2x128xf32>
    %1857 = vector.extract_strided_slice %1853 {offsets = [0, 128], sizes = [2, 16], strides = [1, 1]} : vector<2x144xf32> to vector<2x16xf32>
    %1858 = arith.mulf %1854, %1634 : vector<2x128xf32>
    %1859 = arith.mulf %1856, %1835 : vector<2x128xf32>
    %1860 = arith.addf %1858, %1859 : vector<2x128xf32>
    %1861 = arith.mulf %1855, %1637 : vector<2x16xf32>
    %1862 = arith.mulf %1857, %1812 : vector<2x16xf32>
    %1863 = arith.addf %1861, %1862 : vector<2x16xf32>
    %1864 = arith.mulf %1860, %1831 : vector<2x128xf32>
    %cst_946 = arith.constant dense<0.000000e+00> : vector<2x16xf32>
    %1865 = tpu.matmul %1864, %1844, %cst_946 {dimension_numbers = #tpu.dot_dimension_numbers<[1], [1], [0], [0], [0, 0, 1, 0], [], []>} : vector<2x128xf32>, vector<16x128xf32>, vector<2x16xf32> -> vector<2x16xf32>
    %1866 = arith.mulf %1863, %1811 : vector<2x16xf32>
    %cst_947 = arith.constant dense<0.000000e+00> : vector<2x2xf32>
    %1867 = tpu.matmul %1866, %1842, %cst_947 {dimension_numbers = #tpu.dot_dimension_numbers<[1], [1], [0], [0], [0, 0, 1, 0], [], []>} : vector<2x16xf32>, vector<2x16xf32>, vector<2x2xf32> -> vector<2x2xf32>
    %1868 = math.absf %1867 : vector<2x2xf32>
    %cst_948 = arith.constant 1.000000e+00 : f32
    %1869 = vector.broadcast %cst_948 : f32 to vector<2x2xf32>
    %1870 = arith.maximumf %1868, %1869 : vector<2x2xf32>
    %1871 = tpu.reciprocal %1870 : vector<2x2xf32> -> vector<2x2xf32>
    %cst_949 = arith.constant dense<0.000000e+00> : vector<2x16xf32>
    %1872 = tpu.matmul %1871, %1842, %cst_949 {dimension_numbers = #tpu.dot_dimension_numbers<[1], [0], [0], [1], [0, 0, 1, 1], [], []>} : vector<2x2xf32>, vector<2x16xf32>, vector<2x16xf32> -> vector<2x16xf32>
    %1873 = arith.mulf %1829, %1865 : vector<2x16xf32>
    %1874 = arith.mulf %1873, %1872 : vector<2x16xf32>
    %cst_950 = arith.constant dense<0.000000e+00> : vector<2x2xf32>
    %1875 = tpu.matmul %1874, %1842, %cst_950 {dimension_numbers = #tpu.dot_dimension_numbers<[1], [1], [0], [0], [0, 0, 1, 0], [], []>} : vector<2x16xf32>, vector<2x16xf32>, vector<2x2xf32> -> vector<2x2xf32>
    %cst_951 = arith.constant 1.250000e-01 : f32
    %1876 = vector.broadcast %cst_951 : f32 to vector<2x2xf32>
    %1877 = arith.mulf %1875, %1876 : vector<2x2xf32>
    %cst_952 = arith.constant dense<0.000000e+00> : vector<2x16xf32>
    %1878 = tpu.matmul %1877, %1842, %cst_952 {dimension_numbers = #tpu.dot_dimension_numbers<[1], [0], [0], [1], [0, 0, 1, 1], [], []>} : vector<2x2xf32>, vector<2x16xf32>, vector<2x16xf32> -> vector<2x16xf32>
    %1879 = arith.subf %1874, %1878 : vector<2x16xf32>
    %1880 = arith.mulf %1879, %1879 : vector<2x16xf32>
    %cst_953 = arith.constant dense<0.000000e+00> : vector<2x2xf32>
    %1881 = tpu.matmul %1880, %1842, %cst_953 {dimension_numbers = #tpu.dot_dimension_numbers<[1], [1], [0], [0], [0, 0, 1, 0], [], []>} : vector<2x16xf32>, vector<2x16xf32>, vector<2x2xf32> -> vector<2x2xf32>
    %cst_954 = arith.constant 1.250000e-01 : f32
    %1882 = vector.broadcast %cst_954 : f32 to vector<2x2xf32>
    %1883 = arith.mulf %1881, %1882 : vector<2x2xf32>
    %cst_955 = arith.constant dense<0.000000e+00> : vector<2x16xf32>
    %1884 = tpu.matmul %1883, %1842, %cst_955 {dimension_numbers = #tpu.dot_dimension_numbers<[1], [0], [0], [1], [0, 0, 1, 1], [], []>} : vector<2x2xf32>, vector<2x16xf32>, vector<2x16xf32> -> vector<2x16xf32>
    %cst_956 = arith.constant 9.99999974E-6 : f32
    %1885 = vector.broadcast %cst_956 : f32 to vector<2x16xf32>
    %1886 = arith.addf %1884, %1885 : vector<2x16xf32>
    %1887 = math.rsqrt %1886 : vector<2x16xf32>
    %1888 = arith.mulf %1879, %1887 : vector<2x16xf32>
    %c1_957 = arith.constant 1 : index
    %c0_958 = arith.constant 0 : index
    %c0_959 = arith.constant 0 : index
    %1889 = vector.load %arg19[%c1_957, %c0_958, %c0_959] : memref<2x1x16xf32, #tpu.memory_space<vmem>>, vector<1x1x16xf32>
    %1890 = vector.shape_cast %1889 : vector<1x1x16xf32> to vector<1x16xf32>
    %1891 = vector.broadcast %1890 : vector<1x16xf32> to vector<2x16xf32>
    %1892 = arith.mulf %1888, %1891 : vector<2x16xf32>
    %c1_960 = arith.constant 1 : index
    %c0_961 = arith.constant 0 : index
    %c0_962 = arith.constant 0 : index
    %1893 = vector.load %arg20[%c1_960, %c0_961, %c0_962] : memref<2x1x16xf32, #tpu.memory_space<vmem>>, vector<1x1x16xf32>
    %1894 = vector.shape_cast %1893 : vector<1x1x16xf32> to vector<1x16xf32>
    %1895 = vector.broadcast %1894 : vector<1x16xf32> to vector<2x16xf32>
    %1896 = arith.addf %1892, %1895 : vector<2x16xf32>
    %1897 = arith.addf %1896, %1813 : vector<2x16xf32>
    %1898 = arith.mulf %1897, %1841 : vector<2x16xf32>
    %c1_963 = arith.constant 1 : index
    %c0_964 = arith.constant 0 : index
    %c0_965 = arith.constant 0 : index
    %1899 = vector.load %arg21[%c1_963, %c0_964, %c0_965] : memref<2x16x16xf32, #tpu.memory_space<vmem>>, vector<1x16x16xf32>
    %1900 = vector.shape_cast %1899 : vector<1x16x16xf32> to vector<16x16xf32>
    %cst_966 = arith.constant dense<0.000000e+00> : vector<2x16xf32>
    %1901 = tpu.matmul %1898, %1900, %cst_966 {dimension_numbers = #tpu.dot_dimension_numbers<[1], [0], [0], [1], [0, 0, 1, 1], [], []>} : vector<2x16xf32>, vector<16x16xf32>, vector<2x16xf32> -> vector<2x16xf32>
    %c1_967 = arith.constant 1 : index
    %c0_968 = arith.constant 0 : index
    %c0_969 = arith.constant 0 : index
    %1902 = vector.load %arg22[%c1_967, %c0_968, %c0_969] : memref<2x1x16xf32, #tpu.memory_space<vmem>>, vector<1x1x16xf32>
    %1903 = vector.shape_cast %1902 : vector<1x1x16xf32> to vector<1x16xf32>
    %1904 = vector.broadcast %1903 : vector<1x16xf32> to vector<2x16xf32>
    %1905 = arith.addf %1901, %1904 : vector<2x16xf32>
    %1906 = arith.addf %1905, %1755 : vector<2x16xf32>
    %1907 = tpu.concatenate %324, %550, %776, %1002, %1228, %1454, %1680, %1906 in 0 : vector<2x16xf32>, vector<2x16xf32>, vector<2x16xf32>, vector<2x16xf32>, vector<2x16xf32>, vector<2x16xf32>, vector<2x16xf32>, vector<2x16xf32> -> vector<16x16xf32>
    %c0_970 = arith.constant 0 : index
    %c0_971 = arith.constant 0 : index
    %1908 = vector.load %arg23[%c0_970, %c0_971] : memref<16x16xf32, #tpu.memory_space<vmem>>, vector<16x16xf32>
    tpu.vector_store %arg23[%c0_970, %c0_971], %1907 {strides = array<i32>} : memref<16x16xf32, #tpu.memory_space<vmem>>, vector<16x16xf32>,
    %c0_972 = arith.constant 0 : index
    %c0_973 = arith.constant 0 : index
    %c0_974 = arith.constant 0 : index
    %1909 = vector.load %arg24[%c0_972, %c0_973, %c0_974] : memref<2x2x128xf32, #tpu.memory_space<vmem>>, vector<1x2x128xf32>
    %1910 = vector.shape_cast %1909 : vector<1x2x128xf32> to vector<2x128xf32>
    %1911 = vector.shape_cast %1709 : vector<2x128xf32> to vector<1x2x128xf32>
    tpu.vector_store %arg24[%c0_972, %c0_973, %c0_974], %1911 {strides = array<i32>} : memref<2x2x128xf32, #tpu.memory_space<vmem>>, vector<1x2x128xf32>,
    %c0_975 = arith.constant 0 : index
    %c0_976 = arith.constant 0 : index
    %c0_977 = arith.constant 0 : index
    %1912 = vector.load %arg25[%c0_975, %c0_976, %c0_977] : memref<2x2x16xf32, #tpu.memory_space<vmem>>, vector<1x2x16xf32>
    %1913 = vector.shape_cast %1912 : vector<1x2x16xf32> to vector<2x16xf32>
    %1914 = vector.shape_cast %1712 : vector<2x16xf32> to vector<1x2x16xf32>
    tpu.vector_store %arg25[%c0_975, %c0_976, %c0_977], %1914 {strides = array<i32>} : memref<2x2x16xf32, #tpu.memory_space<vmem>>, vector<1x2x16xf32>,
    %c0_978 = arith.constant 0 : index
    %c0_979 = arith.constant 0 : index
    %c0_980 = arith.constant 0 : index
    %1915 = vector.load %arg26[%c0_978, %c0_979, %c0_980] : memref<2x2x2xf32, #tpu.memory_space<vmem>>, vector<1x2x2xf32>
    %1916 = vector.shape_cast %1915 : vector<1x2x2xf32> to vector<2x2xf32>
    %1917 = vector.shape_cast %1695 : vector<2x2xf32> to vector<1x2x2xf32>
    tpu.vector_store %arg26[%c0_978, %c0_979, %c0_980], %1917 {strides = array<i32>} : memref<2x2x2xf32, #tpu.memory_space<vmem>>, vector<1x2x2xf32>,
    %c1_981 = arith.constant 1 : index
    %c0_982 = arith.constant 0 : index
    %c0_983 = arith.constant 0 : index
    %1918 = vector.load %arg24[%c1_981, %c0_982, %c0_983] : memref<2x2x128xf32, #tpu.memory_space<vmem>>, vector<1x2x128xf32>
    %1919 = vector.shape_cast %1918 : vector<1x2x128xf32> to vector<2x128xf32>
    %1920 = vector.shape_cast %1860 : vector<2x128xf32> to vector<1x2x128xf32>
    tpu.vector_store %arg24[%c1_981, %c0_982, %c0_983], %1920 {strides = array<i32>} : memref<2x2x128xf32, #tpu.memory_space<vmem>>, vector<1x2x128xf32>,
    %c1_984 = arith.constant 1 : index
    %c0_985 = arith.constant 0 : index
    %c0_986 = arith.constant 0 : index
    %1921 = vector.load %arg25[%c1_984, %c0_985, %c0_986] : memref<2x2x16xf32, #tpu.memory_space<vmem>>, vector<1x2x16xf32>
    %1922 = vector.shape_cast %1921 : vector<1x2x16xf32> to vector<2x16xf32>
    %1923 = vector.shape_cast %1863 : vector<2x16xf32> to vector<1x2x16xf32>
    tpu.vector_store %arg25[%c1_984, %c0_985, %c0_986], %1923 {strides = array<i32>} : memref<2x2x16xf32, #tpu.memory_space<vmem>>, vector<1x2x16xf32>,
    %c1_987 = arith.constant 1 : index
    %c0_988 = arith.constant 0 : index
    %c0_989 = arith.constant 0 : index
    %1924 = vector.load %arg26[%c1_987, %c0_988, %c0_989] : memref<2x2x2xf32, #tpu.memory_space<vmem>>, vector<1x2x2xf32>
    %1925 = vector.shape_cast %1924 : vector<1x2x2xf32> to vector<2x2xf32>
    %1926 = vector.shape_cast %1846 : vector<2x2xf32> to vector<1x2x2xf32>
    tpu.vector_store %arg26[%c1_987, %c0_988, %c0_989], %1926 {strides = array<i32>} : memref<2x2x2xf32, #tpu.memory_space<vmem>>, vector<1x2x2xf32>,
    return
  }
  func.func @transform_0(%arg0: i32) -> (i32, i32) {
    %c0_i32 = arith.constant 0 : i32
    %c0_i32_0 = arith.constant 0 : i32
    %c0_i32_1 = arith.constant 0 : i32
    return %c0_i32, %c0_i32_0 : i32, i32
  }
  func.func @transform_1(%arg0: i32) -> (i32, i32, i32) {
    %c0_i32 = arith.constant 0 : i32
    %c0_i32_0 = arith.constant 0 : i32
    %c0_i32_1 = arith.constant 0 : i32
    %c0_i32_2 = arith.constant 0 : i32
    return %c0_i32, %c0_i32_0, %c0_i32_1 : i32, i32, i32
  }
  func.func @transform_2(%arg0: i32) -> (i32, i32, i32) {
    %c0_i32 = arith.constant 0 : i32
    %c0_i32_0 = arith.constant 0 : i32
    %c0_i32_1 = arith.constant 0 : i32
    %c0_i32_2 = arith.constant 0 : i32
    return %c0_i32, %c0_i32_0, %c0_i32_1 : i32, i32, i32
  }
  func.func @transform_3(%arg0: i32) -> (i32, i32, i32) {
    %c0_i32 = arith.constant 0 : i32
    %c0_i32_0 = arith.constant 0 : i32
    %c0_i32_1 = arith.constant 0 : i32
    %c0_i32_2 = arith.constant 0 : i32
    return %c0_i32, %c0_i32_0, %c0_i32_1 : i32, i32, i32
  }
  func.func @transform_4(%arg0: i32) -> (i32, i32) {
    %c0_i32 = arith.constant 0 : i32
    %c0_i32_0 = arith.constant 0 : i32
    %c0_i32_1 = arith.constant 0 : i32
    return %c0_i32, %c0_i32_0 : i32, i32
  }
  func.func @transform_5(%arg0: i32) -> (i32, i32) {
    %c0_i32 = arith.constant 0 : i32
    %c0_i32_0 = arith.constant 0 : i32
    %c0_i32_1 = arith.constant 0 : i32
    return %c0_i32, %c0_i32_0 : i32, i32
  }
  func.func @transform_6(%arg0: i32) -> (i32, i32) {
    %c0_i32 = arith.constant 0 : i32
    %c0_i32_0 = arith.constant 0 : i32
    %c0_i32_1 = arith.constant 0 : i32
    return %c0_i32, %c0_i32_0 : i32, i32
  }
  func.func @transform_7(%arg0: i32) -> (i32, i32) {
    %c0_i32 = arith.constant 0 : i32
    %c0_i32_0 = arith.constant 0 : i32
    %c0_i32_1 = arith.constant 0 : i32
    return %c0_i32, %c0_i32_0 : i32, i32
  }
  func.func @transform_8(%arg0: i32) -> (i32, i32, i32) {
    %c0_i32 = arith.constant 0 : i32
    %c0_i32_0 = arith.constant 0 : i32
    %c0_i32_1 = arith.constant 0 : i32
    %c0_i32_2 = arith.constant 0 : i32
    return %c0_i32, %c0_i32_0, %c0_i32_1 : i32, i32, i32
  }
  func.func @transform_9(%arg0: i32) -> (i32, i32, i32) {
    %c0_i32 = arith.constant 0 : i32
    %c0_i32_0 = arith.constant 0 : i32
    %c0_i32_1 = arith.constant 0 : i32
    %c0_i32_2 = arith.constant 0 : i32
    return %c0_i32, %c0_i32_0, %c0_i32_1 : i32, i32, i32
  }
  func.func @transform_10(%arg0: i32) -> (i32, i32, i32) {
    %c0_i32 = arith.constant 0 : i32
    %c0_i32_0 = arith.constant 0 : i32
    %c0_i32_1 = arith.constant 0 : i32
    %c0_i32_2 = arith.constant 0 : i32
    return %c0_i32, %c0_i32_0, %c0_i32_1 : i32, i32, i32
  }
  func.func @transform_11(%arg0: i32) -> (i32, i32, i32) {
    %c0_i32 = arith.constant 0 : i32
    %c0_i32_0 = arith.constant 0 : i32
    %c0_i32_1 = arith.constant 0 : i32
    %c0_i32_2 = arith.constant 0 : i32
    return %c0_i32, %c0_i32_0, %c0_i32_1 : i32, i32, i32
  }
  func.func @transform_12(%arg0: i32) -> (i32, i32, i32) {
    %c0_i32 = arith.constant 0 : i32
    %c0_i32_0 = arith.constant 0 : i32
    %c0_i32_1 = arith.constant 0 : i32
    %c0_i32_2 = arith.constant 0 : i32
    return %c0_i32, %c0_i32_0, %c0_i32_1 : i32, i32, i32
  }
  func.func @transform_13(%arg0: i32) -> (i32, i32, i32) {
    %c0_i32 = arith.constant 0 : i32
    %c0_i32_0 = arith.constant 0 : i32
    %c0_i32_1 = arith.constant 0 : i32
    %c0_i32_2 = arith.constant 0 : i32
    return %c0_i32, %c0_i32_0, %c0_i32_1 : i32, i32, i32
  }
  func.func @transform_14(%arg0: i32) -> (i32, i32, i32) {
    %c0_i32 = arith.constant 0 : i32
    %c0_i32_0 = arith.constant 0 : i32
    %c0_i32_1 = arith.constant 0 : i32
    %c0_i32_2 = arith.constant 0 : i32
    return %c0_i32, %c0_i32_0, %c0_i32_1 : i32, i32, i32
  }
  func.func @transform_15(%arg0: i32) -> (i32, i32, i32) {
    %c0_i32 = arith.constant 0 : i32
    %c0_i32_0 = arith.constant 0 : i32
    %c0_i32_1 = arith.constant 0 : i32
    %c0_i32_2 = arith.constant 0 : i32
    return %c0_i32, %c0_i32_0, %c0_i32_1 : i32, i32, i32
  }
  func.func @transform_16(%arg0: i32) -> (i32, i32, i32) {
    %c0_i32 = arith.constant 0 : i32
    %c0_i32_0 = arith.constant 0 : i32
    %c0_i32_1 = arith.constant 0 : i32
    %c0_i32_2 = arith.constant 0 : i32
    return %c0_i32, %c0_i32_0, %c0_i32_1 : i32, i32, i32
  }
  func.func @transform_17(%arg0: i32) -> (i32, i32, i32) {
    %c0_i32 = arith.constant 0 : i32
    %c0_i32_0 = arith.constant 0 : i32
    %c0_i32_1 = arith.constant 0 : i32
    %c0_i32_2 = arith.constant 0 : i32
    return %c0_i32, %c0_i32_0, %c0_i32_1 : i32, i32, i32
  }
  func.func @transform_18(%arg0: i32) -> (i32, i32, i32) {
    %c0_i32 = arith.constant 0 : i32
    %c0_i32_0 = arith.constant 0 : i32
    %c0_i32_1 = arith.constant 0 : i32
    %c0_i32_2 = arith.constant 0 : i32
    return %c0_i32, %c0_i32_0, %c0_i32_1 : i32, i32, i32
  }
  func.func @transform_19(%arg0: i32) -> (i32, i32, i32) {
    %c0_i32 = arith.constant 0 : i32
    %c0_i32_0 = arith.constant 0 : i32
    %c0_i32_1 = arith.constant 0 : i32
    %c0_i32_2 = arith.constant 0 : i32
    return %c0_i32, %c0_i32_0, %c0_i32_1 : i32, i32, i32
  }
  func.func @transform_20(%arg0: i32) -> (i32, i32, i32) {
    %c0_i32 = arith.constant 0 : i32
    %c0_i32_0 = arith.constant 0 : i32
    %c0_i32_1 = arith.constant 0 : i32
    %c0_i32_2 = arith.constant 0 : i32
    return %c0_i32, %c0_i32_0, %c0_i32_1 : i32, i32, i32
  }
  func.func @transform_21(%arg0: i32) -> (i32, i32, i32) {
    %c0_i32 = arith.constant 0 : i32
    %c0_i32_0 = arith.constant 0 : i32
    %c0_i32_1 = arith.constant 0 : i32
    %c0_i32_2 = arith.constant 0 : i32
    return %c0_i32, %c0_i32_0, %c0_i32_1 : i32, i32, i32
  }
  func.func @transform_22(%arg0: i32) -> (i32, i32) {
    %c0_i32 = arith.constant 0 : i32
    %c0_i32_0 = arith.constant 0 : i32
    %c0_i32_1 = arith.constant 0 : i32
    return %c0_i32, %c0_i32_0 : i32, i32
  }
  func.func @transform_23(%arg0: i32) -> (i32, i32, i32) {
    %c0_i32 = arith.constant 0 : i32
    %c0_i32_0 = arith.constant 0 : i32
    %c0_i32_1 = arith.constant 0 : i32
    %c0_i32_2 = arith.constant 0 : i32
    return %c0_i32, %c0_i32_0, %c0_i32_1 : i32, i32, i32
  }
  func.func @transform_24(%arg0: i32) -> (i32, i32, i32) {
    %c0_i32 = arith.constant 0 : i32
    %c0_i32_0 = arith.constant 0 : i32
    %c0_i32_1 = arith.constant 0 : i32
    %c0_i32_2 = arith.constant 0 : i32
    return %c0_i32, %c0_i32_0, %c0_i32_1 : i32, i32, i32
  }
  func.func @transform_25(%arg0: i32) -> (i32, i32, i32) {
    %c0_i32 = arith.constant 0 : i32
    %c0_i32_0 = arith.constant 0 : i32
    %c0_i32_1 = arith.constant 0 : i32
    %c0_i32_2 = arith.constant 0 : i32
    return %c0_i32, %c0_i32_0, %c0_i32_1 : i32, i32, i32
  }
}

</mosaic_0001>

<bundles_post_ra>
// kernel: xlstm_forward.1
= control target key start
LH: loop header
LB: loop body
LE: loop exit
PB: predicated region body
PF: predicated region fallthrough
CT: control target
= control target key end

     0   :  { %s24002_s0 = inlined_call_operand.vmem [shape: f32[16,16], index: 0, kind: input, shape index: {}]   ;;  %s24003_s1 = inlined_call_operand.vmem [shape: f32[2,2,128], index: 1, kind: input, shape index: {}]   ;;  %s24004_s2 = inlined_call_operand.vmem [shape: f32[2,2,16], index: 2, kind: input, shape index: {}]   ;;  %s24005_s3 = inlined_call_operand.vmem [shape: f32[2,2,2], index: 3, kind: input, shape index: {}]   ;;  %s24006_s4 = inlined_call_operand.vmem [shape: f32[2,16], index: 4, kind: input, shape index: {}]   ;;  %s24007_s5 = inlined_call_operand.vmem [shape: f32[16,128], index: 5, kind: input, shape index: {}]   ;;  %s24008_s6 = inlined_call_operand.vmem [shape: f32[16,128], index: 6, kind: input, shape index: {}]   ;;  %s24009_s7 = inlined_call_operand.vmem [shape: f32[2,144], index: 7, kind: input, shape index: {}]   ;;  %s24010_s8 = inlined_call_operand.vmem [shape: f32[2,1,16], index: 8, kind: input, shape index: {}]   ;;  %s24011_s9 = inlined_call_operand.vmem [shape: f32[2,1,16], index: 9, kind: input, shape index: {}]   ;;  %s24012_s10 = inlined_call_operand.vmem [shape: f32[2,16,48], index: 10, kind: input, shape index: {}]   ;;  %s24013_s11 = inlined_call_operand.vmem [shape: f32[2,1,48], index: 11, kind: input, shape index: {}]   ;;  %s24014_s12 = inlined_call_operand.vmem [shape: f32[2,32,32], index: 12, kind: input, shape index: {}]   ;;  %s24015_s13 = inlined_call_operand.vmem [shape: f32[2,1,1], index: 13, kind: input, shape index: {}]   ;;  %s24016_s14 = inlined_call_operand.vmem [shape: f32[2,32,52], index: 14, kind: input, shape index: {}]   ;;  %s24017_s15 = inlined_call_operand.vmem [shape: f32[2,1,52], index: 15, kind: input, shape index: {}]   ;;  %s24018_s16 = inlined_call_operand.vmem [shape: f32[2,32,32], index: 16, kind: input, shape index: {}]   ;;  %s24019_s17 = inlined_call_operand.vmem [shape: f32[2,1,32], index: 17, kind: input, shape index: {}]   ;;  %s24020_s18 = inlined_call_operand.vmem [shape: f32[2,1,16], index: 18, kind: input, shape index: {}]   ;;  %s24021_s19 = inlined_call_operand.vmem [shape: f32[2,1,16], index: 19, kind: input, shape index: {}]   ;;  %s24022_s20 = inlined_call_operand.vmem [shape: f32[2,16,16], index: 20, kind: input, shape index: {}]   ;;  %s24023_s21 = inlined_call_operand.vmem [shape: f32[2,1,16], index: 21, kind: input, shape index: {}]   ;;  %s24024_s22 = inlined_call_operand.hbm [shape: f32[16,16], index: 22, kind: output, shape index: {0}]   ;;  %s24025_s23 = inlined_call_operand.vmem [shape: f32[2,2,128], index: 23, kind: output, shape index: {1}]   ;;  %s24026_s24 = inlined_call_operand.vmem [shape: f32[2,2,16], index: 24, kind: output, shape index: {2}]   ;;  %s24027_s25 = inlined_call_operand.hbm [shape: f32[2,2,2], index: 25, kind: output, shape index: {3}]  }
   0x1   :  { %24061 = sst [smem:[#allocation11_spill]] %s24002_s0 }
   0x2   :  { %24062 = sst [smem:[#allocation12_spill]] %s24003_s1 }
   0x3   :  { %24063 = sst [smem:[#allocation13_spill]] %s24004_s2 }
   0x4   :  { %24064 = sst [smem:[#allocation14_spill]] %s24005_s3 }
   0x5   :  { %24065 = sst [smem:[#allocation15_spill]] %s24006_s4 }
   0x6   :  { %24066 = sst [smem:[#allocation16_spill]] %s24007_s5 }
   0x7   :  { %24067 = sst [smem:[#allocation17_spill]] %s24008_s6 }
   0x8   :  { %24068 = sst [smem:[#allocation18_spill]] %s24009_s7 }
   0x9   :  { %24069 = sst [smem:[#allocation19_spill]] %s24010_s8 }
   0xa   :  { %24070 = sst [smem:[#allocation20_spill]] %s24011_s9 }
   0xb   :  { %24071 = sst [smem:[#allocation21_spill]] %s24024_s22 }
   0xc   :  { %24072 = sst [smem:[#allocation22_spill]] %s24027_s25 }
   0xd   :  { %31 = vsyncpa [#allocation3], 0  ;;  %s24073_s6 = sld [smem:[#allocation11_spill]]  ;;  %vm81_vm0 = vcmask 130048  }
  0x13   :  { %v21421_v0 = vld [vmem:[%s24073_s6] sm:$0xff]  ;;  %v78_v1 = vld [vmem:[%s24073_s6 + $0x8] sm:$0xff] }
  0x14   :  { %32 = vsyncpa [#allocation5], 0  ;;  %v82_v2 = vsel %vm81_vm0, %v21421_v0, 0.0  ;;  %v85_v3 = vsel %vm81_vm0, %v78_v1, 0.0  ;;  %v125_v14 = vld [vmem:[%s24012_s10] sm:$0xff]  ;;  %v126_v15 = vld [vmem:[%s24012_s10 + $0x8] sm:$0xff] }
  0x15   :  { %83 = vadd.xlane.f32.xlu0 %v82_v2  ;;  %v20528_v16 = vpack.c.bf16 %v126_v15, %v125_v14  ;;  %v215_v17 = vld [vmem:[%s24014_s12] sm:$0xff]  ;;  %v216_v18 = vld [vmem:[%s24014_s12 + $0x8] sm:$0xff]  ;;  %s24074_s29 = sld [smem:[#allocation19_spill]]  ;;  %s24075_s7 = sld [smem:[#allocation20_spill]]  ;;  %v217_v36 = vld [vmem:[%s24014_s12 + $0x10] sm:$0xff]  ;;  %v21272_v43 = vmov 0  }
  0x16   :  { %v20532_v19 = vpack.c.bf16 %v216_v18, %v215_v17  ;;  %v218_v37 = vld [vmem:[%s24014_s12 + $0x18] sm:$0xff]  ;;  %v417_v39 = vld [vmem:[%s24018_s16] sm:$0xff]  ;;  %v418_v40 = vld [vmem:[%s24018_s16 + $0x8] sm:$0xff]  ;;  %20920 = vset.pattern.permute.xlu0 %v21272_v43  ;;  %vm229_vm1 = vcmask 261120   ;;  %s24077_s28 = sld [smem:[#allocation17_spill]]  ;;  %s24078_s9 = sld [smem:[#allocation14_spill]] }
  0x17   :  { %20529 = vmatprep.subr.bf16.mxu0 %v20528_v16  ;;  %v20536_v38 = vpack.c.bf16 %v218_v37, %v217_v36  ;;  %v20548_v41 = vpack.c.bf16 %v418_v40, %v417_v39  ;;  %v18289_v42 = vld [vmem:[%s24015_s13] ss:$0 sm:$0xff]  ;;  %v419_v46 = vld [vmem:[%s24018_s16 + $0x10] sm:$0xff]  ;;  %v420_v47 = vld [vmem:[%s24018_s16 + $0x18] sm:$0xff]  ;;  %s24046_s5 = smov 50   ;;  %s24080_s26 = sld [smem:[#allocation16_spill]] }
  0x18   :  { %20531 = vmatpush3.bf16.msra.mxu0 %v20528_v16  ;;  %20533 = vmatprep.subr.bf16.mxu1 %v20532_v19  ;;  %v18286_v44 = vld [vmem:[%s24013_s11] ss:$0 sm:$0xff]  ;;  %v20552_v51 = vpack.c.bf16 %v420_v47, %v419_v46  ;;  %v326_v56 = vld [vmem:[%s24016_s14 + $0x8] sm:$0xff]  ;;  %v327_v58 = vld [vmem:[%s24016_s14 + $0x10] sm:$0xff]  ;;  %s24042_s0 = smov 126   ;;  %s24081_s3 = sld [smem:[#allocation18_spill]] }
  0x19   :  { %86 = vadd.xlane.f32.xlu0 %v85_v3  ;;  %20535 = vmatpush3.bf16.msra.mxu1 %v20532_v19  ;;  %v325_v55 = vld [vmem:[%s24016_s14] sm:$0xff]  ;;  %v328_v59 = vld [vmem:[%s24016_s14 + $0x18] sm:$0xff]  ;;  %vm826_vm2 = vcmask 1041408   ;;  %s24040_s1 = smov 78   ;;  %vm823_vm3 = vcmask 15360   ;;  %s24038_s8 = smov 80  }
  0x1a   :  { %20537 = vmatprep.subr.bf16.mxu1 %v20536_v38  ;;  %v20540_v57 = vpack.c.bf16 %v326_v56, %v325_v55  ;;  %v20544_v60 = vpack.c.bf16 %v328_v59, %v327_v58  ;;  %s24083_s2 = sld [smem:[#allocation15_spill]]  ;;  %vm21281_vm4 = vmmov 0   ;;  %s24084_s4 = sld [smem:[#allocation12_spill]]  ;;  %vm1646_vm5 = vcmask 123904  }
  0x1b   :  { %v18284_v27 = vld [vmem:[%s24074_s29] ss:$0 sm:$0xff]  ;;  %s24087_s25 = smov 50   ;;  %s24091_s27 = smov 80   ;;  %vm18218_vm6 = vcmask 1043456   ;;  %vm18220_vm7 = vcmask 1045504  }
  0x1c   :  { %v18285_v29 = vld [vmem:[%s24075_s7] ss:$0 sm:$0xff]  ;;  %v682_v53 = vld [vmem:[%s24077_s28 + $0x8] sm:$0xff]  ;;  %20541 = vmatprep.subr.bf16.mxu0 %v20540_v57  ;;  %vm18232_vm8 = vcmask 15366   ;;  %vm18242_vm9 = vcmask 9216  }
  0x1d   :  { %20539 = vmatpush3.bf16.msra.mxu1 %v20536_v38  ;;  %v681_v52 = vld [vmem:[%s24077_s28] sm:$0xff]  ;;  %s24044_s28 = smov 2   ;;  %v24059_v38 = vmov 0.0  }
  0x1e   :  { %20549 = vmatprep.subr.bf16.mxu1 %v20548_v41  ;;  %v21494_v54 = vpack.c.bf16 %v682_v53, %v681_v52  ;;  %v782_v61 = vld [vmem:[%s24078_s9] sm:$0x3] }
  0x1f   :  { %v515_v19 = vld [vmem:[%s24080_s26] sm:$0xff] }
  0x20   :  { %v21613_v53 = vld [vmem:[%s24083_s2] sm:$0x3] }
  0x2f   :  { %226 = vperm.xlu0 %20920, %v18289_v42  }
  0xa2   :  { %v84_v4 = vpop.xlane.xlu0 %83 }
  0xa3   :  { %v89_v5 = vmul.f32 0.0625, %v84_v4 }
  0xa5   :  { %v91_v6 = vsub.f32 %v21421_v0, %v89_v5 }
  0xa6   :  { %v87_v7 = vpop.xlane.xlu0 %86 }
  0xa7   :  { %v90_v8 = vmul.f32 0.0625, %v87_v7  ;;  %v93_v9 = vmul.f32 %v91_v6, %v91_v6 }
  0xa9   :  { %v92_v10 = vsub.f32 %v78_v1, %v90_v8  ;;  %v95_v11 = vsel %vm81_vm0, %v93_v9, 0.0 }
  0xaa   :  { %96 = vadd.xlane.f32.xlu1 %v95_v11 }
  0xab   :  { %v94_v12 = vmul.f32 %v92_v10, %v92_v10 }
  0xad   :  { %v98_v13 = vsel %vm81_vm0, %v94_v12, 0.0 }
  0xae   :  { %99 = vadd.xlane.f32.xlu1 %v98_v13  ;;  %v227_v62 = vpop.permute.xlu0 %226 }
  0xbf   :  { %792 = vrot.lane.b32.xlu1 %v782_v61, %s24046_s5  ;;  %v780_v61 = vld [vmem:[%s24084_s4] sm:$0x3]  ;;  %s24086_s5 = smov 112  }
 0x137   :  { %v97_v20 = vpop.xlane.xlu1 %96 }
 0x138   :  { %v101_v21 = vmul.f32 0.0625, %v97_v20  ;;  %v516_v20 = vld [vmem:[%s24080_s26 + $0x8] sm:$0xff]  ;;  %s24047_s26 = smov 112  }
 0x13a   :  { %v103_v22 = vadd.f32 1e-05, %v101_v21  ;;  %v21533_v21 = vpack.c.bf16 %v516_v20, %v515_v19 }
 0x13b   :  { %v100_v23 = vpop.xlane.xlu1 %99 }
 0x13c   :  { %20921 = vrsqrt.f32 %v103_v22  ;;  %v102_v24 = vmul.f32 0.0625, %v100_v23 }
 0x13e   :  { %v104_v25 = vadd.f32 1e-05, %v102_v24  ;;  %v18294_v24 = vld [vmem:[%s24017_s15] ss:$0 sm:$0xff] }
 0x140   :  { %20923 = vrsqrt.f32 %v104_v25 }
 0x146   :  { %v20922_v26 = vpop.eup %20921 }
 0x147   :  { %v107_v28 = vmul.f32 %v20922_v26, %v91_v6  ;;  %v18297_v6 = vld [vmem:[%s24019_s17] ss:$0 sm:$0xff] }
 0x149   :  { %v115_v30 = vmul.f32 %v18284_v27, %v107_v28 }
 0x14a   :  { %v20924_v31 = vpop.eup %20923 }
 0x14b   :  { %v108_v32 = vmul.f32 %v20924_v31, %v92_v10  ;;  %v123_v33 = vadd.f32 %v18285_v29, %v115_v30 }
 0x14d   :  { %v116_v34 = vmul.f32 %v18284_v27, %v108_v32  ;;  %19279 = vmatprep.mubr.msk.f32.mxu0 %vm81_vm0, %v123_v33 }
 0x14f   :  { %v124_v35 = vadd.f32 %v18285_v29, %v116_v34  ;;  %v793_v29 = vpop.permute.xlu1 %792  ;;  %v21569_v34 = vld.sshfl [vmem:[%s24081_s3] sm:$0x33 pattern:$0x76325410] }
 0x151   :  { %19280 = vmatmul.mubr.msk.f32.vlgmr.msra.gmra.mrb[0].mxu0 %vm81_vm0, %v124_v35  ;;  %v21573_v35 = vcombine.high %v21569_v34, %v21569_v34 }
 0x152   :  { %20543 = vmatpush3.bf16.msra.mxu0 %v20540_v57 }
 0x153   :  { %20545 = vmatprep.subr.bf16.mxu0 %v20544_v60 }
 0x156   :  { %20547 = vmatpush3.bf16.msra.mxu0 %v20544_v60 }
 0x157   :  { %20557 = vmatprep.subr.bf16.mxu0 %v21533_v21 }
 0x224   :  { %v19281_v45 = vpop.f32.mrb[0].mxu0 }
 0x225   :  { %v206_v48 = vpop.f32.mrb[1].mxu0  ;;  %v21478_v50 = vadd.f32 %v19281_v45, %v18286_v44 }
 0x226   :  { %v21476_v49 = vadd.f32 %v18286_v44, %v206_v48 }
 0x227   :  { %24076 = vst [vmem:[#allocation8_spill] sm:$0xff] %v21478_v50 }
 0x228   :  { %19290 = vmatprep.mubr.msk.f32.mxu1 %vm229_vm1, %v21476_v49 }
 0x229   :  { %19291 = vmatmul.mubr.msk.f32.vlgmr.msra.gmra.mrb[0].mxu1 %vm229_vm1, %v21478_v50 }
 0x22a   :  { %20551 = vmatpush3.bf16.msra.mxu1 %v20548_v41  ;;  %19312 = vmatprep.mubr.msk.f32.mxu1 %vm229_vm1, %v21476_v49 }
 0x22b   :  { %20553 = vmatprep.subr.bf16.mxu1 %v20552_v51 }
 0x22e   :  { %20555 = vmatpush3.bf16.msra.mxu1 %v20552_v51  ;;  %v24053_v51 = vmov 0.0|0.0  }
 0x22f   :  { %20565 = vmatprep.subr.bf16.mxu1 %v21494_v54 }
 0x231   :  { %19313 = vmatmul.mubr.msk.f32.vlgmr.msra.gmra.mrb[2].mxu1 %vm229_vm1, %v21478_v50 }
 0x232   :  { %20567 = vmatpush3.bf16.msra.mxu1 %v21494_v54 }
 0x233   :  { %18317 = vmatprep.subr.msk.mxu1 %vm826_vm2, %v21573_v35 }
 0x2fc   :  { %v19292_v63 = vpop.f32.mrb[0].mxu1 }
 0x2fd   :  { %v308_v1 = vadd.f32 %v19292_v63, %v227_v62  ;;  %v302_v2 = vpop.f32.mrb[1].mxu1 }
 0x2fe   :  { %v303_v3 = vadd.f32 %v302_v2, %v227_v62 }
 0x2ff   :  { %v18293_v4 = vmul.f32 -1.442695, %v308_v1 }
 0x300   :  { %v18292_v5 = vmul.f32 -1.442695, %v303_v3 }
 0x301   :  { %20925 = vpow2.f32 %v18293_v4 }
 0x302   :  { %20927 = vpow2.f32 %v18292_v5 }
 0x304   :  { %v19314_v7 = vpop.f32.mrb[2].mxu1 }
 0x305   :  { %v494_v8 = vpop.f32.mrb[3].mxu1  ;;  %v21519_v10 = vadd.f32 %v19314_v7, %v18297_v6 }
 0x306   :  { %v21517_v9 = vadd.f32 %v18297_v6, %v494_v8 }
 0x307   :  { %24079 = vst [vmem:[#allocation9_spill] sm:$0xff] %v21519_v10 }
 0x308   :  { %19333 = vmatprep.mubr.msk.f32.mxu1 %vm81_vm0, %v21517_v9 }
 0x309   :  { %19334 = vmatmul.mubr.msk.f32.vlgmr.msra.gmra.mrb[4].mxu1 %vm81_vm0, %v21519_v10 }
 0x30a   :  { %18318 = vmatpush1.msk.msra.mxu1 %vm826_vm2, %v21569_v34  ;;  %971 = vmatprep.mubr.f32.mxu1 %v24059_v38 }
 0x30b   :  { %v20926_v11 = vpop.eup %20925  ;;  %19343 = vmatprep.subr.mxu1 %v24059_v38 }
 0x30c   :  { %v20928_v12 = vpop.eup %20927  ;;  %v318_v13 = vadd.f32 1.0, %v20926_v11 }
 0x30d   :  { %v317_v14 = vadd.f32 1.0, %v20928_v12 }
 0x30e   :  { %20929 = vrcp.f32 %v318_v13 }
 0x30f   :  { %20931 = vrcp.f32 %v317_v14 }
 0x318   :  { %v20930_v15 = vpop.eup %20929 }
 0x319   :  { %v20932_v16 = vpop.eup %20931  ;;  %v324_v18 = vmul.f32 %v20930_v15, %v308_v1 }
 0x31a   :  { %v323_v17 = vmul.f32 %v20932_v16, %v303_v3 }
 0x31c   :  { %19301 = vmatprep.mubr.msk.f32.mxu0 %vm229_vm1, %v323_v17 }
 0x31d   :  { %19302 = vmatmul.mubr.msk.f32.vlgmr.msra.gmra.mrb[2].mxu0 %vm229_vm1, %v324_v18 }
 0x31e   :  { %20559 = vmatpush3.bf16.msra.mxu0 %v21533_v21 }
 0x31f   :  { %20561 = vmatprep.subr.bf16.mxu0 %v21533_v21 }
 0x3dc   :  { %v21538_v22 = vpop.f32.mrb[4].mxu1 }
 0x3dd   :  { %v21540_v23 = vpop.f32.mrb[5].mxu1 }
 0x3f0   :  { %v19303_v25 = vpop.f32.mrb[2].mxu0 }
 0x3f1   :  { %v408_v26 = vpop.f32.mrb[3].mxu0  ;;  %v21547_v28 = vadd.f32 %v19303_v25, %v18294_v24 }
 0x3f2   :  { %v21545_v27 = vadd.f32 %v18294_v24, %v408_v26 }
 0x3f4   :  { %796 = vrot.lane.b32.xlu1 %v21545_v27, %s24044_s28  ;;  %19319 = vmatprep.mubr.msk.f32.mxu0 %vm81_vm0, %v21545_v27  ;;  %v795_v30 = vadd.f32 %v793_v29, %v21545_v27  ;;  %s24088_s28 = smov 2  }
 0x3f5   :  { %19320 = vmatmul.mubr.msk.f32.vlgmr.msra.gmra.mrb[4].mxu0 %vm81_vm0, %v21547_v28 }
 0x3f6   :  { %20563 = vmatpush3.bf16.msra.mxu0 %v21533_v21 }
 0x3f7   :  { %18314 = vmatprep.subr.msk.mxu0 %vm826_vm2, %v21573_v35 }
 0x466   :  { %v21557_v31 = vpop.permute.xlu1 %796 }
 0x467   :  { %v21560_v32 = vmax.f32 %v795_v30, %v21557_v31 }
 0x469   :  { %801 = vrot.lane.b32.xlu1 %v21560_v32, %s24042_s0  ;;  %v807_v33 = vsub.f32 %v21545_v27, %v21560_v32  ;;  %s24085_s0 = sld [smem:[#allocation13_spill]] }
 0x46b   :  { %v808_v36 = vadd.f32 %v807_v33, %v793_v29 }
 0x46d   :  { %v809_v37 = vmul.f32 1.442695, %v808_v36  ;;  %598 = vrot.lane.b32.xlu1 %v21545_v27, %s24047_s26 }
 0x46f   :  { %20933 = vpow2.f32 %v809_v37  ;;  %v781_v62 = vld [vmem:[%s24085_s0] sm:$0x3] }
 0x471   :  { %600 = vrot.lane.b32.xlu1 %v21547_v28, %s24047_s26 }
 0x479   :  { %v20934_v39 = vpop.eup %20933 }
 0x47a   :  { %812 = vrot.lane.b32.xlu1 %v20934_v39, %s24040_s1  ;;  %s24049_s1 = smov 16  }
 0x4c8   :  { %v21588_v40 = vpop.f32.mrb[4].mxu0 }
 0x4c9   :  { %24082 = vst [vmem:[#allocation10_spill] sm:$0xff] %v21588_v40  ;;  %v21590_v41 = vpop.f32.mrb[5].mxu0 }
 0x4db   :  { %v802_v42 = vpop.permute.xlu1 %801 }
 0x4dc   :  { %v804_v43 = vsub.f32 %v21545_v27, %v802_v42 }
 0x4de   :  { %v805_v44 = vmul.f32 1.442695, %v804_v43 }
 0x4df   :  { %v21593_v45 = vpop.permute.xlu1 %598 }
 0x4e0   :  { %20935 = vpow2.f32 %v805_v44  ;;  %19326 = vmatprep.mubr.msk.f32.mxu0 %vm81_vm0, %v21593_v45  ;;  %v18308_v44 = vmul.f32 -1.442695, %v21476_v49 }
 0x4e3   :  { %v21597_v46 = vpop.permute.xlu1 %600 }
 0x4e4   :  { %19327 = vmatmul.mubr.msk.f32.vlgmr.msra.gmra.mrb[6].mxu0 %vm81_vm0, %v21597_v46 }
 0x4e5   :  { %18315 = vmatpush1.msk.msra.mxu0 %vm826_vm2, %v21569_v34  ;;  %895 = vmatprep.mubr.f32.mxu0 %v24059_v38 }
 0x4e6   :  { %20568 = vmatprep.subr.bf16.mxu0 %v24053_v51 }
 0x4ea   :  { %v20936_v47 = vpop.eup %20935 }
 0x4eb   :  { %903 = vrot.lane.b32.xlu1 %v20936_v47, %s24038_s8 }
 0x4ec   :  { %v813_v48 = vpop.permute.xlu1 %812 }
 0x4ed   :  { %18316 = vmatmul.mubr.msk.f32.vlgmr.msra.gmra.mrb[8].mxu0 %vm823_vm3, %v813_v48 }
 0x4ee   :  { %20570 = vmatpush3.bf16.xpose.msra.mxu0 %v21494_v54  ;;  %19340 = vmatprep.mubr.msk.f32.mxu0 %vm21281_vm4, %v24059_v38 }
 0x4ef   :  { %19353 = vmatprep.subr.mxu0 %v24059_v38 }
 0x55d   :  { %v904_v52 = vpop.permute.xlu1 %903 }
 0x55e   :  { %18319 = vmatmul.mubr.msk.f32.vlgmr.msra.gmra.mrb[6].mxu1 %vm823_vm3, %v904_v52 }
 0x55f   :  { %19344 = vmatpush3.xpose.msk.msra.mxu1 %vm81_vm0, %v21613_v53  ;;  %19345 = vmatprep.mubr.msk.f32.mxu1 %vm21281_vm4, %v24059_v38 }
 0x560   :  { %19348 = vmatprep.subr.mxu1 %v24059_v38 }
 0x5b7   :  { %v19328_v55 = vpop.f32.mrb[6].mxu0 }
 0x5b8   :  { %v21618_v56 = vmul.f32 %v21538_v22, %v19328_v55  ;;  %v672_v57 = vpop.f32.mrb[7].mxu0  ;;  %v18300_v22 = vmul.f32 -1.442695, %v21517_v9 }
 0x5b9   :  { %v21625_v58 = vmul.f32 %v21540_v23, %v672_v57 }
 0x5c0   :  { %v897_v59 = vpop.f32.mrb[8].mxu0 }
 0x5c1   :  { %v899_v60 = vpop.f32.mrb[9].mxu0  ;;  %v978_v1 = vmul.f32 %v897_v59, %v780_v61  ;;  %v18332_v59 = vld [vmem:[%s24020_s18] ss:$0 sm:$0xff] }
 0x5c2   :  { %v981_v4 = vmul.f32 %v899_v60, %v781_v62 }
 0x631   :  { %v973_v63 = vpop.f32.mrb[6].mxu1 }
 0x632   :  { %v979_v2 = vmul.f32 %v973_v63, %v21625_v58  ;;  %v975_v3 = vpop.f32.mrb[7].mxu1 }
 0x633   :  { %v983_v5 = vmul.f32 %v975_v3, %v21593_v45 }
 0x634   :  { %v21636_v6 = vadd.f32 %v979_v2, %v978_v1 }
 0x635   :  { %v21638_v7 = vadd.f32 %v983_v5, %v981_v4 }
 0x636   :  { %v985_v8 = vmul.f32 %v21636_v6, %v21590_v41 }
 0x637   :  { %v1056_v11 = vmul.f32 %v21638_v7, %v21545_v27 }
 0x638   :  { %19341 = vmatmul.mubr.f32.vlgmr.msra.gmra.mrb[10].mxu0 %v985_v8  ;;  %v1558_v8 = vld [vmem:[%s24022_s20 + $0x8] sm:$0xff] }
 0x639   :  { %19346 = vmatmul.mubr.msk.f32.vlgmr.msra.gmra.mrb[8].mxu1 %vm81_vm0, %v1056_v11  ;;  %19354 = vmatpush3.xpose.msk.msra.mxu0 %vm81_vm0, %v21613_v53 }
 0x63a   :  { %19349 = vmatpush3.msk.msra.mxu1 %vm826_vm2, %v21613_v53  ;;  %19350 = vmatprep.mubr.msk.f32.mxu1 %vm21281_vm4, %v24059_v38 }
 0x63b   :  { %19355 = vmatprep.mubr.msk.f32.mxu0 %vm21281_vm4, %v24059_v38  ;;  %19358 = vmatprep.subr.mxu1 %v24059_v38 }
 0x63c   :  { %19363 = vmatprep.subr.mxu0 %v24059_v38 }
 0x70b   :  { %v1052_v12 = vpop.f32.mrb[10].mxu0 }
 0x70c   :  { %v1129_v13 = vpop.f32.mrb[8].mxu1  ;;  %1212 = vrot.lane.b32.xlu1 %v1052_v12, %s24049_s1  ;;  %v19342_v14 = vpop.f32.mrb[11].mxu0 }
 0x70d   :  { %v1133_v15 = vand.u32 2147483647, %v1129_v13  ;;  %v19347_v16 = vpop.f32.mrb[9].mxu1  ;;  %v18333_v13 = vld [vmem:[%s24021_s19] ss:$0 sm:$0xff] }
 0x70f   :  { %v1134_v17 = vmax.f32 %v1133_v15, 1.0 }
 0x711   :  { %20937 = vrcp.f32 %v1134_v17 }
 0x712   :  { %20939 = vpow2.f32 %v18300_v22 }
 0x71b   :  { %v20938_v18 = vpop.eup %20937 }
 0x71c   :  { %19351 = vmatmul.mubr.msk.f32.vlgmr.msra.gmra.mrb[10].mxu1 %vm823_vm3, %v20938_v18  ;;  %v20940_v23 = vpop.eup %20939 }
 0x71d   :  { %19359 = vmatpush3.msk.msra.mxu1 %vm826_vm2, %v21613_v53  ;;  %19360 = vmatprep.mubr.msk.f32.mxu1 %vm21281_vm4, %v24059_v38  ;;  %v509_v24 = vadd.f32 1.0, %v20940_v23 }
 0x71e   :  { %19368 = vmatprep.subr.mxu1 %v24059_v38 }
 0x71f   :  { %20941 = vrcp.f32 %v509_v24 }
 0x720   :  { %20943 = vpow2.f32 %v18308_v44 }
 0x729   :  { %v21664_v26 = vpop.eup %20941 }
 0x72a   :  { %v20944_v47 = vpop.eup %20943 }
 0x72b   :  { %v772_v48 = vadd.f32 1.0, %v20944_v47  ;;  %v18350_v47 = vld [vmem:[%s24015_s13 + $0x1] ss:$0 sm:$0xff]  ;;  %s24090_s13 = smov 78  }
 0x72d   :  { %20945 = vrcp.f32 %v772_v48  ;;  %v18341_v48 = vld [vmem:[%s24012_s10 + $0x18] sm:$0xff] }
 0x737   :  { %v20946_v60 = vpop.eup %20945 }
 0x738   :  { %v778_v61 = vmul.f32 %v20946_v60, %v21476_v49  ;;  %v1557_v49 = vld [vmem:[%s24022_s20] sm:$0xff] }
 0x739   :  { %v21701_v11 = vpack.c.bf16 %v1558_v8, %v1557_v49  ;;  %v21778_v49 = vld [vmem:[%s24075_s7 + $0x1] ss:$0 sm:$0xff] }
 0x77e   :  { %v1213_v25 = vpop.permute.xlu1 %1212 }
 0x77f   :  { %v1215_v29 = vmul.f32 %v21664_v26, %v1213_v25  ;;  %v21727_v25 = vld [vmem:[%s24023_s21] ss:$0 sm:$0xff] }
 0x7ef   :  { %v1207_v19 = vpop.f32.mrb[10].mxu1 }
 0x7f0   :  { %1217 = vrot.lane.b32.xlu0 %v1207_v19, %s24049_s1  ;;  %v19352_v20 = vpop.f32.mrb[11].mxu1 }
 0x862   :  { %v1218_v30 = vpop.permute.xlu0 %1217 }
 0x863   :  { %v1220_v33 = vmul.f32 %v1218_v30, %v1215_v29 }
 0x865   :  { %1222 = vrot.lane.b32.xlu1 %v1220_v33, %s24047_s26 }
 0x8d7   :  { %v1223_v36 = vpop.permute.xlu1 %1222 }
 0x8d8   :  { %19356 = vmatmul.mubr.msk.f32.vlgmr.msra.gmra.mrb[12].mxu0 %vm81_vm0, %v1223_v36 }
 0x8d9   :  { %19364 = vmatpush3.xpose.msk.msra.mxu0 %vm81_vm0, %v21613_v53  ;;  %19365 = vmatprep.mubr.msk.f32.mxu0 %vm21281_vm4, %v24059_v38 }
 0x8da   :  { %20571 = vmatprep.subr.bf16.mxu0 %v24053_v51 }
 0x9ab   :  { %v1292_v9 = vpop.f32.mrb[12].mxu0 }
 0x9ac   :  { %v1296_v37 = vmul.f32 0.125, %v1292_v9  ;;  %v19357_v39 = vpop.f32.mrb[13].mxu0 }
 0x9ae   :  { %19361 = vmatmul.mubr.msk.f32.vlgmr.msra.gmra.mrb[12].mxu1 %vm823_vm3, %v1296_v37 }
 0x9af   :  { %19369 = vmatpush3.msk.msra.mxu1 %vm826_vm2, %v21613_v53  ;;  %19370 = vmatprep.mubr.msk.f32.mxu1 %vm21281_vm4, %v24059_v38 }
 0x9b0   :  { %20574 = vmatprep.subr.bf16.mxu1 %v24053_v51 }
 0xa81   :  { %v1366_v42 = vpop.f32.mrb[12].mxu1 }
 0xa82   :  { %1371 = vrot.lane.b32.xlu0 %v1366_v42, %s24049_s1  ;;  %v19362_v43 = vpop.f32.mrb[13].mxu1 }
 0xaf4   :  { %v1372_v52 = vpop.permute.xlu0 %1371 }
 0xaf5   :  { %v1374_v55 = vsub.f32 %v1220_v33, %v1372_v52 }
 0xaf7   :  { %v1375_v57 = vmul.f32 %v1374_v55, %v1374_v55 }
 0xaf9   :  { %1377 = vrot.lane.b32.xlu1 %v1375_v57, %s24047_s26  ;;  %v18346_v57 = vld [vmem:[%s24014_s12 + $0x28] sm:$0xff] }
 0xafd   :  { %1537 = vrot.lane.b32.xlu1 %v18332_v59, %s24049_s1  ;;  %v18347_v59 = vld [vmem:[%s24014_s12 + $0x30] sm:$0xff] }
 0xb01   :  { %1553 = vrot.lane.b32.xlu1 %v778_v61, %s24047_s26  ;;  %v18348_v61 = vld [vmem:[%s24014_s12 + $0x38] sm:$0xff]  ;;  %s24089_s26 = smov 126  }
 0xb6b   :  { %v1378_v62 = vpop.permute.xlu1 %1377 }
 0xb6c   :  { %19366 = vmatmul.mubr.msk.f32.vlgmr.msra.gmra.mrb[14].mxu0 %vm81_vm0, %v1378_v62  ;;  %v21765_v62 = vpack.c.bf16 %v18348_v61, %v18347_v59  ;;  %v21854_v59 = vld [vmem:[%s24019_s17 + $0x1] ss:$0 sm:$0xff] }
 0xb6d   :  { %19377 = vmatprep.mubr.msk.f32.mxu0 %vm21281_vm4, %v24059_v38  ;;  %20573 = vmatpush3.bf16.msra.mxu0 %v21701_v11 }
 0xb6e   :  { %20577 = vmatprep.subr.bf16.mxu0 %v24053_v51 }
 0xb6f   :  { %v21710_v16 = vpop.permute.xlu1 %1537 }
 0xb73   :  { %v21717_v22 = vpop.permute.xlu1 %1553 }
 0xc3f   :  { %v1447_v63 = vpop.f32.mrb[14].mxu0 }
 0xc40   :  { %v1451_v1 = vmul.f32 0.125, %v1447_v63  ;;  %v19367_v2 = vpop.f32.mrb[15].mxu0 }
 0xc42   :  { %19371 = vmatmul.mubr.msk.f32.vlgmr.msra.gmra.mrb[14].mxu1 %vm823_vm3, %v1451_v1 }
 0xc43   :  { %19384 = vmatprep.mubr.msk.f32.mxu1 %vm21281_vm4, %v24059_v38 }
 0xd15   :  { %v1521_v3 = vpop.f32.mrb[14].mxu1 }
 0xd16   :  { %v1522_v4 = vadd.f32 1e-05, %v1521_v3  ;;  %v19372_v5 = vpop.f32.mrb[15].mxu1 }
 0xd18   :  { %20947 = vrsqrt.f32 %v1522_v4  ;;  %v21773_v4 = vld [vmem:[%s24074_s29 + $0x1] ss:$0 sm:$0xff] }
 0xd22   :  { %v20948_v12 = vpop.eup %20947 }
 0xd23   :  { %1527 = vrot.lane.b32.xlu0 %v20948_v12, %s24049_s1 }
 0xd27   :  { %1547 = vrot.lane.b32.xlu0 %v18333_v13, %s24049_s1  ;;  %v18360_v13 = vld [vmem:[%s24018_s16 + $0x20] sm:$0xff] }
 0xd95   :  { %v1528_v14 = vpop.permute.xlu0 %1527 }
 0xd96   :  { %v1530_v15 = vmul.f32 %v1528_v14, %v1374_v55  ;;  %v18345_v55 = vld [vmem:[%s24014_s12 + $0x20] sm:$0xff]  ;;  %v18361_v14 = vld [vmem:[%s24018_s16 + $0x28] sm:$0xff] }
 0xd97   :  { %v21759_v60 = vpack.c.bf16 %v18346_v57, %v18345_v55 }
 0xd98   :  { %v1540_v17 = vmul.f32 %v21710_v16, %v1530_v15  ;;  %v21794_v15 = vld [vmem:[%s24013_s11 + $0x1] ss:$0 sm:$0xff] }
 0xd99   :  { %v21713_v18 = vpop.permute.xlu0 %1547 }
 0xd9a   :  { %v1550_v19 = vadd.f32 %v21713_v18, %v1540_v17 }
 0xd9c   :  { %v1551_v20 = vadd.f32 %v1550_v19, %v21593_v45  ;;  %v21796_v19 = vpack.c.bf16 %v18361_v14, %v18360_v13  ;;  %v21873_v14 = vld [vmem:[%s24017_s15 + $0x1] ss:$0 sm:$0xff] }
 0xd9e   :  { %v1556_v23 = vmul.f32 %v21717_v22, %v1551_v20 }
 0xda0   :  { %1567 = vrot.lane.b32.xlu0 %v1556_v23, %s24086_s5 }
 0xe12   :  { %v1568_v24 = vpop.permute.xlu0 %1567 }
 0xe13   :  { %19378 = vmatmul.mubr.msk.f32.vlgmr.msra.gmra.mrb[16].mxu0 %vm81_vm0, %v1568_v24  ;;  %v18362_v24 = vld [vmem:[%s24018_s16 + $0x30] sm:$0xff] }
 0xe14   :  { %19395 = vmatprep.mubr.msk.f32.mxu0 %vm21281_vm4, %v24059_v38  ;;  %20579 = vmatpush3.bf16.msra.mxu0 %v21759_v60 }
 0xe15   :  { %20580 = vmatprep.subr.bf16.mxu0 %v24053_v51 }
 0xe18   :  { %20582 = vmatpush3.bf16.msra.mxu0 %v21765_v62 }
 0xe19   :  { %20589 = vmatprep.subr.bf16.mxu0 %v24053_v51 }
 0xee6   :  { %v1637_v29 = vpop.f32.mrb[16].mxu0 }
 0xee7   :  { %v1638_v30 = vadd.f32 %v21727_v25, %v1637_v29  ;;  %v19379_v33 = vpop.f32.mrb[17].mxu0  ;;  %v18363_v29 = vld [vmem:[%s24018_s16 + $0x38] sm:$0xff] }
 0xee8   :  { %v18353_v33 = vld [vmem:[%s24016_s14 + $0x20] sm:$0xff] }
 0xee9   :  { %v21731_v36 = vadd.f32 %v1638_v30, %v21421_v0  ;;  %v18340_v0 = vld [vmem:[%s24012_s10 + $0x10] sm:$0xff]  ;;  %v21810_v30 = vpack.c.bf16 %v18363_v29, %v18362_v24 }
 0xeea   :  { %v21746_v52 = vpack.c.bf16 %v18341_v48, %v18340_v0 }
 0xeeb   :  { %v1647_v9 = vsel %vm1646_vm5, %v21731_v36, 0.0 }
 0xeec   :  { %1648 = vadd.xlane.f32.xlu1 %v1647_v9  ;;  %20576 = vmatpush3.bf16.msra.mxu1 %v21746_v52  ;;  %v18354_v9 = vld [vmem:[%s24016_s14 + $0x28] sm:$0xff] }
 0xeed   :  { %20583 = vmatprep.subr.bf16.mxu1 %v24053_v51 }
 0xf79   :  { %v1649_v37 = vpop.xlane.xlu1 %1648 }
 0xf7a   :  { %v1650_v39 = vmul.f32 0.0625, %v1649_v37  ;;  %v21830_v37 = vpack.c.bf16 %v18354_v9, %v18353_v33 }
 0xf7c   :  { %v1651_v42 = vsub.f32 %v21731_v36, %v1650_v39  ;;  %v18355_v39 = vld [vmem:[%s24016_s14 + $0x30] sm:$0xff] }
 0xf7e   :  { %v1652_v43 = vmul.f32 %v1651_v42, %v1651_v42 }
 0xf80   :  { %v1653_v44 = vsel %vm1646_vm5, %v1652_v43, 0.0 }
 0xf81   :  { %1654 = vadd.xlane.f32.xlu0 %v1653_v44  ;;  %v18312_v44 = vld [vmem:[%s24078_s9 + $0x2] sm:$0x3] }
 0xf82   :  { %2258 = vrot.lane.b32.xlu1 %v18312_v44, %s24087_s25 }
 0xf97   :  { %1771 = vperm.xlu0 %20920, %v18350_v47  }
 0xff4   :  { %v2259_v29 = vpop.permute.xlu1 %2258 }
0x100e   :  { %v1655_v63 = vpop.xlane.xlu0 %1654 }
0x100f   :  { %v1656_v1 = vmul.f32 0.0625, %v1655_v63 }
0x1011   :  { %v1657_v2 = vadd.f32 1e-05, %v1656_v1 }
0x1013   :  { %20949 = vrsqrt.f32 %v1657_v2 }
0x1016   :  { %v21848_v47 = vpop.permute.xlu0 %1771 }
0x101d   :  { %v20950_v3 = vpop.eup %20949 }
0x101e   :  { %v1659_v5 = vmul.f32 %v20950_v3, %v1651_v42  ;;  %v18356_v42 = vld [vmem:[%s24016_s14 + $0x38] sm:$0xff] }
0x101f   :  { %v21840_v43 = vpack.c.bf16 %v18356_v42, %v18355_v39 }
0x1020   :  { %v1666_v8 = vmul.f32 %v21773_v4, %v1659_v5 }
0x1022   :  { %v1673_v12 = vadd.f32 %v21778_v49, %v1666_v8 }
0x1024   :  { %19385 = vmatmul.mubr.msk.f32.vlgmr.msra.gmra.mrb[16].mxu1 %vm81_vm0, %v1673_v12 }
0x1025   :  { %19406 = vmatprep.mubr.msk.f32.mxu1 %vm21281_vm4, %v24059_v38  ;;  %20585 = vmatpush3.bf16.msra.mxu1 %v21830_v37 }
0x1026   :  { %20586 = vmatprep.subr.bf16.mxu1 %v24053_v51 }
0x1029   :  { %20588 = vmatpush3.bf16.msra.mxu1 %v21840_v43 }
0x102a   :  { %20595 = vmatprep.subr.bf16.mxu1 %v24053_v51 }
0x10f7   :  { %v1754_v17 = vpop.f32.mrb[16].mxu1 }
0x10f8   :  { %v21799_v20 = vadd.f32 %v21794_v15, %v1754_v17  ;;  %v19386_v23 = vpop.f32.mrb[17].mxu1 }
0x10fa   :  { %19396 = vmatmul.mubr.msk.f32.vlgmr.msra.gmra.mrb[18].mxu0 %vm229_vm1, %v21799_v20 }
0x10fb   :  { %20591 = vmatpush3.bf16.msra.mxu0 %v21796_v19  ;;  %19417 = vmatprep.mubr.msk.f32.mxu0 %vm21281_vm4, %v24059_v38 }
0x10fc   :  { %20592 = vmatprep.subr.bf16.mxu0 %v24053_v51 }
0x10ff   :  { %20594 = vmatpush3.bf16.msra.mxu0 %v21810_v30 }
0x1100   :  { %20601 = vmatprep.subr.bf16.mxu0 %v24053_v51 }
0x1102   :  { %19418 = vmatmul.mubr.msk.f32.vlgmr.msra.gmra.mrb[20].mxu0 %vm229_vm1, %v21799_v20 }
0x1103   :  { %20603 = vmatpush3.bf16.msra.mxu0 %v21494_v54  ;;  %19438 = vmatprep.mubr.msk.f32.mxu0 %vm21281_vm4, %v24059_v38 }
0x1104   :  { %18375 = vmatprep.subr.msk.mxu0 %vm826_vm2, %v21573_v35 }
0x11cd   :  { %v1843_v0 = vpop.f32.mrb[18].mxu0 }
0x11ce   :  { %v1844_v48 = vadd.f32 %v1843_v0, %v21848_v47  ;;  %v19397_v55 = vpop.f32.mrb[19].mxu0 }
0x11d0   :  { %v18352_v57 = vmul.f32 -1.442695, %v1844_v48 }
0x11d2   :  { %20951 = vpow2.f32 %v18352_v57 }
0x11d5   :  { %v2019_v61 = vpop.f32.mrb[20].mxu0 }
0x11d6   :  { %v21857_v63 = vadd.f32 %v21854_v59, %v2019_v61  ;;  %v19419_v1 = vpop.f32.mrb[21].mxu0 }
0x11d8   :  { %19439 = vmatmul.mubr.msk.f32.vlgmr.msra.gmra.mrb[22].mxu0 %vm81_vm0, %v21857_v63 }
0x11d9   :  { %18376 = vmatpush1.msk.msra.mxu0 %vm826_vm2, %v21569_v34  ;;  %2422 = vmatprep.mubr.f32.mxu0 %v24059_v38 }
0x11da   :  { %19448 = vmatprep.subr.mxu0 %v24059_v38 }
0x11dc   :  { %v20952_v2 = vpop.eup %20951 }
0x11dd   :  { %v1850_v3 = vadd.f32 1.0, %v20952_v2 }
0x11df   :  { %20953 = vrcp.f32 %v1850_v3 }
0x11e9   :  { %v20954_v5 = vpop.eup %20953 }
0x11ea   :  { %v1853_v8 = vmul.f32 %v20954_v5, %v1844_v48 }
0x11ec   :  { %19407 = vmatmul.mubr.msk.f32.vlgmr.msra.gmra.mrb[18].mxu1 %vm229_vm1, %v1853_v8 }
0x11ed   :  { %20597 = vmatpush3.bf16.msra.mxu1 %v21533_v21  ;;  %19424 = vmatprep.mubr.msk.f32.mxu1 %vm21281_vm4, %v24059_v38 }
0x11ee   :  { %20598 = vmatprep.subr.bf16.mxu1 %v24053_v51 }
0x12ab   :  { %v2245_v12 = vpop.f32.mrb[22].mxu0 }
0x12ac   :  { %v19440_v13 = vpop.f32.mrb[23].mxu0 }
0x12bf   :  { %v1936_v17 = vpop.f32.mrb[18].mxu1 }
0x12c0   :  { %v1937_v23 = vadd.f32 %v21873_v14, %v1936_v17  ;;  %v19408_v24 = vpop.f32.mrb[19].mxu1 }
0x12c2   :  { %2262 = vrot.lane.b32.xlu1 %v1937_v23, %s24088_s28  ;;  %19425 = vmatmul.mubr.msk.f32.vlgmr.msra.gmra.mrb[20].mxu1 %vm81_vm0, %v1937_v23  ;;  %v2261_v33 = vadd.f32 %v2259_v29, %v1937_v23 }
0x12c3   :  { %20600 = vmatpush3.bf16.msra.mxu1 %v21533_v21  ;;  %19431 = vmatprep.mubr.msk.f32.mxu1 %vm21281_vm4, %v24059_v38 }
0x12c4   :  { %18372 = vmatprep.subr.msk.mxu1 %vm826_vm2, %v21573_v35 }
0x12c6   :  { %2102 = vrot.lane.b32.xlu1 %v1937_v23, %s24086_s5 }
0x1334   :  { %v2263_v9 = vpop.permute.xlu1 %2262 }
0x1335   :  { %v21884_v39 = vmax.f32 %v2261_v33, %v2263_v9 }
0x1337   :  { %v2273_v42 = vsub.f32 %v1937_v23, %v21884_v39  ;;  %2267 = vrot.lane.b32.xlu0 %v21884_v39, %s24089_s26 }
0x1338   :  { %v21889_v44 = vpop.permute.xlu1 %2102 }
0x1339   :  { %v2274_v0 = vadd.f32 %v2273_v42, %v2259_v29  ;;  %19432 = vmatmul.mubr.msk.f32.vlgmr.msra.gmra.mrb[22].mxu1 %vm81_vm0, %v21889_v44  ;;  %v18310_v42 = vld [vmem:[%s24084_s4 + $0x2] sm:$0x3] }
0x133a   :  { %18373 = vmatpush1.msk.msra.mxu1 %vm826_vm2, %v21569_v34  ;;  %2346 = vmatprep.mubr.f32.mxu1 %v24059_v38 }
0x133b   :  { %v2275_v48 = vmul.f32 1.442695, %v2274_v0  ;;  %20604 = vmatprep.subr.bf16.mxu1 %v24053_v51 }
0x133d   :  { %20955 = vpow2.f32 %v2275_v48 }
0x1347   :  { %v20956_v55 = vpop.eup %20955 }
0x1348   :  { %2278 = vrot.lane.b32.xlu0 %v20956_v55, %s24090_s13 }
0x1395   :  { %v2098_v57 = vpop.f32.mrb[20].mxu1 }
0x1396   :  { %v19426_v61 = vpop.f32.mrb[21].mxu1 }
0x13a9   :  { %v2268_v1 = vpop.permute.xlu0 %2267 }
0x13aa   :  { %v2270_v2 = vsub.f32 %v1937_v23, %v2268_v1 }
0x13ac   :  { %v2271_v3 = vmul.f32 1.442695, %v2270_v2 }
0x13ae   :  { %20957 = vpow2.f32 %v2271_v3 }
0x13b8   :  { %v20958_v5 = vpop.eup %20957 }
0x13b9   :  { %2354 = vrot.lane.b32.xlu1 %v20958_v5, %s24091_s27 }
0x13ba   :  { %v2279_v8 = vpop.permute.xlu0 %2278 }
0x13bb   :  { %18374 = vmatmul.mubr.msk.f32.vlgmr.msra.gmra.mrb[24].mxu1 %vm823_vm3, %v2279_v8 }
0x13bc   :  { %20606 = vmatpush3.bf16.xpose.msra.mxu1 %v21494_v54  ;;  %19445 = vmatprep.mubr.msk.f32.mxu1 %vm21281_vm4, %v24059_v38 }
0x13bd   :  { %19458 = vmatprep.subr.mxu1 %v24059_v38 }
0x140c   :  { %v2172_v13 = vpop.f32.mrb[22].mxu1 }
0x140d   :  { %v2249_v17 = vmul.f32 %v2245_v12, %v2172_v13  ;;  %v19433_v24 = vpop.f32.mrb[23].mxu1  ;;  %v18311_v12 = vld [vmem:[%s24085_s0 + $0x2] sm:$0x3]  ;;  %s24092_s0 = smov 16  }
0x142b   :  { %v2355_v29 = vpop.permute.xlu1 %2354 }
0x142c   :  { %18377 = vmatmul.mubr.msk.f32.vlgmr.msra.gmra.mrb[24].mxu0 %vm823_vm3, %v2355_v29 }
0x142d   :  { %19449 = vmatpush3.xpose.msk.msra.mxu0 %vm81_vm0, %v21613_v53  ;;  %19450 = vmatprep.mubr.msk.f32.mxu0 %vm21281_vm4, %v24059_v38 }
0x142e   :  { %19453 = vmatprep.subr.mxu0 %v24059_v38 }
0x148e   :  { %v2348_v33 = vpop.f32.mrb[24].mxu1 }
0x148f   :  { %v2350_v9 = vpop.f32.mrb[25].mxu1  ;;  %v2429_v48 = vmul.f32 %v18310_v42, %v2348_v33 }
0x1490   :  { %v2432_v1 = vmul.f32 %v18311_v12, %v2350_v9 }
0x14ff   :  { %v2424_v0 = vpop.f32.mrb[24].mxu0 }
0x1500   :  { %v2430_v55 = vmul.f32 %v2424_v0, %v2249_v17  ;;  %v2426_v61 = vpop.f32.mrb[25].mxu0  ;;  %v18367_v0 = vmul.f32 -1.442695, %v21857_v63 }
0x1501   :  { %v2434_v2 = vmul.f32 %v2426_v61, %v21889_v44 }
0x1502   :  { %v21917_v3 = vadd.f32 %v2430_v55, %v2429_v48 }
0x1503   :  { %v21919_v5 = vadd.f32 %v2434_v2, %v2432_v1 }
0x1504   :  { %v2436_v8 = vmul.f32 %v21917_v3, %v2098_v57 }
0x1505   :  { %v2507_v13 = vmul.f32 %v21919_v5, %v1937_v23 }
0x1506   :  { %19446 = vmatmul.mubr.f32.vlgmr.msra.gmra.mrb[26].mxu1 %v2436_v8 }
0x1507   :  { %19451 = vmatmul.mubr.msk.f32.vlgmr.msra.gmra.mrb[26].mxu0 %vm81_vm0, %v2507_v13  ;;  %19459 = vmatpush3.xpose.msk.msra.mxu1 %vm81_vm0, %v21613_v53 }
0x1508   :  { %19454 = vmatpush3.msk.msra.mxu0 %vm826_vm2, %v21613_v53  ;;  %19455 = vmatprep.mubr.msk.f32.mxu0 %vm21281_vm4, %v24059_v38 }
0x1509   :  { %19460 = vmatprep.mubr.msk.f32.mxu1 %vm21281_vm4, %v24059_v38  ;;  %19463 = vmatprep.subr.mxu0 %v24059_v38 }
0x150a   :  { %19468 = vmatprep.subr.mxu1 %v24059_v38 }
0x15d9   :  { %v2503_v23 = vpop.f32.mrb[26].mxu1 }
0x15da   :  { %2658 = vrot.lane.b32.xlu0 %v2503_v23, %s24092_s0  ;;  %v19447_v57 = vpop.f32.mrb[27].mxu1  ;;  %v2577_v17 = vpop.f32.mrb[26].mxu0 }
0x15db   :  { %v2581_v24 = vand.u32 2147483647, %v2577_v17  ;;  %v19452_v29 = vpop.f32.mrb[27].mxu0 }
0x15dc   :  { %v3092_v29 = vrot.slane %v21560_v32, 6  ;;  %v18391_v32 = vld [vmem:[%s24020_s18 + $0x1] ss:$0 sm:$0xff] }
0x15dd   :  { %v2582_v33 = vmax.f32 %v2581_v24, 1.0  ;;  %v18371_v24 = vmul.f32 -1.442695, %v21799_v20 }
0x15df   :  { %20959 = vrcp.f32 %v2582_v33  ;;  %v3094_v33 = vadd.f32 %v3092_v29, %v21545_v27 }
0x15e0   :  { %20961 = vpow2.f32 %v18367_v0 }
0x15e9   :  { %v20960_v9 = vpop.eup %20959 }
0x15ea   :  { %19456 = vmatmul.mubr.msk.f32.vlgmr.msra.gmra.mrb[28].mxu0 %vm823_vm3, %v20960_v9  ;;  %v20962_v48 = vpop.eup %20961  ;;  %v21961_v9 = vmax.f32 %v3094_v33, %v21557_v31 }
0x15eb   :  { %19464 = vmatpush3.msk.msra.mxu0 %vm826_vm2, %v21613_v53  ;;  %19465 = vmatprep.mubr.msk.f32.mxu0 %vm21281_vm4, %v24059_v38  ;;  %v2026_v55 = vadd.f32 1.0, %v20962_v48 }
0x15ec   :  { %19473 = vmatprep.subr.mxu0 %v24059_v38 }
0x15ed   :  { %20963 = vrcp.f32 %v2026_v55 }
0x15ee   :  { %20965 = vpow2.f32 %v18371_v24 }
0x15f7   :  { %v20964_v1 = vpop.eup %20963 }
0x164c   :  { %v2659_v61 = vpop.permute.xlu0 %2658 }
0x164d   :  { %v2661_v2 = vmul.f32 %v20964_v1, %v2659_v61 }
0x16bd   :  { %v2653_v42 = vpop.f32.mrb[28].mxu0 }
0x16be   :  { %2663 = vrot.lane.b32.xlu1 %v2653_v42, %s24092_s0  ;;  %v19457_v12 = vpop.f32.mrb[29].mxu0  ;;  %v3103_v42 = vsub.f32 %v21545_v27, %v21961_v9 }
0x16bf   :  { %v20966_v12 = vpop.eup %20965 }
0x16c0   :  { %v2253_v0 = vadd.f32 1.0, %v20966_v12  ;;  %v3104_v48 = vadd.f32 %v3103_v42, %v3092_v29 }
0x16c2   :  { %20967 = vrcp.f32 %v2253_v0  ;;  %v3105_v55 = vmul.f32 1.442695, %v3104_v48 }
0x16c4   :  { %20969 = vpow2.f32 %v3105_v55 }
0x1730   :  { %v2664_v8 = vpop.permute.xlu1 %2663 }
0x1731   :  { %v2666_v13 = vmul.f32 %v2664_v8, %v2661_v2  ;;  %v20968_v2 = vpop.eup %20967 }
0x1732   :  { %v2256_v8 = vmul.f32 %v20968_v2, %v21799_v20 }
0x1733   :  { %2668 = vrot.lane.b32.xlu0 %v2666_v13, %s24086_s5 }
0x17a5   :  { %v2669_v23 = vpop.permute.xlu0 %2668 }
0x17a6   :  { %19461 = vmatmul.mubr.msk.f32.vlgmr.msra.gmra.mrb[28].mxu1 %vm81_vm0, %v2669_v23  ;;  %v20970_v23 = vpop.eup %20969 }
0x17a7   :  { %19469 = vmatpush3.xpose.msk.msra.mxu1 %vm81_vm0, %v21613_v53  ;;  %19470 = vmatprep.mubr.msk.f32.mxu1 %vm21281_vm4, %v24059_v38 }
0x17a8   :  { %20607 = vmatprep.subr.bf16.mxu1 %v24053_v51 }
0x1879   :  { %v2738_v63 = vpop.f32.mrb[28].mxu1 }
0x187a   :  { %v2742_v57 = vmul.f32 0.125, %v2738_v63  ;;  %v19462_v17 = vpop.f32.mrb[29].mxu1  ;;  %v3108_v63 = vrot.slane %v20970_v23, 2 }
0x187c   :  { %19466 = vmatmul.mubr.msk.f32.vlgmr.msra.gmra.mrb[30].mxu0 %vm823_vm3, %v2742_v57  ;;  %v3268_v57 = vrot.slane %v21545_v27, 2 }
0x187d   :  { %19474 = vmatpush3.msk.msra.mxu0 %vm826_vm2, %v21613_v53  ;;  %19475 = vmatprep.mubr.msk.f32.mxu0 %vm21281_vm4, %v24059_v38 }
0x187e   :  { %18399 = vmatprep.subr.msk.mxu0 %vm826_vm2, %v21573_v35 }
0x194f   :  { %v2812_v61 = vpop.f32.mrb[30].mxu0 }
0x1950   :  { %2817 = vrot.lane.b32.xlu1 %v2812_v61, %s24092_s0  ;;  %v19467_v1 = vpop.f32.mrb[31].mxu0 }
0x1954   :  { %3097 = vrot.lane.b32.xlu1 %v21961_v9, %s24089_s26 }
0x1958   :  { %2984 = vrot.lane.b32.xlu1 %v18391_v32, %s24092_s0 }
0x195c   :  { %3001 = vrot.lane.b32.xlu1 %v2256_v8, %s24086_s5 }
0x1960   :  { %3109 = vrot.lane.b32.xlu1 %v3108_v63, %s24090_s13  ;;  %v18393_v63 = vld [vmem:[%s24021_s19 + $0x1] ss:$0 sm:$0xff] }
0x1964   :  { %3269 = vrot.lane.b32.xlu1 %v3268_v57, %s24086_s5 }
0x19c2   :  { %v2818_v17 = vpop.permute.xlu1 %2817 }
0x19c3   :  { %v2820_v24 = vsub.f32 %v2666_v13, %v2818_v17  ;;  %v18394_v17 = vld [vmem:[%s24022_s20 + $0x10] sm:$0xff] }
0x19c5   :  { %v2821_v29 = vmul.f32 %v2820_v24, %v2820_v24 }
0x19c6   :  { %v3098_v20 = vpop.permute.xlu1 %3097 }
0x19c7   :  { %2823 = vrot.lane.b32.xlu0 %v2821_v29, %s24086_s5  ;;  %v18395_v29 = vld [vmem:[%s24022_s20 + $0x18] sm:$0xff] }
0x19ca   :  { %v21983_v42 = vpop.permute.xlu1 %2984 }
0x19ce   :  { %v3002_v12 = vpop.permute.xlu1 %3001 }
0x19d2   :  { %v3110_v13 = vpop.permute.xlu1 %3109 }
0x1a39   :  { %v2824_v33 = vpop.permute.xlu0 %2823 }
0x1a3a   :  { %19471 = vmatmul.mubr.msk.f32.vlgmr.msra.gmra.mrb[30].mxu1 %vm81_vm0, %v2824_v33  ;;  %v22005_v33 = vpack.c.bf16 %v18395_v29, %v18394_v17 }
0x1a3b   :  { %19482 = vmatprep.mubr.msk.f32.mxu1 %vm21281_vm4, %v24059_v38 }
0x1a3c   :  { %20609 = vmatpush3.bf16.msra.mxu1 %v22005_v33 }
0x1a3d   :  { %18402 = vmatprep.subr.msk.mxu1 %vm826_vm2, %v21573_v35 }
0x1b0d   :  { %v2893_v0 = vpop.f32.mrb[30].mxu1 }
0x1b0e   :  { %v2897_v48 = vmul.f32 0.125, %v2893_v0  ;;  %v19472_v55 = vpop.f32.mrb[31].mxu1  ;;  %v3100_v0 = vsub.f32 %v21545_v27, %v3098_v20 }
0x1b10   :  { %19476 = vmatmul.mubr.msk.f32.vlgmr.msra.gmra.mrb[32].mxu0 %vm823_vm3, %v2897_v48  ;;  %v3101_v48 = vmul.f32 1.442695, %v3100_v0 }
0x1b11   :  { %18400 = vmatpush1.msk.msra.mxu0 %vm826_vm2, %v21569_v34  ;;  %3177 = vmatprep.mubr.f32.mxu0 %v24059_v38 }
0x1b12   :  { %20610 = vmatprep.subr.bf16.mxu0 %v24053_v51 }
0x1b14   :  { %18401 = vmatmul.mubr.msk.f32.vlgmr.msra.gmra.mrb[34].mxu0 %vm823_vm3, %v3110_v13 }
0x1b15   :  { %19489 = vmatprep.mubr.msk.f32.mxu0 %vm21281_vm4, %v24059_v38 }
0x1b18   :  { %20612 = vmatpush3.bf16.xpose.msra.mxu0 %v21494_v54 }
0x1b19   :  { %19502 = vmatprep.subr.mxu0 %v24059_v38 }
0x1be3   :  { %v2967_v61 = vpop.f32.mrb[32].mxu0 }
0x1be4   :  { %v2968_v1 = vadd.f32 1e-05, %v2967_v61  ;;  %v19477_v32 = vpop.f32.mrb[33].mxu0 }
0x1be6   :  { %20971 = vrsqrt.f32 %v2968_v1 }
0x1be7   :  { %v3179_v2 = vpop.f32.mrb[34].mxu0  ;;  %20973 = vpow2.f32 %v3101_v48  ;;  %v3270_v48 = vpop.permute.xlu1 %3269 }
0x1be8   :  { %v3181_v8 = vpop.f32.mrb[35].mxu0 }
0x1bf0   :  { %v20972_v23 = vpop.eup %20971 }
0x1bf1   :  { %2973 = vrot.lane.b32.xlu0 %v20972_v23, %s24092_s0  ;;  %v20974_v17 = vpop.eup %20973 }
0x1bf2   :  { %v3185_v29 = vrot.slane %v20974_v17, 2 }
0x1bf5   :  { %2995 = vrot.lane.b32.xlu0 %v18393_v63, %s24092_s0 }
0x1c63   :  { %v2974_v55 = vpop.permute.xlu0 %2973 }
0x1c64   :  { %v2976_v13 = vmul.f32 %v2974_v55, %v2820_v24  ;;  %v3261_v55 = vmul.f32 %v3179_v2, %v21636_v6 }
0x1c66   :  { %v2987_v61 = vmul.f32 %v21983_v42, %v2976_v13 }
0x1c67   :  { %v22013_v1 = vpop.permute.xlu0 %2995 }
0x1c68   :  { %v2998_v32 = vadd.f32 %v22013_v1, %v2987_v61 }
0x1c6a   :  { %v2999_v23 = vadd.f32 %v2998_v32, %v21889_v44  ;;  %v3267_v32 = vmul.f32 %v3181_v8, %v21638_v7 }
0x1c6c   :  { %v3004_v63 = vmul.f32 %v3002_v12, %v2999_v23 }
0x1c6e   :  { %3017 = vrot.lane.b32.xlu0 %v3004_v63, %s24086_s5  ;;  %v3275_v63 = vrot.slane %v21590_v41, 2 }
0x1c72   :  { %3186 = vrot.lane.b32.xlu0 %v3185_v29, %s24091_s27 }
0x1ce0   :  { %v3018_v20 = vpop.permute.xlu0 %3017 }
0x1ce1   :  { %19483 = vmatmul.mubr.msk.f32.vlgmr.msra.gmra.mrb[32].mxu1 %vm81_vm0, %v3018_v20 }
0x1ce2   :  { %18403 = vmatpush1.msk.msra.mxu1 %vm826_vm2, %v21569_v34  ;;  %3254 = vmatprep.mubr.f32.mxu1 %v24059_v38  ;;  %v3263_v34 = vrot.slane %v21625_v58, 2 }
0x1ce3   :  { %19492 = vmatprep.subr.mxu1 %v24059_v38 }
0x1ce4   :  { %v3187_v24 = vpop.permute.xlu0 %3186 }
0x1ce5   :  { %18404 = vmatmul.mubr.msk.f32.vlgmr.msra.gmra.mrb[34].mxu1 %vm823_vm3, %v3187_v24 }
0x1ce6   :  { %19494 = vmatprep.mubr.msk.f32.mxu1 %vm21281_vm4, %v24059_v38 }
0x1ce9   :  { %19493 = vmatpush3.xpose.msk.msra.mxu1 %vm81_vm0, %v21613_v53 }
0x1cea   :  { %19497 = vmatprep.subr.mxu1 %v24059_v38 }
0x1db4   :  { %v22030_v44 = vpop.f32.mrb[32].mxu1 }
0x1db5   :  { %v19484_v12 = vpop.f32.mrb[33].mxu1 }
0x1db8   :  { %v3256_v0 = vpop.f32.mrb[34].mxu1 }
0x1db9   :  { %v3265_v13 = vmul.f32 %v3263_v34, %v3256_v0  ;;  %v3258_v61 = vpop.f32.mrb[35].mxu1 }
0x1dba   :  { %v3272_v23 = vmul.f32 %v3270_v48, %v3258_v61 }
0x1dbb   :  { %v22036_v17 = vadd.f32 %v3265_v13, %v3261_v55 }
0x1dbc   :  { %v22038_v29 = vadd.f32 %v3272_v23, %v3267_v32 }
0x1dbd   :  { %v3277_v20 = vmul.f32 %v3275_v63, %v22036_v17 }
0x1dbe   :  { %v3349_v24 = vmul.f32 %v22038_v29, %v3268_v57 }
0x1dbf   :  { %19490 = vmatmul.mubr.f32.vlgmr.msra.gmra.mrb[36].mxu0 %v3277_v20 }
0x1dc0   :  { %19495 = vmatmul.mubr.msk.f32.vlgmr.msra.gmra.mrb[36].mxu1 %vm81_vm0, %v3349_v24  ;;  %19503 = vmatpush3.xpose.msk.msra.mxu0 %vm81_vm0, %v21613_v53 }
0x1dc1   :  { %19498 = vmatpush3.msk.msra.mxu1 %vm826_vm2, %v21613_v53  ;;  %19499 = vmatprep.mubr.msk.f32.mxu1 %vm21281_vm4, %v24059_v38 }
0x1dc2   :  { %19504 = vmatprep.mubr.msk.f32.mxu0 %vm21281_vm4, %v24059_v38  ;;  %19507 = vmatprep.subr.mxu1 %v24059_v38 }
0x1dc3   :  { %19512 = vmatprep.subr.mxu0 %v24059_v38 }
0x1e92   :  { %v3344_v6 = vpop.f32.mrb[36].mxu0 }
0x1e93   :  { %v3500_v7 = vrot.slane %v3344_v6, 6  ;;  %v19491_v57 = vpop.f32.mrb[37].mxu0  ;;  %v3419_v2 = vpop.f32.mrb[36].mxu1 }
0x1e94   :  { %v3423_v8 = vand.u32 2147483647, %v3419_v2  ;;  %v19496_v12 = vpop.f32.mrb[37].mxu1 }
0x1e95   :  { %3501 = vrot.lane.b32.xlu0 %v3500_v7, %s24092_s0 }
0x1e96   :  { %v3424_v34 = vmax.f32 %v3423_v8, 1.0 }
0x1e98   :  { %20975 = vrcp.f32 %v3424_v34 }
0x1ea2   :  { %v20976_v0 = vpop.eup %20975 }
0x1ea3   :  { %19500 = vmatmul.mubr.msk.f32.vlgmr.msra.gmra.mrb[38].mxu1 %vm823_vm3, %v20976_v0 }
0x1ea4   :  { %19508 = vmatpush3.msk.msra.mxu1 %vm826_vm2, %v21613_v53  ;;  %19509 = vmatprep.mubr.msk.f32.mxu1 %vm21281_vm4, %v24059_v38 }
0x1ea5   :  { %19517 = vmatprep.subr.mxu1 %v24059_v38 }
0x1f07   :  { %v3502_v61 = vpop.permute.xlu0 %3501 }
0x1f08   :  { %v3504_v32 = vmul.f32 %v21664_v26, %v3502_v61 }
0x1f76   :  { %v3495_v48 = vpop.f32.mrb[38].mxu1 }
0x1f77   :  { %v3506_v55 = vrot.slane %v3495_v48, 6  ;;  %v19501_v13 = vpop.f32.mrb[39].mxu1 }
0x1f79   :  { %3507 = vrot.lane.b32.xlu1 %v3506_v55, %s24092_s0 }
0x1feb   :  { %v3508_v23 = vpop.permute.xlu1 %3507 }
0x1fec   :  { %v3510_v63 = vmul.f32 %v3508_v23, %v3504_v32 }
0x1fee   :  { %v3512_v20 = vrot.slane %v3510_v63, 2 }
0x1ff0   :  { %3513 = vrot.lane.b32.xlu0 %v3512_v20, %s24086_s5 }
0x2062   :  { %v3514_v24 = vpop.permute.xlu0 %3513 }
0x2063   :  { %19505 = vmatmul.mubr.msk.f32.vlgmr.msra.gmra.mrb[38].mxu0 %vm81_vm0, %v3514_v24 }
0x2064   :  { %19513 = vmatpush3.xpose.msk.msra.mxu0 %vm81_vm0, %v21613_v53  ;;  %19514 = vmatprep.mubr.msk.f32.mxu0 %vm21281_vm4, %v24059_v38 }
0x2065   :  { %20613 = vmatprep.subr.bf16.mxu0 %v24053_v51 }
0x2136   :  { %v3583_v6 = vpop.f32.mrb[38].mxu0 }
0x2137   :  { %v3587_v7 = vmul.f32 0.125, %v3583_v6  ;;  %v19506_v57 = vpop.f32.mrb[39].mxu0 }
0x2139   :  { %19510 = vmatmul.mubr.msk.f32.vlgmr.msra.gmra.mrb[40].mxu1 %vm823_vm3, %v3587_v7 }
0x213a   :  { %19518 = vmatpush3.msk.msra.mxu1 %vm826_vm2, %v21613_v53  ;;  %19519 = vmatprep.mubr.msk.f32.mxu1 %vm21281_vm4, %v24059_v38 }
0x213b   :  { %20616 = vmatprep.subr.bf16.mxu1 %v24053_v51 }
0x220c   :  { %v3657_v2 = vpop.f32.mrb[40].mxu1 }
0x220d   :  { %v3662_v8 = vrot.slane %v3657_v2, 6  ;;  %v19511_v12 = vpop.f32.mrb[41].mxu1 }
0x220f   :  { %3663 = vrot.lane.b32.xlu1 %v3662_v8, %s24092_s0 }
0x2281   :  { %v3664_v34 = vpop.permute.xlu1 %3663 }
0x2282   :  { %v3666_v0 = vsub.f32 %v3510_v63, %v3664_v34 }
0x2284   :  { %v3667_v48 = vmul.f32 %v3666_v0, %v3666_v0 }
0x2286   :  { %v3669_v55 = vrot.slane %v3667_v48, 2 }
0x2288   :  { %3670 = vrot.lane.b32.xlu0 %v3669_v55, %s24086_s5 }
0x22fa   :  { %v3671_v13 = vpop.permute.xlu0 %3670 }
0x22fb   :  { %19515 = vmatmul.mubr.msk.f32.vlgmr.msra.gmra.mrb[40].mxu0 %vm81_vm0, %v3671_v13 }
0x22fc   :  { %20615 = vmatpush3.bf16.msra.mxu0 %v21701_v11  ;;  %19526 = vmatprep.mubr.msk.f32.mxu0 %vm21281_vm4, %v24059_v38 }
0x22fd   :  { %20619 = vmatprep.subr.bf16.mxu0 %v24053_v51 }
0x23ce   :  { %v3740_v53 = vpop.f32.mrb[40].mxu0 }
0x23cf   :  { %v3744_v61 = vmul.f32 0.125, %v3740_v53  ;;  %v19516_v32 = vpop.f32.mrb[41].mxu0 }
0x23d1   :  { %19520 = vmatmul.mubr.msk.f32.vlgmr.msra.gmra.mrb[42].mxu1 %vm823_vm3, %v3744_v61 }
0x23d2   :  { %20618 = vmatpush3.bf16.msra.mxu1 %v21746_v52  ;;  %19533 = vmatprep.mubr.msk.f32.mxu1 %vm21281_vm4, %v24059_v38 }
0x23d3   :  { %20625 = vmatprep.subr.bf16.mxu1 %v24053_v51 }
0x24a4   :  { %v3814_v23 = vpop.f32.mrb[42].mxu1 }
0x24a5   :  { %v3815_v63 = vadd.f32 1e-05, %v3814_v23  ;;  %v19521_v20 = vpop.f32.mrb[43].mxu1 }
0x24a7   :  { %20977 = vrsqrt.f32 %v3815_v63 }
0x24b1   :  { %v20978_v24 = vpop.eup %20977 }
0x24b2   :  { %v3820_v6 = vrot.slane %v20978_v24, 6 }
0x24b4   :  { %3821 = vrot.lane.b32.xlu1 %v3820_v6, %s24092_s0 }
0x2526   :  { %v3822_v7 = vpop.permute.xlu1 %3821 }
0x2527   :  { %v3824_v57 = vmul.f32 %v3822_v7, %v3666_v0  ;;  %v22105_v0 = vld [vmem:[%s24073_s6] sm:$0xff] }
0x2528   :  { %v3906_v13 = vrot.slane %v22105_v0, 2 }
0x2529   :  { %v3825_v2 = vmul.f32 %v3824_v57, %v21710_v16 }
0x252b   :  { %v3826_v8 = vadd.f32 %v3825_v2, %v21713_v18 }
0x252d   :  { %v3827_v12 = vadd.f32 %v3826_v8, %v21593_v45 }
0x252f   :  { %v3828_v34 = vmul.f32 %v3827_v12, %v21717_v22 }
0x2531   :  { %v3830_v48 = vrot.slane %v3828_v34, 2 }
0x2533   :  { %3831 = vrot.lane.b32.xlu0 %v3830_v48, %s24086_s5 }
0x25a5   :  { %v3832_v55 = vpop.permute.xlu0 %3831 }
0x25a6   :  { %19527 = vmatmul.mubr.msk.f32.vlgmr.msra.gmra.mrb[42].mxu0 %vm81_vm0, %v3832_v55 }
0x25a7   :  { %20621 = vmatpush3.bf16.msra.mxu0 %v21759_v60  ;;  %19544 = vmatprep.mubr.msk.f32.mxu0 %vm21281_vm4, %v24059_v38 }
0x25a8   :  { %20622 = vmatprep.subr.bf16.mxu0 %v24053_v51 }
0x25ab   :  { %20624 = vmatpush3.bf16.msra.mxu0 %v21765_v62 }
0x25ac   :  { %20631 = vmatprep.subr.bf16.mxu0 %v24053_v51 }
0x2679   :  { %v3901_v53 = vpop.f32.mrb[42].mxu0 }
0x267a   :  { %v3902_v61 = vadd.f32 %v21727_v25, %v3901_v53  ;;  %v19528_v32 = vpop.f32.mrb[43].mxu0 }
0x267c   :  { %v22109_v23 = vadd.f32 %v3906_v13, %v3902_v61 }
0x267e   :  { %v3909_v63 = vsel %vm1646_vm5, %v22109_v23, 0.0 }
0x267f   :  { %3910 = vadd.xlane.f32.xlu1 %v3909_v63 }
0x270c   :  { %v3911_v20 = vpop.xlane.xlu1 %3910 }
0x270d   :  { %v3912_v24 = vmul.f32 0.0625, %v3911_v20 }
0x270f   :  { %v3913_v6 = vsub.f32 %v22109_v23, %v3912_v24 }
0x2711   :  { %v3914_v7 = vmul.f32 %v3913_v6, %v3913_v6 }
0x2713   :  { %v3915_v57 = vsel %vm1646_vm5, %v3914_v7, 0.0 }
0x2714   :  { %3916 = vadd.xlane.f32.xlu0 %v3915_v57 }
0x27a1   :  { %v3917_v2 = vpop.xlane.xlu0 %3916 }
0x27a2   :  { %v3918_v8 = vmul.f32 0.0625, %v3917_v2 }
0x27a4   :  { %v3919_v12 = vadd.f32 1e-05, %v3918_v8 }
0x27a6   :  { %20979 = vrsqrt.f32 %v3919_v12 }
0x27b0   :  { %v20980_v25 = vpop.eup %20979 }
0x27b1   :  { %v3921_v34 = vmul.f32 %v20980_v25, %v3913_v6  ;;  %v22151_v6 = vld.sshfl [vmem:[%s24081_s3] sm:$0x33 pattern:$0x76325410] }
0x27b3   :  { %v3922_v48 = vmul.f32 %v21773_v4, %v3921_v34 }
0x27b5   :  { %v3923_v55 = vadd.f32 %v21778_v49, %v3922_v48 }
0x27b7   :  { %19534 = vmatmul.mubr.msk.f32.vlgmr.msra.gmra.mrb[44].mxu1 %vm81_vm0, %v3923_v55 }
0x27b8   :  { %20627 = vmatpush3.bf16.msra.mxu1 %v21830_v37  ;;  %19555 = vmatprep.mubr.msk.f32.mxu1 %vm21281_vm4, %v24059_v38 }
0x27b9   :  { %20628 = vmatprep.subr.bf16.mxu1 %v24053_v51 }
0x27bc   :  { %20630 = vmatpush3.bf16.msra.mxu1 %v21840_v43 }
0x27bd   :  { %20637 = vmatprep.subr.bf16.mxu1 %v24053_v51 }
0x288a   :  { %v3993_v13 = vpop.f32.mrb[44].mxu1 }
0x288b   :  { %v22125_v53 = vadd.f32 %v21794_v15, %v3993_v13  ;;  %v19535_v4 = vpop.f32.mrb[45].mxu1 }
0x288d   :  { %19545 = vmatmul.mubr.msk.f32.vlgmr.msra.gmra.mrb[44].mxu0 %vm229_vm1, %v22125_v53 }
0x288e   :  { %20633 = vmatpush3.bf16.msra.mxu0 %v21796_v19  ;;  %19566 = vmatprep.mubr.msk.f32.mxu0 %vm21281_vm4, %v24059_v38 }
0x288f   :  { %20634 = vmatprep.subr.bf16.mxu0 %v24053_v51 }
0x2892   :  { %20636 = vmatpush3.bf16.msra.mxu0 %v21810_v30 }
0x2893   :  { %20643 = vmatprep.subr.bf16.mxu0 %v24053_v51 }
0x2895   :  { %19567 = vmatmul.mubr.msk.f32.vlgmr.msra.gmra.mrb[46].mxu0 %vm229_vm1, %v22125_v53 }
0x2896   :  { %20645 = vmatpush3.bf16.msra.mxu0 %v21494_v54  ;;  %19587 = vmatprep.mubr.msk.f32.mxu0 %vm21281_vm4, %v24059_v38 }
0x2897   :  { %18431 = vmatprep.subr.msk.mxu0 %vm826_vm2, %v21573_v35 }
0x2960   :  { %v4066_v49 = vpop.f32.mrb[44].mxu0 }
0x2961   :  { %v4067_v15 = vadd.f32 %v4066_v49, %v21848_v47  ;;  %v19546_v61 = vpop.f32.mrb[45].mxu0 }
0x2963   :  { %v18420_v32 = vmul.f32 -1.442695, %v4067_v15 }
0x2965   :  { %20981 = vpow2.f32 %v18420_v32 }
0x2968   :  { %v4216_v63 = vpop.f32.mrb[46].mxu0 }
0x2969   :  { %v22144_v20 = vadd.f32 %v21854_v59, %v4216_v63  ;;  %v19568_v24 = vpop.f32.mrb[47].mxu0 }
0x296b   :  { %19588 = vmatmul.mubr.msk.f32.vlgmr.msra.gmra.mrb[48].mxu0 %vm81_vm0, %v22144_v20 }
0x296c   :  { %18432 = vmatpush1.msk.msra.mxu0 %vm826_vm2, %v22151_v6  ;;  %4615 = vmatprep.mubr.f32.mxu0 %v24059_v38 }
0x296d   :  { %19597 = vmatprep.subr.mxu0 %v24059_v38 }
0x296f   :  { %v20982_v7 = vpop.eup %20981 }
0x2970   :  { %v4073_v57 = vadd.f32 1.0, %v20982_v7 }
0x2972   :  { %20983 = vrcp.f32 %v4073_v57 }
0x297c   :  { %v20984_v59 = vpop.eup %20983 }
0x297d   :  { %v4076_v2 = vmul.f32 %v20984_v59, %v4067_v15 }
0x297f   :  { %19556 = vmatmul.mubr.msk.f32.vlgmr.msra.gmra.mrb[46].mxu1 %vm229_vm1, %v4076_v2 }
0x2980   :  { %20639 = vmatpush3.bf16.msra.mxu1 %v21533_v21  ;;  %19573 = vmatprep.mubr.msk.f32.mxu1 %vm21281_vm4, %v24059_v38 }
0x2981   :  { %20640 = vmatprep.subr.bf16.mxu1 %v24053_v51 }
0x2a3e   :  { %v4442_v8 = vpop.f32.mrb[48].mxu0 }
0x2a3f   :  { %v19589_v12 = vpop.f32.mrb[49].mxu0 }
0x2a52   :  { %v4146_v25 = vpop.f32.mrb[46].mxu1 }
0x2a53   :  { %v4147_v34 = vadd.f32 %v21873_v14, %v4146_v25  ;;  %v19557_v48 = vpop.f32.mrb[47].mxu1  ;;  %v22197_v25 = vld [vmem:[%s24083_s2] sm:$0x3] }
0x2a55   :  { %4455 = vrot.lane.b32.xlu0 %v4147_v34, %s24088_s28  ;;  %19574 = vmatmul.mubr.msk.f32.vlgmr.msra.gmra.mrb[48].mxu1 %vm81_vm0, %v4147_v34  ;;  %v4454_v55 = vadd.f32 %v4147_v34, %v21884_v39 }
0x2a56   :  { %20642 = vmatpush3.bf16.msra.mxu1 %v21533_v21  ;;  %19580 = vmatprep.mubr.msk.f32.mxu1 %vm21281_vm4, %v24059_v38 }
0x2a57   :  { %18428 = vmatprep.subr.msk.mxu1 %vm826_vm2, %v21573_v35 }
0x2ac7   :  { %v4456_v13 = vpop.permute.xlu0 %4455 }
0x2ac8   :  { %v22171_v4 = vmax.f32 %v4454_v55, %v4456_v13 }
0x2aca   :  { %v4466_v14 = vsub.f32 %v4147_v34, %v22171_v4  ;;  %4460 = vrot.lane.b32.xlu1 %v22171_v4, %s24089_s26 }
0x2acc   :  { %v4467_v49 = vadd.f32 %v4466_v14, %v21884_v39 }
0x2ace   :  { %v4468_v15 = vmul.f32 1.442695, %v4467_v49  ;;  %4299 = vrot.lane.b32.xlu1 %v4147_v34, %s24086_s5 }
0x2ad0   :  { %20985 = vpow2.f32 %v4468_v15 }
0x2ada   :  { %v20986_v61 = vpop.eup %20985 }
0x2adb   :  { %4471 = vrot.lane.b32.xlu0 %v20986_v61, %s24090_s13 }
0x2b28   :  { %v4295_v32 = vpop.f32.mrb[48].mxu1 }
0x2b29   :  { %v19575_v63 = vpop.f32.mrb[49].mxu1 }
0x2b3c   :  { %v4461_v24 = vpop.permute.xlu1 %4460 }
0x2b3d   :  { %v4463_v7 = vsub.f32 %v4147_v34, %v4461_v24 }
0x2b3f   :  { %v4464_v57 = vmul.f32 1.442695, %v4463_v7 }
0x2b40   :  { %v22179_v59 = vpop.permute.xlu1 %4299 }
0x2b41   :  { %20987 = vpow2.f32 %v4464_v57  ;;  %19581 = vmatmul.mubr.msk.f32.vlgmr.msra.gmra.mrb[50].mxu1 %vm81_vm0, %v22179_v59 }
0x2b42   :  { %18429 = vmatpush1.msk.msra.mxu1 %vm826_vm2, %v22151_v6  ;;  %4539 = vmatprep.mubr.f32.mxu1 %v24059_v38 }
0x2b43   :  { %20646 = vmatprep.subr.bf16.mxu1 %v24053_v51 }
0x2b4b   :  { %v20988_v39 = vpop.eup %20987 }
0x2b4c   :  { %4547 = vrot.lane.b32.xlu1 %v20988_v39, %s24091_s27 }
0x2b4d   :  { %v4472_v2 = vpop.permute.xlu0 %4471 }
0x2b4e   :  { %18430 = vmatmul.mubr.msk.f32.vlgmr.msra.gmra.mrb[52].mxu1 %vm823_vm3, %v4472_v2 }
0x2b4f   :  { %20648 = vmatpush3.bf16.xpose.msra.mxu1 %v21494_v54  ;;  %19594 = vmatprep.mubr.msk.f32.mxu1 %vm21281_vm4, %v24059_v38 }
0x2b50   :  { %19607 = vmatprep.subr.mxu1 %v24059_v38 }
0x2bbe   :  { %v4548_v12 = vpop.permute.xlu1 %4547 }
0x2bbf   :  { %18433 = vmatmul.mubr.msk.f32.vlgmr.msra.gmra.mrb[50].mxu0 %vm823_vm3, %v4548_v12 }
0x2bc0   :  { %19598 = vmatpush3.xpose.msk.msra.mxu0 %vm81_vm0, %v22197_v25  ;;  %19599 = vmatprep.mubr.msk.f32.mxu0 %vm21281_vm4, %v24059_v38 }
0x2bc1   :  { %19602 = vmatprep.subr.mxu0 %v24059_v38 }
0x2c14   :  { %v4369_v48 = vpop.f32.mrb[50].mxu1 }
0x2c15   :  { %v4446_v55 = vmul.f32 %v4442_v8, %v4369_v48  ;;  %v19582_v13 = vpop.f32.mrb[51].mxu1 }
0x2c21   :  { %v4541_v14 = vpop.f32.mrb[52].mxu1 }
0x2c22   :  { %v4543_v49 = vpop.f32.mrb[53].mxu1  ;;  %v4622_v61 = vmul.f32 %v4541_v14, %v21917_v3 }
0x2c23   :  { %v4625_v7 = vmul.f32 %v4543_v49, %v21919_v5 }
0x2c92   :  { %v4617_v15 = vpop.f32.mrb[50].mxu0 }
0x2c93   :  { %v4623_v63 = vmul.f32 %v4617_v15, %v4446_v55  ;;  %v4619_v24 = vpop.f32.mrb[51].mxu0  ;;  %v18423_v15 = vmul.f32 -1.442695, %v22144_v20 }
0x2c94   :  { %v4627_v57 = vmul.f32 %v4619_v24, %v22179_v59 }
0x2c95   :  { %v22207_v39 = vadd.f32 %v4623_v63, %v4622_v61 }
0x2c96   :  { %v22209_v2 = vadd.f32 %v4627_v57, %v4625_v7 }
0x2c97   :  { %v4629_v12 = vmul.f32 %v22207_v39, %v4295_v32 }
0x2c98   :  { %v4700_v8 = vmul.f32 %v22209_v2, %v4147_v34 }
0x2c99   :  { %19595 = vmatmul.mubr.f32.vlgmr.msra.gmra.mrb[54].mxu1 %v4629_v12 }
0x2c9a   :  { %19600 = vmatmul.mubr.msk.f32.vlgmr.msra.gmra.mrb[52].mxu0 %vm81_vm0, %v4700_v8  ;;  %19608 = vmatpush3.xpose.msk.msra.mxu1 %vm81_vm0, %v22197_v25 }
0x2c9b   :  { %19603 = vmatpush3.msk.msra.mxu0 %vm826_vm2, %v22197_v25  ;;  %19604 = vmatprep.mubr.msk.f32.mxu0 %vm21281_vm4, %v24059_v38 }
0x2c9c   :  { %19609 = vmatprep.mubr.msk.f32.mxu1 %vm21281_vm4, %v24059_v38  ;;  %19612 = vmatprep.subr.mxu0 %v24059_v38 }
0x2c9d   :  { %19617 = vmatprep.subr.mxu1 %v24059_v38 }
0x2d6c   :  { %v4696_v3 = vpop.f32.mrb[54].mxu1 }
0x2d6d   :  { %4851 = vrot.lane.b32.xlu0 %v4696_v3, %s24092_s0  ;;  %v19596_v5 = vpop.f32.mrb[55].mxu1  ;;  %v4770_v34 = vpop.f32.mrb[52].mxu0 }
0x2d6e   :  { %v4774_v32 = vand.u32 2147483647, %v4770_v34  ;;  %v19601_v48 = vpop.f32.mrb[53].mxu0 }
0x2d6f   :  { %v5254_v48 = vrot.slane %v21961_v9, 6 }
0x2d70   :  { %v4775_v55 = vmax.f32 %v4774_v32, 1.0  ;;  %v18427_v32 = vmul.f32 -1.442695, %v22125_v53 }
0x2d72   :  { %20989 = vrcp.f32 %v4775_v55  ;;  %v5256_v55 = vadd.f32 %v5254_v48, %v21545_v27 }
0x2d73   :  { %20991 = vpow2.f32 %v18423_v15 }
0x2d7c   :  { %v20990_v13 = vpop.eup %20989 }
0x2d7d   :  { %19605 = vmatmul.mubr.msk.f32.vlgmr.msra.gmra.mrb[54].mxu0 %vm823_vm3, %v20990_v13  ;;  %v20992_v61 = vpop.eup %20991  ;;  %v22251_v13 = vmax.f32 %v5256_v55, %v21557_v31 }
0x2d7e   :  { %19613 = vmatpush3.msk.msra.mxu0 %vm826_vm2, %v22197_v25  ;;  %19614 = vmatprep.mubr.msk.f32.mxu0 %vm21281_vm4, %v24059_v38  ;;  %v4223_v63 = vadd.f32 1.0, %v20992_v61 }
0x2d7f   :  { %19622 = vmatprep.subr.mxu0 %v24059_v38 }
0x2d80   :  { %20993 = vrcp.f32 %v4223_v63 }
0x2d81   :  { %20995 = vpow2.f32 %v18427_v32 }
0x2d8a   :  { %v20994_v7 = vpop.eup %20993 }
0x2ddf   :  { %v4852_v24 = vpop.permute.xlu0 %4851 }
0x2de0   :  { %v4854_v57 = vmul.f32 %v20994_v7, %v4852_v24 }
0x2e50   :  { %v4846_v14 = vpop.f32.mrb[54].mxu0 }
0x2e51   :  { %4856 = vrot.lane.b32.xlu1 %v4846_v14, %s24092_s0  ;;  %v19606_v49 = vpop.f32.mrb[55].mxu0  ;;  %v5265_v14 = vsub.f32 %v21545_v27, %v22251_v13 }
0x2e52   :  { %v20996_v49 = vpop.eup %20995 }
0x2e53   :  { %v4450_v15 = vadd.f32 1.0, %v20996_v49  ;;  %v5266_v61 = vadd.f32 %v5265_v14, %v5254_v48 }
0x2e55   :  { %20997 = vrcp.f32 %v4450_v15  ;;  %v5267_v63 = vmul.f32 1.442695, %v5266_v61 }
0x2e57   :  { %20999 = vpow2.f32 %v5267_v63 }
0x2e5f   :  { %v20998_v9 = vpop.eup %20997 }
0x2ec3   :  { %v4857_v12 = vpop.permute.xlu1 %4856 }
0x2ec4   :  { %v4859_v8 = vmul.f32 %v4857_v12, %v4854_v57  ;;  %v4453_v57 = vmul.f32 %v20998_v9, %v22125_v53  ;;  %v21000_v12 = vpop.eup %20999 }
0x2ec6   :  { %4861 = vrot.lane.b32.xlu0 %v4859_v8, %s24086_s5 }
0x2f38   :  { %v4862_v3 = vpop.permute.xlu0 %4861 }
0x2f39   :  { %19610 = vmatmul.mubr.msk.f32.vlgmr.msra.gmra.mrb[56].mxu1 %vm81_vm0, %v4862_v3  ;;  %v5270_v3 = vrot.slane %v21000_v12, 4 }
0x2f3a   :  { %19618 = vmatpush3.xpose.msk.msra.mxu1 %vm81_vm0, %v22197_v25  ;;  %19619 = vmatprep.mubr.msk.f32.mxu1 %vm21281_vm4, %v24059_v38 }
0x2f3b   :  { %20649 = vmatprep.subr.bf16.mxu1 %v24053_v51 }
0x300c   :  { %v4931_v20 = vpop.f32.mrb[56].mxu1 }
0x300d   :  { %v4935_v5 = vmul.f32 0.125, %v4931_v20  ;;  %v19611_v34 = vpop.f32.mrb[57].mxu1  ;;  %v5429_v20 = vrot.slane %v21545_v27, 4 }
0x300f   :  { %19615 = vmatmul.mubr.msk.f32.vlgmr.msra.gmra.mrb[56].mxu0 %vm823_vm3, %v4935_v5 }
0x3010   :  { %19623 = vmatpush3.msk.msra.mxu0 %vm826_vm2, %v22197_v25  ;;  %19624 = vmatprep.mubr.msk.f32.mxu0 %vm21281_vm4, %v24059_v38 }
0x3011   :  { %18447 = vmatprep.subr.msk.mxu0 %vm826_vm2, %v21573_v35 }
0x30e2   :  { %v5005_v24 = vpop.f32.mrb[56].mxu0 }
0x30e3   :  { %5010 = vrot.lane.b32.xlu1 %v5005_v24, %s24092_s0  ;;  %v19616_v7 = vpop.f32.mrb[57].mxu0 }
0x30e7   :  { %5259 = vrot.lane.b32.xlu1 %v22251_v13, %s24089_s26 }
0x30eb   :  { %5174 = vrot.lane.b32.xlu1 %v4453_v57, %s24086_s5 }
0x30ef   :  { %5271 = vrot.lane.b32.xlu1 %v5270_v3, %s24090_s13 }
0x30f3   :  { %5430 = vrot.lane.b32.xlu1 %v5429_v20, %s24086_s5 }
0x3155   :  { %v5011_v5 = vpop.permute.xlu1 %5010 }
0x3156   :  { %v5013_v34 = vsub.f32 %v4859_v8, %v5011_v5 }
0x3158   :  { %v5014_v32 = vmul.f32 %v5013_v34, %v5013_v34 }
0x3159   :  { %v5260_v53 = vpop.permute.xlu1 %5259 }
0x315a   :  { %5016 = vrot.lane.b32.xlu0 %v5014_v32, %s24086_s5  ;;  %v5262_v12 = vsub.f32 %v21545_v27, %v5260_v53 }
0x315c   :  { %v5263_v3 = vmul.f32 1.442695, %v5262_v12 }
0x315d   :  { %v5175_v55 = vpop.permute.xlu1 %5174 }
0x3161   :  { %v5272_v8 = vpop.permute.xlu1 %5271 }
0x31cc   :  { %v5017_v48 = vpop.permute.xlu0 %5016 }
0x31cd   :  { %19620 = vmatmul.mubr.msk.f32.vlgmr.msra.gmra.mrb[58].mxu1 %vm81_vm0, %v5017_v48 }
0x31ce   :  { %20651 = vmatpush3.bf16.msra.mxu1 %v22005_v33  ;;  %19631 = vmatprep.mubr.msk.f32.mxu1 %vm21281_vm4, %v24059_v38 }
0x31cf   :  { %18450 = vmatprep.subr.msk.mxu1 %vm826_vm2, %v21573_v35 }
0x32a0   :  { %v5086_v14 = vpop.f32.mrb[58].mxu1 }
0x32a1   :  { %v5090_v49 = vmul.f32 0.125, %v5086_v14  ;;  %v19621_v15 = vpop.f32.mrb[59].mxu1 }
0x32a3   :  { %19625 = vmatmul.mubr.msk.f32.vlgmr.msra.gmra.mrb[58].mxu0 %vm823_vm3, %v5090_v49 }
0x32a4   :  { %18448 = vmatpush1.msk.msra.mxu0 %vm826_vm2, %v22151_v6  ;;  %5339 = vmatprep.mubr.f32.mxu0 %v24059_v38 }
0x32a5   :  { %20652 = vmatprep.subr.bf16.mxu0 %v24053_v51 }
0x32a7   :  { %18449 = vmatmul.mubr.msk.f32.vlgmr.msra.gmra.mrb[60].mxu0 %vm823_vm3, %v5272_v8 }
0x32a8   :  { %19638 = vmatprep.mubr.msk.f32.mxu0 %vm21281_vm4, %v24059_v38 }
0x32ab   :  { %20654 = vmatpush3.bf16.xpose.msra.mxu0 %v21494_v54 }
0x32ac   :  { %19651 = vmatprep.subr.mxu0 %v24059_v38 }
0x3376   :  { %v5160_v61 = vpop.f32.mrb[58].mxu0 }
0x3377   :  { %v5161_v63 = vadd.f32 1e-05, %v5160_v61  ;;  %v19626_v24 = vpop.f32.mrb[59].mxu0 }
0x3379   :  { %21001 = vrsqrt.f32 %v5161_v63 }
0x337a   :  { %v5341_v7 = vpop.f32.mrb[60].mxu0  ;;  %21003 = vpow2.f32 %v5263_v3  ;;  %v5424_v3 = vrot.slane %v21625_v58, 4 }
0x337b   :  { %v5343_v9 = vpop.f32.mrb[61].mxu0 }
0x3383   :  { %v21002_v57 = vpop.eup %21001 }
0x3384   :  { %5166 = vrot.lane.b32.xlu0 %v21002_v57, %s24092_s0  ;;  %v21004_v8 = vpop.eup %21003 }
0x3385   :  { %v5347_v61 = vrot.slane %v21004_v8, 4 }
0x33f6   :  { %v5167_v5 = vpop.permute.xlu0 %5166 }
0x33f7   :  { %v5169_v32 = vmul.f32 %v5167_v5, %v5013_v34 }
0x33f9   :  { %v5170_v48 = vmul.f32 %v5169_v32, %v21983_v42 }
0x33fb   :  { %v5171_v14 = vadd.f32 %v5170_v48, %v22013_v1  ;;  %v5431_v48 = vpop.permute.xlu1 %5430 }
0x33fd   :  { %v5172_v49 = vadd.f32 %v5171_v14, %v22179_v59  ;;  %v22303_v59 = vld [vmem:[%s24023_s21 + $0x1] ss:$0 sm:$0xff]  ;;  %v5423_v14 = vmul.f32 %v5341_v7, %v22036_v17 }
0x33ff   :  { %v5177_v15 = vmul.f32 %v5175_v55, %v5172_v49  ;;  %v3088_v55 = vadd.f32 %v22303_v59, %v22030_v44  ;;  %v5435_v44 = vrot.slane %v21590_v41, 4 }
0x3401   :  { %5179 = vrot.lane.b32.xlu0 %v5177_v15, %s24086_s5  ;;  %v3091_v32 = vadd.f32 %v3088_v55, %v21731_v36 }
0x3405   :  { %5348 = vrot.lane.b32.xlu0 %v5347_v61, %s24091_s27  ;;  %v5428_v61 = vmul.f32 %v5343_v9, %v22038_v29 }
0x3473   :  { %v5180_v63 = vpop.permute.xlu0 %5179 }
0x3474   :  { %19632 = vmatmul.mubr.msk.f32.vlgmr.msra.gmra.mrb[60].mxu1 %vm81_vm0, %v5180_v63 }
0x3475   :  { %18451 = vmatpush1.msk.msra.mxu1 %vm826_vm2, %v22151_v6  ;;  %5416 = vmatprep.mubr.f32.mxu1 %v24059_v38 }
0x3476   :  { %19641 = vmatprep.subr.mxu1 %v24059_v38 }
0x3477   :  { %v5349_v34 = vpop.permute.xlu0 %5348 }
0x3478   :  { %18452 = vmatmul.mubr.msk.f32.vlgmr.msra.gmra.mrb[62].mxu1 %vm823_vm3, %v5349_v34 }
0x3479   :  { %19643 = vmatprep.mubr.msk.f32.mxu1 %vm21281_vm4, %v24059_v38 }
0x347c   :  { %19642 = vmatpush3.xpose.msk.msra.mxu1 %vm81_vm0, %v22197_v25 }
0x347d   :  { %19646 = vmatprep.subr.mxu1 %v24059_v38 }
0x3547   :  { %v5249_v53 = vpop.f32.mrb[60].mxu1 }
0x3548   :  { %v5250_v24 = vadd.f32 %v22303_v59, %v5249_v53  ;;  %v19633_v57 = vpop.f32.mrb[61].mxu1 }
0x354a   :  { %v5253_v12 = vadd.f32 %v5250_v24, %v22109_v23 }
0x354b   :  { %v5418_v5 = vpop.f32.mrb[62].mxu1 }
0x354c   :  { %v18200_v49 = vrot.slane %v5253_v12, 6  ;;  %v5426_v15 = vmul.f32 %v5424_v3, %v5418_v5  ;;  %v5420_v8 = vpop.f32.mrb[63].mxu1 }
0x354d   :  { %v5433_v63 = vmul.f32 %v5431_v48, %v5420_v8 }
0x354e   :  { %v22315_v34 = vsel %vm826_vm2, %v3091_v32, %v18200_v49  ;;  %v22317_v23 = vadd.f32 %v5426_v15, %v5423_v14 }
0x354f   :  { %v22319_v53 = vadd.f32 %v5433_v63, %v5428_v61 }
0x3550   :  { %v5437_v36 = vmul.f32 %v5435_v44, %v22317_v23 }
0x3551   :  { %v5509_v17 = vmul.f32 %v22319_v53, %v5429_v20 }
0x3552   :  { %19639 = vmatmul.mubr.f32.vlgmr.msra.gmra.mrb[62].mxu0 %v5437_v36 }
0x3553   :  { %19644 = vmatmul.mubr.msk.f32.vlgmr.msra.gmra.mrb[64].mxu1 %vm81_vm0, %v5509_v17  ;;  %19652 = vmatpush3.xpose.msk.msra.mxu0 %vm81_vm0, %v22197_v25 }
0x3554   :  { %19647 = vmatpush3.msk.msra.mxu1 %vm826_vm2, %v22197_v25  ;;  %19648 = vmatprep.mubr.msk.f32.mxu1 %vm21281_vm4, %v24059_v38 }
0x3555   :  { %19653 = vmatprep.mubr.msk.f32.mxu0 %vm21281_vm4, %v24059_v38  ;;  %19656 = vmatprep.subr.mxu1 %v24059_v38 }
0x3556   :  { %19661 = vmatprep.subr.mxu0 %v24059_v38 }
0x3625   :  { %v5504_v29 = vpop.f32.mrb[62].mxu0 }
0x3626   :  { %v5660_v20 = vrot.slane %v5504_v29, 4  ;;  %v19640_v7 = vpop.f32.mrb[63].mxu0  ;;  %v5579_v9 = vpop.f32.mrb[64].mxu1 }
0x3627   :  { %v5583_v55 = vand.u32 2147483647, %v5579_v9  ;;  %v19645_v24 = vpop.f32.mrb[65].mxu1 }
0x3628   :  { %5661 = vrot.lane.b32.xlu0 %v5660_v20, %s24092_s0 }
0x3629   :  { %v5584_v57 = vmax.f32 %v5583_v55, 1.0 }
0x362b   :  { %21005 = vrcp.f32 %v5584_v57 }
0x3635   :  { %v21006_v12 = vpop.eup %21005 }
0x3636   :  { %19649 = vmatmul.mubr.msk.f32.vlgmr.msra.gmra.mrb[66].mxu1 %vm823_vm3, %v21006_v12 }
0x3637   :  { %19657 = vmatpush3.msk.msra.mxu1 %vm826_vm2, %v22197_v25  ;;  %19658 = vmatprep.mubr.msk.f32.mxu1 %vm21281_vm4, %v24059_v38 }
0x3638   :  { %19666 = vmatprep.subr.mxu1 %v24059_v38 }
0x369a   :  { %v5662_v48 = vpop.permute.xlu0 %5661 }
0x369b   :  { %v5664_v14 = vmul.f32 %v21664_v26, %v5662_v48 }
0x3709   :  { %v5655_v3 = vpop.f32.mrb[66].mxu1 }
0x370a   :  { %v5666_v5 = vrot.slane %v5655_v3, 4  ;;  %v19650_v32 = vpop.f32.mrb[67].mxu1 }
0x370c   :  { %5667 = vrot.lane.b32.xlu1 %v5666_v5, %s24092_s0 }
0x377e   :  { %v5668_v49 = vpop.permute.xlu1 %5667 }
0x377f   :  { %v5670_v15 = vmul.f32 %v5668_v49, %v5664_v14 }
0x3781   :  { %v5672_v8 = vrot.slane %v5670_v15, 4 }
0x3783   :  { %5673 = vrot.lane.b32.xlu0 %v5672_v8, %s24086_s5 }
0x37f5   :  { %v5674_v61 = vpop.permute.xlu0 %5673 }
0x37f6   :  { %19654 = vmatmul.mubr.msk.f32.vlgmr.msra.gmra.mrb[64].mxu0 %vm81_vm0, %v5674_v61 }
0x37f7   :  { %19662 = vmatpush3.xpose.msk.msra.mxu0 %vm81_vm0, %v22197_v25  ;;  %19663 = vmatprep.mubr.msk.f32.mxu0 %vm21281_vm4, %v24059_v38 }
0x37f8   :  { %20655 = vmatprep.subr.bf16.mxu0 %v24053_v51 }
0x38c9   :  { %v5743_v63 = vpop.f32.mrb[64].mxu0 }
0x38ca   :  { %v5747_v44 = vmul.f32 0.125, %v5743_v63  ;;  %v19655_v36 = vpop.f32.mrb[65].mxu0 }
0x38cc   :  { %19659 = vmatmul.mubr.msk.f32.vlgmr.msra.gmra.mrb[68].mxu1 %vm823_vm3, %v5747_v44 }
0x38cd   :  { %19667 = vmatpush3.msk.msra.mxu1 %vm826_vm2, %v22197_v25  ;;  %19668 = vmatprep.mubr.msk.f32.mxu1 %vm21281_vm4, %v24059_v38 }
0x38ce   :  { %20658 = vmatprep.subr.bf16.mxu1 %v24053_v51 }
0x399f   :  { %v5817_v17 = vpop.f32.mrb[68].mxu1 }
0x39a0   :  { %v5822_v29 = vrot.slane %v5817_v17, 4  ;;  %v19660_v20 = vpop.f32.mrb[69].mxu1 }
0x39a2   :  { %5823 = vrot.lane.b32.xlu1 %v5822_v29, %s24092_s0 }
0x3a14   :  { %v5824_v7 = vpop.permute.xlu1 %5823 }
0x3a15   :  { %v5826_v9 = vsub.f32 %v5670_v15, %v5824_v7  ;;  %v6065_v7 = vrot.slane %v22105_v0, 4 }
0x3a17   :  { %v5827_v55 = vmul.f32 %v5826_v9, %v5826_v9 }
0x3a19   :  { %v5829_v24 = vrot.slane %v5827_v55, 4  ;;  %v22387_v55 = vld [vmem:[%s24023_s21] ss:$0 sm:$0xff] }
0x3a1b   :  { %5830 = vrot.lane.b32.xlu0 %v5829_v24, %s24086_s5 }
0x3a8d   :  { %v5831_v57 = vpop.permute.xlu0 %5830 }
0x3a8e   :  { %19664 = vmatmul.mubr.msk.f32.vlgmr.msra.gmra.mrb[66].mxu0 %vm81_vm0, %v5831_v57 }
0x3a8f   :  { %20657 = vmatpush3.bf16.msra.mxu0 %v21701_v11  ;;  %19675 = vmatprep.mubr.msk.f32.mxu0 %vm21281_vm4, %v24059_v38 }
0x3a90   :  { %20661 = vmatprep.subr.bf16.mxu0 %v24053_v51 }
0x3b61   :  { %v5900_v12 = vpop.f32.mrb[66].mxu0 }
0x3b62   :  { %v5904_v3 = vmul.f32 0.125, %v5900_v12  ;;  %v19665_v5 = vpop.f32.mrb[67].mxu0 }
0x3b64   :  { %19669 = vmatmul.mubr.msk.f32.vlgmr.msra.gmra.mrb[70].mxu1 %vm823_vm3, %v5904_v3 }
0x3b65   :  { %20660 = vmatpush3.bf16.msra.mxu1 %v21746_v52  ;;  %19682 = vmatprep.mubr.msk.f32.mxu1 %vm21281_vm4, %v24059_v38 }
0x3b66   :  { %20667 = vmatprep.subr.bf16.mxu1 %v24053_v51 }
0x3c37   :  { %v5974_v32 = vpop.f32.mrb[70].mxu1 }
0x3c38   :  { %v5975_v48 = vadd.f32 1e-05, %v5974_v32  ;;  %v19670_v14 = vpop.f32.mrb[71].mxu1 }
0x3c3a   :  { %21007 = vrsqrt.f32 %v5975_v48 }
0x3c44   :  { %v21008_v49 = vpop.eup %21007 }
0x3c45   :  { %v5980_v15 = vrot.slane %v21008_v49, 4 }
0x3c47   :  { %5981 = vrot.lane.b32.xlu1 %v5980_v15, %s24092_s0 }
0x3cb9   :  { %v5982_v8 = vpop.permute.xlu1 %5981 }
0x3cba   :  { %v5984_v61 = vmul.f32 %v5982_v8, %v5826_v9 }
0x3cbc   :  { %v5985_v63 = vmul.f32 %v5984_v61, %v21710_v16 }
0x3cbe   :  { %v5986_v44 = vadd.f32 %v5985_v63, %v21713_v18 }
0x3cc0   :  { %v5987_v36 = vadd.f32 %v5986_v44, %v21593_v45  ;;  %v22399_v44 = vld [vmem:[%s24074_s29 + $0x1] ss:$0 sm:$0xff] }
0x3cc2   :  { %v5988_v17 = vmul.f32 %v5987_v36, %v21717_v22 }
0x3cc4   :  { %v5990_v29 = vrot.slane %v5988_v17, 4  ;;  %v22405_v17 = vld [vmem:[%s24075_s7 + $0x1] ss:$0 sm:$0xff] }
0x3cc6   :  { %5991 = vrot.lane.b32.xlu0 %v5990_v29, %s24086_s5 }
0x3d38   :  { %v5992_v20 = vpop.permute.xlu0 %5991 }
0x3d39   :  { %19676 = vmatmul.mubr.msk.f32.vlgmr.msra.gmra.mrb[68].mxu0 %vm81_vm0, %v5992_v20 }
0x3d3a   :  { %20663 = vmatpush3.bf16.msra.mxu0 %v21759_v60  ;;  %19693 = vmatprep.mubr.msk.f32.mxu0 %vm21281_vm4, %v24059_v38 }
0x3d3b   :  { %20664 = vmatprep.subr.bf16.mxu0 %v24053_v51 }
0x3d3e   :  { %20666 = vmatpush3.bf16.msra.mxu0 %v21765_v62 }
0x3d3f   :  { %20673 = vmatprep.subr.bf16.mxu0 %v24053_v51 }
0x3e0c   :  { %v6061_v9 = vpop.f32.mrb[68].mxu0 }
0x3e0d   :  { %v6062_v24 = vadd.f32 %v22387_v55, %v6061_v9  ;;  %v19677_v57 = vpop.f32.mrb[69].mxu0 }
0x3e0f   :  { %v22390_v12 = vadd.f32 %v6065_v7, %v6062_v24  ;;  %v22418_v7 = vld [vmem:[%s24013_s11 + $0x1] ss:$0 sm:$0xff] }
0x3e11   :  { %v6068_v3 = vsel %vm1646_vm5, %v22390_v12, 0.0 }
0x3e12   :  { %6069 = vadd.xlane.f32.xlu1 %v6068_v3 }
0x3e9f   :  { %v6070_v5 = vpop.xlane.xlu1 %6069 }
0x3ea0   :  { %v6071_v32 = vmul.f32 0.0625, %v6070_v5 }
0x3ea2   :  { %v6072_v48 = vsub.f32 %v22390_v12, %v6071_v32 }
0x3ea4   :  { %v6073_v0 = vmul.f32 %v6072_v48, %v6072_v48 }
0x3ea6   :  { %v6074_v14 = vsel %vm1646_vm5, %v6073_v0, 0.0  ;;  %v22442_v0 = vld [vmem:[%s24019_s17 + $0x1] ss:$0 sm:$0xff] }
0x3ea7   :  { %6075 = vadd.xlane.f32.xlu0 %v6074_v14 }
0x3f34   :  { %v6076_v49 = vpop.xlane.xlu0 %6075 }
0x3f35   :  { %v6077_v15 = vmul.f32 0.0625, %v6076_v49 }
0x3f37   :  { %v6078_v8 = vadd.f32 1e-05, %v6077_v15 }
0x3f39   :  { %21009 = vrsqrt.f32 %v6078_v8 }
0x3f43   :  { %v21010_v61 = vpop.eup %21009 }
0x3f44   :  { %v6080_v63 = vmul.f32 %v21010_v61, %v6072_v48 }
0x3f46   :  { %v6081_v36 = vmul.f32 %v22399_v44, %v6080_v63 }
0x3f48   :  { %v6082_v29 = vadd.f32 %v22405_v17, %v6081_v36 }
0x3f4a   :  { %19683 = vmatmul.mubr.msk.f32.vlgmr.msra.gmra.mrb[72].mxu1 %vm81_vm0, %v6082_v29 }
0x3f4b   :  { %20669 = vmatpush3.bf16.msra.mxu1 %v21830_v37  ;;  %19704 = vmatprep.mubr.msk.f32.mxu1 %vm21281_vm4, %v24059_v38 }
0x3f4c   :  { %20670 = vmatprep.subr.bf16.mxu1 %v24053_v51 }
0x3f4f   :  { %20672 = vmatpush3.bf16.msra.mxu1 %v21840_v43 }
0x3f50   :  { %20679 = vmatprep.subr.bf16.mxu1 %v24053_v51 }
0x401d   :  { %v6152_v20 = vpop.f32.mrb[72].mxu1 }
0x401e   :  { %v22421_v9 = vadd.f32 %v22418_v7, %v6152_v20  ;;  %v19684_v24 = vpop.f32.mrb[73].mxu1 }
0x401f   :  { %v22461_v24 = vld [vmem:[%s24017_s15 + $0x1] ss:$0 sm:$0xff] }
0x4020   :  { %19694 = vmatmul.mubr.msk.f32.vlgmr.msra.gmra.mrb[70].mxu0 %vm229_vm1, %v22421_v9 }
0x4021   :  { %20675 = vmatpush3.bf16.msra.mxu0 %v21796_v19  ;;  %19715 = vmatprep.mubr.msk.f32.mxu0 %vm21281_vm4, %v24059_v38 }
0x4022   :  { %20676 = vmatprep.subr.bf16.mxu0 %v24053_v51 }
0x4025   :  { %20678 = vmatpush3.bf16.msra.mxu0 %v21810_v30 }
0x4026   :  { %20685 = vmatprep.subr.bf16.mxu0 %v24053_v51 }
0x4028   :  { %19716 = vmatmul.mubr.msk.f32.vlgmr.msra.gmra.mrb[72].mxu0 %vm229_vm1, %v22421_v9 }
0x4029   :  { %20687 = vmatpush3.bf16.msra.mxu0 %v21494_v54  ;;  %19736 = vmatprep.mubr.msk.f32.mxu0 %vm21281_vm4, %v24059_v38 }
0x402a   :  { %18479 = vmatprep.subr.msk.mxu0 %vm826_vm2, %v21573_v35 }
0x40f3   :  { %v6225_v57 = vpop.f32.mrb[70].mxu0 }
0x40f4   :  { %v6226_v3 = vadd.f32 %v6225_v57, %v21848_v47  ;;  %v19695_v5 = vpop.f32.mrb[71].mxu0 }
0x40f6   :  { %v18468_v32 = vmul.f32 -1.442695, %v6226_v3 }
0x40f8   :  { %21011 = vpow2.f32 %v18468_v32 }
0x40fb   :  { %v6375_v48 = vpop.f32.mrb[72].mxu0 }
0x40fc   :  { %v22445_v14 = vadd.f32 %v22442_v0, %v6375_v48  ;;  %v19717_v49 = vpop.f32.mrb[73].mxu0 }
0x40fe   :  { %19737 = vmatmul.mubr.msk.f32.vlgmr.msra.gmra.mrb[74].mxu0 %vm81_vm0, %v22445_v14 }
0x40ff   :  { %18480 = vmatpush1.msk.msra.mxu0 %vm826_vm2, %v22151_v6  ;;  %6774 = vmatprep.mubr.f32.mxu0 %v24059_v38 }
0x4100   :  { %19746 = vmatprep.subr.mxu0 %v24059_v38 }
0x4102   :  { %v21012_v15 = vpop.eup %21011 }
0x4103   :  { %v6232_v8 = vadd.f32 1.0, %v21012_v15 }
0x4105   :  { %21013 = vrcp.f32 %v6232_v8 }
0x410f   :  { %v21014_v61 = vpop.eup %21013 }
0x4110   :  { %v6235_v63 = vmul.f32 %v21014_v61, %v6226_v3 }
0x4112   :  { %19705 = vmatmul.mubr.msk.f32.vlgmr.msra.gmra.mrb[74].mxu1 %vm229_vm1, %v6235_v63 }
0x4113   :  { %20681 = vmatpush3.bf16.msra.mxu1 %v21533_v21  ;;  %19722 = vmatprep.mubr.msk.f32.mxu1 %vm21281_vm4, %v24059_v38 }
0x4114   :  { %20682 = vmatprep.subr.bf16.mxu1 %v24053_v51 }
0x41d1   :  { %v6601_v36 = vpop.f32.mrb[74].mxu0 }
0x41d2   :  { %v19738_v29 = vpop.f32.mrb[75].mxu0 }
0x41e5   :  { %v6305_v20 = vpop.f32.mrb[74].mxu1 }
0x41e6   :  { %v6306_v57 = vadd.f32 %v22461_v24, %v6305_v20  ;;  %v19706_v3 = vpop.f32.mrb[75].mxu1 }
0x41e8   :  { %6614 = vrot.lane.b32.xlu0 %v6306_v57, %s24088_s28  ;;  %19723 = vmatmul.mubr.msk.f32.vlgmr.msra.gmra.mrb[76].mxu1 %vm81_vm0, %v6306_v57  ;;  %v6613_v5 = vadd.f32 %v6306_v57, %v22171_v4 }
0x41e9   :  { %20684 = vmatpush3.bf16.msra.mxu1 %v21533_v21  ;;  %19729 = vmatprep.mubr.msk.f32.mxu1 %vm21281_vm4, %v24059_v38 }
0x41ea   :  { %18476 = vmatprep.subr.msk.mxu1 %vm826_vm2, %v21573_v35 }
0x425a   :  { %v6615_v32 = vpop.permute.xlu0 %6614 }
0x425b   :  { %v22472_v48 = vmax.f32 %v6613_v5, %v6615_v32 }
0x425d   :  { %v6625_v49 = vsub.f32 %v6306_v57, %v22472_v48  ;;  %6619 = vrot.lane.b32.xlu1 %v22472_v48, %s24089_s26 }
0x425f   :  { %v6626_v15 = vadd.f32 %v6625_v49, %v22171_v4 }
0x4261   :  { %v6627_v8 = vmul.f32 1.442695, %v6626_v15  ;;  %6458 = vrot.lane.b32.xlu1 %v6306_v57, %s24086_s5 }
0x4263   :  { %21015 = vpow2.f32 %v6627_v8 }
0x426d   :  { %v21016_v61 = vpop.eup %21015 }
0x426e   :  { %6630 = vrot.lane.b32.xlu0 %v21016_v61, %s24090_s13 }
0x42bb   :  { %v6454_v63 = vpop.f32.mrb[76].mxu1 }
0x42bc   :  { %v19724_v29 = vpop.f32.mrb[77].mxu1 }
0x42cf   :  { %v6620_v20 = vpop.permute.xlu1 %6619 }
0x42d0   :  { %v6622_v3 = vsub.f32 %v6306_v57, %v6620_v20 }
0x42d2   :  { %v6623_v5 = vmul.f32 1.442695, %v6622_v3 }
0x42d3   :  { %v22480_v32 = vpop.permute.xlu1 %6458 }
0x42d4   :  { %21017 = vpow2.f32 %v6623_v5  ;;  %19730 = vmatmul.mubr.msk.f32.vlgmr.msra.gmra.mrb[78].mxu1 %vm81_vm0, %v22480_v32 }
0x42d5   :  { %18477 = vmatpush1.msk.msra.mxu1 %vm826_vm2, %v22151_v6  ;;  %6698 = vmatprep.mubr.f32.mxu1 %v24059_v38 }
0x42d6   :  { %20688 = vmatprep.subr.bf16.mxu1 %v24053_v51 }
0x42de   :  { %v21018_v4 = vpop.eup %21017 }
0x42df   :  { %6706 = vrot.lane.b32.xlu1 %v21018_v4, %s24091_s27 }
0x42e0   :  { %v6631_v49 = vpop.permute.xlu0 %6630 }
0x42e1   :  { %18478 = vmatmul.mubr.msk.f32.vlgmr.msra.gmra.mrb[80].mxu1 %vm823_vm3, %v6631_v49 }
0x42e2   :  { %20690 = vmatpush3.bf16.xpose.msra.mxu1 %v21494_v54  ;;  %19743 = vmatprep.mubr.msk.f32.mxu1 %vm21281_vm4, %v24059_v38 }
0x42e3   :  { %19756 = vmatprep.subr.mxu1 %v24059_v38 }
0x4351   :  { %v6707_v15 = vpop.permute.xlu1 %6706 }
0x4352   :  { %18481 = vmatmul.mubr.msk.f32.vlgmr.msra.gmra.mrb[76].mxu0 %vm823_vm3, %v6707_v15 }
0x4353   :  { %19747 = vmatpush3.xpose.msk.msra.mxu0 %vm81_vm0, %v22197_v25  ;;  %19748 = vmatprep.mubr.msk.f32.mxu0 %vm21281_vm4, %v24059_v38 }
0x4354   :  { %19751 = vmatprep.subr.mxu0 %v24059_v38 }
0x43a7   :  { %v6528_v8 = vpop.f32.mrb[78].mxu1 }
0x43a8   :  { %v6605_v61 = vmul.f32 %v6601_v36, %v6528_v8  ;;  %v19731_v29 = vpop.f32.mrb[79].mxu1 }
0x43b4   :  { %v6700_v20 = vpop.f32.mrb[80].mxu1 }
0x43b5   :  { %v6702_v3 = vpop.f32.mrb[81].mxu1  ;;  %v6781_v4 = vmul.f32 %v6700_v20, %v22207_v39  ;;  %v24093_v39 = vmov 0.0   ;;  %v18471_v20 = vmul.f32 -1.442695, %v22445_v14  ;;  %v24094_v14 = vmov 0.0|0.0  }
0x43b6   :  { %v6784_v15 = vmul.f32 %v6702_v3, %v22209_v2 }
0x4425   :  { %v6776_v5 = vpop.f32.mrb[76].mxu0 }
0x4426   :  { %v6782_v49 = vmul.f32 %v6776_v5, %v6605_v61  ;;  %v6778_v51 = vpop.f32.mrb[77].mxu0 }
0x4427   :  { %v6786_v50 = vmul.f32 %v6778_v51, %v22480_v32 }
0x4428   :  { %v22503_v10 = vadd.f32 %v6782_v49, %v6781_v4 }
0x4429   :  { %v22505_v40 = vadd.f32 %v6786_v50, %v6784_v15 }
0x442a   :  { %v6788_v38 = vmul.f32 %v22503_v10, %v6454_v63 }
0x442b   :  { %v6859_v36 = vmul.f32 %v22505_v40, %v6306_v57 }
0x442c   :  { %19744 = vmatmul.mubr.f32.vlgmr.msra.gmra.mrb[82].mxu1 %v6788_v38 }
0x442d   :  { %19749 = vmatmul.mubr.msk.f32.vlgmr.msra.gmra.mrb[78].mxu0 %vm81_vm0, %v6859_v36  ;;  %19757 = vmatpush3.xpose.msk.msra.mxu1 %vm81_vm0, %v22197_v25 }
0x442e   :  { %19752 = vmatpush3.msk.msra.mxu0 %vm826_vm2, %v22197_v25  ;;  %19753 = vmatprep.mubr.msk.f32.mxu0 %vm21281_vm4, %v24093_v39 }
0x442f   :  { %19758 = vmatprep.mubr.msk.f32.mxu1 %vm21281_vm4, %v24093_v39  ;;  %19761 = vmatprep.subr.mxu0 %v24093_v39 }
0x4430   :  { %19766 = vmatprep.subr.mxu1 %v24093_v39 }
0x44ff   :  { %v6855_v50 = vpop.f32.mrb[82].mxu1 }
0x4500   :  { %7010 = vrot.lane.b32.xlu0 %v6855_v50, %s24092_s0  ;;  %v19745_v38 = vpop.f32.mrb[83].mxu1  ;;  %v6929_v51 = vpop.f32.mrb[78].mxu0 }
0x4501   :  { %v6933_v2 = vand.u32 2147483647, %v6929_v51  ;;  %v19750_v57 = vpop.f32.mrb[79].mxu0 }
0x4503   :  { %v6934_v63 = vmax.f32 %v6933_v2, 1.0 }
0x4505   :  { %21019 = vrcp.f32 %v6934_v63  ;;  %v18475_v63 = vmul.f32 -1.442695, %v22421_v9 }
0x4506   :  { %21021 = vpow2.f32 %v18471_v20 }
0x450f   :  { %v21020_v8 = vpop.eup %21019 }
0x4510   :  { %19754 = vmatmul.mubr.msk.f32.vlgmr.msra.gmra.mrb[80].mxu0 %vm823_vm3, %v21020_v8  ;;  %v21022_v3 = vpop.eup %21021  ;;  %v7413_v8 = vrot.slane %v22251_v13, 6 }
0x4511   :  { %19762 = vmatpush3.msk.msra.mxu0 %vm826_vm2, %v22197_v25  ;;  %19763 = vmatprep.mubr.msk.f32.mxu0 %vm21281_vm4, %v24093_v39  ;;  %v6382_v5 = vadd.f32 1.0, %v21022_v3 }
0x4512   :  { %19771 = vmatprep.subr.mxu0 %v24093_v39 }
0x4513   :  { %21023 = vrcp.f32 %v6382_v5 }
0x4514   :  { %21025 = vpow2.f32 %v18475_v63 }
0x451d   :  { %v21024_v49 = vpop.eup %21023 }
0x451e   :  { %v21026_v3 = vpop.eup %21025 }
0x451f   :  { %v6609_v5 = vadd.f32 1.0, %v21026_v3 }
0x4521   :  { %21027 = vrcp.f32 %v6609_v5 }
0x452b   :  { %v21028_v13 = vpop.eup %21027 }
0x4572   :  { %v7011_v4 = vpop.permute.xlu0 %7010 }
0x4573   :  { %v7013_v15 = vmul.f32 %v21024_v49, %v7011_v4 }
0x45e3   :  { %v7005_v61 = vpop.f32.mrb[80].mxu0 }
0x45e4   :  { %7015 = vrot.lane.b32.xlu1 %v7005_v61, %s24092_s0  ;;  %v19755_v29 = vpop.f32.mrb[81].mxu0  ;;  %v7415_v61 = vadd.f32 %v7413_v8, %v21545_v27 }
0x45e6   :  { %v22547_v29 = vmax.f32 %v7415_v61, %v21557_v31  ;;  %v6612_v31 = vmul.f32 %v21028_v13, %v22421_v9 }
0x45e8   :  { %v7424_v20 = vsub.f32 %v21545_v27, %v22547_v29 }
0x45ea   :  { %v7425_v4 = vadd.f32 %v7424_v20, %v7413_v8 }
0x45ec   :  { %v7426_v49 = vmul.f32 1.442695, %v7425_v4 }
0x45ee   :  { %21029 = vpow2.f32 %v7426_v49 }
0x4656   :  { %v7016_v36 = vpop.permute.xlu1 %7015 }
0x4657   :  { %v7018_v50 = vmul.f32 %v7016_v36, %v7013_v15 }
0x4659   :  { %7020 = vrot.lane.b32.xlu0 %v7018_v50, %s24086_s5 }
0x46cb   :  { %v7021_v38 = vpop.permute.xlu0 %7020 }
0x46cc   :  { %19759 = vmatmul.mubr.msk.f32.vlgmr.msra.gmra.mrb[84].mxu1 %vm81_vm0, %v7021_v38  ;;  %v21030_v38 = vpop.eup %21029 }
0x46cd   :  { %19767 = vmatpush3.xpose.msk.msra.mxu1 %vm81_vm0, %v22197_v25  ;;  %19768 = vmatprep.mubr.msk.f32.mxu1 %vm21281_vm4, %v24093_v39 }
0x46ce   :  { %20691 = vmatprep.subr.bf16.mxu1 %v24094_v14 }
0x479f   :  { %v7090_v51 = vpop.f32.mrb[84].mxu1 }
0x47a0   :  { %v7094_v2 = vmul.f32 0.125, %v7090_v51  ;;  %v19760_v57 = vpop.f32.mrb[85].mxu1  ;;  %v7429_v51 = vrot.slane %v21030_v38, 6 }
0x47a2   :  { %19764 = vmatmul.mubr.msk.f32.vlgmr.msra.gmra.mrb[82].mxu0 %vm823_vm3, %v7094_v2  ;;  %v7588_v2 = vrot.slane %v21545_v27, 6 }
0x47a3   :  { %19772 = vmatpush3.msk.msra.mxu0 %vm826_vm2, %v22197_v25  ;;  %19773 = vmatprep.mubr.msk.f32.mxu0 %vm21281_vm4, %v24093_v39 }
0x47a4   :  { %18495 = vmatprep.subr.msk.mxu0 %vm826_vm2, %v21573_v35 }
0x4875   :  { %v7164_v15 = vpop.f32.mrb[82].mxu0 }
0x4876   :  { %7169 = vrot.lane.b32.xlu1 %v7164_v15, %s24092_s0  ;;  %v19765_v36 = vpop.f32.mrb[83].mxu0 }
0x487a   :  { %7418 = vrot.lane.b32.xlu1 %v22547_v29, %s24089_s26 }
0x487e   :  { %7333 = vrot.lane.b32.xlu1 %v6612_v31, %s24086_s5 }
0x4882   :  { %7430 = vrot.lane.b32.xlu1 %v7429_v51, %s24090_s13 }
0x4886   :  { %7589 = vrot.lane.b32.xlu1 %v7588_v2, %s24086_s5 }
0x48e8   :  { %v7170_v57 = vpop.permute.xlu1 %7169 }
0x48e9   :  { %v7172_v63 = vsub.f32 %v7018_v50, %v7170_v57 }
0x48eb   :  { %v7173_v8 = vmul.f32 %v7172_v63, %v7172_v63 }
0x48ec   :  { %v7419_v9 = vpop.permute.xlu1 %7418 }
0x48ed   :  { %7175 = vrot.lane.b32.xlu0 %v7173_v8, %s24086_s5  ;;  %v7421_v38 = vsub.f32 %v21545_v27, %v7419_v9 }
0x48ef   :  { %v7422_v51 = vmul.f32 1.442695, %v7421_v38  ;;  %v7583_v38 = vrot.slane %v21625_v58, 6 }
0x48f0   :  { %v7334_v20 = vpop.permute.xlu1 %7333 }
0x48f4   :  { %v7431_v50 = vpop.permute.xlu1 %7430 }
0x495f   :  { %v7176_v61 = vpop.permute.xlu0 %7175 }
0x4960   :  { %19769 = vmatmul.mubr.msk.f32.vlgmr.msra.gmra.mrb[86].mxu1 %vm81_vm0, %v7176_v61 }
0x4961   :  { %20693 = vmatpush3.bf16.msra.mxu1 %v22005_v33  ;;  %19780 = vmatprep.mubr.msk.f32.mxu1 %vm21281_vm4, %v24093_v39 }
0x4962   :  { %18498 = vmatprep.subr.msk.mxu1 %vm826_vm2, %v21573_v35 }
0x4a33   :  { %v7245_v3 = vpop.f32.mrb[86].mxu1 }
0x4a34   :  { %v7249_v5 = vmul.f32 0.125, %v7245_v3  ;;  %v19770_v4 = vpop.f32.mrb[87].mxu1 }
0x4a36   :  { %19774 = vmatmul.mubr.msk.f32.vlgmr.msra.gmra.mrb[84].mxu0 %vm823_vm3, %v7249_v5 }
0x4a37   :  { %18496 = vmatpush1.msk.msra.mxu0 %vm826_vm2, %v22151_v6  ;;  %7498 = vmatprep.mubr.f32.mxu0 %v24093_v39 }
0x4a38   :  { %20694 = vmatprep.subr.bf16.mxu0 %v24094_v14 }
0x4a3a   :  { %18497 = vmatmul.mubr.msk.f32.vlgmr.msra.gmra.mrb[86].mxu0 %vm823_vm3, %v7431_v50 }
0x4a3b   :  { %19787 = vmatprep.mubr.msk.f32.mxu0 %vm21281_vm4, %v24093_v39 }
0x4a3e   :  { %20696 = vmatpush3.bf16.xpose.msra.mxu0 %v21494_v54 }
0x4a3f   :  { %19800 = vmatprep.subr.mxu0 %v24093_v39 }
0x4b09   :  { %v7319_v49 = vpop.f32.mrb[84].mxu0 }
0x4b0a   :  { %v7320_v15 = vadd.f32 1e-05, %v7319_v49  ;;  %v19775_v36 = vpop.f32.mrb[85].mxu0 }
0x4b0c   :  { %21031 = vrsqrt.f32 %v7320_v15 }
0x4b0d   :  { %v7500_v13 = vpop.f32.mrb[86].mxu0  ;;  %21033 = vpow2.f32 %v7422_v51 }
0x4b0e   :  { %v7502_v6 = vpop.f32.mrb[87].mxu0 }
0x4b16   :  { %v21032_v31 = vpop.eup %21031 }
0x4b17   :  { %7325 = vrot.lane.b32.xlu0 %v21032_v31, %s24092_s0  ;;  %v21034_v50 = vpop.eup %21033 }
0x4b18   :  { %v7506_v49 = vrot.slane %v21034_v50, 6  ;;  %v7594_v50 = vrot.slane %v21590_v41, 6  ;;  %v22623_v41 = vld [vmem:[%s24083_s2] sm:$0x3] }
0x4b89   :  { %v7326_v57 = vpop.permute.xlu0 %7325 }
0x4b8a   :  { %v7328_v8 = vmul.f32 %v7326_v57, %v7172_v63  ;;  %v22589_v63 = vld.sshfl [vmem:[%s24081_s3] sm:$0x33 pattern:$0x76325410]  ;;  %v7590_v57 = vpop.permute.xlu1 %7589 }
0x4b8c   :  { %v7329_v61 = vmul.f32 %v7328_v8, %v21983_v42  ;;  %v7582_v8 = vmul.f32 %v7500_v13, %v22317_v23 }
0x4b8e   :  { %v7330_v3 = vadd.f32 %v7329_v61, %v22013_v1 }
0x4b90   :  { %v7331_v5 = vadd.f32 %v7330_v3, %v22480_v32 }
0x4b92   :  { %v7336_v4 = vmul.f32 %v7334_v20, %v7331_v5 }
0x4b94   :  { %7338 = vrot.lane.b32.xlu0 %v7336_v4, %s24086_s5 }
0x4b98   :  { %7507 = vrot.lane.b32.xlu0 %v7506_v49, %s24091_s27 }
0x4c06   :  { %v7339_v15 = vpop.permute.xlu0 %7338 }
0x4c07   :  { %19781 = vmatmul.mubr.msk.f32.vlgmr.msra.gmra.mrb[88].mxu1 %vm81_vm0, %v7339_v15 }
0x4c08   :  { %18499 = vmatpush1.msk.msra.mxu1 %vm826_vm2, %v22589_v63  ;;  %7575 = vmatprep.mubr.f32.mxu1 %v24093_v39 }
0x4c09   :  { %19790 = vmatprep.subr.mxu1 %v24093_v39 }
0x4c0a   :  { %v7508_v32 = vpop.permute.xlu0 %7507 }
0x4c0b   :  { %18500 = vmatmul.mubr.msk.f32.vlgmr.msra.gmra.mrb[90].mxu1 %vm823_vm3, %v7508_v32 }
0x4c0c   :  { %19792 = vmatprep.mubr.msk.f32.mxu1 %vm21281_vm4, %v24093_v39 }
0x4c0f   :  { %19791 = vmatpush3.xpose.msk.msra.mxu1 %vm81_vm0, %v22197_v25  ;;  %v7587_v25 = vmul.f32 %v7502_v6, %v22319_v53 }
0x4c10   :  { %19795 = vmatprep.subr.mxu1 %v24093_v39 }
0x4cda   :  { %v7408_v9 = vpop.f32.mrb[88].mxu1 }
0x4cdb   :  { %v7409_v20 = vadd.f32 %v22303_v59, %v7408_v9  ;;  %v19782_v36 = vpop.f32.mrb[89].mxu1 }
0x4cdd   :  { %v7412_v31 = vadd.f32 %v7409_v20, %v22390_v12 }
0x4cde   :  { %v7577_v51 = vpop.f32.mrb[90].mxu1 }
0x4cdf   :  { %v18203_v61 = vrot.slane %v7412_v31, 4  ;;  %v7585_v3 = vmul.f32 %v7583_v38, %v7577_v51  ;;  %v7579_v5 = vpop.f32.mrb[91].mxu1 }
0x4ce0   :  { %v7592_v4 = vmul.f32 %v7590_v57, %v7579_v5 }
0x4ce1   :  { %v22609_v59 = vsel %vm18218_vm6, %v22315_v34, %v18203_v61  ;;  %v22611_v12 = vadd.f32 %v7585_v3, %v7582_v8 }
0x4ce2   :  { %v22613_v58 = vadd.f32 %v7592_v4, %v7587_v25 }
0x4ce3   :  { %v7596_v49 = vmul.f32 %v7594_v50, %v22611_v12 }
0x4ce4   :  { %v7668_v23 = vmul.f32 %v22613_v58, %v7588_v2 }
0x4ce5   :  { %19788 = vmatmul.mubr.f32.vlgmr.msra.gmra.mrb[88].mxu0 %v7596_v49 }
0x4ce6   :  { %19793 = vmatmul.mubr.msk.f32.vlgmr.msra.gmra.mrb[92].mxu1 %vm81_vm0, %v7668_v23  ;;  %19801 = vmatpush3.xpose.msk.msra.mxu0 %vm81_vm0, %v22623_v41 }
0x4ce7   :  { %19796 = vmatpush3.msk.msra.mxu1 %vm826_vm2, %v22623_v41  ;;  %19797 = vmatprep.mubr.msk.f32.mxu1 %vm21281_vm4, %v24093_v39 }
0x4ce8   :  { %19802 = vmatprep.mubr.msk.f32.mxu0 %vm21281_vm4, %v24093_v39  ;;  %19805 = vmatprep.subr.mxu1 %v24093_v39 }
0x4ce9   :  { %19810 = vmatprep.subr.mxu0 %v24093_v39 }
0x4db8   :  { %v7663_v27 = vpop.f32.mrb[88].mxu0 }
0x4db9   :  { %v7819_v34 = vrot.slane %v7663_v27, 2  ;;  %v19789_v53 = vpop.f32.mrb[89].mxu0  ;;  %v7738_v2 = vpop.f32.mrb[92].mxu1 }
0x4dba   :  { %v7742_v13 = vand.u32 2147483647, %v7738_v2  ;;  %v19794_v6 = vpop.f32.mrb[93].mxu1 }
0x4dbb   :  { %7820 = vrot.lane.b32.xlu0 %v7819_v34, %s24092_s0 }
0x4dbc   :  { %v7743_v15 = vmax.f32 %v7742_v13, 1.0 }
0x4dbe   :  { %21035 = vrcp.f32 %v7743_v15 }
0x4dc8   :  { %v21036_v32 = vpop.eup %21035 }
0x4dc9   :  { %19798 = vmatmul.mubr.msk.f32.vlgmr.msra.gmra.mrb[94].mxu1 %vm823_vm3, %v21036_v32 }
0x4dca   :  { %19806 = vmatpush3.msk.msra.mxu1 %vm826_vm2, %v22623_v41  ;;  %19807 = vmatprep.mubr.msk.f32.mxu1 %vm21281_vm4, %v24093_v39 }
0x4dcb   :  { %19815 = vmatprep.subr.mxu1 %v24093_v39 }
0x4e2d   :  { %v7821_v31 = vpop.permute.xlu0 %7820 }
0x4e2e   :  { %v7823_v38 = vmul.f32 %v21664_v26, %v7821_v31 }
0x4e9c   :  { %v7814_v9 = vpop.f32.mrb[94].mxu1 }
0x4e9d   :  { %v7825_v20 = vrot.slane %v7814_v9, 2  ;;  %v19799_v36 = vpop.f32.mrb[95].mxu1 }
0x4e9f   :  { %7826 = vrot.lane.b32.xlu1 %v7825_v20, %s24092_s0 }
0x4f11   :  { %v7827_v51 = vpop.permute.xlu1 %7826 }
0x4f12   :  { %v7829_v57 = vmul.f32 %v7827_v51, %v7823_v38 }
0x4f14   :  { %v7831_v8 = vrot.slane %v7829_v57, 6 }
0x4f16   :  { %7832 = vrot.lane.b32.xlu0 %v7831_v8, %s24086_s5 }
0x4f88   :  { %v7833_v61 = vpop.permute.xlu0 %7832 }
0x4f89   :  { %19803 = vmatmul.mubr.msk.f32.vlgmr.msra.gmra.mrb[90].mxu0 %vm81_vm0, %v7833_v61 }
0x4f8a   :  { %19811 = vmatpush3.xpose.msk.msra.mxu0 %vm81_vm0, %v22623_v41  ;;  %19812 = vmatprep.mubr.msk.f32.mxu0 %vm21281_vm4, %v24093_v39 }
0x4f8b   :  { %20697 = vmatprep.subr.bf16.mxu0 %v24094_v14 }
0x505c   :  { %v7902_v3 = vpop.f32.mrb[90].mxu0 }
0x505d   :  { %v7906_v5 = vmul.f32 0.125, %v7902_v3  ;;  %v19804_v25 = vpop.f32.mrb[91].mxu0 }
0x505f   :  { %19808 = vmatmul.mubr.msk.f32.vlgmr.msra.gmra.mrb[96].mxu1 %vm823_vm3, %v7906_v5 }
0x5060   :  { %19816 = vmatpush3.msk.msra.mxu1 %vm826_vm2, %v22623_v41  ;;  %19817 = vmatprep.mubr.msk.f32.mxu1 %vm21281_vm4, %v24093_v39 }
0x5061   :  { %20700 = vmatprep.subr.bf16.mxu1 %v24094_v14 }
0x5132   :  { %v7976_v26 = vpop.f32.mrb[96].mxu1 }
0x5133   :  { %v7981_v4 = vrot.slane %v7976_v26, 2  ;;  %v19809_v50 = vpop.f32.mrb[97].mxu1 }
0x5135   :  { %7982 = vrot.lane.b32.xlu1 %v7981_v4, %s24092_s0 }
0x51a7   :  { %v7983_v49 = vpop.permute.xlu1 %7982 }
0x51a8   :  { %v7985_v23 = vsub.f32 %v7829_v57, %v7983_v49 }
0x51aa   :  { %v7986_v27 = vmul.f32 %v7985_v23, %v7985_v23 }
0x51ac   :  { %v7988_v34 = vrot.slane %v7986_v27, 6 }
0x51ae   :  { %7989 = vrot.lane.b32.xlu0 %v7988_v34, %s24086_s5 }
0x5220   :  { %v7990_v53 = vpop.permute.xlu0 %7989 }
0x5221   :  { %19813 = vmatmul.mubr.msk.f32.vlgmr.msra.gmra.mrb[92].mxu0 %vm81_vm0, %v7990_v53 }
0x5222   :  { %20699 = vmatpush3.bf16.msra.mxu0 %v21701_v11  ;;  %19824 = vmatprep.mubr.msk.f32.mxu0 %vm21281_vm4, %v24093_v39 }
0x5223   :  { %20703 = vmatprep.subr.bf16.mxu0 %v24094_v14 }
0x52f4   :  { %v8059_v2 = vpop.f32.mrb[92].mxu0 }
0x52f5   :  { %v8063_v13 = vmul.f32 0.125, %v8059_v2  ;;  %v19814_v6 = vpop.f32.mrb[93].mxu0 }
0x52f7   :  { %19818 = vmatmul.mubr.msk.f32.vlgmr.msra.gmra.mrb[98].mxu1 %vm823_vm3, %v8063_v13 }
0x52f8   :  { %20702 = vmatpush3.bf16.msra.mxu1 %v21746_v52  ;;  %19831 = vmatprep.mubr.msk.f32.mxu1 %vm21281_vm4, %v24093_v39 }
0x52f9   :  { %20709 = vmatprep.subr.bf16.mxu1 %v24094_v14 }
0x53ca   :  { %v8133_v15 = vpop.f32.mrb[98].mxu1 }
0x53cb   :  { %v8134_v32 = vadd.f32 1e-05, %v8133_v15  ;;  %v19819_v9 = vpop.f32.mrb[99].mxu1 }
0x53cd   :  { %21037 = vrsqrt.f32 %v8134_v32 }
0x53d7   :  { %v21038_v20 = vpop.eup %21037 }
0x53d8   :  { %v8139_v36 = vrot.slane %v21038_v20, 2 }
0x53da   :  { %8140 = vrot.lane.b32.xlu1 %v8139_v36, %s24092_s0 }
0x544c   :  { %v8141_v31 = vpop.permute.xlu1 %8140 }
0x544d   :  { %v8143_v38 = vmul.f32 %v8141_v31, %v7985_v23 }
0x544f   :  { %v8144_v51 = vmul.f32 %v8143_v38, %v21710_v16 }
0x5451   :  { %v8145_v57 = vadd.f32 %v8144_v51, %v21713_v18 }
0x5453   :  { %v8146_v8 = vadd.f32 %v8145_v57, %v21593_v45  ;;  %v21200_v45 = vld [vmem:[%s24073_s6] sm:$0xff] }
0x5455   :  { %v8147_v61 = vmul.f32 %v8146_v8, %v21717_v22  ;;  %v8224_v22 = vrot.slane %v21200_v45, 6 }
0x5457   :  { %v8149_v3 = vrot.slane %v8147_v61, 6 }
0x5459   :  { %8150 = vrot.lane.b32.xlu0 %v8149_v3, %s24086_s5 }
0x54cb   :  { %v8151_v5 = vpop.permute.xlu0 %8150 }
0x54cc   :  { %19825 = vmatmul.mubr.msk.f32.vlgmr.msra.gmra.mrb[94].mxu0 %vm81_vm0, %v8151_v5 }
0x54cd   :  { %20705 = vmatpush3.bf16.msra.mxu0 %v21759_v60  ;;  %19842 = vmatprep.mubr.msk.f32.mxu0 %vm21281_vm4, %v24093_v39 }
0x54ce   :  { %20706 = vmatprep.subr.bf16.mxu0 %v24094_v14 }
0x54d1   :  { %20708 = vmatpush3.bf16.msra.mxu0 %v21765_v62 }
0x54d2   :  { %20715 = vmatprep.subr.bf16.mxu0 %v24094_v14 }
0x559f   :  { %v8220_v25 = vpop.f32.mrb[94].mxu0 }
0x55a0   :  { %v8221_v26 = vadd.f32 %v22387_v55, %v8220_v25  ;;  %v19826_v4 = vpop.f32.mrb[95].mxu0 }
0x55a2   :  { %v22686_v50 = vadd.f32 %v8224_v22, %v8221_v26 }
0x55a4   :  { %v8227_v49 = vsel %vm1646_vm5, %v22686_v50, 0.0 }
0x55a5   :  { %8228 = vadd.xlane.f32.xlu1 %v8227_v49 }
0x5632   :  { %v8229_v23 = vpop.xlane.xlu1 %8228 }
0x5633   :  { %v8230_v27 = vmul.f32 0.0625, %v8229_v23 }
0x5635   :  { %v8231_v34 = vsub.f32 %v22686_v50, %v8230_v27 }
0x5637   :  { %v8232_v53 = vmul.f32 %v8231_v34, %v8231_v34 }
0x5639   :  { %v8233_v2 = vsel %vm1646_vm5, %v8232_v53, 0.0 }
0x563a   :  { %8234 = vadd.xlane.f32.xlu0 %v8233_v2 }
0x56c7   :  { %v8235_v13 = vpop.xlane.xlu0 %8234 }
0x56c8   :  { %v8236_v6 = vmul.f32 0.0625, %v8235_v13 }
0x56ca   :  { %v8237_v15 = vadd.f32 1e-05, %v8236_v6 }
0x56cc   :  { %21039 = vrsqrt.f32 %v8237_v15 }
0x56d6   :  { %v21040_v55 = vpop.eup %21039 }
0x56d7   :  { %v8239_v32 = vmul.f32 %v21040_v55, %v8231_v34 }
0x56d9   :  { %v8240_v9 = vmul.f32 %v22399_v44, %v8239_v32 }
0x56db   :  { %v8241_v20 = vadd.f32 %v22405_v17, %v8240_v9 }
0x56dd   :  { %19832 = vmatmul.mubr.msk.f32.vlgmr.msra.gmra.mrb[100].mxu1 %vm81_vm0, %v8241_v20 }
0x56de   :  { %20711 = vmatpush3.bf16.msra.mxu1 %v21830_v37  ;;  %19853 = vmatprep.mubr.msk.f32.mxu1 %vm21281_vm4, %v24093_v39 }
0x56df   :  { %20712 = vmatprep.subr.bf16.mxu1 %v24094_v14 }
0x56e2   :  { %20714 = vmatpush3.bf16.msra.mxu1 %v21840_v43 }
0x56e3   :  { %20721 = vmatprep.subr.bf16.mxu1 %v24094_v14 }
0x57b0   :  { %v8311_v36 = vpop.f32.mrb[100].mxu1 }
0x57b1   :  { %v22702_v31 = vadd.f32 %v22418_v7, %v8311_v36  ;;  %v19833_v44 = vpop.f32.mrb[101].mxu1 }
0x57b3   :  { %19843 = vmatmul.mubr.msk.f32.vlgmr.msra.gmra.mrb[96].mxu0 %vm229_vm1, %v22702_v31 }
0x57b4   :  { %20717 = vmatpush3.bf16.msra.mxu0 %v21796_v19  ;;  %19864 = vmatprep.mubr.msk.f32.mxu0 %vm21281_vm4, %v24093_v39 }
0x57b5   :  { %20718 = vmatprep.subr.bf16.mxu0 %v24094_v14 }
0x57b8   :  { %20720 = vmatpush3.bf16.msra.mxu0 %v21810_v30 }
0x57b9   :  { %20727 = vmatprep.subr.bf16.mxu0 %v24094_v14 }
0x57bb   :  { %19865 = vmatmul.mubr.msk.f32.vlgmr.msra.gmra.mrb[98].mxu0 %vm229_vm1, %v22702_v31 }
0x57bc   :  { %20729 = vmatpush3.bf16.msra.mxu0 %v21494_v54  ;;  %19885 = vmatprep.mubr.msk.f32.mxu0 %vm21281_vm4, %v24093_v39 }
0x57bd   :  { %18527 = vmatprep.subr.msk.mxu0 %vm826_vm2, %v21573_v35 }
0x5886   :  { %v8384_v17 = vpop.f32.mrb[96].mxu0 }
0x5887   :  { %v8385_v7 = vadd.f32 %v8384_v17, %v21848_v47  ;;  %v19844_v38 = vpop.f32.mrb[97].mxu0 }
0x5889   :  { %v18516_v51 = vmul.f32 -1.442695, %v8385_v7 }
0x588b   :  { %21041 = vpow2.f32 %v18516_v51 }
0x588e   :  { %v8534_v57 = vpop.f32.mrb[98].mxu0 }
0x588f   :  { %v22721_v8 = vadd.f32 %v22442_v0, %v8534_v57  ;;  %v19866_v61 = vpop.f32.mrb[99].mxu0 }
0x5891   :  { %19886 = vmatmul.mubr.msk.f32.vlgmr.msra.gmra.mrb[100].mxu0 %vm81_vm0, %v22721_v8 }
0x5892   :  { %18528 = vmatpush1.msk.msra.mxu0 %vm826_vm2, %v22589_v63  ;;  %8933 = vmatprep.mubr.f32.mxu0 %v24093_v39 }
0x5893   :  { %19895 = vmatprep.subr.mxu0 %v24093_v39 }
0x5895   :  { %v21042_v3 = vpop.eup %21041 }
0x5896   :  { %v8391_v5 = vadd.f32 1.0, %v21042_v3 }
0x5898   :  { %21043 = vrcp.f32 %v8391_v5 }
0x58a2   :  { %v21044_v45 = vpop.eup %21043 }
0x58a3   :  { %v8394_v22 = vmul.f32 %v21044_v45, %v8385_v7 }
0x58a5   :  { %19854 = vmatmul.mubr.msk.f32.vlgmr.msra.gmra.mrb[102].mxu1 %vm229_vm1, %v8394_v22 }
0x58a6   :  { %20723 = vmatpush3.bf16.msra.mxu1 %v21533_v21  ;;  %19871 = vmatprep.mubr.msk.f32.mxu1 %vm21281_vm4, %v24093_v39 }
0x58a7   :  { %20724 = vmatprep.subr.bf16.mxu1 %v24094_v14 }
0x5964   :  { %v8760_v0 = vpop.f32.mrb[100].mxu0 }
0x5965   :  { %v19887_v25 = vpop.f32.mrb[101].mxu0 }
0x5978   :  { %v8464_v26 = vpop.f32.mrb[102].mxu1 }
0x5979   :  { %v8465_v4 = vadd.f32 %v22461_v24, %v8464_v26  ;;  %v19855_v49 = vpop.f32.mrb[103].mxu1 }
0x597b   :  { %8773 = vrot.lane.b32.xlu0 %v8465_v4, %s24088_s28  ;;  %19872 = vmatmul.mubr.msk.f32.vlgmr.msra.gmra.mrb[104].mxu1 %vm81_vm0, %v8465_v4  ;;  %v8772_v23 = vadd.f32 %v8465_v4, %v22472_v48 }
0x597c   :  { %20726 = vmatpush3.bf16.msra.mxu1 %v21533_v21  ;;  %19878 = vmatprep.mubr.msk.f32.mxu1 %vm21281_vm4, %v24093_v39 }
0x597d   :  { %18524 = vmatprep.subr.msk.mxu1 %vm826_vm2, %v21573_v35 }
0x59ed   :  { %v8774_v27 = vpop.permute.xlu0 %8773 }
0x59ee   :  { %v22743_v34 = vmax.f32 %v8772_v23, %v8774_v27 }
0x59f0   :  { %v8784_v24 = vsub.f32 %v8465_v4, %v22743_v34  ;;  %8778 = vrot.lane.b32.xlu1 %v22743_v34, %s24089_s26 }
0x59f2   :  { %v8785_v53 = vadd.f32 %v8784_v24, %v22472_v48 }
0x59f4   :  { %v8786_v2 = vmul.f32 1.442695, %v8785_v53  ;;  %8617 = vrot.lane.b32.xlu1 %v8465_v4, %s24086_s5 }
0x59f6   :  { %21045 = vpow2.f32 %v8786_v2 }
0x5a00   :  { %v21046_v13 = vpop.eup %21045 }
0x5a01   :  { %8789 = vrot.lane.b32.xlu0 %v21046_v13, %s24090_s13 }
0x5a4e   :  { %v8613_v6 = vpop.f32.mrb[104].mxu1 }
0x5a4f   :  { %v19873_v15 = vpop.f32.mrb[105].mxu1 }
0x5a50   :  { %v18519_v15 = vmul.f32 -1.442695, %v22721_v8 }
0x5a62   :  { %v8779_v55 = vpop.permute.xlu1 %8778 }
0x5a63   :  { %v8781_v32 = vsub.f32 %v8465_v4, %v8779_v55 }
0x5a65   :  { %v8782_v9 = vmul.f32 1.442695, %v8781_v32 }
0x5a66   :  { %v22751_v20 = vpop.permute.xlu1 %8617 }
0x5a67   :  { %21047 = vpow2.f32 %v8782_v9  ;;  %19879 = vmatmul.mubr.msk.f32.vlgmr.msra.gmra.mrb[106].mxu1 %vm81_vm0, %v22751_v20 }
0x5a68   :  { %18525 = vmatpush1.msk.msra.mxu1 %vm826_vm2, %v22589_v63  ;;  %8857 = vmatprep.mubr.f32.mxu1 %v24093_v39 }
0x5a69   :  { %20730 = vmatprep.subr.bf16.mxu1 %v24094_v14 }
0x5a71   :  { %v21048_v48 = vpop.eup %21047 }
0x5a72   :  { %8865 = vrot.lane.b32.xlu1 %v21048_v48, %s24091_s27 }
0x5a73   :  { %v8790_v36 = vpop.permute.xlu0 %8789 }
0x5a74   :  { %18526 = vmatmul.mubr.msk.f32.vlgmr.msra.gmra.mrb[108].mxu1 %vm823_vm3, %v8790_v36 }
0x5a75   :  { %20732 = vmatpush3.bf16.xpose.msra.mxu1 %v21494_v54  ;;  %19892 = vmatprep.mubr.msk.f32.mxu1 %vm21281_vm4, %v24093_v39 }
0x5a76   :  { %19905 = vmatprep.subr.mxu1 %v24093_v39 }
0x5ae4   :  { %v8866_v44 = vpop.permute.xlu1 %8865 }
0x5ae5   :  { %18529 = vmatmul.mubr.msk.f32.vlgmr.msra.gmra.mrb[102].mxu0 %vm823_vm3, %v8866_v44 }
0x5ae6   :  { %19896 = vmatpush3.xpose.msk.msra.mxu0 %vm81_vm0, %v22623_v41  ;;  %19897 = vmatprep.mubr.msk.f32.mxu0 %vm21281_vm4, %v24093_v39 }
0x5ae7   :  { %19900 = vmatprep.subr.mxu0 %v24093_v39 }
0x5b3a   :  { %v8687_v17 = vpop.f32.mrb[106].mxu1 }
0x5b3b   :  { %v8764_v7 = vmul.f32 %v8760_v0, %v8687_v17  ;;  %v19880_v38 = vpop.f32.mrb[107].mxu1 }
0x5b47   :  { %v8859_v51 = vpop.f32.mrb[108].mxu1 }
0x5b48   :  { %v8861_v57 = vpop.f32.mrb[109].mxu1  ;;  %v8940_v3 = vmul.f32 %v8859_v51, %v22503_v10 }
0x5b49   :  { %v8943_v22 = vmul.f32 %v8861_v57, %v22505_v40 }
0x5bb8   :  { %v8935_v61 = vpop.f32.mrb[102].mxu0 }
0x5bb9   :  { %v8941_v5 = vmul.f32 %v8935_v61, %v8764_v7  ;;  %v8937_v45 = vpop.f32.mrb[103].mxu0 }
0x5bba   :  { %v8945_v25 = vmul.f32 %v8937_v45, %v22751_v20 }
0x5bbb   :  { %v22774_v26 = vadd.f32 %v8941_v5, %v8940_v3  ;;  %v18523_v3 = vmul.f32 -1.442695, %v22702_v31 }
0x5bbc   :  { %v22776_v49 = vadd.f32 %v8945_v25, %v8943_v22  ;;  %v9572_v22 = vrot.slane %v22547_v29, 6 }
0x5bbd   :  { %v8947_v23 = vmul.f32 %v22774_v26, %v8613_v6 }
0x5bbe   :  { %v9018_v0 = vmul.f32 %v22776_v49, %v8465_v4 }
0x5bbf   :  { %19893 = vmatmul.mubr.f32.vlgmr.msra.gmra.mrb[110].mxu1 %v8947_v23 }
0x5bc0   :  { %19898 = vmatmul.mubr.msk.f32.vlgmr.msra.gmra.mrb[104].mxu0 %vm81_vm0, %v9018_v0  ;;  %19906 = vmatpush3.xpose.msk.msra.mxu1 %vm81_vm0, %v22623_v41 }
0x5bc1   :  { %19901 = vmatpush3.msk.msra.mxu0 %vm826_vm2, %v22623_v41  ;;  %19902 = vmatprep.mubr.msk.f32.mxu0 %vm21281_vm4, %v24093_v39 }
0x5bc2   :  { %19907 = vmatprep.mubr.msk.f32.mxu1 %vm21281_vm4, %v24093_v39  ;;  %19910 = vmatprep.subr.mxu0 %v24093_v39 }
0x5bc3   :  { %19915 = vmatprep.subr.mxu1 %v24093_v39 }
0x5c92   :  { %v9014_v10 = vpop.f32.mrb[110].mxu1 }
0x5c93   :  { %9169 = vrot.lane.b32.xlu0 %v9014_v10, %s24092_s0  ;;  %v19894_v40 = vpop.f32.mrb[111].mxu1  ;;  %v9088_v4 = vpop.f32.mrb[104].mxu0  ;;  %v9574_v10 = vadd.f32 %v9572_v22, %v21547_v28 }
0x5c94   :  { %v9092_v27 = vand.u32 2147483647, %v9088_v4  ;;  %v19899_v24 = vpop.f32.mrb[105].mxu0 }
0x5c96   :  { %v9093_v53 = vmax.f32 %v9092_v27, 1.0 }
0x5c98   :  { %21049 = vrcp.f32 %v9093_v53 }
0x5c99   :  { %21051 = vpow2.f32 %v18519_v15 }
0x5ca2   :  { %v21050_v2 = vpop.eup %21049 }
0x5ca3   :  { %19903 = vmatmul.mubr.msk.f32.vlgmr.msra.gmra.mrb[106].mxu0 %vm823_vm3, %v21050_v2  ;;  %v21052_v55 = vpop.eup %21051 }
0x5ca4   :  { %19911 = vmatpush3.msk.msra.mxu0 %vm826_vm2, %v22623_v41  ;;  %19912 = vmatprep.mubr.msk.f32.mxu0 %vm21281_vm4, %v24093_v39  ;;  %v8541_v32 = vadd.f32 1.0, %v21052_v55 }
0x5ca5   :  { %19920 = vmatprep.subr.mxu0 %v24093_v39 }
0x5ca6   :  { %21053 = vrcp.f32 %v8541_v32 }
0x5ca7   :  { %21055 = vpow2.f32 %v18523_v3 }
0x5cb0   :  { %v21054_v48 = vpop.eup %21053 }
0x5cb1   :  { %v21056_v5 = vpop.eup %21055 }
0x5cb2   :  { %v8768_v45 = vadd.f32 1.0, %v21056_v5 }
0x5cb4   :  { %21057 = vrcp.f32 %v8768_v45 }
0x5cbe   :  { %v21058_v24 = vpop.eup %21057 }
0x5cbf   :  { %v8771_v2 = vmul.f32 %v21058_v24, %v22702_v31 }
0x5d05   :  { %v9170_v9 = vpop.permute.xlu0 %9169 }
0x5d06   :  { %v9172_v36 = vmul.f32 %v21054_v48, %v9170_v9 }
0x5d76   :  { %v9164_v13 = vpop.f32.mrb[106].mxu0 }
0x5d77   :  { %9174 = vrot.lane.b32.xlu1 %v9164_v13, %s24092_s0  ;;  %v19904_v6 = vpop.f32.mrb[107].mxu0 }
0x5de9   :  { %v9175_v44 = vpop.permute.xlu1 %9174 }
0x5dea   :  { %v9177_v17 = vmul.f32 %v9175_v44, %v9172_v36 }
0x5dec   :  { %9179 = vrot.lane.b32.xlu0 %v9177_v17, %s24086_s5 }
0x5e5e   :  { %v9180_v7 = vpop.permute.xlu0 %9179 }
0x5e5f   :  { %19908 = vmatmul.mubr.msk.f32.vlgmr.msra.gmra.mrb[112].mxu1 %vm81_vm0, %v9180_v7 }
0x5e60   :  { %19916 = vmatpush3.xpose.msk.msra.mxu1 %vm81_vm0, %v22623_v41  ;;  %19917 = vmatprep.mubr.msk.f32.mxu1 %vm21281_vm4, %v24093_v39 }
0x5e61   :  { %20733 = vmatprep.subr.bf16.mxu1 %v24094_v14 }
0x5f32   :  { %v9249_v8 = vpop.f32.mrb[112].mxu1 }
0x5f33   :  { %v9253_v38 = vmul.f32 0.125, %v9249_v8  ;;  %v19909_v51 = vpop.f32.mrb[113].mxu1 }
0x5f35   :  { %19913 = vmatmul.mubr.msk.f32.vlgmr.msra.gmra.mrb[108].mxu0 %vm823_vm3, %v9253_v38 }
0x5f36   :  { %19921 = vmatpush3.msk.msra.mxu0 %vm826_vm2, %v22623_v41  ;;  %19922 = vmatprep.mubr.msk.f32.mxu0 %vm21281_vm4, %v24093_v39 }
0x5f37   :  { %18543 = vmatprep.subr.msk.mxu0 %vm826_vm2, %v21573_v35 }
0x6008   :  { %v9323_v57 = vpop.f32.mrb[108].mxu0 }
0x6009   :  { %9328 = vrot.lane.b32.xlu1 %v9323_v57, %s24092_s0  ;;  %v19914_v61 = vpop.f32.mrb[109].mxu0 }
0x600d   :  { %9575 = vrot.lane.b32.xlu1 %v21547_v28, %s24088_s28 }
0x607b   :  { %v9329_v25 = vpop.permute.xlu1 %9328 }
0x607c   :  { %v9331_v23 = vsub.f32 %v9177_v17, %v9329_v25 }
0x607e   :  { %v9332_v0 = vmul.f32 %v9331_v23, %v9331_v23 }
0x607f   :  { %v22820_v40 = vpop.permute.xlu1 %9575 }
0x6080   :  { %9334 = vrot.lane.b32.xlu0 %v9332_v0, %s24086_s5  ;;  %v22824_v4 = vmax.f32 %v9574_v10, %v22820_v40 }
0x6082   :  { %v9586_v27 = vsub.f32 %v21547_v28, %v22824_v4 }
0x6084   :  { %9580 = vrot.lane.b32.xlu0 %v22824_v4, %s24089_s26  ;;  %v9587_v29 = vadd.f32 %v9586_v27, %v9572_v22 }
0x6086   :  { %v9588_v53 = vmul.f32 1.442695, %v9587_v29 }
0x6088   :  { %21059 = vpow2.f32 %v9588_v53  ;;  %9492 = vrot.lane.b32.xlu0 %v8771_v2, %s24086_s5 }
0x6092   :  { %v21060_v13 = vpop.eup %21059 }
0x6093   :  { %9591 = vrot.lane.b32.xlu0 %v21060_v13, %s24090_s13 }
0x60f2   :  { %v9335_v6 = vpop.permute.xlu0 %9334 }
0x60f3   :  { %19918 = vmatmul.mubr.msk.f32.vlgmr.msra.gmra.mrb[114].mxu1 %vm81_vm0, %v9335_v6 }
0x60f4   :  { %20735 = vmatpush3.bf16.msra.mxu1 %v22005_v33  ;;  %19929 = vmatprep.mubr.msk.f32.mxu1 %vm21281_vm4, %v24093_v39 }
0x60f5   :  { %18546 = vmatprep.subr.msk.mxu1 %vm826_vm2, %v21573_v35 }
0x60f6   :  { %v9581_v15 = vpop.permute.xlu0 %9580 }
0x60f7   :  { %v9583_v51 = vsub.f32 %v21547_v28, %v9581_v15 }
0x60f9   :  { %v9584_v57 = vmul.f32 1.442695, %v9583_v51 }
0x60fa   :  { %v9493_v9 = vpop.permute.xlu0 %9492 }
0x6105   :  { %v9592_v48 = vpop.permute.xlu0 %9591 }
0x61c6   :  { %v9404_v55 = vpop.f32.mrb[114].mxu1 }
0x61c7   :  { %v9408_v31 = vmul.f32 0.125, %v9404_v55  ;;  %v19919_v32 = vpop.f32.mrb[115].mxu1 }
0x61c9   :  { %19923 = vmatmul.mubr.msk.f32.vlgmr.msra.gmra.mrb[110].mxu0 %vm823_vm3, %v9408_v31 }
0x61ca   :  { %18544 = vmatpush1.msk.msra.mxu0 %vm826_vm2, %v22589_v63  ;;  %9659 = vmatprep.mubr.f32.mxu0 %v24093_v39 }
0x61cb   :  { %20736 = vmatprep.subr.bf16.mxu0 %v24094_v14 }
0x61cd   :  { %18545 = vmatmul.mubr.msk.f32.vlgmr.msra.gmra.mrb[112].mxu0 %vm823_vm3, %v9592_v48 }
0x61ce   :  { %19936 = vmatprep.mubr.msk.f32.mxu0 %vm21281_vm4, %v24093_v39 }
0x61d1   :  { %20738 = vmatpush3.bf16.xpose.msra.mxu0 %v21494_v54 }
0x61d2   :  { %19949 = vmatprep.subr.mxu0 %v24093_v39 }
0x629c   :  { %v9478_v36 = vpop.f32.mrb[110].mxu0 }
0x629d   :  { %v9479_v44 = vadd.f32 1e-05, %v9478_v36  ;;  %v19924_v17 = vpop.f32.mrb[111].mxu0 }
0x629f   :  { %21061 = vrsqrt.f32 %v9479_v44 }
0x62a0   :  { %v9661_v7 = vpop.f32.mrb[112].mxu0  ;;  %21063 = vpow2.f32 %v9584_v57 }
0x62a1   :  { %v9663_v8 = vpop.f32.mrb[113].mxu0  ;;  %v9742_v2 = vmul.f32 %v9661_v7, %v22611_v12 }
0x62a2   :  { %v9745_v55 = vmul.f32 %v9663_v8, %v22613_v58 }
0x62a9   :  { %v21062_v38 = vpop.eup %21061 }
0x62aa   :  { %9484 = vrot.lane.b32.xlu1 %v21062_v38, %s24092_s0  ;;  %v21064_v0 = vpop.eup %21063 }
0x631c   :  { %v9485_v61 = vpop.permute.xlu1 %9484 }
0x631d   :  { %v9487_v3 = vmul.f32 %v9485_v61, %v9331_v23  ;;  %v24096_v61 = vld [vmem:[#allocation9_spill] sm:$0xff] }
0x631f   :  { %v9488_v5 = vmul.f32 %v9487_v3, %v21983_v42  ;;  %v18301_v3 = vmul.f32 -1.442695, %v24096_v61 }
0x6321   :  { %v9489_v45 = vadd.f32 %v9488_v5, %v22013_v1 }
0x6323   :  { %v9490_v22 = vadd.f32 %v9489_v45, %v22751_v20 }
0x6325   :  { %v9495_v25 = vmul.f32 %v9493_v9, %v9490_v22 }
0x6327   :  { %9497 = vrot.lane.b32.xlu1 %v9495_v25, %s24086_s5 }
0x632b   :  { %9667 = vrot.lane.b32.xlu1 %v21064_v0, %s24091_s27 }
0x6399   :  { %v9498_v10 = vpop.permute.xlu1 %9497 }
0x639a   :  { %19930 = vmatmul.mubr.msk.f32.vlgmr.msra.gmra.mrb[116].mxu1 %vm81_vm0, %v9498_v10 }
0x639b   :  { %18547 = vmatpush1.msk.msra.mxu1 %vm826_vm2, %v22589_v63  ;;  %9735 = vmatprep.mubr.f32.mxu1 %v24093_v39  ;;  %v21201_v63 = vld [vmem:[%s24023_s21 + $0x1] ss:$0 sm:$0xff] }
0x639c   :  { %19939 = vmatprep.subr.mxu1 %v24093_v39 }
0x639d   :  { %v9668_v23 = vpop.permute.xlu1 %9667 }
0x639e   :  { %18548 = vmatmul.mubr.msk.f32.vlgmr.msra.gmra.mrb[118].mxu1 %vm823_vm3, %v9668_v23 }
0x639f   :  { %19941 = vmatprep.mubr.msk.f32.mxu1 %vm21281_vm4, %v24093_v39 }
0x63a2   :  { %19940 = vmatpush3.xpose.msk.msra.mxu1 %vm81_vm0, %v22623_v41 }
0x63a3   :  { %19944 = vmatprep.subr.mxu1 %v24093_v39 }
0x646d   :  { %v9567_v20 = vpop.f32.mrb[116].mxu1 }
0x646e   :  { %v9568_v27 = vadd.f32 %v21201_v63, %v9567_v20  ;;  %v19931_v24 = vpop.f32.mrb[117].mxu1 }
0x6470   :  { %v9571_v29 = vadd.f32 %v9568_v27, %v22686_v50  ;;  %v24095_v50 = vld [vmem:[#allocation10_spill] sm:$0xff] }
0x6471   :  { %v9737_v53 = vpop.f32.mrb[118].mxu1 }
0x6472   :  { %v18206_v13 = vrot.slane %v9571_v29, 2  ;;  %v9743_v6 = vmul.f32 %v9737_v53, %v21618_v56  ;;  %v9739_v15 = vpop.f32.mrb[119].mxu1 }
0x6473   :  { %v9747_v31 = vmul.f32 %v9739_v15, %v21597_v46 }
0x6474   :  { %v22875_v32 = vadd.f32 %v9743_v6, %v9742_v2  ;;  %v18221_v9 = vsel %vm18220_vm7, %v22609_v59, %v18206_v13  ;;  %v24097_v2 = vld [vmem:[#allocation8_spill] sm:$0xff] }
0x6475   :  { %v22879_v48 = vadd.f32 %v9747_v31, %v9745_v55  ;;  %18225 = vst.msk [vmem:[#allocation2] sm:$0xff] %vm81_vm0, %v18221_v9  ;;  %v18309_v13 = vmul.f32 -1.442695, %v24097_v2 }
0x6476   :  { %v9749_v12 = vmul.f32 %v24095_v50, %v22875_v32 }
0x6477   :  { %v9820_v36 = vmul.f32 %v22879_v48, %v21547_v28 }
0x6478   :  { %19937 = vmatmul.mubr.f32.vlgmr.msra.gmra.mrb[114].mxu0 %v9749_v12 }
0x6479   :  { %19942 = vmatmul.mubr.msk.f32.vlgmr.msra.gmra.mrb[120].mxu1 %vm81_vm0, %v9820_v36  ;;  %19950 = vmatpush3.xpose.msk.msra.mxu0 %vm81_vm0, %v22623_v41 }
0x647a   :  { %19945 = vmatpush3.msk.msra.mxu1 %vm826_vm2, %v22623_v41  ;;  %19946 = vmatprep.mubr.msk.f32.mxu1 %vm21281_vm4, %v24093_v39 }
0x647b   :  { %19951 = vmatprep.mubr.msk.f32.mxu0 %vm21281_vm4, %v24093_v39  ;;  %19954 = vmatprep.subr.mxu1 %v24093_v39 }
0x647c   :  { %19959 = vmatprep.subr.mxu0 %v24093_v39 }
0x654b   :  { %v9816_v59 = vpop.f32.mrb[114].mxu0 }
0x654c   :  { %9971 = vrot.lane.b32.xlu0 %v9816_v59, %s24092_s0  ;;  %v19938_v58 = vpop.f32.mrb[115].mxu0  ;;  %v9890_v44 = vpop.f32.mrb[120].mxu1 }
0x654d   :  { %v9894_v17 = vand.u32 2147483647, %v9890_v44  ;;  %v19943_v7 = vpop.f32.mrb[121].mxu1 }
0x654f   :  { %v9895_v8 = vmax.f32 %v9894_v17, 1.0 }
0x6551   :  { %21065 = vrcp.f32 %v9895_v8 }
0x6552   :  { %21067 = vpow2.f32 %v18301_v3 }
0x655b   :  { %v21066_v38 = vpop.eup %21065 }
0x655c   :  { %19947 = vmatmul.mubr.msk.f32.vlgmr.msra.gmra.mrb[122].mxu1 %vm823_vm3, %v21066_v38  ;;  %v21068_v5 = vpop.eup %21067 }
0x655d   :  { %19955 = vmatpush3.msk.msra.mxu1 %vm826_vm2, %v22623_v41  ;;  %19956 = vmatprep.mubr.msk.f32.mxu1 %vm21281_vm4, %v24093_v39  ;;  %v510_v45 = vadd.f32 1.0, %v21068_v5 }
0x655e   :  { %19964 = vmatprep.subr.mxu1 %v24093_v39 }
0x655f   :  { %21069 = vrcp.f32 %v510_v45 }
0x6560   :  { %21071 = vpow2.f32 %v18309_v13 }
0x6569   :  { %v22906_v25 = vpop.eup %21069 }
0x656a   :  { %v21072_v6 = vpop.eup %21071 }
0x656b   :  { %v773_v15 = vadd.f32 1.0, %v21072_v6 }
0x656d   :  { %21073 = vrcp.f32 %v773_v15 }
0x6577   :  { %v21074_v12 = vpop.eup %21073 }
0x65be   :  { %v9972_v22 = vpop.permute.xlu0 %9971 }
0x65bf   :  { %v9974_v0 = vmul.f32 %v22906_v25, %v9972_v22 }
0x662f   :  { %v9966_v51 = vpop.f32.mrb[122].mxu1 }
0x6630   :  { %9976 = vrot.lane.b32.xlu1 %v9966_v51, %s24092_s0  ;;  %v19948_v57 = vpop.f32.mrb[123].mxu1 }
0x66a2   :  { %v9977_v10 = vpop.permute.xlu1 %9976 }
0x66a3   :  { %v9979_v23 = vmul.f32 %v9977_v10, %v9974_v0 }
0x66a5   :  { %9981 = vrot.lane.b32.xlu0 %v9979_v23, %s24086_s5 }
0x6717   :  { %v9982_v20 = vpop.permute.xlu0 %9981 }
0x6718   :  { %19952 = vmatmul.mubr.msk.f32.vlgmr.msra.gmra.mrb[116].mxu0 %vm81_vm0, %v9982_v20 }
0x6719   :  { %19960 = vmatpush3.xpose.msk.msra.mxu0 %vm81_vm0, %v22623_v41  ;;  %19961 = vmatprep.mubr.msk.f32.mxu0 %vm21281_vm4, %v24093_v39 }
0x671a   :  { %20739 = vmatprep.subr.bf16.mxu0 %v24094_v14 }
0x67eb   :  { %v10051_v63 = vpop.f32.mrb[116].mxu0 }
0x67ec   :  { %v10055_v27 = vmul.f32 0.125, %v10051_v63  ;;  %v19953_v24 = vpop.f32.mrb[117].mxu0 }
0x67ee   :  { %19957 = vmatmul.mubr.msk.f32.vlgmr.msra.gmra.mrb[124].mxu1 %vm823_vm3, %v10055_v27  ;;  %v22961_v27 = vld [vmem:[%s24073_s6 + $0x8] sm:$0xff] }
0x67ef   :  { %19965 = vmatpush3.msk.msra.mxu1 %vm826_vm2, %v22623_v41  ;;  %19966 = vmatprep.mubr.msk.f32.mxu1 %vm21281_vm4, %v24093_v39  ;;  %v779_v41 = vmul.f32 %v21074_v12, %v24097_v2 }
0x67f0   :  { %20742 = vmatprep.subr.bf16.mxu1 %v24094_v14 }
0x68c1   :  { %v10125_v29 = vpop.f32.mrb[124].mxu1 }
0x68c2   :  { %10130 = vrot.lane.b32.xlu1 %v10125_v29, %s24092_s0  ;;  %v19958_v53 = vpop.f32.mrb[125].mxu1 }
0x6934   :  { %v10131_v55 = vpop.permute.xlu1 %10130 }
0x6935   :  { %v10133_v31 = vsub.f32 %v9979_v23, %v10131_v55  ;;  %v22955_v23 = vld [vmem:[%s24023_s21] ss:$0 sm:$0xff] }
0x6937   :  { %v10134_v9 = vmul.f32 %v10133_v31, %v10133_v31 }
0x6939   :  { %10136 = vrot.lane.b32.xlu0 %v10134_v9, %s24086_s5 }
0x693d   :  { %10294 = vrot.lane.b32.xlu0 %v779_v41, %s24086_s5 }
0x69ab   :  { %v10137_v36 = vpop.permute.xlu0 %10136 }
0x69ac   :  { %19962 = vmatmul.mubr.msk.f32.vlgmr.msra.gmra.mrb[118].mxu0 %vm81_vm0, %v10137_v36  ;;  %v22973_v36 = vld [vmem:[%s24074_s29 + $0x1] ss:$0 sm:$0xff] }
0x69ad   :  { %20741 = vmatpush3.bf16.msra.mxu0 %v21701_v11  ;;  %19973 = vmatprep.mubr.msk.f32.mxu0 %vm21281_vm4, %v24093_v39 }
0x69ae   :  { %20745 = vmatprep.subr.bf16.mxu0 %v24094_v14 }
0x69af   :  { %v22941_v45 = vpop.permute.xlu0 %10294 }
0x6a7f   :  { %v10206_v59 = vpop.f32.mrb[118].mxu0 }
0x6a80   :  { %v10210_v58 = vmul.f32 0.125, %v10206_v59  ;;  %v19963_v44 = vpop.f32.mrb[119].mxu0 }
0x6a82   :  { %19967 = vmatmul.mubr.msk.f32.vlgmr.msra.gmra.mrb[126].mxu1 %vm823_vm3, %v10210_v58  ;;  %v22979_v58 = vld [vmem:[%s24075_s7 + $0x1] ss:$0 sm:$0xff] }
0x6a83   :  { %20744 = vmatpush3.bf16.msra.mxu1 %v21746_v52  ;;  %19980 = vmatprep.mubr.msk.f32.mxu1 %vm21281_vm4, %v24093_v39 }
0x6a84   :  { %20751 = vmatprep.subr.bf16.mxu1 %v24094_v14 }
0x6b55   :  { %v10280_v17 = vpop.f32.mrb[126].mxu1 }
0x6b56   :  { %v10281_v7 = vadd.f32 1e-05, %v10280_v17  ;;  %v19968_v8 = vpop.f32.mrb[127].mxu1 }
0x6b58   :  { %21075 = vrsqrt.f32 %v10281_v7  ;;  %v22992_v7 = vld [vmem:[%s24013_s11 + $0x1] ss:$0 sm:$0xff] }
0x6b62   :  { %v21076_v38 = vpop.eup %21075 }
0x6b63   :  { %10286 = vrot.lane.b32.xlu1 %v21076_v38, %s24092_s0 }
0x6bd5   :  { %v10287_v51 = vpop.permute.xlu1 %10286 }
0x6bd6   :  { %v10289_v57 = vmul.f32 %v10287_v51, %v10133_v31 }
0x6bd8   :  { %v10290_v61 = vmul.f32 %v10289_v57, %v21710_v16 }
0x6bda   :  { %v10291_v3 = vadd.f32 %v10290_v61, %v21713_v18 }
0x6bdc   :  { %v10292_v5 = vadd.f32 %v10291_v3, %v21597_v46 }
0x6bde   :  { %v10297_v22 = vmul.f32 %v22941_v45, %v10292_v5 }
0x6be0   :  { %10299 = vrot.lane.b32.xlu1 %v10297_v22, %s24086_s5  ;;  %v23016_v22 = vld [vmem:[%s24019_s17 + $0x1] ss:$0 sm:$0xff] }
0x6c52   :  { %v10300_v0 = vpop.permute.xlu1 %10299 }
0x6c53   :  { %19974 = vmatmul.mubr.msk.f32.vlgmr.msra.gmra.mrb[120].mxu0 %vm81_vm0, %v10300_v0 }
0x6c54   :  { %20747 = vmatpush3.bf16.msra.mxu0 %v21759_v60  ;;  %19991 = vmatprep.mubr.msk.f32.mxu0 %vm21281_vm4, %v24093_v39 }
0x6c55   :  { %20748 = vmatprep.subr.bf16.mxu0 %v24094_v14 }
0x6c58   :  { %20750 = vmatpush3.bf16.msra.mxu0 %v21765_v62 }
0x6c59   :  { %20757 = vmatprep.subr.bf16.mxu0 %v24094_v14 }
0x6d26   :  { %v10369_v10 = vpop.f32.mrb[120].mxu0 }
0x6d27   :  { %v10370_v20 = vadd.f32 %v22955_v23, %v10369_v10  ;;  %v19975_v63 = vpop.f32.mrb[121].mxu0 }
0x6d29   :  { %v22964_v24 = vadd.f32 %v22961_v27, %v10370_v20  ;;  %v23026_v20 = vld.sshfl [vmem:[%s24081_s3] sm:$0x33 pattern:$0x76325410] }
0x6d2b   :  { %v10374_v29 = vsel %vm1646_vm5, %v22964_v24, 0.0 }
0x6d2c   :  { %10375 = vadd.xlane.f32.xlu0 %v10374_v29 }
0x6db9   :  { %v10376_v53 = vpop.xlane.xlu0 %10375 }
0x6dba   :  { %v10377_v2 = vmul.f32 0.0625, %v10376_v53 }
0x6dbc   :  { %v10378_v13 = vsub.f32 %v22964_v24, %v10377_v2 }
0x6dbe   :  { %v10379_v6 = vmul.f32 %v10378_v13, %v10378_v13 }
0x6dc0   :  { %v10380_v15 = vsel %vm1646_vm5, %v10379_v6, 0.0 }
0x6dc1   :  { %10381 = vadd.xlane.f32.xlu1 %v10380_v15 }
0x6e4e   :  { %v10382_v55 = vpop.xlane.xlu1 %10381 }
0x6e4f   :  { %v10383_v31 = vmul.f32 0.0625, %v10382_v55  ;;  %v23040_v55 = vld [vmem:[%s24017_s15 + $0x1] ss:$0 sm:$0xff] }
0x6e51   :  { %v10384_v9 = vadd.f32 1e-05, %v10383_v31 }
0x6e53   :  { %21077 = vrsqrt.f32 %v10384_v9 }
0x6e5d   :  { %v21078_v12 = vpop.eup %21077 }
0x6e5e   :  { %v10386_v41 = vmul.f32 %v21078_v12, %v10378_v13 }
0x6e60   :  { %v10387_v59 = vmul.f32 %v22973_v36, %v10386_v41 }
0x6e62   :  { %v10388_v44 = vadd.f32 %v22979_v58, %v10387_v59 }
0x6e64   :  { %19981 = vmatmul.mubr.msk.f32.vlgmr.msra.gmra.mrb[128].mxu1 %vm81_vm0, %v10388_v44 }
0x6e65   :  { %20753 = vmatpush3.bf16.msra.mxu1 %v21830_v37  ;;  %20002 = vmatprep.mubr.msk.f32.mxu1 %vm21281_vm4, %v24093_v39 }
0x6e66   :  { %20754 = vmatprep.subr.bf16.mxu1 %v24094_v14 }
0x6e69   :  { %20756 = vmatpush3.bf16.msra.mxu1 %v21840_v43 }
0x6e6a   :  { %20763 = vmatprep.subr.bf16.mxu1 %v24094_v14 }
0x6f37   :  { %v10458_v17 = vpop.f32.mrb[128].mxu1 }
0x6f38   :  { %v22995_v8 = vadd.f32 %v22992_v7, %v10458_v17  ;;  %v19982_v38 = vpop.f32.mrb[129].mxu1 }
0x6f3a   :  { %19992 = vmatmul.mubr.msk.f32.vlgmr.msra.gmra.mrb[122].mxu0 %vm229_vm1, %v22995_v8 }
0x6f3b   :  { %20759 = vmatpush3.bf16.msra.mxu0 %v21796_v19  ;;  %20013 = vmatprep.mubr.msk.f32.mxu0 %vm21281_vm4, %v24093_v39 }
0x6f3c   :  { %20760 = vmatprep.subr.bf16.mxu0 %v24094_v14 }
0x6f3f   :  { %20762 = vmatpush3.bf16.msra.mxu0 %v21810_v30 }
0x6f40   :  { %20769 = vmatprep.subr.bf16.mxu0 %v24094_v14 }
0x6f42   :  { %20014 = vmatmul.mubr.msk.f32.vlgmr.msra.gmra.mrb[124].mxu0 %vm229_vm1, %v22995_v8 }
0x6f43   :  { %20771 = vmatpush3.bf16.msra.mxu0 %v21494_v54  ;;  %20034 = vmatprep.mubr.msk.f32.mxu0 %vm21281_vm4, %v24093_v39 }
0x6f44   :  { %18575 = vmatprep.subr.msk.mxu0 %vm826_vm2, %v21573_v35 }
0x700d   :  { %v10531_v51 = vpop.f32.mrb[122].mxu0 }
0x700e   :  { %v10532_v57 = vadd.f32 %v10531_v51, %v21848_v47  ;;  %v19993_v61 = vpop.f32.mrb[123].mxu0 }
0x7010   :  { %v18564_v3 = vmul.f32 -1.442695, %v10532_v57 }
0x7012   :  { %21079 = vpow2.f32 %v18564_v3 }
0x7015   :  { %v10681_v5 = vpop.f32.mrb[124].mxu0 }
0x7016   :  { %v23019_v0 = vadd.f32 %v23016_v22, %v10681_v5  ;;  %v20015_v10 = vpop.f32.mrb[125].mxu0 }
0x7018   :  { %20035 = vmatmul.mubr.msk.f32.vlgmr.msra.gmra.mrb[126].mxu0 %vm81_vm0, %v23019_v0 }
0x7019   :  { %18576 = vmatpush1.msk.msra.mxu0 %vm826_vm2, %v23026_v20  ;;  %11080 = vmatprep.mubr.f32.mxu0 %v24093_v39 }
0x701a   :  { %20044 = vmatprep.subr.mxu0 %v24093_v39 }
0x701c   :  { %v21080_v63 = vpop.eup %21079 }
0x701d   :  { %v10538_v29 = vadd.f32 1.0, %v21080_v63 }
0x701f   :  { %21081 = vrcp.f32 %v10538_v29 }
0x7029   :  { %v21082_v53 = vpop.eup %21081 }
0x702a   :  { %v10541_v2 = vmul.f32 %v21082_v53, %v10532_v57 }
0x702c   :  { %20003 = vmatmul.mubr.msk.f32.vlgmr.msra.gmra.mrb[130].mxu1 %vm229_vm1, %v10541_v2 }
0x702d   :  { %20765 = vmatpush3.bf16.msra.mxu1 %v21533_v21  ;;  %20020 = vmatprep.mubr.msk.f32.mxu1 %vm21281_vm4, %v24093_v39 }
0x702e   :  { %20766 = vmatprep.subr.bf16.mxu1 %v24094_v14 }
0x70eb   :  { %v10907_v13 = vpop.f32.mrb[126].mxu0 }
0x70ec   :  { %v20036_v6 = vpop.f32.mrb[127].mxu0 }
0x70ff   :  { %v10611_v15 = vpop.f32.mrb[130].mxu1 }
0x7100   :  { %v10612_v31 = vadd.f32 %v23040_v55, %v10611_v15  ;;  %v20004_v9 = vpop.f32.mrb[131].mxu1 }
0x7101   :  { %v23077_v9 = vld [vmem:[%s24083_s2] sm:$0x3] }
0x7102   :  { %10920 = vrot.lane.b32.xlu0 %v10612_v31, %s24088_s28  ;;  %20021 = vmatmul.mubr.msk.f32.vlgmr.msra.gmra.mrb[132].mxu1 %vm81_vm0, %v10612_v31  ;;  %v10919_v12 = vadd.f32 %v10612_v31, %v22743_v34 }
0x7103   :  { %20768 = vmatpush3.bf16.msra.mxu1 %v21533_v21  ;;  %20027 = vmatprep.mubr.msk.f32.mxu1 %vm21281_vm4, %v24093_v39 }
0x7104   :  { %18572 = vmatprep.subr.msk.mxu1 %vm826_vm2, %v21573_v35 }
0x7106   :  { %10764 = vrot.lane.b32.xlu0 %v10612_v31, %s24086_s5 }
0x7174   :  { %v10921_v41 = vpop.permute.xlu0 %10920 }
0x7175   :  { %v23052_v59 = vmax.f32 %v10919_v12, %v10921_v41 }
0x7177   :  { %v10931_v44 = vsub.f32 %v10612_v31, %v23052_v59  ;;  %10925 = vrot.lane.b32.xlu1 %v23052_v59, %s24089_s26 }
0x7178   :  { %v23057_v17 = vpop.permute.xlu0 %10764 }
0x7179   :  { %v10932_v38 = vadd.f32 %v10931_v44, %v22743_v34  ;;  %20028 = vmatmul.mubr.msk.f32.vlgmr.msra.gmra.mrb[134].mxu1 %vm81_vm0, %v23057_v17 }
0x717a   :  { %18573 = vmatpush1.msk.msra.mxu1 %vm826_vm2, %v23026_v20  ;;  %11004 = vmatprep.mubr.f32.mxu1 %v24093_v39 }
0x717b   :  { %v10933_v51 = vmul.f32 1.442695, %v10932_v38  ;;  %20772 = vmatprep.subr.bf16.mxu1 %v24094_v14 }
0x717d   :  { %21083 = vpow2.f32 %v10933_v51 }
0x7187   :  { %v21084_v57 = vpop.eup %21083 }
0x7188   :  { %10936 = vrot.lane.b32.xlu1 %v21084_v57, %s24090_s13 }
0x71d5   :  { %v10760_v61 = vpop.f32.mrb[132].mxu1 }
0x71d6   :  { %v20022_v3 = vpop.f32.mrb[133].mxu1 }
0x71e9   :  { %v10926_v5 = vpop.permute.xlu1 %10925 }
0x71ea   :  { %v10928_v10 = vsub.f32 %v10612_v31, %v10926_v5 }
0x71ec   :  { %v10929_v34 = vmul.f32 1.442695, %v10928_v10 }
0x71ee   :  { %21085 = vpow2.f32 %v10929_v34 }
0x71f8   :  { %v21086_v63 = vpop.eup %21085 }
0x71f9   :  { %11012 = vrot.lane.b32.xlu0 %v21086_v63, %s24091_s27 }
0x71fa   :  { %v10937_v29 = vpop.permute.xlu1 %10936 }
0x71fb   :  { %18574 = vmatmul.mubr.msk.f32.vlgmr.msra.gmra.mrb[136].mxu1 %vm823_vm3, %v10937_v29 }
0x71fc   :  { %20774 = vmatpush3.bf16.xpose.msra.mxu1 %v21494_v54  ;;  %20041 = vmatprep.mubr.msk.f32.mxu1 %vm21281_vm4, %v24093_v39 }
0x71fd   :  { %20054 = vmatprep.subr.mxu1 %v24093_v39 }
0x724c   :  { %v10834_v53 = vpop.f32.mrb[134].mxu1 }
0x724d   :  { %v10911_v2 = vmul.f32 %v10907_v13, %v10834_v53  ;;  %v20029_v6 = vpop.f32.mrb[135].mxu1 }
0x726b   :  { %v11013_v15 = vpop.permute.xlu0 %11012 }
0x726c   :  { %18577 = vmatmul.mubr.msk.f32.vlgmr.msra.gmra.mrb[128].mxu0 %vm823_vm3, %v11013_v15 }
0x726d   :  { %20045 = vmatpush3.xpose.msk.msra.mxu0 %vm81_vm0, %v23077_v9  ;;  %20046 = vmatprep.mubr.msk.f32.mxu0 %vm21281_vm4, %v24093_v39 }
0x726e   :  { %20049 = vmatprep.subr.mxu0 %v24093_v39 }
0x72ce   :  { %v11006_v12 = vpop.f32.mrb[136].mxu1 }
0x72cf   :  { %v11008_v41 = vpop.f32.mrb[137].mxu1  ;;  %v11087_v44 = vmul.f32 %v11006_v12, %v22774_v26  ;;  %v18567_v12 = vmul.f32 -1.442695, %v23019_v0 }
0x72d0   :  { %v11090_v57 = vmul.f32 %v11008_v41, %v22776_v49 }
0x733f   :  { %v11082_v13 = vpop.f32.mrb[128].mxu0 }
0x7340   :  { %v11088_v38 = vmul.f32 %v11082_v13, %v10911_v2  ;;  %v11084_v51 = vpop.f32.mrb[129].mxu0 }
0x7341   :  { %v11092_v3 = vmul.f32 %v11084_v51, %v23057_v17 }
0x7342   :  { %v23087_v5 = vadd.f32 %v11088_v38, %v11087_v44 }
0x7343   :  { %v23089_v10 = vadd.f32 %v11092_v3, %v11090_v57 }
0x7344   :  { %v11094_v34 = vmul.f32 %v23087_v5, %v10760_v61 }
0x7345   :  { %v11165_v63 = vmul.f32 %v23089_v10, %v10612_v31 }
0x7346   :  { %20042 = vmatmul.mubr.f32.vlgmr.msra.gmra.mrb[138].mxu1 %v11094_v34 }
0x7347   :  { %20047 = vmatmul.mubr.msk.f32.vlgmr.msra.gmra.mrb[130].mxu0 %vm81_vm0, %v11165_v63  ;;  %20055 = vmatpush3.xpose.msk.msra.mxu1 %vm81_vm0, %v23077_v9 }
0x7348   :  { %20050 = vmatpush3.msk.msra.mxu0 %vm826_vm2, %v23077_v9  ;;  %20051 = vmatprep.mubr.msk.f32.mxu0 %vm21281_vm4, %v24093_v39 }
0x7349   :  { %20056 = vmatprep.mubr.msk.f32.mxu1 %vm21281_vm4, %v24093_v39  ;;  %20059 = vmatprep.subr.mxu0 %v24093_v39 }
0x734a   :  { %20064 = vmatprep.subr.mxu1 %v24093_v39 }
0x7419   :  { %v11161_v26 = vpop.f32.mrb[138].mxu1 }
0x741a   :  { %11316 = vrot.lane.b32.xlu1 %v11161_v26, %s24092_s0  ;;  %v20043_v49 = vpop.f32.mrb[139].mxu1  ;;  %v11235_v31 = vpop.f32.mrb[130].mxu0 }
0x741b   :  { %v11239_v61 = vand.u32 2147483647, %v11235_v31  ;;  %v20048_v29 = vpop.f32.mrb[131].mxu0  ;;  %v18571_v49 = vmul.f32 -1.442695, %v22995_v8  ;;  %v11719_v31 = vrot.slane %v22824_v4, 6 }
0x741d   :  { %v11240_v53 = vmax.f32 %v11239_v61, 1.0  ;;  %v11721_v61 = vadd.f32 %v11719_v31, %v21547_v28 }
0x741f   :  { %21087 = vrcp.f32 %v11240_v53  ;;  %v23131_v29 = vmax.f32 %v11721_v61, %v22820_v40 }
0x7420   :  { %21089 = vpow2.f32 %v18567_v12 }
0x7421   :  { %v11730_v53 = vsub.f32 %v21547_v28, %v23131_v29 }
0x7429   :  { %v21088_v2 = vpop.eup %21087 }
0x742a   :  { %20052 = vmatmul.mubr.msk.f32.vlgmr.msra.gmra.mrb[132].mxu0 %vm823_vm3, %v21088_v2  ;;  %v21090_v41 = vpop.eup %21089 }
0x742b   :  { %20060 = vmatpush3.msk.msra.mxu0 %vm826_vm2, %v23077_v9  ;;  %20061 = vmatprep.mubr.msk.f32.mxu0 %vm21281_vm4, %v24093_v39  ;;  %v10688_v13 = vadd.f32 1.0, %v21090_v41 }
0x742c   :  { %20069 = vmatprep.subr.mxu0 %v24093_v39 }
0x742d   :  { %21091 = vrcp.f32 %v10688_v13 }
0x742e   :  { %21093 = vpow2.f32 %v18571_v49 }
0x7437   :  { %v21092_v38 = vpop.eup %21091 }
0x7438   :  { %v21094_v2 = vpop.eup %21093 }
0x748c   :  { %v11317_v44 = vpop.permute.xlu1 %11316 }
0x748d   :  { %v11319_v51 = vmul.f32 %v21092_v38, %v11317_v44 }
0x74fd   :  { %v11311_v6 = vpop.f32.mrb[132].mxu0 }
0x74fe   :  { %11321 = vrot.lane.b32.xlu0 %v11311_v6, %s24092_s0  ;;  %v20053_v15 = vpop.f32.mrb[133].mxu0  ;;  %v10915_v6 = vadd.f32 1.0, %v21094_v2 }
0x74ff   :  { %v11731_v15 = vadd.f32 %v11730_v53, %v11719_v31 }
0x7500   :  { %21095 = vrcp.f32 %v10915_v6 }
0x7501   :  { %v11732_v12 = vmul.f32 1.442695, %v11731_v15 }
0x7503   :  { %21097 = vpow2.f32 %v11732_v12 }
0x750a   :  { %v21096_v4 = vpop.eup %21095 }
0x750b   :  { %v10918_v44 = vmul.f32 %v21096_v4, %v22995_v8 }
0x750d   :  { %v21098_v38 = vpop.eup %21097 }
0x7570   :  { %v11322_v57 = vpop.permute.xlu0 %11321 }
0x7571   :  { %v11324_v3 = vmul.f32 %v11322_v57, %v11319_v51  ;;  %v11735_v51 = vrot.slane %v21098_v38, 2  ;;  %v11895_v57 = vrot.slane %v21547_v28, 2 }
0x7573   :  { %11326 = vrot.lane.b32.xlu1 %v11324_v3, %s24086_s5 }
0x75e5   :  { %v11327_v34 = vpop.permute.xlu1 %11326 }
0x75e6   :  { %20057 = vmatmul.mubr.msk.f32.vlgmr.msra.gmra.mrb[140].mxu1 %vm81_vm0, %v11327_v34 }
0x75e7   :  { %20065 = vmatpush3.xpose.msk.msra.mxu1 %vm81_vm0, %v23077_v9  ;;  %20066 = vmatprep.mubr.msk.f32.mxu1 %vm21281_vm4, %v24093_v39 }
0x75e8   :  { %20775 = vmatprep.subr.bf16.mxu1 %v24094_v14 }
0x76b9   :  { %v11396_v0 = vpop.f32.mrb[140].mxu1 }
0x76ba   :  { %v11400_v63 = vmul.f32 0.125, %v11396_v0  ;;  %v20058_v26 = vpop.f32.mrb[141].mxu1 }
0x76bc   :  { %20062 = vmatmul.mubr.msk.f32.vlgmr.msra.gmra.mrb[134].mxu0 %vm823_vm3, %v11400_v63 }
0x76bd   :  { %20070 = vmatpush3.msk.msra.mxu0 %vm826_vm2, %v23077_v9  ;;  %20071 = vmatprep.mubr.msk.f32.mxu0 %vm21281_vm4, %v24093_v39 }
0x76be   :  { %18591 = vmatprep.subr.msk.mxu0 %vm826_vm2, %v21573_v35 }
0x778f   :  { %v11470_v41 = vpop.f32.mrb[134].mxu0 }
0x7790   :  { %11475 = vrot.lane.b32.xlu0 %v11470_v41, %s24092_s0  ;;  %v20063_v13 = vpop.f32.mrb[135].mxu0 }
0x7794   :  { %11724 = vrot.lane.b32.xlu0 %v23131_v29, %s24089_s26 }
0x7798   :  { %11639 = vrot.lane.b32.xlu0 %v10918_v44, %s24086_s5 }
0x779c   :  { %11736 = vrot.lane.b32.xlu0 %v11735_v51, %s24090_s13 }
0x77a0   :  { %11896 = vrot.lane.b32.xlu0 %v11895_v57, %s24086_s5 }
0x7802   :  { %v11476_v34 = vpop.permute.xlu0 %11475 }
0x7803   :  { %v11478_v0 = vsub.f32 %v11324_v3, %v11476_v34 }
0x7805   :  { %v11479_v63 = vmul.f32 %v11478_v0, %v11478_v0 }
0x7806   :  { %v11725_v8 = vpop.permute.xlu0 %11724 }
0x7807   :  { %11481 = vrot.lane.b32.xlu1 %v11479_v63, %s24086_s5  ;;  %v11727_v4 = vsub.f32 %v21547_v28, %v11725_v8 }
0x7809   :  { %v11728_v44 = vmul.f32 1.442695, %v11727_v4 }
0x780a   :  { %v11640_v49 = vpop.permute.xlu0 %11639 }
0x780e   :  { %v11737_v3 = vpop.permute.xlu0 %11736 }
0x7879   :  { %v11482_v26 = vpop.permute.xlu1 %11481 }
0x787a   :  { %20067 = vmatmul.mubr.msk.f32.vlgmr.msra.gmra.mrb[142].mxu1 %vm81_vm0, %v11482_v26 }
0x787b   :  { %20777 = vmatpush3.bf16.msra.mxu1 %v22005_v33  ;;  %20078 = vmatprep.mubr.msk.f32.mxu1 %vm21281_vm4, %v24093_v39 }
0x787c   :  { %18594 = vmatprep.subr.msk.mxu1 %vm826_vm2, %v21573_v35 }
0x794d   :  { %v11551_v31 = vpop.f32.mrb[142].mxu1 }
0x794e   :  { %v11555_v61 = vmul.f32 0.125, %v11551_v31  ;;  %v20068_v53 = vpop.f32.mrb[143].mxu1 }
0x7950   :  { %20072 = vmatmul.mubr.msk.f32.vlgmr.msra.gmra.mrb[136].mxu0 %vm823_vm3, %v11555_v61 }
0x7951   :  { %18592 = vmatpush1.msk.msra.mxu0 %vm826_vm2, %v23026_v20  ;;  %11804 = vmatprep.mubr.f32.mxu0 %v24093_v39 }
0x7952   :  { %20778 = vmatprep.subr.bf16.mxu0 %v24094_v14 }
0x7954   :  { %18593 = vmatmul.mubr.msk.f32.vlgmr.msra.gmra.mrb[138].mxu0 %vm823_vm3, %v11737_v3 }
0x7955   :  { %20085 = vmatprep.mubr.msk.f32.mxu0 %vm21281_vm4, %v24093_v39 }
0x7958   :  { %20780 = vmatpush3.bf16.xpose.msra.mxu0 %v21494_v54 }
0x7959   :  { %20098 = vmatprep.subr.mxu0 %v24093_v39 }
0x7a23   :  { %v11625_v2 = vpop.f32.mrb[136].mxu0 }
0x7a24   :  { %v11626_v6 = vadd.f32 1e-05, %v11625_v2  ;;  %v20073_v15 = vpop.f32.mrb[137].mxu0 }
0x7a26   :  { %21099 = vrsqrt.f32 %v11626_v6  ;;  %v11897_v6 = vpop.permute.xlu0 %11896 }
0x7a27   :  { %v11806_v12 = vpop.f32.mrb[138].mxu0  ;;  %21101 = vpow2.f32 %v11728_v44 }
0x7a28   :  { %v11808_v41 = vpop.f32.mrb[139].mxu0  ;;  %v11888_v15 = vmul.f32 %v11806_v12, %v22875_v32 }
0x7a29   :  { %v11894_v44 = vmul.f32 %v11808_v41, %v22879_v48 }
0x7a30   :  { %v21100_v13 = vpop.eup %21099 }
0x7a31   :  { %11631 = vrot.lane.b32.xlu1 %v21100_v13, %s24092_s0  ;;  %v21102_v61 = vpop.eup %21101 }
0x7a32   :  { %v11812_v53 = vrot.slane %v21102_v61, 2 }
0x7aa3   :  { %v11632_v38 = vpop.permute.xlu1 %11631 }
0x7aa4   :  { %v11634_v51 = vmul.f32 %v11632_v38, %v11478_v0 }
0x7aa6   :  { %v11635_v34 = vmul.f32 %v11634_v51, %v21983_v42  ;;  %v11902_v51 = vrot.slane %v24095_v50, 2 }
0x7aa8   :  { %v11636_v63 = vadd.f32 %v11635_v34, %v22013_v1 }
0x7aaa   :  { %v11637_v26 = vadd.f32 %v11636_v63, %v23057_v17 }
0x7aac   :  { %v11642_v31 = vmul.f32 %v11640_v49, %v11637_v26  ;;  %v11890_v49 = vrot.slane %v21618_v56, 2 }
0x7aae   :  { %11644 = vrot.lane.b32.xlu1 %v11642_v31, %s24086_s5 }
0x7ab2   :  { %11813 = vrot.lane.b32.xlu1 %v11812_v53, %s24091_s27 }
0x7b20   :  { %v11645_v3 = vpop.permute.xlu1 %11644 }
0x7b21   :  { %20079 = vmatmul.mubr.msk.f32.vlgmr.msra.gmra.mrb[144].mxu1 %vm81_vm0, %v11645_v3 }
0x7b22   :  { %18595 = vmatpush1.msk.msra.mxu1 %vm826_vm2, %v23026_v20  ;;  %11881 = vmatprep.mubr.f32.mxu1 %v24093_v39 }
0x7b23   :  { %20088 = vmatprep.subr.mxu1 %v24093_v39 }
0x7b24   :  { %v11814_v0 = vpop.permute.xlu1 %11813 }
0x7b25   :  { %18596 = vmatmul.mubr.msk.f32.vlgmr.msra.gmra.mrb[146].mxu1 %vm823_vm3, %v11814_v0 }
0x7b26   :  { %20090 = vmatprep.mubr.msk.f32.mxu1 %vm21281_vm4, %v24093_v39 }
0x7b29   :  { %20089 = vmatpush3.xpose.msk.msra.mxu1 %vm81_vm0, %v23077_v9 }
0x7b2a   :  { %20093 = vmatprep.subr.mxu1 %v24093_v39 }
0x7bf4   :  { %v23180_v17 = vpop.f32.mrb[144].mxu1 }
0x7bf5   :  { %v20080_v8 = vpop.f32.mrb[145].mxu1 }
0x7bf8   :  { %v11883_v2 = vpop.f32.mrb[146].mxu1 }
0x7bf9   :  { %v11892_v13 = vmul.f32 %v11890_v49, %v11883_v2  ;;  %v11885_v4 = vpop.f32.mrb[147].mxu1 }
0x7bfa   :  { %v11899_v38 = vmul.f32 %v11897_v6, %v11885_v4 }
0x7bfb   :  { %v23186_v34 = vadd.f32 %v11892_v13, %v11888_v15 }
0x7bfc   :  { %v23188_v63 = vadd.f32 %v11899_v38, %v11894_v44 }
0x7bfd   :  { %v11904_v26 = vmul.f32 %v11902_v51, %v23186_v34 }
0x7bfe   :  { %v11976_v31 = vmul.f32 %v23188_v63, %v11895_v57 }
0x7bff   :  { %20086 = vmatmul.mubr.f32.vlgmr.msra.gmra.mrb[140].mxu0 %v11904_v26 }
0x7c00   :  { %20091 = vmatmul.mubr.msk.f32.vlgmr.msra.gmra.mrb[148].mxu1 %vm81_vm0, %v11976_v31  ;;  %20099 = vmatpush3.xpose.msk.msra.mxu0 %vm81_vm0, %v23077_v9 }
0x7c01   :  { %20094 = vmatpush3.msk.msra.mxu1 %vm826_vm2, %v23077_v9  ;;  %20095 = vmatprep.mubr.msk.f32.mxu1 %vm21281_vm4, %v24093_v39 }
0x7c02   :  { %20100 = vmatprep.mubr.msk.f32.mxu0 %vm21281_vm4, %v24093_v39  ;;  %20103 = vmatprep.subr.mxu1 %v24093_v39 }
0x7c03   :  { %20108 = vmatprep.subr.mxu0 %v24093_v39 }
0x7cd2   :  { %v11971_v32 = vpop.f32.mrb[140].mxu0 }
0x7cd3   :  { %v12127_v48 = vrot.slane %v11971_v32, 6  ;;  %v20087_v57 = vpop.f32.mrb[141].mxu0  ;;  %v12046_v12 = vpop.f32.mrb[148].mxu1 }
0x7cd4   :  { %v12050_v41 = vand.u32 2147483647, %v12046_v12  ;;  %v20092_v61 = vpop.f32.mrb[149].mxu1 }
0x7cd5   :  { %12128 = vrot.lane.b32.xlu1 %v12127_v48, %s24092_s0 }
0x7cd6   :  { %v12051_v53 = vmax.f32 %v12050_v41, 1.0 }
0x7cd8   :  { %21103 = vrcp.f32 %v12051_v53 }
0x7ce2   :  { %v21104_v3 = vpop.eup %21103 }
0x7ce3   :  { %20096 = vmatmul.mubr.msk.f32.vlgmr.msra.gmra.mrb[150].mxu1 %vm823_vm3, %v21104_v3 }
0x7ce4   :  { %20104 = vmatpush3.msk.msra.mxu1 %vm826_vm2, %v23077_v9  ;;  %20105 = vmatprep.mubr.msk.f32.mxu1 %vm21281_vm4, %v24093_v39 }
0x7ce5   :  { %20113 = vmatprep.subr.mxu1 %v24093_v39 }
0x7d47   :  { %v12129_v2 = vpop.permute.xlu1 %12128 }
0x7d48   :  { %v12131_v6 = vmul.f32 %v22906_v25, %v12129_v2 }
0x7db6   :  { %v12122_v0 = vpop.f32.mrb[150].mxu1 }
0x7db7   :  { %v12133_v8 = vrot.slane %v12122_v0, 6  ;;  %v20097_v49 = vpop.f32.mrb[151].mxu1 }
0x7db9   :  { %12134 = vrot.lane.b32.xlu0 %v12133_v8, %s24092_s0 }
0x7e2b   :  { %v12135_v15 = vpop.permute.xlu0 %12134 }
0x7e2c   :  { %v12137_v13 = vmul.f32 %v12135_v15, %v12131_v6 }
0x7e2e   :  { %v12139_v4 = vrot.slane %v12137_v13, 2 }
0x7e30   :  { %12140 = vrot.lane.b32.xlu1 %v12139_v4, %s24086_s5 }
0x7ea2   :  { %v12141_v44 = vpop.permute.xlu1 %12140 }
0x7ea3   :  { %20101 = vmatmul.mubr.msk.f32.vlgmr.msra.gmra.mrb[142].mxu0 %vm81_vm0, %v12141_v44 }
0x7ea4   :  { %20109 = vmatpush3.xpose.msk.msra.mxu0 %vm81_vm0, %v23077_v9  ;;  %20110 = vmatprep.mubr.msk.f32.mxu0 %vm21281_vm4, %v24093_v39 }
0x7ea5   :  { %20781 = vmatprep.subr.bf16.mxu0 %v24094_v14 }
0x7f76   :  { %v12210_v38 = vpop.f32.mrb[142].mxu0 }
0x7f77   :  { %v12214_v51 = vmul.f32 0.125, %v12210_v38  ;;  %v20102_v26 = vpop.f32.mrb[143].mxu0 }
0x7f79   :  { %20106 = vmatmul.mubr.msk.f32.vlgmr.msra.gmra.mrb[152].mxu1 %vm823_vm3, %v12214_v51 }
0x7f7a   :  { %20114 = vmatpush3.msk.msra.mxu1 %vm826_vm2, %v23077_v9  ;;  %20115 = vmatprep.mubr.msk.f32.mxu1 %vm21281_vm4, %v24093_v39 }
0x7f7b   :  { %20784 = vmatprep.subr.bf16.mxu1 %v24094_v14 }
0x804c   :  { %v12284_v31 = vpop.f32.mrb[152].mxu1 }
0x804d   :  { %v12289_v32 = vrot.slane %v12284_v31, 6  ;;  %v20107_v48 = vpop.f32.mrb[153].mxu1 }
0x804f   :  { %12290 = vrot.lane.b32.xlu0 %v12289_v32, %s24092_s0 }
0x80c1   :  { %v12291_v57 = vpop.permute.xlu0 %12290 }
0x80c2   :  { %v12293_v12 = vsub.f32 %v12137_v13, %v12291_v57  ;;  %v12533_v57 = vrot.slane %v22961_v27, 2 }
0x80c4   :  { %v12294_v41 = vmul.f32 %v12293_v12, %v12293_v12 }
0x80c6   :  { %v12296_v61 = vrot.slane %v12294_v41, 2 }
0x80c8   :  { %12297 = vrot.lane.b32.xlu1 %v12296_v61, %s24086_s5 }
0x813a   :  { %v12298_v53 = vpop.permute.xlu1 %12297 }
0x813b   :  { %20111 = vmatmul.mubr.msk.f32.vlgmr.msra.gmra.mrb[144].mxu0 %vm81_vm0, %v12298_v53 }
0x813c   :  { %20783 = vmatpush3.bf16.msra.mxu0 %v21701_v11  ;;  %20122 = vmatprep.mubr.msk.f32.mxu0 %vm21281_vm4, %v24093_v39 }
0x813d   :  { %20787 = vmatprep.subr.bf16.mxu0 %v24094_v14 }
0x820e   :  { %v12367_v3 = vpop.f32.mrb[144].mxu0 }
0x820f   :  { %v12371_v0 = vmul.f32 0.125, %v12367_v3  ;;  %v20112_v8 = vpop.f32.mrb[145].mxu0 }
0x8211   :  { %20116 = vmatmul.mubr.msk.f32.vlgmr.msra.gmra.mrb[154].mxu1 %vm823_vm3, %v12371_v0 }
0x8212   :  { %20786 = vmatpush3.bf16.msra.mxu1 %v21746_v52  ;;  %20129 = vmatprep.mubr.msk.f32.mxu1 %vm21281_vm4, %v24093_v39 }
0x8213   :  { %20793 = vmatprep.subr.bf16.mxu1 %v24094_v14 }
0x82e4   :  { %v12441_v49 = vpop.f32.mrb[154].mxu1 }
0x82e5   :  { %v12442_v2 = vadd.f32 1e-05, %v12441_v49  ;;  %v20117_v6 = vpop.f32.mrb[155].mxu1 }
0x82e7   :  { %21105 = vrsqrt.f32 %v12442_v2 }
0x82f1   :  { %v21106_v15 = vpop.eup %21105 }
0x82f2   :  { %v12447_v13 = vrot.slane %v21106_v15, 6 }
0x82f4   :  { %12448 = vrot.lane.b32.xlu0 %v12447_v13, %s24092_s0 }
0x8366   :  { %v12449_v4 = vpop.permute.xlu0 %12448 }
0x8367   :  { %v12451_v44 = vmul.f32 %v12449_v4, %v12293_v12 }
0x8369   :  { %v12452_v38 = vmul.f32 %v12451_v44, %v21710_v16 }
0x836b   :  { %v12453_v51 = vadd.f32 %v12452_v38, %v21713_v18 }
0x836d   :  { %v12454_v26 = vadd.f32 %v12453_v51, %v21597_v46 }
0x836f   :  { %v12455_v31 = vmul.f32 %v12454_v26, %v22941_v45 }
0x8371   :  { %v12457_v32 = vrot.slane %v12455_v31, 2 }
0x8373   :  { %12458 = vrot.lane.b32.xlu1 %v12457_v32, %s24086_s5 }
0x83e5   :  { %v12459_v48 = vpop.permute.xlu1 %12458 }
0x83e6   :  { %20123 = vmatmul.mubr.msk.f32.vlgmr.msra.gmra.mrb[146].mxu0 %vm81_vm0, %v12459_v48 }
0x83e7   :  { %20789 = vmatpush3.bf16.msra.mxu0 %v21759_v60  ;;  %20140 = vmatprep.mubr.msk.f32.mxu0 %vm21281_vm4, %v24093_v39 }
0x83e8   :  { %20790 = vmatprep.subr.bf16.mxu0 %v24094_v14 }
0x83eb   :  { %20792 = vmatpush3.bf16.msra.mxu0 %v21765_v62 }
0x83ec   :  { %20799 = vmatprep.subr.bf16.mxu0 %v24094_v14 }
0x84b9   :  { %v12528_v12 = vpop.f32.mrb[146].mxu0 }
0x84ba   :  { %v12529_v41 = vadd.f32 %v22955_v23, %v12528_v12  ;;  %v20124_v61 = vpop.f32.mrb[147].mxu0 }
0x84bc   :  { %v23254_v53 = vadd.f32 %v12533_v57, %v12529_v41 }
0x84be   :  { %v12536_v3 = vsel %vm1646_vm5, %v23254_v53, 0.0 }
0x84bf   :  { %12537 = vadd.xlane.f32.xlu0 %v12536_v3 }
0x854c   :  { %v12538_v0 = vpop.xlane.xlu0 %12537 }
0x854d   :  { %v12539_v8 = vmul.f32 0.0625, %v12538_v0 }
0x854f   :  { %v12540_v49 = vsub.f32 %v23254_v53, %v12539_v8 }
0x8551   :  { %v12541_v2 = vmul.f32 %v12540_v49, %v12540_v49 }
0x8553   :  { %v12542_v6 = vsel %vm1646_vm5, %v12541_v2, 0.0 }
0x8554   :  { %12543 = vadd.xlane.f32.xlu1 %v12542_v6 }
0x85e1   :  { %v12544_v15 = vpop.xlane.xlu1 %12543 }
0x85e2   :  { %v12545_v27 = vmul.f32 0.0625, %v12544_v15 }
0x85e4   :  { %v12546_v13 = vadd.f32 1e-05, %v12545_v27 }
0x85e6   :  { %21107 = vrsqrt.f32 %v12546_v13 }
0x85f0   :  { %v21108_v23 = vpop.eup %21107 }
0x85f1   :  { %v12548_v4 = vmul.f32 %v21108_v23, %v12540_v49 }
0x85f3   :  { %v12549_v44 = vmul.f32 %v22973_v36, %v12548_v4 }
0x85f5   :  { %v12550_v38 = vadd.f32 %v22979_v58, %v12549_v44 }
0x85f7   :  { %20130 = vmatmul.mubr.msk.f32.vlgmr.msra.gmra.mrb[156].mxu1 %vm81_vm0, %v12550_v38 }
0x85f8   :  { %20795 = vmatpush3.bf16.msra.mxu1 %v21830_v37  ;;  %20151 = vmatprep.mubr.msk.f32.mxu1 %vm21281_vm4, %v24093_v39 }
0x85f9   :  { %20796 = vmatprep.subr.bf16.mxu1 %v24094_v14 }
0x85fc   :  { %20798 = vmatpush3.bf16.msra.mxu1 %v21840_v43 }
0x85fd   :  { %20805 = vmatprep.subr.bf16.mxu1 %v24094_v14 }
0x86ca   :  { %v12620_v51 = vpop.f32.mrb[156].mxu1 }
0x86cb   :  { %v23270_v26 = vadd.f32 %v22992_v7, %v12620_v51  ;;  %v20131_v36 = vpop.f32.mrb[157].mxu1 }
0x86cd   :  { %20141 = vmatmul.mubr.msk.f32.vlgmr.msra.gmra.mrb[148].mxu0 %vm229_vm1, %v23270_v26 }
0x86ce   :  { %20801 = vmatpush3.bf16.msra.mxu0 %v21796_v19  ;;  %20162 = vmatprep.mubr.msk.f32.mxu0 %vm21281_vm4, %v24093_v39 }
0x86cf   :  { %20802 = vmatprep.subr.bf16.mxu0 %v24094_v14 }
0x86d2   :  { %20804 = vmatpush3.bf16.msra.mxu0 %v21810_v30 }
0x86d3   :  { %20811 = vmatprep.subr.bf16.mxu0 %v24094_v14 }
0x86d5   :  { %20163 = vmatmul.mubr.msk.f32.vlgmr.msra.gmra.mrb[150].mxu0 %vm229_vm1, %v23270_v26 }
0x86d6   :  { %20813 = vmatpush3.bf16.msra.mxu0 %v21494_v54  ;;  %20183 = vmatprep.mubr.msk.f32.mxu0 %vm21281_vm4, %v24093_v39 }
0x86d7   :  { %18623 = vmatprep.subr.msk.mxu0 %vm826_vm2, %v21573_v35 }
0x87a0   :  { %v12693_v58 = vpop.f32.mrb[148].mxu0 }
0x87a1   :  { %v12694_v7 = vadd.f32 %v12693_v58, %v21848_v47  ;;  %v20142_v31 = vpop.f32.mrb[149].mxu0 }
0x87a3   :  { %v18612_v32 = vmul.f32 -1.442695, %v12694_v7 }
0x87a5   :  { %21109 = vpow2.f32 %v18612_v32 }
0x87a8   :  { %v12843_v48 = vpop.f32.mrb[150].mxu0 }
0x87a9   :  { %v23289_v57 = vadd.f32 %v23016_v22, %v12843_v48  ;;  %v20164_v12 = vpop.f32.mrb[151].mxu0 }
0x87ab   :  { %20184 = vmatmul.mubr.msk.f32.vlgmr.msra.gmra.mrb[152].mxu0 %vm81_vm0, %v23289_v57 }
0x87ac   :  { %18624 = vmatpush1.msk.msra.mxu0 %vm826_vm2, %v23026_v20  ;;  %13242 = vmatprep.mubr.f32.mxu0 %v24093_v39 }
0x87ad   :  { %20193 = vmatprep.subr.mxu0 %v24093_v39 }
0x87af   :  { %v21110_v41 = vpop.eup %21109 }
0x87b0   :  { %v12700_v61 = vadd.f32 1.0, %v21110_v41 }
0x87b2   :  { %21111 = vrcp.f32 %v12700_v61 }
0x87bc   :  { %v21112_v3 = vpop.eup %21111 }
0x87bd   :  { %v12703_v0 = vmul.f32 %v21112_v3, %v12694_v7 }
0x87bf   :  { %20152 = vmatmul.mubr.msk.f32.vlgmr.msra.gmra.mrb[158].mxu1 %vm229_vm1, %v12703_v0 }
0x87c0   :  { %20807 = vmatpush3.bf16.msra.mxu1 %v21533_v21  ;;  %20169 = vmatprep.mubr.msk.f32.mxu1 %vm21281_vm4, %v24093_v39 }
0x87c1   :  { %20808 = vmatprep.subr.bf16.mxu1 %v24094_v14 }
0x887e   :  { %v13069_v22 = vpop.f32.mrb[152].mxu0 }
0x887f   :  { %v20185_v8 = vpop.f32.mrb[153].mxu0 }
0x8892   :  { %v12773_v49 = vpop.f32.mrb[158].mxu1 }
0x8893   :  { %v12774_v2 = vadd.f32 %v23040_v55, %v12773_v49  ;;  %v20153_v6 = vpop.f32.mrb[159].mxu1 }
0x8895   :  { %13082 = vrot.lane.b32.xlu0 %v12774_v2, %s24088_s28  ;;  %20170 = vmatmul.mubr.msk.f32.vlgmr.msra.gmra.mrb[160].mxu1 %vm81_vm0, %v12774_v2  ;;  %v13081_v15 = vadd.f32 %v12774_v2, %v23052_v59 }
0x8896   :  { %20810 = vmatpush3.bf16.msra.mxu1 %v21533_v21  ;;  %20176 = vmatprep.mubr.msk.f32.mxu1 %vm21281_vm4, %v24093_v39 }
0x8897   :  { %18620 = vmatprep.subr.msk.mxu1 %vm826_vm2, %v21573_v35 }
0x8899   :  { %12926 = vrot.lane.b32.xlu0 %v12774_v2, %s24086_s5 }
0x8907   :  { %v13083_v27 = vpop.permute.xlu0 %13082 }
0x8908   :  { %v23312_v13 = vmax.f32 %v13081_v15, %v13083_v27 }
0x890a   :  { %v13093_v55 = vsub.f32 %v12774_v2, %v23312_v13  ;;  %13087 = vrot.lane.b32.xlu1 %v23312_v13, %s24089_s26 }
0x890b   :  { %v23317_v23 = vpop.permute.xlu0 %12926 }
0x890c   :  { %v13094_v4 = vadd.f32 %v13093_v55, %v23052_v59  ;;  %20177 = vmatmul.mubr.msk.f32.vlgmr.msra.gmra.mrb[162].mxu1 %vm81_vm0, %v23317_v23 }
0x890d   :  { %18621 = vmatpush1.msk.msra.mxu1 %vm826_vm2, %v23026_v20  ;;  %13166 = vmatprep.mubr.f32.mxu1 %v24093_v39 }
0x890e   :  { %v13095_v44 = vmul.f32 1.442695, %v13094_v4  ;;  %20814 = vmatprep.subr.bf16.mxu1 %v24094_v14 }
0x8910   :  { %21113 = vpow2.f32 %v13095_v44 }
0x891a   :  { %v21114_v38 = vpop.eup %21113 }
0x891b   :  { %13098 = vrot.lane.b32.xlu1 %v21114_v38, %s24090_s13 }
0x8968   :  { %v12922_v51 = vpop.f32.mrb[160].mxu1 }
0x8969   :  { %v20171_v36 = vpop.f32.mrb[161].mxu1 }
0x897c   :  { %v13088_v58 = vpop.permute.xlu1 %13087 }
0x897d   :  { %v13090_v7 = vsub.f32 %v12774_v2, %v13088_v58 }
0x897f   :  { %v13091_v59 = vmul.f32 1.442695, %v13090_v7 }
0x8981   :  { %21115 = vpow2.f32 %v13091_v59 }
0x898b   :  { %v21116_v31 = vpop.eup %21115 }
0x898c   :  { %13174 = vrot.lane.b32.xlu0 %v21116_v31, %s24091_s27 }
0x898d   :  { %v13099_v32 = vpop.permute.xlu1 %13098 }
0x898e   :  { %18622 = vmatmul.mubr.msk.f32.vlgmr.msra.gmra.mrb[164].mxu1 %vm823_vm3, %v13099_v32  ;;  %v18615_v32 = vmul.f32 -1.442695, %v23289_v57 }
0x898f   :  { %20816 = vmatpush3.bf16.xpose.msra.mxu1 %v21494_v54  ;;  %20190 = vmatprep.mubr.msk.f32.mxu1 %vm21281_vm4, %v24093_v39 }
0x8990   :  { %20203 = vmatprep.subr.mxu1 %v24093_v39 }
0x89df   :  { %v12996_v48 = vpop.f32.mrb[162].mxu1 }
0x89e0   :  { %v13073_v12 = vmul.f32 %v13069_v22, %v12996_v48  ;;  %v20178_v41 = vpop.f32.mrb[163].mxu1 }
0x89fe   :  { %v13175_v61 = vpop.permute.xlu0 %13174 }
0x89ff   :  { %18625 = vmatmul.mubr.msk.f32.vlgmr.msra.gmra.mrb[154].mxu0 %vm823_vm3, %v13175_v61 }
0x8a00   :  { %20194 = vmatpush3.xpose.msk.msra.mxu0 %vm81_vm0, %v23077_v9  ;;  %20195 = vmatprep.mubr.msk.f32.mxu0 %vm21281_vm4, %v24093_v39 }
0x8a01   :  { %20198 = vmatprep.subr.mxu0 %v24093_v39 }
0x8a61   :  { %v13168_v3 = vpop.f32.mrb[164].mxu1 }
0x8a62   :  { %v13170_v0 = vpop.f32.mrb[165].mxu1  ;;  %v13249_v49 = vmul.f32 %v13168_v3, %v23087_v5 }
0x8a63   :  { %v13252_v22 = vmul.f32 %v13170_v0, %v23089_v10 }
0x8ad2   :  { %v13244_v8 = vpop.f32.mrb[154].mxu0 }
0x8ad3   :  { %v13250_v6 = vmul.f32 %v13244_v8, %v13073_v12  ;;  %v13246_v15 = vpop.f32.mrb[155].mxu0 }
0x8ad4   :  { %v13254_v27 = vmul.f32 %v13246_v15, %v23317_v23 }
0x8ad5   :  { %v23342_v55 = vadd.f32 %v13250_v6, %v13249_v49 }
0x8ad6   :  { %v23344_v4 = vadd.f32 %v13254_v27, %v13252_v22  ;;  %v18619_v22 = vmul.f32 -1.442695, %v23270_v26  ;;  %v13881_v27 = vrot.slane %v23131_v29, 6 }
0x8ad7   :  { %v13256_v44 = vmul.f32 %v23342_v55, %v12922_v51 }
0x8ad8   :  { %v13327_v38 = vmul.f32 %v23344_v4, %v12774_v2 }
0x8ad9   :  { %20191 = vmatmul.mubr.f32.vlgmr.msra.gmra.mrb[166].mxu1 %v13256_v44  ;;  %v13883_v44 = vadd.f32 %v13881_v27, %v21547_v28 }
0x8ada   :  { %20196 = vmatmul.mubr.msk.f32.vlgmr.msra.gmra.mrb[156].mxu0 %vm81_vm0, %v13327_v38  ;;  %20204 = vmatpush3.xpose.msk.msra.mxu1 %vm81_vm0, %v23077_v9 }
0x8adb   :  { %20199 = vmatpush3.msk.msra.mxu0 %vm826_vm2, %v23077_v9  ;;  %20200 = vmatprep.mubr.msk.f32.mxu0 %vm21281_vm4, %v24093_v39  ;;  %v23386_v38 = vmax.f32 %v13883_v44, %v22820_v40 }
0x8adc   :  { %20205 = vmatprep.mubr.msk.f32.mxu1 %vm21281_vm4, %v24093_v39  ;;  %20208 = vmatprep.subr.mxu0 %v24093_v39 }
0x8add   :  { %20213 = vmatprep.subr.mxu1 %v24093_v39 }
0x8bac   :  { %v13323_v5 = vpop.f32.mrb[166].mxu1 }
0x8bad   :  { %13478 = vrot.lane.b32.xlu1 %v13323_v5, %s24092_s0  ;;  %v20192_v10 = vpop.f32.mrb[167].mxu1  ;;  %v13397_v2 = vpop.f32.mrb[156].mxu0  ;;  %v13892_v5 = vsub.f32 %v21547_v28, %v23386_v38 }
0x8bae   :  { %v13401_v51 = vand.u32 2147483647, %v13397_v2  ;;  %v20197_v36 = vpop.f32.mrb[157].mxu0 }
0x8bb0   :  { %v13402_v58 = vmax.f32 %v13401_v51, 1.0  ;;  %v13893_v51 = vadd.f32 %v13892_v5, %v13881_v27 }
0x8bb2   :  { %21117 = vrcp.f32 %v13402_v58  ;;  %v13894_v36 = vmul.f32 1.442695, %v13893_v51 }
0x8bb3   :  { %21119 = vpow2.f32 %v18615_v32 }
0x8bbc   :  { %v21118_v7 = vpop.eup %21117 }
0x8bbd   :  { %20201 = vmatmul.mubr.msk.f32.vlgmr.msra.gmra.mrb[158].mxu0 %vm823_vm3, %v21118_v7  ;;  %v21120_v48 = vpop.eup %21119 }
0x8bbe   :  { %20209 = vmatpush3.msk.msra.mxu0 %vm826_vm2, %v23077_v9  ;;  %20210 = vmatprep.mubr.msk.f32.mxu0 %vm21281_vm4, %v24093_v39  ;;  %v12850_v12 = vadd.f32 1.0, %v21120_v48  ;;  %v14056_v48 = vrot.slane %v21547_v28, 4 }
0x8bbf   :  { %20218 = vmatprep.subr.mxu0 %v24093_v39 }
0x8bc0   :  { %21121 = vrcp.f32 %v12850_v12 }
0x8bc1   :  { %21123 = vpow2.f32 %v18619_v22 }
0x8bca   :  { %v21122_v61 = vpop.eup %21121 }
0x8bcb   :  { %v21124_v10 = vpop.eup %21123 }
0x8bcc   :  { %v13077_v2 = vadd.f32 1.0, %v21124_v10 }
0x8bce   :  { %21125 = vrcp.f32 %v13077_v2 }
0x8bcf   :  { %21127 = vpow2.f32 %v13894_v36 }
0x8bd8   :  { %v21126_v29 = vpop.eup %21125 }
0x8c1f   :  { %v13479_v41 = vpop.permute.xlu1 %13478 }
0x8c20   :  { %v13481_v3 = vmul.f32 %v21122_v61, %v13479_v41 }
0x8c90   :  { %v13473_v59 = vpop.f32.mrb[158].mxu0 }
0x8c91   :  { %13483 = vrot.lane.b32.xlu0 %v13473_v59, %s24092_s0  ;;  %v20202_v31 = vpop.f32.mrb[159].mxu0  ;;  %v13080_v59 = vmul.f32 %v21126_v29, %v23270_v26 }
0x8c92   :  { %v21128_v31 = vpop.eup %21127 }
0x8c93   :  { %v13897_v32 = vrot.slane %v21128_v31, 4 }
0x8d03   :  { %v13484_v0 = vpop.permute.xlu0 %13483 }
0x8d04   :  { %v13486_v8 = vmul.f32 %v13484_v0, %v13481_v3 }
0x8d06   :  { %13488 = vrot.lane.b32.xlu1 %v13486_v8, %s24086_s5 }
0x8d78   :  { %v13489_v49 = vpop.permute.xlu1 %13488 }
0x8d79   :  { %20206 = vmatmul.mubr.msk.f32.vlgmr.msra.gmra.mrb[168].mxu1 %vm81_vm0, %v13489_v49 }
0x8d7a   :  { %20214 = vmatpush3.xpose.msk.msra.mxu1 %vm81_vm0, %v23077_v9  ;;  %20215 = vmatprep.mubr.msk.f32.mxu1 %vm21281_vm4, %v24093_v39 }
0x8d7b   :  { %20817 = vmatprep.subr.bf16.mxu1 %v24094_v14 }
0x8e4c   :  { %v13558_v57 = vpop.f32.mrb[168].mxu1 }
0x8e4d   :  { %v13562_v6 = vmul.f32 0.125, %v13558_v57  ;;  %v20207_v15 = vpop.f32.mrb[169].mxu1 }
0x8e4f   :  { %20211 = vmatmul.mubr.msk.f32.vlgmr.msra.gmra.mrb[160].mxu0 %vm823_vm3, %v13562_v6 }
0x8e50   :  { %20219 = vmatpush3.msk.msra.mxu0 %vm826_vm2, %v23077_v9  ;;  %20220 = vmatprep.mubr.msk.f32.mxu0 %vm21281_vm4, %v24093_v39 }
0x8e51   :  { %18639 = vmatprep.subr.msk.mxu0 %vm826_vm2, %v21573_v35 }
0x8f22   :  { %v13632_v58 = vpop.f32.mrb[160].mxu0 }
0x8f23   :  { %13637 = vrot.lane.b32.xlu0 %v13632_v58, %s24092_s0  ;;  %v20212_v7 = vpop.f32.mrb[161].mxu0 }
0x8f27   :  { %13886 = vrot.lane.b32.xlu0 %v23386_v38, %s24089_s26 }
0x8f2b   :  { %13801 = vrot.lane.b32.xlu0 %v13080_v59, %s24086_s5 }
0x8f2f   :  { %13898 = vrot.lane.b32.xlu0 %v13897_v32, %s24090_s13 }
0x8f33   :  { %14057 = vrot.lane.b32.xlu0 %v14056_v48, %s24086_s5 }
0x8f95   :  { %v13638_v12 = vpop.permute.xlu0 %13637 }
0x8f96   :  { %v13640_v41 = vsub.f32 %v13486_v8, %v13638_v12 }
0x8f98   :  { %v13641_v61 = vmul.f32 %v13640_v41, %v13640_v41 }
0x8f99   :  { %v13887_v26 = vpop.permute.xlu0 %13886 }
0x8f9a   :  { %13643 = vrot.lane.b32.xlu1 %v13641_v61, %s24086_s5  ;;  %v13889_v10 = vsub.f32 %v21547_v28, %v13887_v26 }
0x8f9c   :  { %v13890_v2 = vmul.f32 1.442695, %v13889_v10 }
0x8f9d   :  { %v13802_v0 = vpop.permute.xlu0 %13801 }
0x8fa1   :  { %v13899_v8 = vpop.permute.xlu0 %13898 }
0x900c   :  { %v13644_v3 = vpop.permute.xlu1 %13643 }
0x900d   :  { %20216 = vmatmul.mubr.msk.f32.vlgmr.msra.gmra.mrb[170].mxu1 %vm81_vm0, %v13644_v3  ;;  %v23443_v3 = vld [vmem:[%s24023_s21 + $0x1] ss:$0 sm:$0xff] }
0x900e   :  { %20819 = vmatpush3.bf16.msra.mxu1 %v22005_v33  ;;  %20227 = vmatprep.mubr.msk.f32.mxu1 %vm21281_vm4, %v24093_v39  ;;  %v11715_v26 = vadd.f32 %v23443_v3, %v23180_v17  ;;  %v14062_v17 = vrot.slane %v24095_v50, 4 }
0x900f   :  { %18642 = vmatprep.subr.msk.mxu1 %vm826_vm2, %v21573_v35 }
0x90e0   :  { %v13713_v49 = vpop.f32.mrb[170].mxu1 }
0x90e1   :  { %v13717_v57 = vmul.f32 0.125, %v13713_v49  ;;  %v20217_v6 = vpop.f32.mrb[171].mxu1 }
0x90e2   :  { %v14051_v6 = vrot.slane %v21618_v56, 4 }
0x90e3   :  { %20221 = vmatmul.mubr.msk.f32.vlgmr.msra.gmra.mrb[162].mxu0 %vm823_vm3, %v13717_v57 }
0x90e4   :  { %18640 = vmatpush1.msk.msra.mxu0 %vm826_vm2, %v23026_v20  ;;  %13966 = vmatprep.mubr.f32.mxu0 %v24093_v39 }
0x90e5   :  { %20820 = vmatprep.subr.bf16.mxu0 %v24094_v14 }
0x90e7   :  { %18641 = vmatmul.mubr.msk.f32.vlgmr.msra.gmra.mrb[164].mxu0 %vm823_vm3, %v13899_v8 }
0x90e8   :  { %20234 = vmatprep.mubr.msk.f32.mxu0 %vm21281_vm4, %v24093_v39 }
0x90eb   :  { %20822 = vmatpush3.bf16.xpose.msra.mxu0 %v21494_v54 }
0x90ec   :  { %20247 = vmatprep.subr.mxu0 %v24093_v39 }
0x91b6   :  { %v13787_v15 = vpop.f32.mrb[162].mxu0 }
0x91b7   :  { %v13788_v22 = vadd.f32 1e-05, %v13787_v15  ;;  %v20222_v27 = vpop.f32.mrb[163].mxu0  ;;  %v11718_v15 = vadd.f32 %v11715_v26, %v22964_v24 }
0x91b9   :  { %21129 = vrsqrt.f32 %v13788_v22  ;;  %v14058_v22 = vpop.permute.xlu0 %14057 }
0x91ba   :  { %v13968_v44 = vpop.f32.mrb[164].mxu0  ;;  %21131 = vpow2.f32 %v13890_v2 }
0x91bb   :  { %v13970_v20 = vpop.f32.mrb[165].mxu0  ;;  %v14050_v27 = vmul.f32 %v13968_v44, %v23186_v34 }
0x91c3   :  { %v21130_v5 = vpop.eup %21129 }
0x91c4   :  { %13793 = vrot.lane.b32.xlu1 %v21130_v5, %s24092_s0  ;;  %v21132_v31 = vpop.eup %21131 }
0x91c5   :  { %v13974_v32 = vrot.slane %v21132_v31, 4 }
0x9236   :  { %v13794_v51 = vpop.permute.xlu1 %13793 }
0x9237   :  { %v13796_v36 = vmul.f32 %v13794_v51, %v13640_v41  ;;  %v23428_v41 = vld.sshfl [vmem:[%s24081_s3] sm:$0x33 pattern:$0x76325410]  ;;  %v14055_v51 = vmul.f32 %v13970_v20, %v23188_v63 }
0x9239   :  { %v13797_v58 = vmul.f32 %v13796_v36, %v21983_v42 }
0x923b   :  { %v13798_v7 = vadd.f32 %v13797_v58, %v22013_v1 }
0x923d   :  { %v13799_v29 = vadd.f32 %v13798_v7, %v23317_v23 }
0x923f   :  { %v13804_v59 = vmul.f32 %v13802_v0, %v13799_v29 }
0x9241   :  { %13806 = vrot.lane.b32.xlu1 %v13804_v59, %s24086_s5 }
0x9245   :  { %13975 = vrot.lane.b32.xlu1 %v13974_v32, %s24091_s27  ;;  %v23481_v32 = vld [vmem:[%s24083_s2] sm:$0x3] }
0x92b3   :  { %v13807_v12 = vpop.permute.xlu1 %13806 }
0x92b4   :  { %20228 = vmatmul.mubr.msk.f32.vlgmr.msra.gmra.mrb[172].mxu1 %vm81_vm0, %v13807_v12 }
0x92b5   :  { %18643 = vmatpush1.msk.msra.mxu1 %vm826_vm2, %v23428_v41  ;;  %14043 = vmatprep.mubr.f32.mxu1 %v24093_v39 }
0x92b6   :  { %20237 = vmatprep.subr.mxu1 %v24093_v39 }
0x92b7   :  { %v13976_v23 = vpop.permute.xlu1 %13975 }
0x92b8   :  { %18644 = vmatmul.mubr.msk.f32.vlgmr.msra.gmra.mrb[174].mxu1 %vm823_vm3, %v13976_v23 }
0x92b9   :  { %20239 = vmatprep.mubr.msk.f32.mxu1 %vm21281_vm4, %v24093_v39 }
0x92bc   :  { %20238 = vmatpush3.xpose.msk.msra.mxu1 %vm81_vm0, %v23077_v9 }
0x92bd   :  { %20242 = vmatprep.subr.mxu1 %v24093_v39 }
0x9387   :  { %v13876_v61 = vpop.f32.mrb[172].mxu1 }
0x9388   :  { %v13877_v0 = vadd.f32 %v23443_v3, %v13876_v61  ;;  %v20229_v49 = vpop.f32.mrb[173].mxu1 }
0x938a   :  { %v13880_v57 = vadd.f32 %v13877_v0, %v23254_v53 }
0x938b   :  { %v14045_v8 = vpop.f32.mrb[174].mxu1 }
0x938c   :  { %v18209_v5 = vrot.slane %v13880_v57, 6  ;;  %v14053_v10 = vmul.f32 %v14051_v6, %v14045_v8  ;;  %v14047_v2 = vpop.f32.mrb[175].mxu1 }
0x938d   :  { %v14060_v36 = vmul.f32 %v14058_v22, %v14047_v2 }
0x938e   :  { %v23455_v58 = vsel %vm826_vm2, %v11718_v15, %v18209_v5  ;;  %v23457_v53 = vadd.f32 %v14053_v10, %v14050_v27 }
0x938f   :  { %v23459_v7 = vadd.f32 %v14060_v36, %v14055_v51 }
0x9390   :  { %v14064_v24 = vmul.f32 %v14062_v17, %v23457_v53 }
0x9391   :  { %v14136_v34 = vmul.f32 %v23459_v7, %v14056_v48 }
0x9392   :  { %20235 = vmatmul.mubr.f32.vlgmr.msra.gmra.mrb[166].mxu0 %v14064_v24 }
0x9393   :  { %20240 = vmatmul.mubr.msk.f32.vlgmr.msra.gmra.mrb[176].mxu1 %vm81_vm0, %v14136_v34  ;;  %20248 = vmatpush3.xpose.msk.msra.mxu0 %vm81_vm0, %v23077_v9 }
0x9394   :  { %20243 = vmatpush3.msk.msra.mxu1 %vm826_vm2, %v23077_v9  ;;  %20244 = vmatprep.mubr.msk.f32.mxu1 %vm21281_vm4, %v24093_v39 }
0x9395   :  { %20249 = vmatprep.mubr.msk.f32.mxu0 %vm21281_vm4, %v24093_v39  ;;  %20252 = vmatprep.subr.mxu1 %v24093_v39 }
0x9396   :  { %20257 = vmatprep.subr.mxu0 %v24093_v39 }
0x9465   :  { %v14131_v63 = vpop.f32.mrb[166].mxu0 }
0x9466   :  { %v14287_v48 = vrot.slane %v14131_v63, 4  ;;  %v20236_v44 = vpop.f32.mrb[167].mxu0  ;;  %v14206_v20 = vpop.f32.mrb[176].mxu1 }
0x9467   :  { %v14210_v29 = vand.u32 2147483647, %v14206_v20  ;;  %v20241_v59 = vpop.f32.mrb[177].mxu1 }
0x9468   :  { %14288 = vrot.lane.b32.xlu1 %v14287_v48, %s24092_s0 }
0x9469   :  { %v14211_v31 = vmax.f32 %v14210_v29, 1.0 }
0x946b   :  { %21133 = vrcp.f32 %v14211_v31 }
0x9475   :  { %v21134_v9 = vpop.eup %21133 }
0x9476   :  { %20245 = vmatmul.mubr.msk.f32.vlgmr.msra.gmra.mrb[178].mxu1 %vm823_vm3, %v21134_v9 }
0x9477   :  { %20253 = vmatpush3.msk.msra.mxu1 %vm826_vm2, %v23481_v32  ;;  %20254 = vmatprep.mubr.msk.f32.mxu1 %vm21281_vm4, %v24093_v39 }
0x9478   :  { %20262 = vmatprep.subr.mxu1 %v24093_v39 }
0x94da   :  { %v14289_v26 = vpop.permute.xlu1 %14288 }
0x94db   :  { %v14291_v0 = vmul.f32 %v22906_v25, %v14289_v26 }
0x9549   :  { %v14282_v12 = vpop.f32.mrb[178].mxu1 }
0x954a   :  { %v14293_v23 = vrot.slane %v14282_v12, 4  ;;  %v20246_v61 = vpop.f32.mrb[179].mxu1 }
0x954c   :  { %14294 = vrot.lane.b32.xlu0 %v14293_v23, %s24092_s0 }
0x95be   :  { %v14295_v49 = vpop.permute.xlu0 %14294 }
0x95bf   :  { %v14297_v57 = vmul.f32 %v14295_v49, %v14291_v0 }
0x95c1   :  { %v14299_v6 = vrot.slane %v14297_v57, 4 }
0x95c3   :  { %14300 = vrot.lane.b32.xlu1 %v14299_v6, %s24086_s5 }
0x9635   :  { %v14301_v8 = vpop.permute.xlu1 %14300 }
0x9636   :  { %20250 = vmatmul.mubr.msk.f32.vlgmr.msra.gmra.mrb[168].mxu0 %vm81_vm0, %v14301_v8  ;;  %v23531_v8 = vld [vmem:[%s24073_s6 + $0x8] sm:$0xff] }
0x9637   :  { %20258 = vmatpush3.xpose.msk.msra.mxu0 %vm81_vm0, %v23481_v32  ;;  %20259 = vmatprep.mubr.msk.f32.mxu0 %vm21281_vm4, %v24093_v39 }
0x9638   :  { %20823 = vmatprep.subr.bf16.mxu0 %v24094_v14 }
0x9709   :  { %v14370_v15 = vpop.f32.mrb[168].mxu0 }
0x970a   :  { %v14374_v22 = vmul.f32 0.125, %v14370_v15  ;;  %v20251_v27 = vpop.f32.mrb[169].mxu0  ;;  %v14692_v15 = vrot.slane %v23531_v8, 4 }
0x970b   :  { %v23537_v27 = vld [vmem:[%s24023_s21] ss:$0 sm:$0xff] }
0x970c   :  { %20255 = vmatmul.mubr.msk.f32.vlgmr.msra.gmra.mrb[180].mxu1 %vm823_vm3, %v14374_v22 }
0x970d   :  { %20263 = vmatpush3.msk.msra.mxu1 %vm826_vm2, %v23481_v32  ;;  %20264 = vmatprep.mubr.msk.f32.mxu1 %vm21281_vm4, %v24093_v39 }
0x970e   :  { %20826 = vmatprep.subr.bf16.mxu1 %v24094_v14 }
0x97df   :  { %v14444_v5 = vpop.f32.mrb[180].mxu1 }
0x97e0   :  { %v14449_v10 = vrot.slane %v14444_v5, 4  ;;  %v20256_v2 = vpop.f32.mrb[181].mxu1 }
0x97e2   :  { %14450 = vrot.lane.b32.xlu0 %v14449_v10, %s24092_s0 }
0x9854   :  { %v14451_v51 = vpop.permute.xlu0 %14450 }
0x9855   :  { %v14453_v36 = vsub.f32 %v14297_v57, %v14451_v51 }
0x9857   :  { %v14454_v17 = vmul.f32 %v14453_v36, %v14453_v36 }
0x9859   :  { %v14456_v24 = vrot.slane %v14454_v17, 4 }
0x985b   :  { %14457 = vrot.lane.b32.xlu1 %v14456_v24, %s24086_s5 }
0x98cd   :  { %v14458_v34 = vpop.permute.xlu1 %14457 }
0x98ce   :  { %20260 = vmatmul.mubr.msk.f32.vlgmr.msra.gmra.mrb[170].mxu0 %vm81_vm0, %v14458_v34 }
0x98cf   :  { %20825 = vmatpush3.bf16.msra.mxu0 %v21701_v11  ;;  %20271 = vmatprep.mubr.msk.f32.mxu0 %vm21281_vm4, %v24093_v39 }
0x98d0   :  { %20829 = vmatprep.subr.bf16.mxu0 %v24094_v14 }
0x99a1   :  { %v14527_v63 = vpop.f32.mrb[170].mxu0 }
0x99a2   :  { %v14531_v48 = vmul.f32 0.125, %v14527_v63  ;;  %v20261_v44 = vpop.f32.mrb[171].mxu0 }
0x99a4   :  { %20265 = vmatmul.mubr.msk.f32.vlgmr.msra.gmra.mrb[182].mxu1 %vm823_vm3, %v14531_v48 }
0x99a5   :  { %20828 = vmatpush3.bf16.msra.mxu1 %v21746_v52  ;;  %20278 = vmatprep.mubr.msk.f32.mxu1 %vm21281_vm4, %v24093_v39 }
0x99a6   :  { %20835 = vmatprep.subr.bf16.mxu1 %v24094_v14 }
0x9a77   :  { %v14601_v20 = vpop.f32.mrb[182].mxu1 }
0x9a78   :  { %v14602_v29 = vadd.f32 1e-05, %v14601_v20  ;;  %v20266_v59 = vpop.f32.mrb[183].mxu1 }
0x9a7a   :  { %21135 = vrsqrt.f32 %v14602_v29 }
0x9a84   :  { %v21136_v31 = vpop.eup %21135 }
0x9a85   :  { %v14607_v9 = vrot.slane %v21136_v31, 4  ;;  %v23549_v31 = vld [vmem:[%s24074_s29 + $0x1] ss:$0 sm:$0xff] }
0x9a87   :  { %14608 = vrot.lane.b32.xlu0 %v14607_v9, %s24092_s0 }
0x9af9   :  { %v14609_v12 = vpop.permute.xlu0 %14608 }
0x9afa   :  { %v14611_v23 = vmul.f32 %v14609_v12, %v14453_v36  ;;  %v23555_v12 = vld [vmem:[%s24075_s7 + $0x1] ss:$0 sm:$0xff] }
0x9afc   :  { %v14612_v61 = vmul.f32 %v14611_v23, %v21710_v16 }
0x9afe   :  { %v14613_v26 = vadd.f32 %v14612_v61, %v21713_v18 }
0x9b00   :  { %v14614_v0 = vadd.f32 %v14613_v26, %v21597_v46  ;;  %v23568_v26 = vld [vmem:[%s24013_s11 + $0x1] ss:$0 sm:$0xff] }
0x9b02   :  { %v14615_v49 = vmul.f32 %v14614_v0, %v22941_v45 }
0x9b04   :  { %v14617_v57 = vrot.slane %v14615_v49, 4 }
0x9b06   :  { %14618 = vrot.lane.b32.xlu1 %v14617_v57, %s24086_s5 }
0x9b78   :  { %v14619_v6 = vpop.permute.xlu1 %14618 }
0x9b79   :  { %20272 = vmatmul.mubr.msk.f32.vlgmr.msra.gmra.mrb[172].mxu0 %vm81_vm0, %v14619_v6 }
0x9b7a   :  { %20831 = vmatpush3.bf16.msra.mxu0 %v21759_v60  ;;  %20289 = vmatprep.mubr.msk.f32.mxu0 %vm21281_vm4, %v24093_v39 }
0x9b7b   :  { %20832 = vmatprep.subr.bf16.mxu0 %v24094_v14 }
0x9b7e   :  { %20834 = vmatpush3.bf16.msra.mxu0 %v21765_v62 }
0x9b7f   :  { %20841 = vmatprep.subr.bf16.mxu0 %v24094_v14 }
0x9c4c   :  { %v14688_v22 = vpop.f32.mrb[172].mxu0 }
0x9c4d   :  { %v14689_v5 = vadd.f32 %v23537_v27, %v14688_v22  ;;  %v20273_v10 = vpop.f32.mrb[173].mxu0 }
0x9c4e   :  { %v23592_v10 = vld [vmem:[%s24019_s17 + $0x1] ss:$0 sm:$0xff] }
0x9c4f   :  { %v23540_v2 = vadd.f32 %v14692_v15, %v14689_v5 }
0x9c51   :  { %v14695_v51 = vsel %vm1646_vm5, %v23540_v2, 0.0 }
0x9c52   :  { %14696 = vadd.xlane.f32.xlu0 %v14695_v51 }
0x9cdf   :  { %v14697_v36 = vpop.xlane.xlu0 %14696 }
0x9ce0   :  { %v14698_v17 = vmul.f32 0.0625, %v14697_v36 }
0x9ce2   :  { %v14699_v24 = vsub.f32 %v23540_v2, %v14698_v17 }
0x9ce4   :  { %v14700_v34 = vmul.f32 %v14699_v24, %v14699_v24 }
0x9ce6   :  { %v14701_v63 = vsel %vm1646_vm5, %v14700_v34, 0.0 }
0x9ce7   :  { %14702 = vadd.xlane.f32.xlu1 %v14701_v63 }
0x9d74   :  { %v14703_v48 = vpop.xlane.xlu1 %14702 }
0x9d75   :  { %v14704_v44 = vmul.f32 0.0625, %v14703_v48 }
0x9d77   :  { %v14705_v20 = vadd.f32 1e-05, %v14704_v44 }
0x9d79   :  { %21137 = vrsqrt.f32 %v14705_v20 }
0x9d83   :  { %v21138_v29 = vpop.eup %21137 }
0x9d84   :  { %v14707_v59 = vmul.f32 %v21138_v29, %v14699_v24  ;;  %v23611_v29 = vld [vmem:[%s24017_s15 + $0x1] ss:$0 sm:$0xff] }
0x9d86   :  { %v14708_v9 = vmul.f32 %v23549_v31, %v14707_v59 }
0x9d88   :  { %v14709_v23 = vadd.f32 %v23555_v12, %v14708_v9 }
0x9d8a   :  { %20279 = vmatmul.mubr.msk.f32.vlgmr.msra.gmra.mrb[184].mxu1 %vm81_vm0, %v14709_v23 }
0x9d8b   :  { %20837 = vmatpush3.bf16.msra.mxu1 %v21830_v37  ;;  %20300 = vmatprep.mubr.msk.f32.mxu1 %vm21281_vm4, %v24093_v39 }
0x9d8c   :  { %20838 = vmatprep.subr.bf16.mxu1 %v24094_v14 }
0x9d8f   :  { %20840 = vmatpush3.bf16.msra.mxu1 %v21840_v43 }
0x9d90   :  { %20847 = vmatprep.subr.bf16.mxu1 %v24094_v14 }
0x9e5d   :  { %v14779_v61 = vpop.f32.mrb[184].mxu1 }
0x9e5e   :  { %v23571_v0 = vadd.f32 %v23568_v26, %v14779_v61  ;;  %v20280_v49 = vpop.f32.mrb[185].mxu1 }
0x9e60   :  { %20290 = vmatmul.mubr.msk.f32.vlgmr.msra.gmra.mrb[174].mxu0 %vm229_vm1, %v23571_v0 }
0x9e61   :  { %20843 = vmatpush3.bf16.msra.mxu0 %v21796_v19  ;;  %20311 = vmatprep.mubr.msk.f32.mxu0 %vm21281_vm4, %v24093_v39 }
0x9e62   :  { %20844 = vmatprep.subr.bf16.mxu0 %v24094_v14 }
0x9e65   :  { %20846 = vmatpush3.bf16.msra.mxu0 %v21810_v30 }
0x9e66   :  { %20853 = vmatprep.subr.bf16.mxu0 %v24094_v14 }
0x9e68   :  { %20312 = vmatmul.mubr.msk.f32.vlgmr.msra.gmra.mrb[176].mxu0 %vm229_vm1, %v23571_v0 }
0x9e69   :  { %20855 = vmatpush3.bf16.msra.mxu0 %v21494_v54  ;;  %20332 = vmatprep.mubr.msk.f32.mxu0 %vm21281_vm4, %v24093_v39 }
0x9e6a   :  { %18671 = vmatprep.subr.msk.mxu0 %vm826_vm2, %v21573_v35 }
0x9f33   :  { %v14852_v57 = vpop.f32.mrb[174].mxu0 }
0x9f34   :  { %v14853_v6 = vadd.f32 %v14852_v57, %v21848_v47  ;;  %v20291_v15 = vpop.f32.mrb[175].mxu0 }
0x9f36   :  { %v18660_v22 = vmul.f32 -1.442695, %v14853_v6 }
0x9f38   :  { %21139 = vpow2.f32 %v18660_v22 }
0x9f3b   :  { %v15002_v5 = vpop.f32.mrb[176].mxu0 }
0x9f3c   :  { %v23595_v51 = vadd.f32 %v23592_v10, %v15002_v5  ;;  %v20313_v36 = vpop.f32.mrb[177].mxu0 }
0x9f3e   :  { %20333 = vmatmul.mubr.msk.f32.vlgmr.msra.gmra.mrb[178].mxu0 %vm81_vm0, %v23595_v51 }
0x9f3f   :  { %18672 = vmatpush1.msk.msra.mxu0 %vm826_vm2, %v23428_v41  ;;  %15401 = vmatprep.mubr.f32.mxu0 %v24093_v39 }
0x9f40   :  { %20342 = vmatprep.subr.mxu0 %v24093_v39 }
0x9f42   :  { %v21140_v17 = vpop.eup %21139 }
0x9f43   :  { %v14859_v24 = vadd.f32 1.0, %v21140_v17 }
0x9f45   :  { %21141 = vrcp.f32 %v14859_v24 }
0x9f4f   :  { %v21142_v34 = vpop.eup %21141 }
0x9f50   :  { %v14862_v63 = vmul.f32 %v21142_v34, %v14853_v6 }
0x9f52   :  { %20301 = vmatmul.mubr.msk.f32.vlgmr.msra.gmra.mrb[186].mxu1 %vm229_vm1, %v14862_v63 }
0x9f53   :  { %20849 = vmatpush3.bf16.msra.mxu1 %v21533_v21  ;;  %20318 = vmatprep.mubr.msk.f32.mxu1 %vm21281_vm4, %v24093_v39 }
0x9f54   :  { %20850 = vmatprep.subr.bf16.mxu1 %v24094_v14 }
0xa011   :  { %v15228_v48 = vpop.f32.mrb[178].mxu0 }
0xa012   :  { %v20334_v44 = vpop.f32.mrb[179].mxu0 }
0xa025   :  { %v14932_v20 = vpop.f32.mrb[186].mxu1 }
0xa026   :  { %v14933_v59 = vadd.f32 %v23611_v29, %v14932_v20  ;;  %v20302_v9 = vpop.f32.mrb[187].mxu1 }
0xa028   :  { %15241 = vrot.lane.b32.xlu0 %v14933_v59, %s24088_s28  ;;  %20319 = vmatmul.mubr.msk.f32.vlgmr.msra.gmra.mrb[188].mxu1 %vm81_vm0, %v14933_v59  ;;  %v15240_v23 = vadd.f32 %v14933_v59, %v23312_v13 }
0xa029   :  { %20852 = vmatpush3.bf16.msra.mxu1 %v21533_v21  ;;  %20325 = vmatprep.mubr.msk.f32.mxu1 %vm21281_vm4, %v24093_v39 }
0xa02a   :  { %18668 = vmatprep.subr.msk.mxu1 %vm826_vm2, %v21573_v35 }
0xa02c   :  { %15085 = vrot.lane.b32.xlu0 %v14933_v59, %s24086_s5 }
0xa09a   :  { %v15242_v61 = vpop.permute.xlu0 %15241 }
0xa09b   :  { %v23623_v49 = vmax.f32 %v15240_v23, %v15242_v61 }
0xa09d   :  { %v15252_v57 = vsub.f32 %v14933_v59, %v23623_v49  ;;  %15246 = vrot.lane.b32.xlu1 %v23623_v49, %s24089_s26 }
0xa09e   :  { %v23628_v6 = vpop.permute.xlu0 %15085 }
0xa09f   :  { %v15253_v15 = vadd.f32 %v15252_v57, %v23312_v13  ;;  %20326 = vmatmul.mubr.msk.f32.vlgmr.msra.gmra.mrb[190].mxu1 %vm81_vm0, %v23628_v6 }
0xa0a0   :  { %18669 = vmatpush1.msk.msra.mxu1 %vm826_vm2, %v23428_v41  ;;  %15325 = vmatprep.mubr.f32.mxu1 %v24093_v39 }
0xa0a1   :  { %v15254_v22 = vmul.f32 1.442695, %v15253_v15  ;;  %20856 = vmatprep.subr.bf16.mxu1 %v24094_v14 }
0xa0a3   :  { %21143 = vpow2.f32 %v15254_v22 }
0xa0ad   :  { %v21144_v5 = vpop.eup %21143 }
0xa0ae   :  { %15257 = vrot.lane.b32.xlu1 %v21144_v5, %s24090_s13 }
0xa0fb   :  { %v15081_v36 = vpop.f32.mrb[188].mxu1 }
0xa0fc   :  { %v20320_v17 = vpop.f32.mrb[189].mxu1 }
0xa10f   :  { %v15247_v24 = vpop.permute.xlu1 %15246 }
0xa110   :  { %v15249_v34 = vsub.f32 %v14933_v59, %v15247_v24 }
0xa112   :  { %v15250_v13 = vmul.f32 1.442695, %v15249_v34 }
0xa114   :  { %21145 = vpow2.f32 %v15250_v13 }
0xa11e   :  { %v21146_v63 = vpop.eup %21145 }
0xa11f   :  { %15333 = vrot.lane.b32.xlu0 %v21146_v63, %s24091_s27 }
0xa120   :  { %v15258_v44 = vpop.permute.xlu1 %15257 }
0xa121   :  { %18670 = vmatmul.mubr.msk.f32.vlgmr.msra.gmra.mrb[192].mxu1 %vm823_vm3, %v15258_v44 }
0xa122   :  { %20858 = vmatpush3.bf16.xpose.msra.mxu1 %v21494_v54  ;;  %20339 = vmatprep.mubr.msk.f32.mxu1 %vm21281_vm4, %v24093_v39 }
0xa123   :  { %20352 = vmatprep.subr.mxu1 %v24093_v39 }
0xa172   :  { %v15155_v20 = vpop.f32.mrb[190].mxu1 }
0xa173   :  { %v15232_v9 = vmul.f32 %v15228_v48, %v15155_v20  ;;  %v20327_v23 = vpop.f32.mrb[191].mxu1 }
0xa191   :  { %v15334_v61 = vpop.permute.xlu0 %15333 }
0xa192   :  { %18673 = vmatmul.mubr.msk.f32.vlgmr.msra.gmra.mrb[180].mxu0 %vm823_vm3, %v15334_v61 }
0xa193   :  { %20343 = vmatpush3.xpose.msk.msra.mxu0 %vm81_vm0, %v23481_v32  ;;  %20344 = vmatprep.mubr.msk.f32.mxu0 %vm21281_vm4, %v24093_v39 }
0xa194   :  { %20347 = vmatprep.subr.mxu0 %v24093_v39 }
0xa1f4   :  { %v15327_v57 = vpop.f32.mrb[192].mxu1 }
0xa1f5   :  { %v15329_v15 = vpop.f32.mrb[193].mxu1  ;;  %v15408_v5 = vmul.f32 %v15327_v57, %v23342_v55 }
0xa1f6   :  { %v15411_v48 = vmul.f32 %v15329_v15, %v23344_v4 }
0xa265   :  { %v15403_v22 = vpop.f32.mrb[180].mxu0 }
0xa266   :  { %v15409_v17 = vmul.f32 %v15403_v22, %v15232_v9  ;;  %v15405_v24 = vpop.f32.mrb[181].mxu0  ;;  %v18663_v22 = vmul.f32 -1.442695, %v23595_v51 }
0xa267   :  { %v15413_v34 = vmul.f32 %v15405_v24, %v23628_v6 }
0xa268   :  { %v23653_v13 = vadd.f32 %v15409_v17, %v15408_v5 }
0xa269   :  { %v23655_v63 = vadd.f32 %v15413_v34, %v15411_v48 }
0xa26a   :  { %v15415_v44 = vmul.f32 %v23653_v13, %v15081_v36 }
0xa26b   :  { %v15486_v20 = vmul.f32 %v23655_v63, %v14933_v59 }
0xa26c   :  { %20340 = vmatmul.mubr.f32.vlgmr.msra.gmra.mrb[194].mxu1 %v15415_v44 }
0xa26d   :  { %20345 = vmatmul.mubr.msk.f32.vlgmr.msra.gmra.mrb[182].mxu0 %vm81_vm0, %v15486_v20  ;;  %20353 = vmatpush3.xpose.msk.msra.mxu1 %vm81_vm0, %v23481_v32 }
0xa26e   :  { %20348 = vmatpush3.msk.msra.mxu0 %vm826_vm2, %v23481_v32  ;;  %20349 = vmatprep.mubr.msk.f32.mxu0 %vm21281_vm4, %v24093_v39 }
0xa26f   :  { %20354 = vmatprep.mubr.msk.f32.mxu1 %vm21281_vm4, %v24093_v39  ;;  %20357 = vmatprep.subr.mxu0 %v24093_v39 }
0xa270   :  { %20362 = vmatprep.subr.mxu1 %v24093_v39 }
0xa33f   :  { %v15482_v55 = vpop.f32.mrb[194].mxu1 }
0xa340   :  { %15637 = vrot.lane.b32.xlu1 %v15482_v55, %s24092_s0  ;;  %v20341_v4 = vpop.f32.mrb[195].mxu1  ;;  %v15556_v59 = vpop.f32.mrb[182].mxu0 }
0xa341   :  { %v15560_v36 = vand.u32 2147483647, %v15556_v59  ;;  %v20346_v9 = vpop.f32.mrb[183].mxu0 }
0xa342   :  { %v16040_v9 = vrot.slane %v23386_v38, 6 }
0xa343   :  { %v15561_v23 = vmax.f32 %v15560_v36, 1.0  ;;  %v18667_v36 = vmul.f32 -1.442695, %v23571_v0 }
0xa345   :  { %21147 = vrcp.f32 %v15561_v23  ;;  %v16042_v23 = vadd.f32 %v16040_v9, %v21547_v28 }
0xa346   :  { %21149 = vpow2.f32 %v18663_v22 }
0xa34f   :  { %v21148_v61 = vpop.eup %21147 }
0xa350   :  { %20350 = vmatmul.mubr.msk.f32.vlgmr.msra.gmra.mrb[184].mxu0 %vm823_vm3, %v21148_v61  ;;  %v21150_v5 = vpop.eup %21149  ;;  %v23697_v61 = vmax.f32 %v16042_v23, %v22820_v40 }
0xa351   :  { %20358 = vmatpush3.msk.msra.mxu0 %vm826_vm2, %v23481_v32  ;;  %20359 = vmatprep.mubr.msk.f32.mxu0 %vm21281_vm4, %v24093_v39  ;;  %v15009_v17 = vadd.f32 1.0, %v21150_v5 }
0xa352   :  { %20367 = vmatprep.subr.mxu0 %v24093_v39 }
0xa353   :  { %21151 = vrcp.f32 %v15009_v17 }
0xa354   :  { %21153 = vpow2.f32 %v18667_v36 }
0xa35d   :  { %v21152_v48 = vpop.eup %21151 }
0xa3b2   :  { %v15638_v24 = vpop.permute.xlu1 %15637 }
0xa3b3   :  { %v15640_v34 = vmul.f32 %v21152_v48, %v15638_v24 }
0xa423   :  { %v15632_v57 = vpop.f32.mrb[184].mxu0 }
0xa424   :  { %15642 = vrot.lane.b32.xlu0 %v15632_v57, %s24092_s0  ;;  %v20351_v15 = vpop.f32.mrb[185].mxu0  ;;  %v16051_v57 = vsub.f32 %v21547_v28, %v23697_v61 }
0xa425   :  { %v21154_v15 = vpop.eup %21153 }
0xa426   :  { %v15236_v22 = vadd.f32 1.0, %v21154_v15  ;;  %v16052_v5 = vadd.f32 %v16051_v57, %v16040_v9 }
0xa428   :  { %21155 = vrcp.f32 %v15236_v22  ;;  %v16053_v17 = vmul.f32 1.442695, %v16052_v5 }
0xa42a   :  { %21157 = vpow2.f32 %v16053_v17 }
0xa432   :  { %v21156_v38 = vpop.eup %21155 }
0xa433   :  { %v15239_v40 = vmul.f32 %v21156_v38, %v23571_v0 }
0xa496   :  { %v15643_v44 = vpop.permute.xlu0 %15642 }
0xa497   :  { %v15645_v20 = vmul.f32 %v15643_v44, %v15640_v34  ;;  %v21158_v34 = vpop.eup %21157 }
0xa498   :  { %v16056_v44 = vrot.slane %v21158_v34, 6 }
0xa499   :  { %15647 = vrot.lane.b32.xlu1 %v15645_v20, %s24086_s5 }
0xa50b   :  { %v15648_v55 = vpop.permute.xlu1 %15647 }
0xa50c   :  { %20355 = vmatmul.mubr.msk.f32.vlgmr.msra.gmra.mrb[196].mxu1 %vm81_vm0, %v15648_v55  ;;  %v16215_v55 = vrot.slane %v21547_v28, 6 }
0xa50d   :  { %20363 = vmatpush3.xpose.msk.msra.mxu1 %vm81_vm0, %v23481_v32  ;;  %20364 = vmatprep.mubr.msk.f32.mxu1 %vm21281_vm4, %v24093_v39 }
0xa50e   :  { %20859 = vmatprep.subr.bf16.mxu1 %v24094_v14 }
0xa5df   :  { %v15717_v51 = vpop.f32.mrb[196].mxu1 }
0xa5e0   :  { %v15721_v4 = vmul.f32 0.125, %v15717_v51  ;;  %v20356_v59 = vpop.f32.mrb[197].mxu1 }
0xa5e2   :  { %20360 = vmatmul.mubr.msk.f32.vlgmr.msra.gmra.mrb[186].mxu0 %vm823_vm3, %v15721_v4 }
0xa5e3   :  { %20368 = vmatpush3.msk.msra.mxu0 %vm826_vm2, %v23481_v32  ;;  %20369 = vmatprep.mubr.msk.f32.mxu0 %vm21281_vm4, %v24093_v39 }
0xa5e4   :  { %18687 = vmatprep.subr.msk.mxu0 %vm826_vm2, %v21573_v35 }
0xa6b5   :  { %v15791_v24 = vpop.f32.mrb[186].mxu0 }
0xa6b6   :  { %15796 = vrot.lane.b32.xlu0 %v15791_v24, %s24092_s0  ;;  %v20361_v48 = vpop.f32.mrb[187].mxu0 }
0xa6ba   :  { %16045 = vrot.lane.b32.xlu0 %v23697_v61, %s24089_s26 }
0xa6be   :  { %15960 = vrot.lane.b32.xlu0 %v15239_v40, %s24086_s5 }
0xa6c2   :  { %16057 = vrot.lane.b32.xlu0 %v16056_v44, %s24090_s13 }
0xa6c6   :  { %16216 = vrot.lane.b32.xlu0 %v16215_v55, %s24086_s5 }
0xa728   :  { %v15797_v51 = vpop.permute.xlu0 %15796 }
0xa729   :  { %v15799_v4 = vsub.f32 %v15645_v20, %v15797_v51 }
0xa72b   :  { %v15800_v59 = vmul.f32 %v15799_v4, %v15799_v4 }
0xa72c   :  { %v16046_v0 = vpop.permute.xlu0 %16045 }
0xa72d   :  { %15802 = vrot.lane.b32.xlu1 %v15800_v59, %s24086_s5  ;;  %v16048_v40 = vsub.f32 %v21547_v28, %v16046_v0 }
0xa72f   :  { %v16049_v34 = vmul.f32 1.442695, %v16048_v40 }
0xa730   :  { %v15961_v9 = vpop.permute.xlu0 %15960 }
0xa734   :  { %v16058_v20 = vpop.permute.xlu0 %16057 }
0xa79f   :  { %v15803_v36 = vpop.permute.xlu1 %15802 }
0xa7a0   :  { %20365 = vmatmul.mubr.msk.f32.vlgmr.msra.gmra.mrb[198].mxu1 %vm81_vm0, %v15803_v36 }
0xa7a1   :  { %20861 = vmatpush3.bf16.msra.mxu1 %v22005_v33  ;;  %20376 = vmatprep.mubr.msk.f32.mxu1 %vm21281_vm4, %v24093_v39 }
0xa7a2   :  { %18690 = vmatprep.subr.msk.mxu1 %vm826_vm2, %v21573_v35 }
0xa873   :  { %v15872_v23 = vpop.f32.mrb[198].mxu1 }
0xa874   :  { %v15876_v57 = vmul.f32 0.125, %v15872_v23  ;;  %v20366_v15 = vpop.f32.mrb[199].mxu1 }
0xa876   :  { %20370 = vmatmul.mubr.msk.f32.vlgmr.msra.gmra.mrb[188].mxu0 %vm823_vm3, %v15876_v57 }
0xa877   :  { %18688 = vmatpush1.msk.msra.mxu0 %vm826_vm2, %v23428_v41  ;;  %16125 = vmatprep.mubr.f32.mxu0 %v24093_v39 }
0xa878   :  { %20862 = vmatprep.subr.bf16.mxu0 %v24094_v14 }
0xa87a   :  { %18689 = vmatmul.mubr.msk.f32.vlgmr.msra.gmra.mrb[190].mxu0 %vm823_vm3, %v16058_v20 }
0xa87b   :  { %20383 = vmatprep.mubr.msk.f32.mxu0 %vm21281_vm4, %v24093_v39 }
0xa87e   :  { %20864 = vmatpush3.bf16.xpose.msra.mxu0 %v21494_v54 }
0xa87f   :  { %20396 = vmatprep.subr.mxu0 %v24093_v39 }
0xa949   :  { %v15946_v22 = vpop.f32.mrb[188].mxu0 }
0xa94a   :  { %v15947_v5 = vadd.f32 1e-05, %v15946_v22  ;;  %v20371_v17 = vpop.f32.mrb[189].mxu0 }
0xa94c   :  { %21159 = vrsqrt.f32 %v15947_v5  ;;  %v16210_v5 = vrot.slane %v21618_v56, 6 }
0xa94d   :  { %v16127_v24 = vpop.f32.mrb[190].mxu0  ;;  %21161 = vpow2.f32 %v16049_v34 }
0xa94e   :  { %v16129_v48 = vpop.f32.mrb[191].mxu0  ;;  %v16209_v40 = vmul.f32 %v16127_v24, %v23457_v53 }
0xa956   :  { %v21160_v38 = vpop.eup %21159 }
0xa957   :  { %15952 = vrot.lane.b32.xlu1 %v21160_v38, %s24092_s0  ;;  %v21162_v15 = vpop.eup %21161  ;;  %v16217_v38 = vpop.permute.xlu0 %16216 }
0xa958   :  { %v16133_v20 = vrot.slane %v21162_v15, 6 }
0xa9c9   :  { %v15953_v44 = vpop.permute.xlu1 %15952 }
0xa9ca   :  { %v15955_v51 = vmul.f32 %v15953_v44, %v15799_v4 }
0xa9cc   :  { %v15956_v59 = vmul.f32 %v15955_v51, %v21983_v42 }
0xa9ce   :  { %v15957_v36 = vadd.f32 %v15956_v59, %v22013_v1  ;;  %v16214_v59 = vmul.f32 %v16129_v48, %v23459_v7 }
0xa9d0   :  { %v15958_v23 = vadd.f32 %v15957_v36, %v23628_v6 }
0xa9d2   :  { %v15963_v57 = vmul.f32 %v15961_v9, %v15958_v23  ;;  %v16221_v23 = vrot.slane %v24095_v50, 6 }
0xa9d4   :  { %15965 = vrot.lane.b32.xlu1 %v15963_v57, %s24086_s5 }
0xa9d8   :  { %16134 = vrot.lane.b32.xlu1 %v16133_v20, %s24091_s27 }
0xaa46   :  { %v15966_v22 = vpop.permute.xlu1 %15965 }
0xaa47   :  { %20377 = vmatmul.mubr.msk.f32.vlgmr.msra.gmra.mrb[200].mxu1 %vm81_vm0, %v15966_v22 }
0xaa48   :  { %18691 = vmatpush1.msk.msra.mxu1 %vm826_vm2, %v23428_v41  ;;  %16202 = vmatprep.mubr.f32.mxu1 %v24093_v39 }
0xaa49   :  { %20386 = vmatprep.subr.mxu1 %v24093_v39 }
0xaa4a   :  { %v16135_v4 = vpop.permute.xlu1 %16134 }
0xaa4b   :  { %18692 = vmatmul.mubr.msk.f32.vlgmr.msra.gmra.mrb[202].mxu1 %vm823_vm3, %v16135_v4 }
0xaa4c   :  { %20388 = vmatprep.mubr.msk.f32.mxu1 %vm21281_vm4, %v24093_v39 }
0xaa4f   :  { %20387 = vmatpush3.xpose.msk.msra.mxu1 %vm81_vm0, %v23481_v32 }
0xaa50   :  { %20391 = vmatprep.subr.mxu1 %v24093_v39 }
0xab1a   :  { %v16035_v6 = vpop.f32.mrb[200].mxu1 }
0xab1b   :  { %v16036_v0 = vadd.f32 %v23443_v3, %v16035_v6  ;;  %v20378_v9 = vpop.f32.mrb[201].mxu1 }
0xab1d   :  { %v16039_v41 = vadd.f32 %v16036_v0, %v23540_v2 }
0xab1e   :  { %v16204_v17 = vpop.f32.mrb[202].mxu1 }
0xab1f   :  { %v18212_v34 = vrot.slane %v16039_v41, 4  ;;  %v16212_v44 = vmul.f32 %v16210_v5, %v16204_v17  ;;  %v16206_v51 = vpop.f32.mrb[203].mxu1 }
0xab20   :  { %v16219_v36 = vmul.f32 %v16217_v38, %v16206_v51 }
0xab21   :  { %v23754_v3 = vsel %vm18218_vm6, %v23455_v58, %v18212_v34  ;;  %v16213_v57 = vadd.f32 %v16212_v44, %v16209_v40 }
0xab22   :  { %v16220_v2 = vadd.f32 %v16219_v36, %v16214_v59 }
0xab23   :  { %v16223_v15 = vmul.f32 %v16221_v23, %v16213_v57  ;;  %18227 = vst [vmem:[%s24025_s23] sm:$0x3] %v16213_v57 }
0xab24   :  { %v16295_v56 = vmul.f32 %v16220_v2, %v16215_v55  ;;  %18228 = vst.msk [vmem:[%s24026_s24] sm:$0x3] %vm1646_vm5, %v16220_v2 }
0xab25   :  { %20384 = vmatmul.mubr.f32.vlgmr.msra.gmra.mrb[192].mxu0 %v16223_v15 }
0xab26   :  { %20389 = vmatmul.mubr.msk.f32.vlgmr.msra.gmra.mrb[204].mxu1 %vm81_vm0, %v16295_v56  ;;  %20397 = vmatpush3.xpose.msk.msra.mxu0 %vm81_vm0, %v23481_v32 }
0xab27   :  { %20392 = vmatpush3.msk.msra.mxu1 %vm826_vm2, %v23481_v32  ;;  %20393 = vmatprep.mubr.msk.f32.mxu1 %vm21281_vm4, %v24093_v39 }
0xab28   :  { %20398 = vmatprep.mubr.msk.f32.mxu0 %vm21281_vm4, %v24093_v39  ;;  %20401 = vmatprep.subr.mxu1 %v24093_v39 }
0xab29   :  { %20406 = vmatprep.subr.mxu0 %v24093_v39 }
0xabf8   :  { %v16290_v28 = vpop.f32.mrb[192].mxu0 }
0xabf9   :  { %v16446_v50 = vrot.slane %v16290_v28, 2  ;;  %v20385_v58 = vpop.f32.mrb[193].mxu0  ;;  %v16365_v53 = vpop.f32.mrb[204].mxu1 }
0xabfa   :  { %v16369_v7 = vand.u32 2147483647, %v16365_v53  ;;  %v20390_v55 = vpop.f32.mrb[205].mxu1 }
0xabfb   :  { %16447 = vrot.lane.b32.xlu1 %v16446_v50, %s24092_s0 }
0xabfc   :  { %v16370_v24 = vmax.f32 %v16369_v7, 1.0 }
0xabfe   :  { %21163 = vrcp.f32 %v16370_v24 }
0xac08   :  { %v21164_v48 = vpop.eup %21163 }
0xac09   :  { %20394 = vmatmul.mubr.msk.f32.vlgmr.msra.gmra.mrb[206].mxu1 %vm823_vm3, %v21164_v48 }
0xac0a   :  { %20402 = vmatpush3.msk.msra.mxu1 %vm826_vm2, %v23481_v32  ;;  %20403 = vmatprep.mubr.msk.f32.mxu1 %vm21281_vm4, %v24093_v39 }
0xac0b   :  { %20411 = vmatprep.subr.mxu1 %v24093_v39 }
0xac6d   :  { %v16448_v6 = vpop.permute.xlu1 %16447 }
0xac6e   :  { %v16450_v0 = vmul.f32 %v22906_v25, %v16448_v6 }
0xacdc   :  { %v16441_v20 = vpop.f32.mrb[206].mxu1 }
0xacdd   :  { %v16452_v22 = vrot.slane %v16441_v20, 2  ;;  %v20395_v4 = vpop.f32.mrb[207].mxu1 }
0xacdf   :  { %16453 = vrot.lane.b32.xlu0 %v16452_v22, %s24092_s0 }
0xad51   :  { %v16454_v9 = vpop.permute.xlu0 %16453 }
0xad52   :  { %v16456_v41 = vmul.f32 %v16454_v9, %v16450_v0 }
0xad54   :  { %v16458_v5 = vrot.slane %v16456_v41, 6 }
0xad56   :  { %16459 = vrot.lane.b32.xlu1 %v16458_v5, %s24086_s5 }
0xadc8   :  { %v16460_v17 = vpop.permute.xlu1 %16459 }
0xadc9   :  { %20399 = vmatmul.mubr.msk.f32.vlgmr.msra.gmra.mrb[194].mxu0 %vm81_vm0, %v16460_v17 }
0xadca   :  { %20407 = vmatpush3.xpose.msk.msra.mxu0 %vm81_vm0, %v23481_v32  ;;  %20408 = vmatprep.mubr.msk.f32.mxu0 %vm21281_vm4, %v24093_v39 }
0xadcb   :  { %20865 = vmatprep.subr.bf16.mxu0 %v24094_v14 }
0xae9c   :  { %v16529_v38 = vpop.f32.mrb[194].mxu0 }
0xae9d   :  { %v16533_v40 = vmul.f32 0.125, %v16529_v38  ;;  %v20400_v34 = vpop.f32.mrb[195].mxu0 }
0xae9f   :  { %20404 = vmatmul.mubr.msk.f32.vlgmr.msra.gmra.mrb[208].mxu1 %vm823_vm3, %v16533_v40 }
0xaea0   :  { %20412 = vmatpush3.msk.msra.mxu1 %vm826_vm2, %v23481_v32  ;;  %20413 = vmatprep.mubr.msk.f32.mxu1 %vm21281_vm4, %v24093_v39 }
0xaea1   :  { %20868 = vmatprep.subr.bf16.mxu1 %v24094_v14 }
0xaf72   :  { %v16603_v25 = vpop.f32.mrb[208].mxu1 }
0xaf73   :  { %v16608_v44 = vrot.slane %v16603_v25, 2  ;;  %v20405_v51 = vpop.f32.mrb[209].mxu1 }
0xaf75   :  { %16609 = vrot.lane.b32.xlu0 %v16608_v44, %s24092_s0 }
0xafe7   :  { %v16610_v59 = vpop.permute.xlu0 %16609 }
0xafe8   :  { %v16612_v36 = vsub.f32 %v16456_v41, %v16610_v59 }
0xafea   :  { %v16613_v23 = vmul.f32 %v16612_v36, %v16612_v36 }
0xafec   :  { %v16615_v57 = vrot.slane %v16613_v23, 6 }
0xafee   :  { %16616 = vrot.lane.b32.xlu1 %v16615_v57, %s24086_s5 }
0xb060   :  { %v16617_v2 = vpop.permute.xlu1 %16616 }
0xb061   :  { %20409 = vmatmul.mubr.msk.f32.vlgmr.msra.gmra.mrb[196].mxu0 %vm81_vm0, %v16617_v2 }
0xb062   :  { %20867 = vmatpush3.bf16.msra.mxu0 %v21701_v11  ;;  %20420 = vmatprep.mubr.msk.f32.mxu0 %vm21281_vm4, %v24093_v39 }
0xb063   :  { %20871 = vmatprep.subr.bf16.mxu0 %v24094_v14 }
0xb134   :  { %v16686_v32 = vpop.f32.mrb[196].mxu0 }
0xb135   :  { %v16690_v15 = vmul.f32 0.125, %v16686_v32  ;;  %v20410_v56 = vpop.f32.mrb[197].mxu0 }
0xb137   :  { %20414 = vmatmul.mubr.msk.f32.vlgmr.msra.gmra.mrb[210].mxu1 %vm823_vm3, %v16690_v15 }
0xb138   :  { %20870 = vmatpush3.bf16.msra.mxu1 %v21746_v52  ;;  %20427 = vmatprep.mubr.msk.f32.mxu1 %vm21281_vm4, %v24093_v39 }
0xb139   :  { %20877 = vmatprep.subr.bf16.mxu1 %v24094_v14 }
0xb20a   :  { %v16760_v28 = vpop.f32.mrb[210].mxu1 }
0xb20b   :  { %v16761_v50 = vadd.f32 1e-05, %v16760_v28  ;;  %v20415_v11 = vpop.f32.mrb[211].mxu1 }
0xb20d   :  { %21165 = vrsqrt.f32 %v16761_v50 }
0xb217   :  { %v21166_v58 = vpop.eup %21165 }
0xb218   :  { %v16766_v53 = vrot.slane %v21166_v58, 2 }
0xb21a   :  { %16767 = vrot.lane.b32.xlu0 %v16766_v53, %s24092_s0 }
0xb28c   :  { %v16768_v7 = vpop.permute.xlu0 %16767 }
0xb28d   :  { %v16770_v55 = vmul.f32 %v16768_v7, %v16612_v36  ;;  %v21221_v36 = vld.sshfl [vmem:[%s24081_s3] sm:$0x33 pattern:$0x76325410] }
0xb28f   :  { %v16771_v24 = vmul.f32 %v16770_v55, %v21710_v16 }
0xb291   :  { %v16772_v48 = vadd.f32 %v16771_v24, %v21713_v18 }
0xb293   :  { %v16773_v52 = vadd.f32 %v16772_v48, %v21597_v46  ;;  %v16851_v46 = vrot.slane %v23531_v8, 6 }
0xb295   :  { %v16774_v20 = vmul.f32 %v16773_v52, %v22941_v45 }
0xb297   :  { %v16776_v22 = vrot.slane %v16774_v20, 6 }
0xb299   :  { %16777 = vrot.lane.b32.xlu1 %v16776_v22, %s24086_s5 }
0xb30b   :  { %v16778_v4 = vpop.permute.xlu1 %16777 }
0xb30c   :  { %20421 = vmatmul.mubr.msk.f32.vlgmr.msra.gmra.mrb[198].mxu0 %vm81_vm0, %v16778_v4 }
0xb30d   :  { %20873 = vmatpush3.bf16.msra.mxu0 %v21759_v60  ;;  %20438 = vmatprep.mubr.msk.f32.mxu0 %vm21281_vm4, %v24093_v39 }
0xb30e   :  { %20874 = vmatprep.subr.bf16.mxu0 %v24094_v14 }
0xb311   :  { %20876 = vmatpush3.bf16.msra.mxu0 %v21765_v62 }
0xb312   :  { %20883 = vmatprep.subr.bf16.mxu0 %v24094_v14 }
0xb3df   :  { %v16847_v16 = vpop.f32.mrb[198].mxu0 }
0xb3e0   :  { %v16848_v18 = vadd.f32 %v23537_v27, %v16847_v16  ;;  %v20422_v45 = vpop.f32.mrb[199].mxu0 }
0xb3e1   :  { %v21222_v45 = vld [vmem:[%s24083_s2] sm:$0x3] }
0xb3e2   :  { %v23825_v6 = vadd.f32 %v16851_v46, %v16848_v18 }
0xb3e4   :  { %v16854_v60 = vsel %vm1646_vm5, %v23825_v6, 0.0 }
0xb3e5   :  { %16855 = vadd.xlane.f32.xlu0 %v16854_v60 }
0xb472   :  { %v16856_v0 = vpop.xlane.xlu0 %16855 }
0xb473   :  { %v16857_v9 = vmul.f32 0.0625, %v16856_v0 }
0xb475   :  { %v16858_v41 = vsub.f32 %v23825_v6, %v16857_v9 }
0xb477   :  { %v16859_v5 = vmul.f32 %v16858_v41, %v16858_v41 }
0xb479   :  { %v16860_v62 = vsel %vm1646_vm5, %v16859_v5, 0.0 }
0xb47a   :  { %16861 = vadd.xlane.f32.xlu1 %v16860_v62 }
0xb507   :  { %v16862_v17 = vpop.xlane.xlu1 %16861 }
0xb508   :  { %v16863_v8 = vmul.f32 0.0625, %v16862_v17 }
0xb50a   :  { %v16864_v38 = vadd.f32 1e-05, %v16863_v8 }
0xb50c   :  { %21167 = vrsqrt.f32 %v16864_v38 }
0xb516   :  { %v21168_v27 = vpop.eup %21167 }
0xb517   :  { %v16866_v40 = vmul.f32 %v21168_v27, %v16858_v41 }
0xb519   :  { %v16867_v34 = vmul.f32 %v23549_v31, %v16866_v40 }
0xb51b   :  { %v16868_v25 = vadd.f32 %v23555_v12, %v16867_v34 }
0xb51d   :  { %20428 = vmatmul.mubr.msk.f32.vlgmr.msra.gmra.mrb[212].mxu1 %vm81_vm0, %v16868_v25 }
0xb51e   :  { %20879 = vmatpush3.bf16.msra.mxu1 %v21830_v37  ;;  %20449 = vmatprep.mubr.msk.f32.mxu1 %vm21281_vm4, %v24093_v39 }
0xb51f   :  { %20880 = vmatprep.subr.bf16.mxu1 %v24094_v14 }
0xb522   :  { %20882 = vmatpush3.bf16.msra.mxu1 %v21840_v43 }
0xb523   :  { %20889 = vmatprep.subr.bf16.mxu1 %v24094_v14 }
0xb5f0   :  { %v16938_v44 = vpop.f32.mrb[212].mxu1 }
0xb5f1   :  { %v23841_v51 = vadd.f32 %v23568_v26, %v16938_v44  ;;  %v20429_v31 = vpop.f32.mrb[213].mxu1 }
0xb5f3   :  { %20439 = vmatmul.mubr.msk.f32.vlgmr.msra.gmra.mrb[200].mxu0 %vm229_vm1, %v23841_v51 }
0xb5f4   :  { %20885 = vmatpush3.bf16.msra.mxu0 %v21796_v19  ;;  %20460 = vmatprep.mubr.msk.f32.mxu0 %vm21281_vm4, %v24093_v39 }
0xb5f5   :  { %20886 = vmatprep.subr.bf16.mxu0 %v24094_v14 }
0xb5f8   :  { %20888 = vmatpush3.bf16.msra.mxu0 %v21810_v30 }
0xb5f9   :  { %20895 = vmatprep.subr.bf16.mxu0 %v24094_v14 }
0xb5fb   :  { %20461 = vmatmul.mubr.msk.f32.vlgmr.msra.gmra.mrb[202].mxu0 %vm229_vm1, %v23841_v51 }
0xb5fc   :  { %20897 = vmatpush3.bf16.msra.mxu0 %v21494_v54  ;;  %20481 = vmatprep.mubr.msk.f32.mxu0 %vm21281_vm4, %v24093_v39 }
0xb5fd   :  { %18719 = vmatprep.subr.msk.mxu0 %vm826_vm2, %v21573_v35 }
0xb6c6   :  { %v17011_v19 = vpop.f32.mrb[200].mxu0 }
0xb6c7   :  { %v17012_v37 = vadd.f32 %v17011_v19, %v21848_v47  ;;  %v20440_v43 = vpop.f32.mrb[201].mxu0 }
0xb6c9   :  { %v18708_v12 = vmul.f32 -1.442695, %v17012_v37 }
0xb6cb   :  { %21169 = vpow2.f32 %v18708_v12 }
0xb6ce   :  { %v17161_v30 = vpop.f32.mrb[202].mxu0 }
0xb6cf   :  { %v23860_v26 = vadd.f32 %v23592_v10, %v17161_v30  ;;  %v20462_v59 = vpop.f32.mrb[203].mxu0 }
0xb6d1   :  { %20482 = vmatmul.mubr.msk.f32.vlgmr.msra.gmra.mrb[204].mxu0 %vm81_vm0, %v23860_v26  ;;  %v18711_v12 = vmul.f32 -1.442695, %v23860_v26 }
0xb6d2   :  { %18720 = vmatpush1.msk.msra.mxu0 %vm826_vm2, %v21221_v36  ;;  %17560 = vmatprep.mubr.f32.mxu0 %v24093_v39 }
0xb6d3   :  { %20491 = vmatprep.subr.mxu0 %v24093_v39 }
0xb6d5   :  { %v21170_v47 = vpop.eup %21169 }
0xb6d6   :  { %v17018_v23 = vadd.f32 1.0, %v21170_v47 }
0xb6d8   :  { %21171 = vrcp.f32 %v17018_v23 }
0xb6e2   :  { %v21172_v57 = vpop.eup %21171 }
0xb6e3   :  { %v17021_v10 = vmul.f32 %v21172_v57, %v17012_v37 }
0xb6e5   :  { %20450 = vmatmul.mubr.msk.f32.vlgmr.msra.gmra.mrb[214].mxu1 %vm229_vm1, %v17021_v10 }
0xb6e6   :  { %20891 = vmatpush3.bf16.msra.mxu1 %v21533_v21  ;;  %20467 = vmatprep.mubr.msk.f32.mxu1 %vm21281_vm4, %v24093_v39 }
0xb6e7   :  { %20892 = vmatprep.subr.bf16.mxu1 %v24094_v14 }
0xb7a4   :  { %v17387_v2 = vpop.f32.mrb[204].mxu0 }
0xb7a5   :  { %v20483_v32 = vpop.f32.mrb[205].mxu0 }
0xb7b8   :  { %v17091_v15 = vpop.f32.mrb[214].mxu1 }
0xb7b9   :  { %v17092_v56 = vadd.f32 %v23611_v29, %v17091_v15  ;;  %v20451_v28 = vpop.f32.mrb[215].mxu1 }
0xb7bb   :  { %17400 = vrot.lane.b32.xlu0 %v17092_v56, %s24088_s28  ;;  %20468 = vmatmul.mubr.msk.f32.vlgmr.msra.gmra.mrb[216].mxu1 %vm81_vm0, %v17092_v56  ;;  %v17399_v50 = vadd.f32 %v17092_v56, %v23623_v49 }
0xb7bc   :  { %20894 = vmatpush3.bf16.msra.mxu1 %v21533_v21  ;;  %20474 = vmatprep.mubr.msk.f32.mxu1 %vm21281_vm4, %v24093_v39 }
0xb7bd   :  { %18716 = vmatprep.subr.msk.mxu1 %vm826_vm2, %v21573_v35 }
0xb7bf   :  { %17244 = vrot.lane.b32.xlu0 %v17092_v56, %s24086_s5 }
0xb82d   :  { %v17401_v11 = vpop.permute.xlu0 %17400 }
0xb82e   :  { %v23885_v58 = vmax.f32 %v17399_v50, %v17401_v11  ;;  %v18715_v50 = vmul.f32 -1.442695, %v23841_v51 }
0xb830   :  { %v17411_v29 = vsub.f32 %v17092_v56, %v23885_v58  ;;  %17405 = vrot.lane.b32.xlu1 %v23885_v58, %s24089_s26 }
0xb831   :  { %v23890_v53 = vpop.permute.xlu0 %17244 }
0xb832   :  { %v17412_v21 = vadd.f32 %v17411_v29, %v23623_v49  ;;  %20475 = vmatmul.mubr.msk.f32.vlgmr.msra.gmra.mrb[218].mxu1 %vm81_vm0, %v23890_v53 }
0xb833   :  { %18717 = vmatpush1.msk.msra.mxu1 %vm826_vm2, %v21221_v36  ;;  %17484 = vmatprep.mubr.f32.mxu1 %v24093_v39 }
0xb834   :  { %v17413_v35 = vmul.f32 1.442695, %v17412_v21  ;;  %20898 = vmatprep.subr.bf16.mxu1 %v24094_v14 }
0xb836   :  { %21173 = vpow2.f32 %v17413_v35 }
0xb840   :  { %v21174_v7 = vpop.eup %21173 }
0xb841   :  { %17416 = vrot.lane.b32.xlu1 %v21174_v7, %s24090_s13 }
0xb88e   :  { %v17240_v55 = vpop.f32.mrb[216].mxu1 }
0xb88f   :  { %v20469_v24 = vpop.f32.mrb[217].mxu1 }
0xb8a2   :  { %v17406_v48 = vpop.permute.xlu1 %17405 }
0xb8a3   :  { %v17408_v52 = vsub.f32 %v17092_v56, %v17406_v48 }
0xb8a5   :  { %v17409_v20 = vmul.f32 1.442695, %v17408_v52 }
0xb8a7   :  { %21175 = vpow2.f32 %v17409_v20 }
0xb8b1   :  { %v21176_v49 = vpop.eup %21175 }
0xb8b2   :  { %17492 = vrot.lane.b32.xlu0 %v21176_v49, %s24091_s27 }
0xb8b3   :  { %v17417_v22 = vpop.permute.xlu1 %17416 }
0xb8b4   :  { %18718 = vmatmul.mubr.msk.f32.vlgmr.msra.gmra.mrb[220].mxu1 %vm823_vm3, %v17417_v22 }
0xb8b5   :  { %20900 = vmatpush3.bf16.xpose.msra.mxu1 %v21494_v54  ;;  %20488 = vmatprep.mubr.msk.f32.mxu1 %vm21281_vm4, %v24093_v39 }
0xb8b6   :  { %20501 = vmatprep.subr.mxu1 %v24093_v39 }
0xb905   :  { %v17314_v4 = vpop.f32.mrb[218].mxu1 }
0xb906   :  { %v17391_v46 = vmul.f32 %v17387_v2, %v17314_v4  ;;  %v20476_v16 = vpop.f32.mrb[219].mxu1 }
0xb924   :  { %v17493_v18 = vpop.permute.xlu0 %17492 }
0xb925   :  { %18721 = vmatmul.mubr.msk.f32.vlgmr.msra.gmra.mrb[206].mxu0 %vm823_vm3, %v17493_v18 }
0xb926   :  { %20492 = vmatpush3.xpose.msk.msra.mxu0 %vm81_vm0, %v21222_v45  ;;  %20493 = vmatprep.mubr.msk.f32.mxu0 %vm21281_vm4, %v24093_v39 }
0xb927   :  { %20496 = vmatprep.subr.mxu0 %v24093_v39 }
0xb987   :  { %v17486_v54 = vpop.f32.mrb[220].mxu1 }
0xb988   :  { %v17488_v60 = vpop.f32.mrb[221].mxu1  ;;  %v17567_v9 = vmul.f32 %v17486_v54, %v23653_v13 }
0xb989   :  { %v17570_v62 = vmul.f32 %v17488_v60, %v23655_v63 }
0xb9f8   :  { %v17562_v0 = vpop.f32.mrb[206].mxu0 }
0xb9f9   :  { %v17568_v41 = vmul.f32 %v17562_v0, %v17391_v46  ;;  %v17564_v5 = vpop.f32.mrb[207].mxu0 }
0xb9fa   :  { %v17572_v17 = vmul.f32 %v17564_v5, %v23890_v53 }
0xb9fb   :  { %v17569_v8 = vadd.f32 %v17568_v41, %v17567_v9 }
0xb9fc   :  { %v17573_v38 = vadd.f32 %v17572_v17, %v17570_v62 }
0xb9fd   :  { %v17574_v27 = vmul.f32 %v17569_v8, %v17240_v55  ;;  %18735 = vst [vmem:[%s24025_s23 + $0x2] sm:$0x3] %v17569_v8  ;;  %s21283_s23 = smov [#allocation4]  }
0xb9fe   :  { %v17645_v40 = vmul.f32 %v17573_v38, %v17092_v56  ;;  %18736 = vst.msk [vmem:[%s24026_s24 + $0x2] sm:$0x3] %vm1646_vm5, %v17573_v38  ;;  %s18265_s24 = sshll.u32 %s21283_s23, 4  ;;  %s18266_s24 = int_to_ptr.vmem [resolvable:$true] %s18265_s24 }
0xb9ff   :  { %20489 = vmatmul.mubr.f32.vlgmr.msra.gmra.mrb[222].mxu1 %v17574_v27  ;;  %p21229_p1 = scmp.lt.s32.totalorder %s18266_s24, %s18266_s24 }
0xba00   :  { %20494 = vmatmul.mubr.msk.f32.vlgmr.msra.gmra.mrb[208].mxu0 %vm81_vm0, %v17645_v40  ;;  %20502 = vmatpush3.xpose.msk.msra.mxu1 %vm81_vm0, %v21222_v45 }
0xba01   :  { %20497 = vmatpush3.msk.msra.mxu0 %vm826_vm2, %v21222_v45  ;;  %20498 = vmatprep.mubr.msk.f32.mxu0 %vm21281_vm4, %v24093_v39 }
0xba02   :  { %20503 = vmatprep.mubr.msk.f32.mxu1 %vm21281_vm4, %v24093_v39  ;;  %20506 = vmatprep.subr.mxu0 %v24093_v39 }
0xba03   :  { %20511 = vmatprep.subr.mxu1 %v24093_v39 }
0xbad2   :  { %v17641_v13 = vpop.f32.mrb[222].mxu1 }
0xbad3   :  { %17796 = vrot.lane.b32.xlu1 %v17641_v13, %s24092_s0  ;;  %v20490_v63 = vpop.f32.mrb[223].mxu1  ;;  %v17715_v34 = vpop.f32.mrb[208].mxu0 }
0xbad4   :  { %v17719_v25 = vand.u32 2147483647, %v17715_v34  ;;  %v20495_v44 = vpop.f32.mrb[209].mxu0 }
0xbad6   :  { %v17720_v31 = vmax.f32 %v17719_v25, 1.0 }
0xbad8   :  { %21177 = vrcp.f32 %v17720_v31 }
0xbad9   :  { %21179 = vpow2.f32 %v18711_v12 }
0xbae2   :  { %v21178_v19 = vpop.eup %21177 }
0xbae3   :  { %20499 = vmatmul.mubr.msk.f32.vlgmr.msra.gmra.mrb[210].mxu0 %vm823_vm3, %v21178_v19  ;;  %v21180_v30 = vpop.eup %21179 }
0xbae4   :  { %20507 = vmatpush3.msk.msra.mxu0 %vm826_vm2, %v21222_v45  ;;  %20508 = vmatprep.mubr.msk.f32.mxu0 %vm21281_vm4, %v24093_v39  ;;  %v17168_v59 = vadd.f32 1.0, %v21180_v30 }
0xbae5   :  { %20516 = vmatprep.subr.mxu0 %v24093_v39 }
0xbae6   :  { %21181 = vrcp.f32 %v17168_v59 }
0xbae7   :  { %21183 = vpow2.f32 %v18715_v50 }
0xbaf0   :  { %v21182_v47 = vpop.eup %21181 }
0xbaf1   :  { %v21184_v11 = vpop.eup %21183 }
0xbaf2   :  { %v17395_v29 = vadd.f32 1.0, %v21184_v11 }
0xbaf4   :  { %21185 = vrcp.f32 %v17395_v29 }
0xbafe   :  { %v21186_v7 = vpop.eup %21185 }
0xbaff   :  { %v17398_v55 = vmul.f32 %v21186_v7, %v23841_v51 }
0xbb45   :  { %v17797_v36 = vpop.permute.xlu1 %17796 }
0xbb46   :  { %v17799_v23 = vmul.f32 %v21182_v47, %v17797_v36 }
0xbbb6   :  { %v17791_v37 = vpop.f32.mrb[210].mxu0 }
0xbbb7   :  { %17801 = vrot.lane.b32.xlu0 %v17791_v37, %s24092_s0  ;;  %v20500_v43 = vpop.f32.mrb[211].mxu0 }
0xbc29   :  { %v17802_v57 = vpop.permute.xlu0 %17801 }
0xbc2a   :  { %v17804_v10 = vmul.f32 %v17802_v57, %v17799_v23 }
0xbc2c   :  { %17806 = vrot.lane.b32.xlu1 %v17804_v10, %s24086_s5 }
0xbc9e   :  { %v17807_v2 = vpop.permute.xlu1 %17806 }
0xbc9f   :  { %20504 = vmatmul.mubr.msk.f32.vlgmr.msra.gmra.mrb[224].mxu1 %vm81_vm0, %v17807_v2 }
0xbca0   :  { %20512 = vmatpush3.xpose.msk.msra.mxu1 %vm81_vm0, %v21222_v45  ;;  %20513 = vmatprep.mubr.msk.f32.mxu1 %vm21281_vm4, %v24093_v39 }
0xbca1   :  { %20901 = vmatprep.subr.bf16.mxu1 %v24094_v14 }
0xbd72   :  { %v17876_v26 = vpop.f32.mrb[224].mxu1 }
0xbd73   :  { %v17880_v32 = vmul.f32 0.125, %v17876_v26  ;;  %v20505_v15 = vpop.f32.mrb[225].mxu1 }
0xbd75   :  { %20509 = vmatmul.mubr.msk.f32.vlgmr.msra.gmra.mrb[212].mxu0 %vm823_vm3, %v17880_v32 }
0xbd76   :  { %20517 = vmatpush3.msk.msra.mxu0 %vm826_vm2, %v21222_v45  ;;  %20518 = vmatprep.mubr.msk.f32.mxu0 %vm21281_vm4, %v24093_v39 }
0xbe48   :  { %v17950_v56 = vpop.f32.mrb[212].mxu0 }
0xbe49   :  { %17955 = vrot.lane.b32.xlu0 %v17950_v56, %s24092_s0  ;;  %v20510_v28 = vpop.f32.mrb[213].mxu0 }
0xbebb   :  { %v17956_v14 = vpop.permute.xlu0 %17955 }
0xbebc   :  { %v17958_v21 = vsub.f32 %v17804_v10, %v17956_v14 }
0xbebe   :  { %v17959_v35 = vmul.f32 %v17958_v21, %v17958_v21 }
0xbec0   :  { %17961 = vrot.lane.b32.xlu1 %v17959_v35, %s24086_s5 }
0xbec4   :  { %18119 = vrot.lane.b32.xlu1 %v17398_v55, %s24086_s5 }
0xbec8   :  { %18229 = vrot.lane.b32.xlu1 %v23697_v61, %s24090_s13 }
0xbf32   :  { %v17962_v24 = vpop.permute.xlu1 %17961 }
0xbf33   :  { %20514 = vmatmul.mubr.msk.f32.vlgmr.msra.gmra.mrb[226].mxu1 %vm81_vm0, %v17962_v24 }
0xbf34   :  { %20903 = vmatpush3.bf16.msra.mxu1 %v22005_v33  ;;  %20525 = vmatprep.mubr.msk.f32.mxu1 %vm21281_vm4, %v24093_v39 }
0xbf36   :  { %v18120_v48 = vpop.permute.xlu1 %18119 }
0xbf3a   :  { %v18230_v52 = vpop.permute.xlu1 %18229 }
0xbf3b   :  { %18233 = vst.msk [vmem:[#allocation4 - $0x6] sm:$0xc0] %vm18232_vm8, %v18230_v52 }
0xc006   :  { %v18031_v20 = vpop.f32.mrb[226].mxu1 }
0xc007   :  { %v18035_v49 = vmul.f32 0.125, %v18031_v20  ;;  %v20515_v51 = vpop.f32.mrb[227].mxu1 }
0xc009   :  { %20519 = vmatmul.mubr.msk.f32.vlgmr.msra.gmra.mrb[214].mxu0 %vm823_vm3, %v18035_v49 }
0xc0dc   :  { %v18105_v22 = vpop.f32.mrb[214].mxu0 }
0xc0dd   :  { %v18106_v4 = vadd.f32 1e-05, %v18105_v22  ;;  %v20520_v61 = vpop.f32.mrb[215].mxu0 }
0xc0df   :  { %21187 = vrsqrt.f32 %v18106_v4 }
0xc0e9   :  { %v21188_v46 = vpop.eup %21187 }
0xc0ea   :  { %18111 = vrot.lane.b32.xlu0 %v21188_v46, %s24092_s0  ;;  %s21224_s0 = scalar_lea.vmem %s18266_s24, 64 }
0xc0eb   :  { %p21225_p0 = scmp.ne.s32.totalorder %s18266_s24, %s21224_s0  ;;  %p21230_p2 = scmp.lt.s32.totalorder %s21224_s0, %s21224_s0 }
0xc0ed   :  { %p21231_p3 = por %p21230_p2, %p21229_p1 }
0xc0ef   :  { %p21232_p4 = pnand %p21231_p3, %p21225_p0 }
0xc15c   :  { %v18112_v33 = vpop.permute.xlu0 %18111 }
0xc15d   :  { %v18114_v16 = vmul.f32 %v18112_v33, %v17958_v21 }
0xc15f   :  { %v18115_v39 = vmul.f32 %v18114_v16, %v21983_v42 }
0xc161   :  { %v18116_v18 = vadd.f32 %v18115_v39, %v22013_v1 }
0xc163   :  { %v18117_v45 = vadd.f32 %v18116_v18, %v23890_v53 }
0xc165   :  { %v18122_v54 = vmul.f32 %v18120_v48, %v18117_v45 }
0xc167   :  { %18124 = vrot.lane.b32.xlu0 %v18122_v54, %s24086_s5 }
0xc16b   :  { %18238 = vrot.lane.b32.xlu0 %v23885_v58, %s24090_s13 }
0xc1d9   :  { %v18125_v60 = vpop.permute.xlu0 %18124 }
0xc1da   :  { %20526 = vmatmul.mubr.msk.f32.vlgmr.msra.gmra.mrb[228].mxu1 %vm81_vm0, %v18125_v60 }
0xc1dd   :  { %v18239_v0 = vpop.permute.xlu0 %18238 }
0xc1de   :  { %18243 = vst.msk [vmem:[#allocation4 + $0x2] sm:$0x3] %vm18242_vm9, %v18239_v0 }
0xc1df   :  { %21235 = shalt.err (!%p21232_p4)
}
0xc1e0   :  { %s24098_s16 = sld [smem:[#allocation22_spill]] }
0xc1e6   :  { %s21236_s13 = scalar_lea.hbm %s24098_s16, 64 }
0xc1e7   :  { %p21237_p5 = scmp.ne.s32.totalorder %s24098_s16, %s21236_s13  ;;  %p21240_p6 = scmp.lt.u32.totalorder %s21236_s13, %s24098_s16 }
0xc1e9   :  { %p21242_p7 = pnand %p21240_p6, %p21237_p5 }
0xc1eb   :  { %21245 = shalt.err (!%p21242_p7)
}
0xc1ec   :  { %s21284_s29 = smov 32   ;;  %v21223_v1 = vld [vmem:[%s24023_s21 + $0x1] ss:$0 sm:$0xff]  ;;  %s21285_s10 = smov [#allocation2]  }
0xc1ed   :  { %18271 = dma.vmem_to_hbm [thread:$0]  %s18266_s24, 64, %s24098_s16, [#allocation5], %s21284_s29, %s21284_s29, %s24088_s28  }
0xc1ee   :  { %s18249_s15 = sshll.u32 %s21285_s10, 4  ;;  %s18250_s15 = int_to_ptr.vmem [resolvable:$true] %s18249_s15 }
0xc1ef   :  { %s21246_s1 = scalar_lea.vmem %s18250_s15, 256  ;;  %p21251_p9 = scmp.lt.s32.totalorder %s18250_s15, %s18250_s15 }
0xc1f0   :  { %p21247_p8 = scmp.ne.s32.totalorder %s18250_s15, %s21246_s1  ;;  %p21252_p10 = scmp.lt.s32.totalorder %s21246_s1, %s21246_s1 }
0xc1f2   :  { %p21253_p11 = por %p21252_p10, %p21251_p9 }
0xc1f4   :  { %p21254_p12 = pnand %p21253_p11, %p21247_p8 }
0xc2ad   :  { %v18194_v42 = vpop.f32.mrb[228].mxu1 }
0xc2ae   :  { %v18195_v58 = vadd.f32 %v21223_v1, %v18194_v42  ;;  %v20527_v53 = vpop.f32.mrb[229].mxu1 }
0xc2b0   :  { %v18198_v9 = vadd.f32 %v18195_v58, %v23825_v6 }
0xc2b2   :  { %v18215_v41 = vrot.slane %v18198_v9, 2 }
0xc2b4   :  { %v18224_v5 = vsel %vm18220_vm7, %v23754_v3, %v18215_v41 }
0xc2b5   :  { %18226 = vst.msk [vmem:[#allocation2 + $0x8] sm:$0xff] %vm81_vm0, %v18224_v5 }
0xc2b6   :  { %21257 = shalt.err (!%p21254_p12)
}
0xc2b7   :  { %s24099_s4 = sld [smem:[#allocation21_spill]] }
0xc2bd   :  { %s21258_s22 = scalar_lea.hbm %s24099_s4, 256 }
0xc2be   :  { %p21259_p13 = scmp.ne.s32.totalorder %s24099_s4, %s21258_s22  ;;  %p21262_p0 = scmp.lt.u32.totalorder %s21258_s22, %s24099_s4 }
0xc2c0   :  { %p21264_p1 = pnand %p21262_p0, %p21259_p13 }
0xc2c2   :  { %21267 = shalt.err (!%p21264_p1)
}
0xc2c3   :  { %s21286_s2 = smov 128   ;;  %s21287_s27 = smov 8  }
0xc2c4   :  { %18255 = dma.vmem_to_hbm [thread:$0]  %s18250_s15, 256, %s24099_s4, [#allocation3], %s21286_s2, %s21286_s2, %s21287_s27  }
0xc2c5   :  { %21268 = dma.done.wait [#allocation3], 256  }
0xc2c6   :  { %21269 = vsyncadd [#allocation3], 4294967040 }
0xc2c7   :  { %21270 = dma.done.wait [#allocation5], 64  }
0xc2c8   :  { %21271 = vsyncadd [#allocation5], 4294967232 }
0xc2c9   :  { %18282 = vsyncpa [#allocation3], 1 }
0xc2ca   :  { %18283 = vsyncpa [#allocation5], 1 }

</bundles_post_ra>
